<compile_context>
chip_gen: v7x
topology: tpu7x:2x2x1
jax: 0.10.0
libtpu: 0.0.40
codegen_flags: <defaults>
</compile_context>

<pallas_src>
import jax
import jax.numpy as jnp
from jax import lax
from jax.experimental import pallas as pl
from jax.experimental.pallas import tpu as pltpu

# ----------------------------- configuration --------------------------------
B = 2               # batch
CIN = 3             # input channels (RGB)
H = W = 16          # spatial size of the synthetic input
NUM_FTRS = 2048     # resnet50 fc.in_features
HIDDEN = 1000       # Linear(num_ftrs, 1000)
HIDDEN_PAD = 1024   # lane-aligned padding of HIDDEN
NUM_CLASSES = 10    # Linear(1000, 10)
CLS_PAD = 128       # lane-dense padded output width
PATCH = 9 * CIN     # 27 im2col columns
PATCH_PAD = 32      # sublane-aligned padding of the patch dim
NUM_HEADS = 2       # fc1 / fc2
EPS = 1e-5          # BatchNorm eps


# --------------------------- fused forward kernel -----------------------------
def fused_kernel(patches_ref, convw_ref, w1_ref, b1_ref, w2_ref, b2_ref, o_ref):
    # ---- backbone stand-in: 3x3 conv (matmul on im2col) + ReLU + global pool --
    hw = H * W
    feat_rows = []
    for b in range(B):                                  # B is tiny & static
        acc_b = jnp.dot(patches_ref[pl.ds(b * hw, hw), :], convw_ref[...],
                        preferred_element_type=jnp.float32)   # (hw, NUM_FTRS)
        acc_b = jnp.maximum(acc_b, 0.0)                         # ReLU
        feat_rows.append(jnp.mean(acc_b, axis=0, keepdims=True))   # global avg pool
    feats = jnp.concatenate(feat_rows, axis=0).astype(jnp.bfloat16)  # (B, NUM_FTRS)

    # ---- this head (BN folded): relu(feats @ W1' + b1') @ W2' + b2' ----------
    h = jnp.dot(feats, w1_ref[0], preferred_element_type=jnp.float32)   # (B, HIDDEN_PAD)
    h = jnp.maximum(h + b1_ref[0], 0.0)
    out = jnp.dot(h.astype(jnp.bfloat16), w2_ref[0],
                  preferred_element_type=jnp.float32)                   # (B, CLS_PAD)
    o_ref[0] = out + b2_ref[0]


def run_model(patches, convw, w1_all, b1_all, w2_all, b2_all):
    return pl.pallas_call(
        fused_kernel,
        out_shape=jax.ShapeDtypeStruct((NUM_HEADS, B, CLS_PAD), jnp.float32),
        grid=(NUM_HEADS,),
        in_specs=[
            pl.BlockSpec((B * H * W, PATCH_PAD), lambda h: (0, 0)),        # im2col patches (resident)
            pl.BlockSpec((PATCH_PAD, NUM_FTRS), lambda h: (0, 0)),         # conv weight    (resident)
            pl.BlockSpec((1, NUM_FTRS, HIDDEN_PAD), lambda h: (h, 0, 0)),  # W1' bf16 stream (per head)
            pl.BlockSpec((1, 1, HIDDEN_PAD), lambda h: (h, 0, 0)),         # b1' f32
            pl.BlockSpec((1, HIDDEN_PAD, CLS_PAD), lambda h: (h, 0, 0)),   # W2' bf16 stream (per head)
            pl.BlockSpec((1, 1, CLS_PAD), lambda h: (h, 0, 0)),            # b2' f32
        ],
        out_specs=pl.BlockSpec((1, B, CLS_PAD), lambda h: (h, 0, 0)),
        compiler_params=pltpu.CompilerParams(
            dimension_semantics=("parallel",),
            vmem_limit_bytes=32 * 1024 * 1024,
        ),
    )(patches, convw, w1_all, b1_all, w2_all, b2_all)


# ------------------------------ host-side glue --------------------------------
def im2col(x_nchw):
    """NCHW (B, CIN, H, W) -> (B*H*W, PATCH_PAD) bf16 im2col patches (3x3 SAME)."""
    x_nhwc = jnp.transpose(x_nchw, (0, 2, 3, 1))                  # (B, H, W, CIN)
    x_pad = jnp.pad(x_nhwc, ((0, 0), (1, 1), (1, 1), (0, 0)))
    patches = jnp.stack(
        [x_pad[:, dy:dy + H, dx:dx + W, :] for dy in range(3) for dx in range(3)],
        axis=3,
    ).reshape(B * H * W, PATCH)
    patches = jnp.pad(patches, ((0, 0), (0, PATCH_PAD - PATCH)))
    return patches.astype(jnp.bfloat16)


def init_head_params(key):
    ks = jax.random.split(key, 12)
    g1 = 1.0 + 0.1 * jax.random.normal(ks[0], (1, NUM_FTRS), jnp.float32)
    be1 = 0.1 * jax.random.normal(ks[1], (1, NUM_FTRS), jnp.float32)
    m1 = 0.1 * jax.random.normal(ks[2], (1, NUM_FTRS), jnp.float32)
    v1 = 0.5 + jax.random.uniform(ks[3], (1, NUM_FTRS), jnp.float32)
    w1 = 0.02 * jax.random.normal(ks[4], (NUM_FTRS, HIDDEN), jnp.float32)
    b1 = 0.02 * jax.random.normal(ks[5], (1, HIDDEN), jnp.float32)
    g2 = 1.0 + 0.1 * jax.random.normal(ks[6], (1, HIDDEN), jnp.float32)
    be2 = 0.1 * jax.random.normal(ks[7], (1, HIDDEN), jnp.float32)
    m2 = 0.1 * jax.random.normal(ks[8], (1, HIDDEN), jnp.float32)
    v2 = 0.5 + jax.random.uniform(ks[9], (1, HIDDEN), jnp.float32)
    w2 = 0.05 * jax.random.normal(ks[10], (HIDDEN, NUM_CLASSES), jnp.float32)
    b2 = 0.05 * jax.random.normal(ks[11], (1, NUM_CLASSES), jnp.float32)
    return (g1, be1, m1, v1, w1, b1, g2, be2, m2, v2, w2, b2)


def _fold_head(params):
    """Fold eval-mode BN1/BN2 into the Linear layers; Dropout(0.3) is identity."""
    g1, be1, m1, v1, w1, b1, g2, be2, m2, v2, w2, b2 = params
    s1 = g1 * lax.rsqrt(v1 + EPS)                   # (1, NUM_FTRS)
    w1f = w1 * s1.T                                 # (NUM_FTRS, HIDDEN)
    b1f = b1 + (be1 - m1 * s1) @ w1                 # (1, HIDDEN)
    s2 = g2 * lax.rsqrt(v2 + EPS)                   # (1, HIDDEN)
    w2f = w2 * s2.T                                 # (HIDDEN, NUM_CLASSES)
    b2f = b2 + (be2 - m2 * s2) @ w2                 # (1, NUM_CLASSES)
    # Zero-pad to (8,128)-aligned shapes (padding contributes exactly 0).
    w1p = jnp.pad(w1f, ((0, 0), (0, HIDDEN_PAD - HIDDEN)))
    b1p = jnp.pad(b1f, ((0, 0), (0, HIDDEN_PAD - HIDDEN)))
    w2p = jnp.pad(w2f, ((0, HIDDEN_PAD - HIDDEN), (0, CLS_PAD - NUM_CLASSES)))
    b2p = jnp.pad(b2f, ((0, 0), (0, CLS_PAD - NUM_CLASSES)))
    return w1p, b1p, w2p, b2p


def pack_params(conv_w, head1_params, head2_params):
    """Done once on the host: flatten+pad conv weight, fold BN, pad, bf16-cast, stack heads."""
    convw = jnp.pad(conv_w.reshape(PATCH, NUM_FTRS),
                    ((0, PATCH_PAD - PATCH), (0, 0))).astype(jnp.bfloat16)
    w1a, b1a, w2a, b2a = _fold_head(head1_params)
    w1b, b1b, w2b, b2b = _fold_head(head2_params)
    w1_all = jnp.stack([w1a, w1b]).astype(jnp.bfloat16)        # (2, NUM_FTRS, HIDDEN_PAD)
    b1_all = jnp.stack([b1a, b1b]).reshape(2, 1, HIDDEN_PAD)   # (2, 1, HIDDEN_PAD) f32
    w2_all = jnp.stack([w2a, w2b]).astype(jnp.bfloat16)        # (2, HIDDEN_PAD, CLS_PAD)
    b2_all = jnp.stack([b2a, b2b]).reshape(2, 1, CLS_PAD)      # (2, 1, CLS_PAD) f32
    return convw, w1_all, b1_all, w2_all, b2_all


@jax.jit
def my_model_forward(x_nchw, packed):
    convw, w1_all, b1_all, w2_all, b2_all = packed
    patches = im2col(x_nchw)
    out_pad = run_model(patches, convw, w1_all, b1_all, w2_all, b2_all)  # (2, B, CLS_PAD)
    out1 = out_pad[0, :, :NUM_CLASSES]
    out2 = out_pad[1, :, :NUM_CLASSES]
    return out1, out2


# --------------------------------- main --------------------------------------
if __name__ == "__main__":
    key = jax.random.PRNGKey(0)
    k_x, k_conv, k_h1, k_h2 = jax.random.split(key, 4)

    x = jax.random.normal(k_x, (B, CIN, H, W), jnp.float32)            # NCHW input
    conv_w = 0.1 * jax.random.normal(k_conv, (3, 3, CIN, NUM_FTRS), jnp.float32)
    head1 = init_head_params(k_h1)
    head2 = init_head_params(k_h2)
    packed = pack_params(conv_w, head1, head2)   # host-side fold + pad + bf16 cast, once

    out1, out2 = my_model_forward(x, packed)
    jax.block_until_ready((out1, out2))

    assert out1.shape == (B, NUM_CLASSES) and out2.shape == (B, NUM_CLASSES)
    assert bool(jnp.all(jnp.isfinite(out1))) and bool(jnp.all(jnp.isfinite(out2)))
    print("KERNEL_OK")
</pallas_src>

<mosaic_0001>
module attributes {stable_mosaic.version = 11 : i64} {
  func.func @fused_kernel(%arg0: i32, %arg1: memref<512x32xbf16, #tpu.memory_space<vmem>>, %arg2: memref<32x2048xbf16, #tpu.memory_space<vmem>>, %arg3: memref<1x2048x1024xbf16, #tpu.memory_space<vmem>>, %arg4: memref<1x1x1024xf32, #tpu.memory_space<vmem>>, %arg5: memref<1x1024x128xbf16, #tpu.memory_space<vmem>>, %arg6: memref<1x1x128xf32, #tpu.memory_space<vmem>>, %arg7: memref<1x2x128xf32, #tpu.memory_space<vmem>>) attributes {dimension_semantics = [#tpu.dimension_semantics<parallel>], iteration_bounds = array<i64: 2>, scalar_prefetch = 0 : i64, scratch_operands = 0 : i64, tpu.core_type = #tpu.core_type<tc>, window_params = [{pipeline_mode = #tpu.pipeline_mode<synchronous>, transform_indices = @transform_0, window_bounds = array<i64: 512, 32>}, {pipeline_mode = #tpu.pipeline_mode<synchronous>, transform_indices = @transform_1, window_bounds = array<i64: 32, 2048>}, {transform_indices = @transform_2, window_bounds = array<i64: 1, 2048, 1024>}, {transform_indices = @transform_3, window_bounds = array<i64: 1, 1, 1024>}, {transform_indices = @transform_4, window_bounds = array<i64: 1, 1024, 128>}, {transform_indices = @transform_5, window_bounds = array<i64: 1, 1, 128>}, {transform_indices = @transform_6, window_bounds = array<i64: 1, 2, 128>}]} {
    %c0 = arith.constant 0 : index
    %c0_0 = arith.constant 0 : index
    %0 = vector.load %arg1[%c0, %c0_0] : memref<512x32xbf16, #tpu.memory_space<vmem>>, vector<256x32xbf16>
    %c0_1 = arith.constant 0 : index
    %c0_2 = arith.constant 0 : index
    %1 = vector.load %arg2[%c0_1, %c0_2] : memref<32x2048xbf16, #tpu.memory_space<vmem>>, vector<32x2048xbf16>
    %cst = arith.constant dense<0.000000e+00> : vector<256x2048xf32>
    %2 = tpu.matmul %0, %1, %cst {dimension_numbers = #tpu.dot_dimension_numbers<[1], [0], [0], [1], [0, 0, 1, 1], [], []>} : vector<256x32xbf16>, vector<32x2048xbf16>, vector<256x2048xf32> -> vector<256x2048xf32>
    %cst_3 = arith.constant 0.000000e+00 : f32
    %3 = vector.broadcast %cst_3 : f32 to vector<256x2048xf32>
    %4 = arith.maximumf %2, %3 : vector<256x2048xf32>
    %cst_4 = arith.constant dense<0.000000e+00> : vector<2048xf32>
    %5 = vector.multi_reduction <add>, %4, %cst_4 [0] : vector<256x2048xf32> to vector<2048xf32>
    %6 = vector.shape_cast %5 : vector<2048xf32> to vector<1x2048xf32>
    %cst_5 = arith.constant 2.560000e+02 : f32
    %7 = vector.broadcast %cst_5 : f32 to vector<1x2048xf32>
    %8 = arith.divf %6, %7 : vector<1x2048xf32>
    %c256 = arith.constant 256 : index
    %c0_6 = arith.constant 0 : index
    %9 = vector.load %arg1[%c256, %c0_6] : memref<512x32xbf16, #tpu.memory_space<vmem>>, vector<256x32xbf16>
    %c0_7 = arith.constant 0 : index
    %c0_8 = arith.constant 0 : index
    %10 = vector.load %arg2[%c0_7, %c0_8] : memref<32x2048xbf16, #tpu.memory_space<vmem>>, vector<32x2048xbf16>
    %cst_9 = arith.constant dense<0.000000e+00> : vector<256x2048xf32>
    %11 = tpu.matmul %9, %10, %cst_9 {dimension_numbers = #tpu.dot_dimension_numbers<[1], [0], [0], [1], [0, 0, 1, 1], [], []>} : vector<256x32xbf16>, vector<32x2048xbf16>, vector<256x2048xf32> -> vector<256x2048xf32>
    %cst_10 = arith.constant 0.000000e+00 : f32
    %12 = vector.broadcast %cst_10 : f32 to vector<256x2048xf32>
    %13 = arith.maximumf %11, %12 : vector<256x2048xf32>
    %cst_11 = arith.constant dense<0.000000e+00> : vector<2048xf32>
    %14 = vector.multi_reduction <add>, %13, %cst_11 [0] : vector<256x2048xf32> to vector<2048xf32>
    %15 = vector.shape_cast %14 : vector<2048xf32> to vector<1x2048xf32>
    %cst_12 = arith.constant 2.560000e+02 : f32
    %16 = vector.broadcast %cst_12 : f32 to vector<1x2048xf32>
    %17 = arith.divf %15, %16 : vector<1x2048xf32>
    %18 = tpu.concatenate %8, %17 in 0 : vector<1x2048xf32>, vector<1x2048xf32> -> vector<2x2048xf32>
    %19 = arith.truncf %18 : vector<2x2048xf32> to vector<2x2048xbf16>
    %c0_13 = arith.constant 0 : index
    %c0_14 = arith.constant 0 : index
    %c0_15 = arith.constant 0 : index
    %20 = vector.load %arg3[%c0_13, %c0_14, %c0_15] : memref<1x2048x1024xbf16, #tpu.memory_space<vmem>>, vector<1x2048x1024xbf16>
    %21 = vector.shape_cast %20 : vector<1x2048x1024xbf16> to vector<2048x1024xbf16>
    %cst_16 = arith.constant dense<0.000000e+00> : vector<2x1024xf32>
    %22 = tpu.matmul %19, %21, %cst_16 {dimension_numbers = #tpu.dot_dimension_numbers<[1], [0], [0], [1], [0, 0, 1, 1], [], []>} : vector<2x2048xbf16>, vector<2048x1024xbf16>, vector<2x1024xf32> -> vector<2x1024xf32>
    %c0_17 = arith.constant 0 : index
    %c0_18 = arith.constant 0 : index
    %c0_19 = arith.constant 0 : index
    %23 = vector.load %arg4[%c0_17, %c0_18, %c0_19] : memref<1x1x1024xf32, #tpu.memory_space<vmem>>, vector<1x1x1024xf32>
    %24 = vector.shape_cast %23 : vector<1x1x1024xf32> to vector<1x1024xf32>
    %25 = vector.broadcast %24 : vector<1x1024xf32> to vector<2x1024xf32>
    %26 = arith.addf %22, %25 : vector<2x1024xf32>
    %cst_20 = arith.constant 0.000000e+00 : f32
    %27 = vector.broadcast %cst_20 : f32 to vector<2x1024xf32>
    %28 = arith.maximumf %26, %27 : vector<2x1024xf32>
    %29 = arith.truncf %28 : vector<2x1024xf32> to vector<2x1024xbf16>
    %c0_21 = arith.constant 0 : index
    %c0_22 = arith.constant 0 : index
    %c0_23 = arith.constant 0 : index
    %30 = vector.load %arg5[%c0_21, %c0_22, %c0_23] : memref<1x1024x128xbf16, #tpu.memory_space<vmem>>, vector<1x1024x128xbf16>
    %31 = vector.shape_cast %30 : vector<1x1024x128xbf16> to vector<1024x128xbf16>
    %cst_24 = arith.constant dense<0.000000e+00> : vector<2x128xf32>
    %32 = tpu.matmul %29, %31, %cst_24 {dimension_numbers = #tpu.dot_dimension_numbers<[1], [0], [0], [1], [0, 0, 1, 1], [], []>} : vector<2x1024xbf16>, vector<1024x128xbf16>, vector<2x128xf32> -> vector<2x128xf32>
    %c0_25 = arith.constant 0 : index
    %c0_26 = arith.constant 0 : index
    %c0_27 = arith.constant 0 : index
    %33 = vector.load %arg6[%c0_25, %c0_26, %c0_27] : memref<1x1x128xf32, #tpu.memory_space<vmem>>, vector<1x1x128xf32>
    %34 = vector.shape_cast %33 : vector<1x1x128xf32> to vector<1x128xf32>
    %35 = vector.broadcast %34 : vector<1x128xf32> to vector<2x128xf32>
    %36 = arith.addf %32, %35 : vector<2x128xf32>
    %c0_28 = arith.constant 0 : index
    %c0_29 = arith.constant 0 : index
    %c0_30 = arith.constant 0 : index
    %37 = vector.load %arg7[%c0_28, %c0_29, %c0_30] : memref<1x2x128xf32, #tpu.memory_space<vmem>>, vector<1x2x128xf32>
    %38 = vector.shape_cast %37 : vector<1x2x128xf32> to vector<2x128xf32>
    %39 = vector.shape_cast %36 : vector<2x128xf32> to vector<1x2x128xf32>
    tpu.vector_store %arg7[%c0_28, %c0_29, %c0_30], %39 {strides = array<i32>} : memref<1x2x128xf32, #tpu.memory_space<vmem>>, vector<1x2x128xf32>,
    return
  }
  func.func @transform_0(%arg0: i32) -> (i32, i32) {
    %c0_i32 = arith.constant 0 : i32
    %c0_i32_0 = arith.constant 0 : i32
    %c0_i32_1 = arith.constant 0 : i32
    return %c0_i32, %c0_i32_0 : i32, i32
  }
  func.func @transform_1(%arg0: i32) -> (i32, i32) {
    %c0_i32 = arith.constant 0 : i32
    %c0_i32_0 = arith.constant 0 : i32
    %c0_i32_1 = arith.constant 0 : i32
    return %c0_i32, %c0_i32_0 : i32, i32
  }
  func.func @transform_2(%arg0: i32) -> (i32, i32, i32) {
    %c0_i32 = arith.constant 0 : i32
    %c0_i32_0 = arith.constant 0 : i32
    %c0_i32_1 = arith.constant 0 : i32
    return %arg0, %c0_i32, %c0_i32_0 : i32, i32, i32
  }
  func.func @transform_3(%arg0: i32) -> (i32, i32, i32) {
    %c0_i32 = arith.constant 0 : i32
    %c0_i32_0 = arith.constant 0 : i32
    %c0_i32_1 = arith.constant 0 : i32
    return %arg0, %c0_i32, %c0_i32_0 : i32, i32, i32
  }
  func.func @transform_4(%arg0: i32) -> (i32, i32, i32) {
    %c0_i32 = arith.constant 0 : i32
    %c0_i32_0 = arith.constant 0 : i32
    %c0_i32_1 = arith.constant 0 : i32
    return %arg0, %c0_i32, %c0_i32_0 : i32, i32, i32
  }
  func.func @transform_5(%arg0: i32) -> (i32, i32, i32) {
    %c0_i32 = arith.constant 0 : i32
    %c0_i32_0 = arith.constant 0 : i32
    %c0_i32_1 = arith.constant 0 : i32
    return %arg0, %c0_i32, %c0_i32_0 : i32, i32, i32
  }
  func.func @transform_6(%arg0: i32) -> (i32, i32, i32) {
    %c0_i32 = arith.constant 0 : i32
    %c0_i32_0 = arith.constant 0 : i32
    %c0_i32_1 = arith.constant 0 : i32
    return %arg0, %c0_i32, %c0_i32_0 : i32, i32, i32
  }
}

</mosaic_0001>

<bundles_post_ra>
// kernel: my_model_forward.1
= control target key start
LH: loop header
LB: loop body
LE: loop exit
PB: predicated region body
PF: predicated region fallthrough
CT: control target
= control target key end

     0   :  { %s20199_s0 = inlined_call_operand.vmem [shape: bf16[512,32], index: 0, kind: input, shape index: {}]   ;;  %s20200_s1 = inlined_call_operand.hbm [shape: bf16[32,2048], index: 1, kind: input, shape index: {}]   ;;  %s20201_s2 = inlined_call_operand.hbm [shape: bf16[2,2048,1024], index: 2, kind: input, shape index: {}]   ;;  %s20202_s3 = inlined_call_operand.hbm [shape: f32[2,1,1024], index: 3, kind: input, shape index: {}]   ;;  %s20203_s4 = inlined_call_operand.hbm [shape: bf16[2,1024,128], index: 4, kind: input, shape index: {}]   ;;  %s20204_s5 = inlined_call_operand.hbm [shape: f32[2,1,128], index: 5, kind: input, shape index: {}]   ;;  %s20205_s6 = inlined_call_operand.vmem [shape: f32[2,2,128], index: 6, kind: output, shape index: {}]  }
   0x1   :  { %20228 = sst [smem:[#allocation26_spill]] %s20201_s2 }
   0x2   :  { %20229 = sst [smem:[#allocation27_spill]] %s20203_s4 }
   0x3   :  { %11 = vsyncpa [#allocation3], 0 }
   0x4   :  { %12 = vsyncpa [#allocation5], 0 }
   0x5   :  { %14 = vsyncpa [#allocation5 + $0x1], 0 }
   0x6   :  { %15 = vsyncpa [#allocation8], 0 }
   0x7   :  { %17 = vsyncpa [#allocation8 + $0x1], 0  ;;  %s16693_s21 = smov 0   ;;  %s16695_s22 = smov 0  }
   0x8   :  { %s16697_s23 = smov 0   ;;  %s16699_s24 = smov 0  }
   0x9 LB: > { %s16714_s25 = sadd.s32 1, %s16645_s24   ;;  %s72_s26 = sadd.s32 1, %s16641_s23  ;;  %s16645_s24 = sphi %s16699_s24, %s20275_s24   ;;  %s16641_s23 = sphi %s16697_s23, %s20274_s23   ;;  %s16637_s22 = sphi %s16695_s22, %s20273_s22   ;;  %s16633_s21 = sphi %s16693_s21, %s20272_s21  }
   0xa   : > { %s69_s27 = ssub.s32 %s16645_s24, %s16714_s25  ;;  %p79_p0 = scmp.ne.s32.totalorder %s16641_s23, %s16637_s22 }
   0xb   : > { %p70_p1 = scmp.eq.s32.totalorder %s69_s27, 0  ;;  %p80_p2 = scmp.eq.s32.totalorder %s16645_s24, 0 }
   0xc   : > { %p16270_p3 = scmp.lt.s32.totalorder %s16645_s24, 2  ;;  %s229_s29 = sand.u32 1, %s16645_s24  }
   0xd   : > { %s16724_s28 = scalar_select %p70_p1, %s16641_s23, %s72_s26  }
   0xe   : > { %p81_p4 = por %p80_p2, %p79_p0  ;;  %s16728_s30 = sand.u32 1, %s16641_s23  }
   0xf   : > { %20230 = sst [smem:[#allocation13_spill]] %s16724_s28  ;;  %s14602_s7 = sshll.u32 %s16728_s30, 13 }
  0x10   : > { %s16029_s8 = sshll.u32 %s16645_s24, 17  ;;  %s20231_s2 = sld [smem:[#allocation26_spill]] }
  0x11   : > { %s233_s12 = scalar_lea.vmem [#allocation4], %s14602_s7  ;;  %p16737_p5 = pnand %p16270_p3, %p81_p4 }
  0x12   : > { %s240_s13 = sshll.u32 %s233_s12, 4  ;;  %s16745_s15 = scalar_lea.sflag [#allocation5], %s229_s29  ;;  %s16741_s13 = int_to_ptr.vmem [resolvable:$true] %s240_s13 }
  0x13   : > { %s20232_s14 = scalar_select %p16737_p5, 1, 0 }
  0x14   : > { %p16751_p7 = pneg %p16737_p5 }
  0x16   : > { %s16735_s11 = scalar_lea.hbm %s20231_s2, %s16029_s8  ;;  %s16460_s20 = scalar_lea.hbm %s20231_s2, 262144 }
  0x17   : > { %s16455_s16 = scalar_lea.hbm %s16735_s11, 131072  ;;  %p16461_p10 = scmp.lt.u32.totalorder %s16735_s11, %s20231_s2 }
  0x18   : > { %p16456_p6 = scmp.ne.s32.totalorder %s16735_s11, %s16455_s16  ;;  %p16462_p11 = scmp.lt.u32.totalorder %s16460_s20, %s16455_s16 }
  0x19   : > { %s20233_s17 = scalar_select %p16751_p7, 1, 0 }
  0x1a   : > { %p16458_p8 = pnand %p16751_p7, %p16456_p6  ;;  %p16463_p12 = por %p16462_p11, %p16461_p10 }
  0x1b   : > { %p16464_p13 = scmp.lt.u32.totalorder %s16455_s16, %s16735_s11 }
  0x1c   : > { %p16459_p9 = pneg %p16458_p8 }
  0x1d   : > { %p16465_p0 = por %p16464_p13, %p16463_p12 }
  0x1f   : > { %p16466_p1 = pnand %p16465_p0, %p16459_p9 }
  0x21   : > { %16469 = shalt.err (!%p16466_p1)
}
  0x22   : > { %s16470_s7 = scalar_lea.vmem %s16741_s13, 131072  ;;  %s16647_s8 = smov [#allocation4]  }
  0x23   : > { %p16471_p2 = scmp.ne.s32.totalorder %s16741_s13, %s16470_s7  ;;  %s16475_s9 = sshll.u32 %s16647_s8, 4  ;;  %s16476_s9 = int_to_ptr.vmem [resolvable:$false] %s16475_s9 }
  0x24   : > { %s16477_s10 = scalar_lea.vmem %s16476_s9, 262144  ;;  %p16478_p6 = scmp.lt.s32.totalorder %s16741_s13, %s16476_s9 }
  0x25   : > { %p16473_p3 = pnand %p16471_p2, %p16751_p7  ;;  %p16479_p8 = scmp.lt.s32.totalorder %s16477_s10, %s16470_s7 }
  0x27   : > { %p16474_p4 = pneg %p16473_p3  ;;  %p16480_p10 = por %p16479_p8, %p16478_p6 }
  0x29   : > { %p16481_p11 = pnand %p16480_p10, %p16474_p4 }
  0x2b   : > { %16484 = shalt.err (!%p16481_p11)
}
  0x2c   : > { %s16648_s12 = smov 512   ;;  %s16649_s16 = smov 32  }
  0x2d   : > { %16259 = dma.hbm_to_vmem [thread:$0]  (!%p16737_p5), %s16735_s11, 131072, %s16741_s13, %s16745_s15, %s16648_s12, %s16648_s12, %s16649_s16  }
  0x2e   : > { %s14608_s18 = sshll.u32 %s16728_s30, 9  ;;  %s16031_s19 = sshll.u32 %s16645_s24, 13 }
  0x2f   : > { %s20234_s4 = sld [smem:[#allocation27_spill]]  ;;  %s273_s7 = scalar_lea.vmem [#allocation7], %s14608_s18 }
  0x30   : > { %s280_s8 = sshll.u32 %s273_s7, 4  ;;  %s16786_s9 = scalar_lea.sflag [#allocation8], %s229_s29  ;;  %s16782_s8 = int_to_ptr.vmem [resolvable:$true] %s280_s8 }
  0x35   : > { %s16780_s27 = scalar_lea.hbm %s20234_s4, %s16031_s19  ;;  %s16490_s12 = scalar_lea.hbm %s20234_s4, 16384 }
  0x36   : > { %s16485_s10 = scalar_lea.hbm %s16780_s27, 8192  ;;  %p16491_p0 = scmp.lt.u32.totalorder %s16780_s27, %s20234_s4 }
  0x37   : > { %p16486_p9 = scmp.ne.s32.totalorder %s16780_s27, %s16485_s10  ;;  %p16492_p1 = scmp.lt.u32.totalorder %s16490_s12, %s16485_s10 }
  0x38   : > { %p16494_p3 = scmp.lt.u32.totalorder %s16485_s10, %s16780_s27 }
  0x39   : > { %p16488_p12 = pnand %p16486_p9, %p16751_p7  ;;  %p16493_p2 = por %p16492_p1, %p16491_p0 }
  0x3b   : > { %p16489_p13 = pneg %p16488_p12  ;;  %p16495_p4 = por %p16494_p3, %p16493_p2 }
  0x3d   : > { %p16496_p6 = pnand %p16495_p4, %p16489_p13 }
  0x3f   : > { %16499 = shalt.err (!%p16496_p6)
}
  0x40   : > { %s16500_s29 = scalar_lea.vmem %s16782_s8, 8192  ;;  %s16650_s18 = smov [#allocation7]  }
  0x41   : > { %p16501_p8 = scmp.ne.s32.totalorder %s16782_s8, %s16500_s29  ;;  %s16505_s20 = sshll.u32 %s16650_s18, 4  ;;  %s16506_s20 = int_to_ptr.vmem [resolvable:$false] %s16505_s20 }
  0x42   : > { %s16507_s26 = scalar_lea.vmem %s16506_s20, 16384  ;;  %p16508_p9 = scmp.lt.s32.totalorder %s16782_s8, %s16506_s20 }
  0x43   : > { %p16503_p10 = pnand %p16501_p8, %p16751_p7  ;;  %p16509_p12 = scmp.lt.s32.totalorder %s16507_s26, %s16500_s29 }
  0x45   : > { %p16504_p11 = pneg %p16503_p10  ;;  %p16510_p0 = por %p16509_p12, %p16508_p9 }
  0x47   : > { %p16511_p1 = pnand %p16510_p0, %p16504_p11 }
  0x49   : > { %16514 = shalt.err (!%p16511_p1)
}
  0x4a   : > { %s20206_s7 = smov 64   ;;  %s16652_s10 = smov 4  }
  0x4b   : > { %16265 = dma.hbm_to_vmem [thread:$0]  (!%p16737_p5), %s16780_s27, 8192, %s16782_s8, %s16786_s9, %s20206_s7, %s20206_s7, %s16652_s10  }
  0x4c   : > { %s16813_s11 = sadd.s32 4294967295, %s16645_s24   ;;  %p85_p13 = scmp.ne.s32.totalorder %s16637_s22, %s16633_s21 }
  0x4d   : > { %p20207_p2 = scmp.eq.s32.totalorder %s16813_s11, 0  ;;  %p14599_p3 = scmp.ge.s32.totalorder %s16645_s24, 1 }
  0x4e   : > { %p200_p4 = scmp.lt.s32.totalorder %s16645_s24, 3  ;;  %s16653_s27 = smov [#allocation2]  }
  0x4f   : > { %p16822_p6 = por %p20207_p2, %p85_p13  ;;  %s215_s8 = sshll.u32 %s16653_s27, 4  ;;  %s16832_s8 = int_to_ptr.vmem [resolvable:$true] %s215_s8 }
  0x50   : > { %p16826_p8 = pnand %p14599_p3, %p200_p4  ;;  %s14605_s21 = sshll.u32 %s16728_s30, 3 }
  0x51   : > { %s20235_s13 = scalar_select %p16822_p6, 1, 0 }
  0x52   : > { %s20236_s12 = scalar_select %p16826_p8, 1, 0 }
  0x53   : > { %p16252_p10 = pneg %p16826_p8  ;;  %s16030_s16 = sshll.u32 %s16645_s24, 7 }
  0x54   : > { %s16845_s20 = scalar_lea.hbm %s20202_s3, %s16030_s16  ;;  %s254_s26 = scalar_lea.vmem [#allocation6], %s14605_s21 }
  0x55   : > { %p16838_p11 = pnand %p16252_p10, %p20207_p2  ;;  %s262_s10 = sshll.u32 %s254_s26, 4  ;;  %s16847_s10 = int_to_ptr.vmem [resolvable:$true] %s262_s10 }
  0x56   : > { %s16515_s2 = scalar_lea.hbm %s20200_s1, 4096 }
  0x57   : > { %p16516_p9 = scmp.ne.s32.totalorder %s20200_s1, %s16515_s2  ;;  %p16517_p12 = pneg %p16838_p11 }
  0x58   : > { %p16522_p13 = scmp.lt.u32.totalorder %s16515_s2, %s20200_s1 }
  0x59   : > { %p16518_p0 = pnand %p16517_p12, %p16516_p9 }
  0x5b   : > { %p16519_p1 = pneg %p16518_p0 }
  0x5d   : > { %p16524_p3 = pnand %p16522_p13, %p16519_p1 }
  0x5f   : > { %16527 = shalt.err (!%p16524_p3)
}
  0x60   : > { %s16528_s21 = scalar_lea.vmem %s16832_s8, 4096  ;;  %p16536_p6 = scmp.lt.s32.totalorder %s16832_s8, %s16832_s8 }
  0x61   : > { %p16529_p4 = scmp.ne.s32.totalorder %s16832_s8, %s16528_s21  ;;  %p16537_p8 = scmp.lt.s32.totalorder %s16528_s21, %s16528_s21 }
  0x63   : > { %p16531_p10 = pnand %p16529_p4, %p16517_p12  ;;  %p16538_p5 = por %p16537_p8, %p16536_p6 }
  0x65   : > { %p16532_p2 = pneg %p16531_p10 }
  0x67   : > { %p16539_p7 = pnand %p16538_p5, %p16532_p2 }
  0x69   : > { %16542 = shalt.err (!%p16539_p7)
}
  0x6a   : > { %s16654_s4 = smov 1024   ;;  %s20238_s28 = smov 64  }
  0x6b   : > { %16255 = dma.hbm_to_vmem [thread:$0]  (!%p16838_p11), %s20200_s1, 4096, %s16832_s8, [#allocation3], %s16654_s4, %s16654_s4, %s20238_s28  }
  0x6c   : > { %s16543_s16 = scalar_lea.hbm %s16845_s20, 128  ;;  %p20239_p12 = scmp.ne.s32.totalorder %s20233_s17, 0 }
  0x6d   : > { %p16544_p9 = scmp.ne.s32.totalorder %s16845_s20, %s16543_s16  ;;  %s16548_s19 = scalar_lea.hbm %s20202_s3, 256 }
  0x6e   : > { %p16549_p7 = scmp.lt.u32.totalorder %s16845_s20, %s20202_s3  ;;  %p16550_p2 = scmp.lt.u32.totalorder %s16548_s19, %s16543_s16 }
  0x6f   : > { %p16546_p6 = pnand %p16544_p9, %p20239_p12  ;;  %p16552_p0 = scmp.lt.u32.totalorder %s16543_s16, %s16845_s20 }
  0x70   : > { %p16551_p8 = por %p16550_p2, %p16549_p7 }
  0x71   : > { %p16547_p5 = pneg %p16546_p6 }
  0x72   : > { %p16553_p1 = por %p16552_p0, %p16551_p8 }
  0x74   : > { %p16554_p13 = pnand %p16553_p1, %p16547_p5 }
  0x76   : > { %16557 = shalt.err (!%p16554_p13)
}
  0x77   : > { %s16558_s8 = scalar_lea.vmem %s16847_s10, 128  ;;  %s16655_s21 = smov [#allocation6]  }
  0x78   : > { %p16559_p11 = scmp.ne.s32.totalorder %s16847_s10, %s16558_s8  ;;  %s16563_s4 = sshll.u32 %s16655_s21, 4  ;;  %s16564_s4 = int_to_ptr.vmem [resolvable:$false] %s16563_s4 }
  0x79   : > { %s16565_s28 = scalar_lea.vmem %s16564_s4, 256  ;;  %p16566_p10 = scmp.lt.s32.totalorder %s16847_s10, %s16564_s4 }
  0x7a   : > { %p16561_p3 = pnand %p16559_p11, %p20239_p12  ;;  %p16567_p9 = scmp.lt.s32.totalorder %s16565_s28, %s16558_s8 }
  0x7c   : > { %p16562_p4 = pneg %p16561_p3  ;;  %p16568_p6 = por %p16567_p9, %p16566_p10 }
  0x7e   : > { %p16569_p7 = pnand %p16568_p6, %p16562_p4 }
  0x80   : > { %16572 = shalt.err (!%p16569_p7)
}
  0x81   : > { %p20240_p5 = scmp.ne.s32.totalorder %s20232_s14, 0  ;;  %s14611_s2 = sshll.u32 %s16645_s24, 4 }
  0x82   : > { %s16897_s26 = scalar_lea.hbm %s20204_s5, %s14611_s2  ;;  %s293_s27 = scalar_lea.vmem [#allocation9], %s16728_s30 }
  0x83   : > { %16262 = dma.hbm_to_vmem [thread:$0]  (!%p20240_p5), %s16845_s20, 128, %s16847_s10, %s16745_s15  }
  0x84   : > { %s300_s19 = sshll.u32 %s293_s27, 4  ;;  %s16573_s29 = scalar_lea.hbm %s16897_s26, 16  ;;  %s301_s19 = int_to_ptr.vmem [resolvable:$true] %s300_s19 }
  0x85   : > { %p16574_p2 = scmp.ne.s32.totalorder %s16897_s26, %s16573_s29  ;;  %s16578_s24 = scalar_lea.hbm %s20204_s5, 32 }
  0x86   : > { %p16579_p1 = scmp.lt.u32.totalorder %s16897_s26, %s20204_s5  ;;  %p16580_p13 = scmp.lt.u32.totalorder %s16578_s24, %s16573_s29 }
  0x87   : > { %p16576_p8 = pnand %p16574_p2, %p20239_p12  ;;  %p16582_p3 = scmp.lt.u32.totalorder %s16573_s29, %s16897_s26 }
  0x88   : > { %p16581_p11 = por %p16580_p13, %p16579_p1 }
  0x89   : > { %p16577_p0 = pneg %p16576_p8 }
  0x8a   : > { %p16583_p4 = por %p16582_p3, %p16581_p11 }
  0x8c   : > { %p16584_p10 = pnand %p16583_p4, %p16577_p0 }
  0x8e   : > { %16587 = shalt.err (!%p16584_p10)
}
  0x8f   : > { %s16588_s30 = scalar_lea.vmem %s301_s19, 16  ;;  %s16656_s8 = smov [#allocation9]  }
  0x90   : > { %p16589_p9 = scmp.ne.s32.totalorder %s301_s19, %s16588_s30  ;;  %s16593_s21 = sshll.u32 %s16656_s8, 4  ;;  %s16594_s21 = int_to_ptr.vmem [resolvable:$false] %s16593_s21 }
  0x91   : > { %s16595_s4 = scalar_lea.vmem %s16594_s21, 32  ;;  %p16596_p2 = scmp.lt.s32.totalorder %s301_s19, %s16594_s21 }
  0x92   : > { %p16591_p6 = pnand %p16589_p9, %p20239_p12  ;;  %p16597_p8 = scmp.lt.s32.totalorder %s16595_s4, %s16588_s30 }
  0x94   : > { %p16592_p7 = pneg %p16591_p6  ;;  %p16598_p5 = por %p16597_p8, %p16596_p2 }
  0x96   : > { %p16599_p1 = pnand %p16598_p5, %p16592_p7 }
  0x98   : > { %16602 = shalt.err (!%p16599_p1)
}
  0x99   : > { %p20241_p13 = scmp.ne.s32.totalorder %s20232_s14, 0  ;;  %p20242_p0 = scmp.ne.s32.totalorder %s20236_s12, 0 }
  0x9b   : > { %16268 = dma.hbm_to_vmem [thread:$0]  (!%p20241_p13), %s16897_s26, 16, %s301_s19, %s16786_s9  }
  0x9c   : > { %309 = sbr.rel (%p20242_p0) target bundleno = 2611 (0xa33), region = 44 }
  0xa3   : > { %p20243_p12 = scmp.eq.s32.totalorder %s16813_s11, 0 }
  0xa5   : > { %16620 = dma.done.wait (%p20243_p12), [#allocation3], 4096   ;;  %p20244_p11 = pmov %p20243_p12 }
  0xa6   : > { %s315_s17 = sand.u32 1, %s16813_s11   ;;  %s16926_s28 = sand.u32 1, %s16637_s22  }
  0xa7   : > { %16622 = vsyncadd (%p20244_p11), [#allocation3], 4294963200  ;;  %s14614_s14 = sshll.u32 %s16926_s28, 13  ;;  %s316_s2 = scalar_lea.sflag [#allocation5], %s315_s17 }
  0xa8   : > { %s16929_s7 = scalar_lea.vmem [#allocation4], %s14614_s14  ;;  %p20245_p5 = scmp.ne.s32.totalorder %s20235_s13, 0 }
  0xaa   : > { %16624 = dma.done.wait (%p20245_p5), %s316_s2, 131200  }
  0xab   : > { %16626 = vsyncadd (%p20245_p5), %s316_s2, 4294836096  ;;  %s14615_s9 = sshll.u32 %s16926_s28, 3  ;;  %s14616_s12 = sshll.u32 %s16926_s28, 9 }
  0xac   : > { %s16937_s16 = scalar_lea.vmem [#allocation6], %s14615_s9  ;;  %s334_s26 = scalar_lea.sflag [#allocation8], %s315_s17 }
  0xad   : > { %s16939_s27 = scalar_lea.vmem [#allocation7], %s14616_s12 }
  0xae   : > { %16628 = dma.done.wait (%p20245_p5), %s334_s26, 8208  }
  0xaf   : > { %16630 = vsyncadd (%p20245_p5), %s334_s26, 4294959088  ;;  %v20214_v0 = vmov 0   ;;  %v424_v1 = vld [vmem:[#allocation2] sm:$0xff]  ;;  %v425_v3 = vld [vmem:[#allocation2 + $0x8] sm:$0xff]  ;;  %vm696_vm0 = vcmask 261120   ;;  %vm6234_vm1 = vcmask 1040384  }
  0xb0   : > { %777 = vmatprep.mubr.bf16.mxu0 %v20214_v0  ;;  %970 = vmatprep.mubr.bf16.mxu1 %v20214_v0  ;;  %v432_v2 = vld [vmem:[#allocation2 + $0x40] sm:$0xff]  ;;  %v433_v5 = vld [vmem:[#allocation2 + $0x48] sm:$0xff]  ;;  %v426_v15 = vld [vmem:[#allocation2 + $0x10] sm:$0xff]  ;;  %p387_p3 = scmp.lt.s32.totalorder %s16813_s11, 1 }
  0xb1   : > { %v16947_v4 = vcombine.high %v424_v1, %v432_v2  ;;  %v16949_v6 = vcombine.low %v424_v1, %v432_v2  ;;  %v440_v7 = vld [vmem:[#allocation2 + $0x80] sm:$0xff]  ;;  %v16951_v9 = vcombine.high %v425_v3, %v433_v5  ;;  %v16953_v10 = vcombine.low %v425_v3, %v433_v5  ;;  %v441_v12 = vld [vmem:[#allocation2 + $0x88] sm:$0xff]  ;;  %v434_v17 = vld [vmem:[#allocation2 + $0x50] sm:$0xff] }
  0xb2   : > { %v448_v8 = vld [vmem:[#allocation2 + $0xc0] sm:$0xff]  ;;  %v449_v13 = vld [vmem:[#allocation2 + $0xc8] sm:$0xff]  ;;  %v427_v18 = vld [vmem:[#allocation2 + $0x18] sm:$0xff]  ;;  %v16968_v21 = vcombine.high %v426_v15, %v434_v17  ;;  %v16979_v24 = vcombine.low %v426_v15, %v434_v17  ;;  %s20277_s11 = smov (!%p387_p3, %s16813_s11), 1 }
  0xb3   : > { %v16955_v11 = vcombine.high %v440_v7, %v448_v8  ;;  %745 = vmatprep.subr.bf16.mxu0 %v16947_v4  ;;  %v16958_v14 = vcombine.high %v441_v12, %v449_v13  ;;  %938 = vmatprep.subr.bf16.mxu1 %v16951_v9  ;;  %v16962_v16 = vcombine.low %v440_v7, %v448_v8  ;;  %v435_v19 = vld [vmem:[#allocation2 + $0x58] sm:$0xff]  ;;  %v16976_v23 = vld [vmem:[%s20199_s0] sm:$0xff]   ;;  %v442_v26 = vld [vmem:[#allocation2 + $0x90] sm:$0xff] }
  0xb4   : > { %746 = vmatpush1.bf16.msra.mxu0 %v16949_v6  ;;  %939 = vmatpush1.bf16.msra.mxu1 %v16953_v10  ;;  %v16966_v20 = vcombine.low %v441_v12, %v449_v13  ;;  %v16971_v22 = vcombine.high %v427_v18, %v435_v19  ;;  %v16983_v25 = vcombine.low %v427_v18, %v435_v19  ;;  %v450_v27 = vld [vmem:[#allocation2 + $0xd0] sm:$0xff]  ;;  %v443_v28 = vld [vmem:[#allocation2 + $0x98] sm:$0xff]  ;;  %v17001_v32 = vld [vmem:[%s20199_s0 + $0x8] sm:$0xff]  }
  0xb5   : > { %747 = vmatprep.subr.bf16.mxu0 %v16955_v11  ;;  %940 = vmatprep.subr.bf16.mxu1 %v16958_v14  ;;  %v16994_v29 = vcombine.low %v442_v26, %v450_v27  ;;  %v16996_v30 = vcombine.high %v442_v26, %v450_v27  ;;  %v451_v31 = vld [vmem:[#allocation2 + $0xd8] sm:$0xff]  ;;  %v17020_v35 = vld [vmem:[%s20199_s0 + $0x10] sm:$0xff]   ;;  %v428_v36 = vld [vmem:[#allocation2 + $0x20] sm:$0xff] }
  0xb6   : > { %v17003_v33 = vcombine.low %v443_v28, %v451_v31  ;;  %v17005_v34 = vcombine.high %v443_v28, %v451_v31  ;;  %v436_v37 = vld [vmem:[#allocation2 + $0x60] sm:$0xff]  ;;  %v429_v40 = vld [vmem:[#allocation2 + $0x28] sm:$0xff]  ;;  %v17041_v44 = vld [vmem:[%s20199_s0 + $0x18] sm:$0xff]  }
  0xb7   : > { %v17022_v38 = vcombine.low %v428_v36, %v436_v37  ;;  %v17024_v39 = vcombine.high %v428_v36, %v436_v37  ;;  %v437_v41 = vld [vmem:[#allocation2 + $0x68] sm:$0xff]  ;;  %v17052_v45 = vld [vmem:[%s20199_s0 + $0x20] sm:$0xff]   ;;  %v17074_v47 = vld [vmem:[%s20199_s0 + $0x30] sm:$0xff]  }
  0xb8   : > { %748 = vmatpush1.bf16.msra.mxu0 %v16962_v16  ;;  %941 = vmatpush1.bf16.msra.mxu1 %v16966_v20  ;;  %v17026_v42 = vcombine.low %v429_v40, %v437_v41  ;;  %v17028_v43 = vcombine.high %v429_v40, %v437_v41  ;;  %v17063_v46 = vld [vmem:[%s20199_s0 + $0x28] sm:$0xff]   ;;  %v17085_v48 = vld [vmem:[%s20199_s0 + $0x38] sm:$0xff]   ;;  %v17096_v49 = vld [vmem:[%s20199_s0 + $0x40] sm:$0xff]  }
  0xb9   : > { %1131 = vmatprep.subr.bf16.mxu0 %v16968_v21  ;;  %1324 = vmatprep.subr.bf16.mxu1 %v16971_v22  ;;  %v17107_v50 = vld [vmem:[%s20199_s0 + $0x48] sm:$0xff]   ;;  %v17118_v51 = vld [vmem:[%s20199_s0 + $0x50] sm:$0xff]   ;;  %v17129_v52 = vld [vmem:[%s20199_s0 + $0x58] sm:$0xff]  }
  0xba   : > { %v17140_v53 = vld [vmem:[%s20199_s0 + $0x60] sm:$0xff]   ;;  %v17151_v54 = vld [vmem:[%s20199_s0 + $0x68] sm:$0xff]   ;;  %v17162_v55 = vld [vmem:[%s20199_s0 + $0x70] sm:$0xff]  }
  0xbb   : > { %14666 = vmatmul.mubr.msk.bf16.vlgmr.msra.gmra.mrb[0].mxu0 %vm696_vm0, %v16976_v23  ;;  %14682 = vmatmul.mubr.msk.bf16.vlgmr.msra.gmra.mrb[0].mxu1 %vm696_vm0, %v16976_v23  ;;  %v17173_v56 = vld [vmem:[%s20199_s0 + $0x78] sm:$0xff]   ;;  %v444_v57 = vld [vmem:[#allocation2 + $0xa0] sm:$0xff]  ;;  %v445_v59 = vld [vmem:[#allocation2 + $0xa8] sm:$0xff] }
  0xbc   : > { %1132 = vmatpush1.bf16.msra.mxu0 %v16979_v24  ;;  %1325 = vmatpush1.bf16.msra.mxu1 %v16983_v25  ;;  %v452_v58 = vld [vmem:[#allocation2 + $0xe0] sm:$0xff]  ;;  %v453_v60 = vld [vmem:[#allocation2 + $0xe8] sm:$0xff]  ;;  %v430_v2 = vld [vmem:[#allocation2 + $0x30] sm:$0xff] }
  0xbd   : > { %787 = vmatprep.mubr.bf16.mxu0 %v20214_v0  ;;  %980 = vmatprep.mubr.bf16.mxu1 %v20214_v0  ;;  %v17181_v61 = vcombine.high %v444_v57, %v452_v58  ;;  %v17185_v62 = vcombine.high %v445_v59, %v453_v60  ;;  %v17190_v63 = vcombine.low %v444_v57, %v452_v58  ;;  %v438_v3 = vld [vmem:[#allocation2 + $0x70] sm:$0xff]  ;;  %v431_v5 = vld [vmem:[#allocation2 + $0x38] sm:$0xff] }
  0xbe   : > { %1133 = vmatprep.subr.bf16.mxu0 %v16996_v30  ;;  %1326 = vmatprep.subr.bf16.mxu1 %v17005_v34  ;;  %v17194_v1 = vcombine.low %v445_v59, %v453_v60  ;;  %v17198_v7 = vcombine.low %v430_v2, %v438_v3  ;;  %v17200_v8 = vcombine.high %v430_v2, %v438_v3  ;;  %v439_v12 = vld [vmem:[#allocation2 + $0x78] sm:$0xff] }
  0xbf   : > { %v17203_v13 = vcombine.low %v431_v5, %v439_v12  ;;  %v17205_v15 = vcombine.high %v431_v5, %v439_v12 }
  0xc0   : > { %1134 = vmatpush1.bf16.msra.mxu0 %v16994_v29  ;;  %1327 = vmatpush1.bf16.msra.mxu1 %v17003_v33  ;;  %20246 = vst [vmem:[#allocation14_spill] sm:$0xff] %v17198_v7  ;;  %20247 = vst [vmem:[#allocation15_spill] sm:$0xff] %v17200_v8 }
  0xc1   : > { %1517 = vmatprep.subr.bf16.mxu0 %v17024_v39  ;;  %1710 = vmatprep.subr.bf16.mxu1 %v17028_v43  ;;  %20248 = vst [vmem:[#allocation16_spill] sm:$0xff] %v17203_v13  ;;  %20249 = vst [vmem:[#allocation17_spill] sm:$0xff] %v17205_v15 }
  0xc3   : > { %14667 = vmatmul.mubr.msk.bf16.gmra.mrb[4].mxu0 %vm696_vm0, %v17001_v32  ;;  %14683 = vmatmul.mubr.msk.bf16.gmra.mrb[4].mxu1 %vm696_vm0, %v17001_v32 }
  0xc4   : > { %797 = vmatprep.mubr.bf16.mxu0 %v20214_v0  ;;  %990 = vmatprep.mubr.bf16.mxu1 %v20214_v0 }
  0xcb   : > { %14668 = vmatmul.mubr.msk.bf16.gmra.mrb[8].mxu0 %vm696_vm0, %v17020_v35  ;;  %14684 = vmatmul.mubr.msk.bf16.gmra.mrb[8].mxu1 %vm696_vm0, %v17020_v35 }
  0xcc   : > { %807 = vmatprep.mubr.bf16.mxu0 %v20214_v0  ;;  %1000 = vmatprep.mubr.bf16.mxu1 %v20214_v0 }
  0xd3   : > { %14669 = vmatmul.mubr.msk.bf16.gmra.mrb[12].mxu0 %vm696_vm0, %v17041_v44  ;;  %14685 = vmatmul.mubr.msk.bf16.gmra.mrb[12].mxu1 %vm696_vm0, %v17041_v44 }
  0xd4   : > { %817 = vmatprep.mubr.bf16.mxu0 %v20214_v0  ;;  %1010 = vmatprep.mubr.bf16.mxu1 %v20214_v0 }
  0xdb   : > { %14670 = vmatmul.mubr.msk.bf16.gmra.mrb[16].mxu0 %vm696_vm0, %v17052_v45  ;;  %14686 = vmatmul.mubr.msk.bf16.gmra.mrb[16].mxu1 %vm696_vm0, %v17052_v45 }
  0xdc   : > { %827 = vmatprep.mubr.bf16.mxu0 %v20214_v0  ;;  %1020 = vmatprep.mubr.bf16.mxu1 %v20214_v0 }
  0xe3   : > { %14671 = vmatmul.mubr.msk.bf16.gmra.mrb[20].mxu0 %vm696_vm0, %v17063_v46  ;;  %14687 = vmatmul.mubr.msk.bf16.gmra.mrb[20].mxu1 %vm696_vm0, %v17063_v46 }
  0xe4   : > { %837 = vmatprep.mubr.bf16.mxu0 %v20214_v0  ;;  %1030 = vmatprep.mubr.bf16.mxu1 %v20214_v0 }
  0xeb   : > { %14672 = vmatmul.mubr.msk.bf16.gmra.mrb[24].mxu0 %vm696_vm0, %v17074_v47  ;;  %14688 = vmatmul.mubr.msk.bf16.gmra.mrb[24].mxu1 %vm696_vm0, %v17074_v47 }
  0xec   : > { %847 = vmatprep.mubr.bf16.mxu0 %v20214_v0  ;;  %1040 = vmatprep.mubr.bf16.mxu1 %v20214_v0 }
  0xf3   : > { %14673 = vmatmul.mubr.msk.bf16.gmra.mrb[28].mxu0 %vm696_vm0, %v17085_v48  ;;  %14689 = vmatmul.mubr.msk.bf16.gmra.mrb[28].mxu1 %vm696_vm0, %v17085_v48 }
  0xf4   : > { %857 = vmatprep.mubr.bf16.mxu0 %v20214_v0  ;;  %1050 = vmatprep.mubr.bf16.mxu1 %v20214_v0 }
  0xfb   : > { %14674 = vmatmul.mubr.msk.bf16.gmra.mrb[32].mxu0 %vm696_vm0, %v17096_v49  ;;  %14690 = vmatmul.mubr.msk.bf16.gmra.mrb[32].mxu1 %vm696_vm0, %v17096_v49 }
  0xfc   : > { %867 = vmatprep.mubr.bf16.mxu0 %v20214_v0  ;;  %1060 = vmatprep.mubr.bf16.mxu1 %v20214_v0 }
 0x103   : > { %14675 = vmatmul.mubr.msk.bf16.gmra.mrb[36].mxu0 %vm696_vm0, %v17107_v50  ;;  %14691 = vmatmul.mubr.msk.bf16.gmra.mrb[36].mxu1 %vm696_vm0, %v17107_v50 }
 0x104   : > { %877 = vmatprep.mubr.bf16.mxu0 %v20214_v0  ;;  %1070 = vmatprep.mubr.bf16.mxu1 %v20214_v0 }
 0x10b   : > { %14676 = vmatmul.mubr.msk.bf16.gmra.mrb[40].mxu0 %vm696_vm0, %v17118_v51  ;;  %14692 = vmatmul.mubr.msk.bf16.gmra.mrb[40].mxu1 %vm696_vm0, %v17118_v51 }
 0x10c   : > { %887 = vmatprep.mubr.bf16.mxu0 %v20214_v0  ;;  %1080 = vmatprep.mubr.bf16.mxu1 %v20214_v0 }
 0x113   : > { %14677 = vmatmul.mubr.msk.bf16.gmra.mrb[44].mxu0 %vm696_vm0, %v17129_v52  ;;  %14693 = vmatmul.mubr.msk.bf16.gmra.mrb[44].mxu1 %vm696_vm0, %v17129_v52 }
 0x114   : > { %897 = vmatprep.mubr.bf16.mxu0 %v20214_v0  ;;  %1090 = vmatprep.mubr.bf16.mxu1 %v20214_v0 }
 0x11b   : > { %14678 = vmatmul.mubr.msk.bf16.gmra.mrb[48].mxu0 %vm696_vm0, %v17140_v53  ;;  %14694 = vmatmul.mubr.msk.bf16.gmra.mrb[48].mxu1 %vm696_vm0, %v17140_v53 }
 0x11c   : > { %907 = vmatprep.mubr.bf16.mxu0 %v20214_v0  ;;  %1100 = vmatprep.mubr.bf16.mxu1 %v20214_v0 }
 0x123   : > { %14679 = vmatmul.mubr.msk.bf16.gmra.mrb[52].mxu0 %vm696_vm0, %v17151_v54  ;;  %14695 = vmatmul.mubr.msk.bf16.gmra.mrb[52].mxu1 %vm696_vm0, %v17151_v54 }
 0x124   : > { %917 = vmatprep.mubr.bf16.mxu0 %v20214_v0  ;;  %1110 = vmatprep.mubr.bf16.mxu1 %v20214_v0 }
 0x12b   : > { %14680 = vmatmul.mubr.msk.bf16.gmra.mrb[56].mxu0 %vm696_vm0, %v17162_v55  ;;  %14696 = vmatmul.mubr.msk.bf16.gmra.mrb[56].mxu1 %vm696_vm0, %v17162_v55 }
 0x12c   : > { %927 = vmatprep.mubr.bf16.mxu0 %v20214_v0  ;;  %1120 = vmatprep.mubr.bf16.mxu1 %v20214_v0 }
 0x133   : > { %14681 = vmatmul.mubr.msk.bf16.gmra.mrb[60].mxu0 %vm696_vm0, %v17173_v56  ;;  %14697 = vmatmul.mubr.msk.bf16.gmra.mrb[60].mxu1 %vm696_vm0, %v17173_v56 }
 0x134   : > { %1163 = vmatprep.mubr.bf16.mxu0 %v20214_v0  ;;  %1356 = vmatprep.mubr.bf16.mxu1 %v20214_v0 }
 0x13b   : > { %14698 = vmatmul.mubr.msk.bf16.vlgmr.msra.gmra.mrb[64].mxu0 %vm696_vm0, %v16976_v23  ;;  %14714 = vmatmul.mubr.msk.bf16.vlgmr.msra.gmra.mrb[64].mxu1 %vm696_vm0, %v16976_v23 }
 0x13c   : > { %1518 = vmatpush1.bf16.msra.mxu0 %v17022_v38  ;;  %1711 = vmatpush1.bf16.msra.mxu1 %v17026_v42 }
 0x13d   : > { %1173 = vmatprep.mubr.bf16.mxu0 %v20214_v0  ;;  %1366 = vmatprep.mubr.bf16.mxu1 %v20214_v0 }
 0x13e   : > { %1519 = vmatprep.subr.bf16.mxu0 %v17181_v61  ;;  %1712 = vmatprep.subr.bf16.mxu1 %v17185_v62 }
 0x140   : > { %1520 = vmatpush1.bf16.msra.mxu0 %v17190_v63  ;;  %1713 = vmatpush1.bf16.msra.mxu1 %v17194_v1 }
 0x141   : > { %1903 = vmatprep.subr.bf16.mxu0 %v17200_v8  ;;  %2096 = vmatprep.subr.bf16.mxu1 %v17205_v15 }
 0x143   : > { %14699 = vmatmul.mubr.msk.bf16.gmra.mrb[68].mxu0 %vm696_vm0, %v17001_v32  ;;  %14715 = vmatmul.mubr.msk.bf16.gmra.mrb[68].mxu1 %vm696_vm0, %v17001_v32 }
 0x144   : > { %1183 = vmatprep.mubr.bf16.mxu0 %v20214_v0  ;;  %1376 = vmatprep.mubr.bf16.mxu1 %v20214_v0 }
 0x14b   : > { %14700 = vmatmul.mubr.msk.bf16.gmra.mrb[72].mxu0 %vm696_vm0, %v17020_v35  ;;  %14716 = vmatmul.mubr.msk.bf16.gmra.mrb[72].mxu1 %vm696_vm0, %v17020_v35 }
 0x14c   : > { %1193 = vmatprep.mubr.bf16.mxu0 %v20214_v0  ;;  %1386 = vmatprep.mubr.bf16.mxu1 %v20214_v0 }
 0x153   : > { %14701 = vmatmul.mubr.msk.bf16.gmra.mrb[76].mxu0 %vm696_vm0, %v17041_v44  ;;  %14717 = vmatmul.mubr.msk.bf16.gmra.mrb[76].mxu1 %vm696_vm0, %v17041_v44 }
 0x154   : > { %1203 = vmatprep.mubr.bf16.mxu0 %v20214_v0  ;;  %1396 = vmatprep.mubr.bf16.mxu1 %v20214_v0 }
 0x15b   : > { %14702 = vmatmul.mubr.msk.bf16.gmra.mrb[80].mxu0 %vm696_vm0, %v17052_v45  ;;  %14718 = vmatmul.mubr.msk.bf16.gmra.mrb[80].mxu1 %vm696_vm0, %v17052_v45 }
 0x15c   : > { %1213 = vmatprep.mubr.bf16.mxu0 %v20214_v0  ;;  %1406 = vmatprep.mubr.bf16.mxu1 %v20214_v0 }
 0x163   : > { %14703 = vmatmul.mubr.msk.bf16.gmra.mrb[84].mxu0 %vm696_vm0, %v17063_v46  ;;  %14719 = vmatmul.mubr.msk.bf16.gmra.mrb[84].mxu1 %vm696_vm0, %v17063_v46 }
 0x164   : > { %1223 = vmatprep.mubr.bf16.mxu0 %v20214_v0  ;;  %1416 = vmatprep.mubr.bf16.mxu1 %v20214_v0 }
 0x16b   : > { %14704 = vmatmul.mubr.msk.bf16.gmra.mrb[88].mxu0 %vm696_vm0, %v17074_v47  ;;  %14720 = vmatmul.mubr.msk.bf16.gmra.mrb[88].mxu1 %vm696_vm0, %v17074_v47 }
 0x16c   : > { %1233 = vmatprep.mubr.bf16.mxu0 %v20214_v0  ;;  %1426 = vmatprep.mubr.bf16.mxu1 %v20214_v0 }
 0x173   : > { %14705 = vmatmul.mubr.msk.bf16.gmra.mrb[92].mxu0 %vm696_vm0, %v17085_v48  ;;  %14721 = vmatmul.mubr.msk.bf16.gmra.mrb[92].mxu1 %vm696_vm0, %v17085_v48 }
 0x174   : > { %1243 = vmatprep.mubr.bf16.mxu0 %v20214_v0  ;;  %1436 = vmatprep.mubr.bf16.mxu1 %v20214_v0 }
 0x17b   : > { %14706 = vmatmul.mubr.msk.bf16.gmra.mrb[96].mxu0 %vm696_vm0, %v17096_v49  ;;  %14722 = vmatmul.mubr.msk.bf16.gmra.mrb[96].mxu1 %vm696_vm0, %v17096_v49 }
 0x17c   : > { %1253 = vmatprep.mubr.bf16.mxu0 %v20214_v0  ;;  %1446 = vmatprep.mubr.bf16.mxu1 %v20214_v0 }
 0x183   : > { %14707 = vmatmul.mubr.msk.bf16.gmra.mrb[100].mxu0 %vm696_vm0, %v17107_v50  ;;  %14723 = vmatmul.mubr.msk.bf16.gmra.mrb[100].mxu1 %vm696_vm0, %v17107_v50 }
 0x184   : > { %1263 = vmatprep.mubr.bf16.mxu0 %v20214_v0  ;;  %1456 = vmatprep.mubr.bf16.mxu1 %v20214_v0 }
 0x18b   : > { %14708 = vmatmul.mubr.msk.bf16.gmra.mrb[104].mxu0 %vm696_vm0, %v17118_v51  ;;  %14724 = vmatmul.mubr.msk.bf16.gmra.mrb[104].mxu1 %vm696_vm0, %v17118_v51 }
 0x18c   : > { %1273 = vmatprep.mubr.bf16.mxu0 %v20214_v0  ;;  %1466 = vmatprep.mubr.bf16.mxu1 %v20214_v0 }
 0x18e   : > { %v779_v17 = vpop.f32.mrb[0].mxu0  ;;  %v972_v18 = vpop.f32.mrb[0].mxu1 }
 0x18f   : > { %v781_v19 = vpop.f32.mrb[1].mxu0  ;;  %v2291_v23 = vmax.f32 %v972_v18, 0.0  ;;  %v974_v26 = vpop.f32.mrb[1].mxu1  ;;  %v2289_v28 = vmax.f32 %v779_v17, 0.0 }
 0x190   : > { %v783_v27 = vpop.f32.mrb[2].mxu0  ;;  %v2292_v31 = vmax.f32 %v974_v26, 0.0  ;;  %v976_v35 = vpop.f32.mrb[2].mxu1  ;;  %v2290_v37 = vmax.f32 %v781_v19, 0.0 }
 0x191   : > { %v2305_v32 = vmax.f32 %v783_v27, 0.0  ;;  %v785_v36 = vpop.f32.mrb[3].mxu0  ;;  %v2307_v40 = vmax.f32 %v976_v35, 0.0  ;;  %v978_v44 = vpop.f32.mrb[3].mxu1 }
 0x192   : > { %v2306_v41 = vmax.f32 %v785_v36, 0.0  ;;  %v2308_v46 = vmax.f32 %v978_v44, 0.0 }
 0x193   : > { %v2801_v45 = vadd.f32 %v2305_v32, %v2289_v28  ;;  %14709 = vmatmul.mubr.msk.bf16.gmra.mrb[108].mxu0 %vm696_vm0, %v17129_v52  ;;  %v2875_v47 = vadd.f32 %v2307_v40, %v2291_v23  ;;  %14725 = vmatmul.mubr.msk.bf16.gmra.mrb[108].mxu1 %vm696_vm0, %v17129_v52 }
 0x194   : > { %v2838_v48 = vadd.f32 %v2306_v41, %v2290_v37  ;;  %1283 = vmatprep.mubr.bf16.mxu0 %v20214_v0  ;;  %v2912_v49 = vadd.f32 %v2308_v46, %v2292_v31  ;;  %1476 = vmatprep.mubr.bf16.mxu1 %v20214_v0 }
 0x196   : > { %v789_v50 = vpop.f32.mrb[4].mxu0  ;;  %v982_v57 = vpop.f32.mrb[4].mxu1 }
 0x197   : > { %v2321_v51 = vmax.f32 %v789_v50, 0.0  ;;  %v791_v58 = vpop.f32.mrb[5].mxu0  ;;  %v2323_v59 = vmax.f32 %v982_v57, 0.0  ;;  %v984_v2 = vpop.f32.mrb[5].mxu1 }
 0x198   : > { %v2322_v60 = vmax.f32 %v791_v58, 0.0  ;;  %v793_v3 = vpop.f32.mrb[6].mxu0  ;;  %v2324_v12 = vmax.f32 %v984_v2, 0.0  ;;  %v986_v18 = vpop.f32.mrb[6].mxu1 }
 0x199   : > { %v2802_v5 = vadd.f32 %v2801_v45, %v2321_v51  ;;  %v2337_v17 = vmax.f32 %v793_v3, 0.0  ;;  %v795_v19 = vpop.f32.mrb[7].mxu0  ;;  %v2876_v23 = vadd.f32 %v2875_v47, %v2323_v59  ;;  %v2339_v26 = vmax.f32 %v986_v18, 0.0  ;;  %v988_v28 = vpop.f32.mrb[7].mxu1 }
 0x19a   : > { %v2839_v52 = vadd.f32 %v2838_v48, %v2322_v60  ;;  %v2338_v27 = vmax.f32 %v795_v19, 0.0  ;;  %v2913_v31 = vadd.f32 %v2912_v49, %v2324_v12  ;;  %v2340_v35 = vmax.f32 %v988_v28, 0.0 }
 0x19b   : > { %v2803_v32 = vadd.f32 %v2802_v5, %v2337_v17  ;;  %14710 = vmatmul.mubr.msk.bf16.gmra.mrb[112].mxu0 %vm696_vm0, %v17140_v53  ;;  %v2877_v36 = vadd.f32 %v2876_v23, %v2339_v26  ;;  %14726 = vmatmul.mubr.msk.bf16.gmra.mrb[112].mxu1 %vm696_vm0, %v17140_v53 }
 0x19c   : > { %v2840_v37 = vadd.f32 %v2839_v52, %v2338_v27  ;;  %1293 = vmatprep.mubr.bf16.mxu0 %v20214_v0  ;;  %v2914_v40 = vadd.f32 %v2913_v31, %v2340_v35  ;;  %1486 = vmatprep.mubr.bf16.mxu1 %v20214_v0 }
 0x19e   : > { %v799_v41 = vpop.f32.mrb[8].mxu0  ;;  %v992_v45 = vpop.f32.mrb[8].mxu1 }
 0x19f   : > { %v2353_v44 = vmax.f32 %v799_v41, 0.0  ;;  %v801_v46 = vpop.f32.mrb[9].mxu0  ;;  %v2355_v47 = vmax.f32 %v992_v45, 0.0  ;;  %v994_v49 = vpop.f32.mrb[9].mxu1 }
 0x1a0   : > { %v2354_v48 = vmax.f32 %v801_v46, 0.0  ;;  %v803_v50 = vpop.f32.mrb[10].mxu0  ;;  %v2356_v57 = vmax.f32 %v994_v49, 0.0  ;;  %v996_v59 = vpop.f32.mrb[10].mxu1 }
 0x1a1   : > { %v2804_v51 = vadd.f32 %v2803_v32, %v2353_v44  ;;  %v2369_v58 = vmax.f32 %v803_v50, 0.0  ;;  %v805_v60 = vpop.f32.mrb[11].mxu0  ;;  %v2878_v2 = vadd.f32 %v2877_v36, %v2355_v47  ;;  %v2371_v3 = vmax.f32 %v996_v59, 0.0  ;;  %v998_v12 = vpop.f32.mrb[11].mxu1 }
 0x1a2   : > { %v2841_v53 = vadd.f32 %v2840_v37, %v2354_v48  ;;  %v2370_v5 = vmax.f32 %v805_v60, 0.0  ;;  %v2915_v17 = vadd.f32 %v2914_v40, %v2356_v57  ;;  %v2372_v19 = vmax.f32 %v998_v12, 0.0 }
 0x1a3   : > { %v2805_v18 = vadd.f32 %v2804_v51, %v2369_v58  ;;  %14711 = vmatmul.mubr.msk.bf16.gmra.mrb[116].mxu0 %vm696_vm0, %v17151_v54  ;;  %v2879_v23 = vadd.f32 %v2878_v2, %v2371_v3  ;;  %14727 = vmatmul.mubr.msk.bf16.gmra.mrb[116].mxu1 %vm696_vm0, %v17151_v54 }
 0x1a4   : > { %v2842_v52 = vadd.f32 %v2841_v53, %v2370_v5  ;;  %1303 = vmatprep.mubr.bf16.mxu0 %v20214_v0  ;;  %v2916_v26 = vadd.f32 %v2915_v17, %v2372_v19  ;;  %1496 = vmatprep.mubr.bf16.mxu1 %v20214_v0 }
 0x1a6   : > { %v809_v27 = vpop.f32.mrb[12].mxu0  ;;  %v1002_v31 = vpop.f32.mrb[12].mxu1 }
 0x1a7   : > { %v2385_v28 = vmax.f32 %v809_v27, 0.0  ;;  %v811_v32 = vpop.f32.mrb[13].mxu0  ;;  %v2387_v35 = vmax.f32 %v1002_v31, 0.0  ;;  %v1004_v37 = vpop.f32.mrb[13].mxu1 }
 0x1a8   : > { %v2386_v36 = vmax.f32 %v811_v32, 0.0  ;;  %v813_v40 = vpop.f32.mrb[14].mxu0  ;;  %v2388_v44 = vmax.f32 %v1004_v37, 0.0  ;;  %v1006_v46 = vpop.f32.mrb[14].mxu1 }
 0x1a9   : > { %v2806_v41 = vadd.f32 %v2805_v18, %v2385_v28  ;;  %v2401_v45 = vmax.f32 %v813_v40, 0.0  ;;  %v815_v47 = vpop.f32.mrb[15].mxu0  ;;  %v2880_v48 = vadd.f32 %v2879_v23, %v2387_v35  ;;  %v2403_v49 = vmax.f32 %v1006_v46, 0.0  ;;  %v1008_v51 = vpop.f32.mrb[15].mxu1 }
 0x1aa   : > { %v2843_v54 = vadd.f32 %v2842_v52, %v2386_v36  ;;  %v2402_v50 = vmax.f32 %v815_v47, 0.0  ;;  %v2917_v57 = vadd.f32 %v2916_v26, %v2388_v44  ;;  %v2404_v59 = vmax.f32 %v1008_v51, 0.0 }
 0x1ab   : > { %v2807_v58 = vadd.f32 %v2806_v41, %v2401_v45  ;;  %14712 = vmatmul.mubr.msk.bf16.gmra.mrb[120].mxu0 %vm696_vm0, %v17162_v55  ;;  %v2881_v60 = vadd.f32 %v2880_v48, %v2403_v49  ;;  %14728 = vmatmul.mubr.msk.bf16.gmra.mrb[120].mxu1 %vm696_vm0, %v17162_v55  ;;  %v446_v49 = vld [vmem:[#allocation2 + $0xb0] sm:$0xff] }
 0x1ac   : > { %v2844_v2 = vadd.f32 %v2843_v54, %v2402_v50  ;;  %1313 = vmatprep.mubr.bf16.mxu0 %v20214_v0  ;;  %v2918_v53 = vadd.f32 %v2917_v57, %v2404_v59  ;;  %1506 = vmatprep.mubr.bf16.mxu1 %v20214_v0  ;;  %v454_v50 = vld [vmem:[#allocation2 + $0xf0] sm:$0xff] }
 0x1ae   : > { %v819_v3 = vpop.f32.mrb[16].mxu0  ;;  %v1012_v12 = vpop.f32.mrb[16].mxu1 }
 0x1af   : > { %v2417_v5 = vmax.f32 %v819_v3, 0.0  ;;  %v821_v17 = vpop.f32.mrb[17].mxu0  ;;  %v2419_v18 = vmax.f32 %v1012_v12, 0.0  ;;  %v1014_v23 = vpop.f32.mrb[17].mxu1  ;;  %v447_v3 = vld [vmem:[#allocation2 + $0xb8] sm:$0xff] }
 0x1b0   : > { %v2418_v19 = vmax.f32 %v821_v17, 0.0  ;;  %v823_v52 = vpop.f32.mrb[18].mxu0  ;;  %v2420_v27 = vmax.f32 %v1014_v23, 0.0  ;;  %v1016_v31 = vpop.f32.mrb[18].mxu1  ;;  %v17301_v23 = vcombine.high %v446_v49, %v454_v50 }
 0x1b1   : > { %v2808_v26 = vadd.f32 %v2807_v58, %v2417_v5  ;;  %v2433_v28 = vmax.f32 %v823_v52, 0.0  ;;  %v825_v32 = vpop.f32.mrb[19].mxu0  ;;  %v2882_v35 = vadd.f32 %v2881_v60, %v2419_v18  ;;  %v2435_v36 = vmax.f32 %v1016_v31, 0.0  ;;  %v1018_v40 = vpop.f32.mrb[19].mxu1  ;;  %v455_v5 = vld [vmem:[#allocation2 + $0xf8] sm:$0xff] }
 0x1b2   : > { %v2845_v55 = vadd.f32 %v2844_v2, %v2418_v19  ;;  %v2434_v37 = vmax.f32 %v825_v32, 0.0  ;;  %v2919_v41 = vadd.f32 %v2918_v53, %v2420_v27  ;;  %v2436_v45 = vmax.f32 %v1018_v40, 0.0  ;;  %20250 = vst [vmem:[#allocation18_spill] sm:$0xff] %v17301_v23 }
 0x1b3   : > { %v2809_v44 = vadd.f32 %v2808_v26, %v2433_v28  ;;  %14713 = vmatmul.mubr.msk.bf16.gmra.mrb[124].mxu0 %vm696_vm0, %v17173_v56  ;;  %v2883_v46 = vadd.f32 %v2882_v35, %v2435_v36  ;;  %14729 = vmatmul.mubr.msk.bf16.gmra.mrb[124].mxu1 %vm696_vm0, %v17173_v56  ;;  %v17306_v36 = vld [vmem:[%s20199_s0] sm:$0xff]  }
 0x1b4   : > { %v2846_v47 = vadd.f32 %v2845_v55, %v2434_v37  ;;  %1549 = vmatprep.mubr.bf16.mxu0 %v20214_v0  ;;  %v2920_v48 = vadd.f32 %v2919_v41, %v2436_v45  ;;  %1742 = vmatprep.mubr.bf16.mxu1 %v20214_v0  ;;  %v17310_v37 = vcombine.high %v447_v3, %v455_v5 }
 0x1b6   : > { %v829_v54 = vpop.f32.mrb[20].mxu0  ;;  %v1022_v57 = vpop.f32.mrb[20].mxu1  ;;  %20251 = vst [vmem:[#allocation19_spill] sm:$0xff] %v17310_v37 }
 0x1b7   : > { %v2449_v51 = vmax.f32 %v829_v54, 0.0  ;;  %v831_v58 = vpop.f32.mrb[21].mxu0  ;;  %v2451_v59 = vmax.f32 %v1022_v57, 0.0  ;;  %v1024_v2 = vpop.f32.mrb[21].mxu1 }
 0x1b8   : > { %v2450_v60 = vmax.f32 %v831_v58, 0.0  ;;  %v833_v53 = vpop.f32.mrb[22].mxu0  ;;  %v2452_v17 = vmax.f32 %v1024_v2, 0.0  ;;  %v1026_v18 = vpop.f32.mrb[22].mxu1 }
 0x1b9   : > { %v2810_v12 = vadd.f32 %v2809_v44, %v2449_v51  ;;  %v2465_v56 = vmax.f32 %v833_v53, 0.0  ;;  %v835_v19 = vpop.f32.mrb[23].mxu0  ;;  %v2884_v52 = vadd.f32 %v2883_v46, %v2451_v59  ;;  %v2467_v27 = vmax.f32 %v1026_v18, 0.0  ;;  %v1028_v31 = vpop.f32.mrb[23].mxu1 }
 0x1ba   : > { %v2847_v26 = vadd.f32 %v2846_v47, %v2450_v60  ;;  %v2466_v28 = vmax.f32 %v835_v19, 0.0  ;;  %v2921_v32 = vadd.f32 %v2920_v48, %v2452_v17  ;;  %v2468_v55 = vmax.f32 %v1028_v31, 0.0 }
 0x1bb   : > { %v2811_v35 = vadd.f32 %v2810_v12, %v2465_v56  ;;  %14730 = vmatmul.mubr.msk.bf16.vlgmr.msra.gmra.mrb[128].mxu0 %vm696_vm0, %v17306_v36  ;;  %v2885_v40 = vadd.f32 %v2884_v52, %v2467_v27  ;;  %14746 = vmatmul.mubr.msk.bf16.vlgmr.msra.gmra.mrb[128].mxu1 %vm696_vm0, %v17306_v36  ;;  %v17315_v44 = vcombine.low %v446_v49, %v454_v50  ;;  %v17331_v27 = vld [vmem:[%s20199_s0 + $0x8] sm:$0xff]  }
 0x1bc   : > { %v2848_v41 = vadd.f32 %v2847_v26, %v2466_v28  ;;  %1904 = vmatpush1.bf16.msra.mxu0 %v17198_v7  ;;  %v2922_v45 = vadd.f32 %v2921_v32, %v2468_v55  ;;  %2097 = vmatpush1.bf16.msra.mxu1 %v17203_v13  ;;  %v17319_v46 = vcombine.low %v447_v3, %v455_v5 }
 0x1bd   : > { %20252 = vst [vmem:[#allocation20_spill] sm:$0xff] %v17315_v44  ;;  %1559 = vmatprep.mubr.bf16.mxu0 %v20214_v0  ;;  %1752 = vmatprep.mubr.bf16.mxu1 %v20214_v0 }
 0x1be   : > { %20253 = vst [vmem:[#allocation21_spill] sm:$0xff] %v17319_v46  ;;  %v839_v47 = vpop.f32.mrb[24].mxu0  ;;  %1905 = vmatprep.subr.bf16.mxu0 %v17301_v23  ;;  %v1032_v54 = vpop.f32.mrb[24].mxu1  ;;  %2098 = vmatprep.subr.bf16.mxu1 %v17310_v37 }
 0x1bf   : > { %v2481_v48 = vmax.f32 %v839_v47, 0.0  ;;  %v841_v51 = vpop.f32.mrb[25].mxu0  ;;  %v2483_v57 = vmax.f32 %v1032_v54, 0.0  ;;  %v1034_v50 = vpop.f32.mrb[25].mxu1 }
 0x1c0   : > { %v2482_v49 = vmax.f32 %v841_v51, 0.0  ;;  %v843_v58 = vpop.f32.mrb[26].mxu0  ;;  %1906 = vmatpush1.bf16.msra.mxu0 %v17315_v44  ;;  %v2484_v60 = vmax.f32 %v1034_v50, 0.0  ;;  %v1036_v53 = vpop.f32.mrb[26].mxu1  ;;  %2099 = vmatpush1.bf16.msra.mxu1 %v17319_v46 }
 0x1c1   : > { %v2812_v59 = vadd.f32 %v2811_v35, %v2481_v48  ;;  %v2497_v2 = vmax.f32 %v843_v58, 0.0  ;;  %v845_v3 = vpop.f32.mrb[27].mxu0  ;;  %3570 = vmatprep.subr.bf16.mxu0 %v16947_v4  ;;  %v2886_v5 = vadd.f32 %v2885_v40, %v2483_v57  ;;  %v2499_v17 = vmax.f32 %v1036_v53, 0.0  ;;  %v1038_v18 = vpop.f32.mrb[27].mxu1  ;;  %3763 = vmatprep.subr.bf16.mxu1 %v16951_v9 }
 0x1c2   : > { %v2849_v12 = vadd.f32 %v2848_v41, %v2482_v49  ;;  %v2498_v56 = vmax.f32 %v845_v3, 0.0  ;;  %v2923_v19 = vadd.f32 %v2922_v45, %v2484_v60  ;;  %v2500_v26 = vmax.f32 %v1038_v18, 0.0 }
 0x1c3   : > { %v2813_v52 = vadd.f32 %v2812_v59, %v2497_v2  ;;  %14731 = vmatmul.mubr.msk.bf16.gmra.mrb[132].mxu0 %vm696_vm0, %v17331_v27  ;;  %v2887_v28 = vadd.f32 %v2886_v5, %v2499_v17  ;;  %14747 = vmatmul.mubr.msk.bf16.gmra.mrb[132].mxu1 %vm696_vm0, %v17331_v27 }
 0x1c4   : > { %v2850_v4 = vadd.f32 %v2849_v12, %v2498_v56  ;;  %1569 = vmatprep.mubr.bf16.mxu0 %v20214_v0  ;;  %v2924_v31 = vadd.f32 %v2923_v19, %v2500_v26  ;;  %1762 = vmatprep.mubr.bf16.mxu1 %v20214_v0  ;;  %v17342_v12 = vld [vmem:[%s20199_s0 + $0x10] sm:$0xff]  }
 0x1c6   : > { %v849_v9 = vpop.f32.mrb[28].mxu0  ;;  %v1042_v35 = vpop.f32.mrb[28].mxu1 }
 0x1c7   : > { %v2513_v32 = vmax.f32 %v849_v9, 0.0  ;;  %v851_v55 = vpop.f32.mrb[29].mxu0  ;;  %v2515_v40 = vmax.f32 %v1042_v35, 0.0  ;;  %v1044_v45 = vpop.f32.mrb[29].mxu1 }
 0x1c8   : > { %v2514_v41 = vmax.f32 %v851_v55, 0.0  ;;  %v853_v47 = vpop.f32.mrb[30].mxu0  ;;  %v2516_v54 = vmax.f32 %v1044_v45, 0.0  ;;  %v1046_v57 = vpop.f32.mrb[30].mxu1 }
 0x1c9   : > { %v2814_v48 = vadd.f32 %v2813_v52, %v2513_v32  ;;  %v2529_v51 = vmax.f32 %v853_v47, 0.0  ;;  %v855_v49 = vpop.f32.mrb[31].mxu0  ;;  %v2888_v50 = vadd.f32 %v2887_v28, %v2515_v40  ;;  %v2531_v59 = vmax.f32 %v1046_v57, 0.0  ;;  %v1048_v2 = vpop.f32.mrb[31].mxu1 }
 0x1ca   : > { %v2851_v58 = vadd.f32 %v2850_v4, %v2514_v41  ;;  %v2530_v60 = vmax.f32 %v855_v49, 0.0  ;;  %v2925_v53 = vadd.f32 %v2924_v31, %v2516_v54  ;;  %v2532_v5 = vmax.f32 %v1048_v2, 0.0 }
 0x1cb   : > { %v2815_v3 = vadd.f32 %v2814_v48, %v2529_v51  ;;  %14732 = vmatmul.mubr.msk.bf16.gmra.mrb[136].mxu0 %vm696_vm0, %v17342_v12  ;;  %v2889_v17 = vadd.f32 %v2888_v50, %v2531_v59  ;;  %14748 = vmatmul.mubr.msk.bf16.gmra.mrb[136].mxu1 %vm696_vm0, %v17342_v12  ;;  %v17353_v59 = vld [vmem:[%s20199_s0 + $0x18] sm:$0xff]  }
 0x1cc   : > { %v2852_v56 = vadd.f32 %v2851_v58, %v2530_v60  ;;  %1579 = vmatprep.mubr.bf16.mxu0 %v20214_v0  ;;  %v2926_v18 = vadd.f32 %v2925_v53, %v2532_v5  ;;  %1772 = vmatprep.mubr.bf16.mxu1 %v20214_v0 }
 0x1ce   : > { %v859_v19 = vpop.f32.mrb[32].mxu0  ;;  %v1052_v26 = vpop.f32.mrb[32].mxu1 }
 0x1cf   : > { %v2545_v52 = vmax.f32 %v859_v19, 0.0  ;;  %v861_v28 = vpop.f32.mrb[33].mxu0  ;;  %v2547_v4 = vmax.f32 %v1052_v26, 0.0  ;;  %v1054_v9 = vpop.f32.mrb[33].mxu1 }
 0x1d0   : > { %v2546_v31 = vmax.f32 %v861_v28, 0.0  ;;  %v863_v32 = vpop.f32.mrb[34].mxu0  ;;  %v2548_v55 = vmax.f32 %v1054_v9, 0.0  ;;  %v1056_v41 = vpop.f32.mrb[34].mxu1 }
 0x1d1   : > { %v2816_v35 = vadd.f32 %v2815_v3, %v2545_v52  ;;  %v2561_v40 = vmax.f32 %v863_v32, 0.0  ;;  %v865_v45 = vpop.f32.mrb[35].mxu0  ;;  %v2890_v47 = vadd.f32 %v2889_v17, %v2547_v4  ;;  %v2563_v54 = vmax.f32 %v1056_v41, 0.0  ;;  %v1058_v57 = vpop.f32.mrb[35].mxu1 }
 0x1d2   : > { %v2853_v48 = vadd.f32 %v2852_v56, %v2546_v31  ;;  %v2562_v51 = vmax.f32 %v865_v45, 0.0  ;;  %v2927_v49 = vadd.f32 %v2926_v18, %v2548_v55  ;;  %v2564_v58 = vmax.f32 %v1058_v57, 0.0 }
 0x1d3   : > { %v2817_v50 = vadd.f32 %v2816_v35, %v2561_v40  ;;  %14733 = vmatmul.mubr.msk.bf16.gmra.mrb[140].mxu0 %vm696_vm0, %v17353_v59  ;;  %v2891_v60 = vadd.f32 %v2890_v47, %v2563_v54  ;;  %14749 = vmatmul.mubr.msk.bf16.gmra.mrb[140].mxu1 %vm696_vm0, %v17353_v59 }
 0x1d4   : > { %v2854_v2 = vadd.f32 %v2853_v48, %v2562_v51  ;;  %1589 = vmatprep.mubr.bf16.mxu0 %v20214_v0  ;;  %v2928_v53 = vadd.f32 %v2927_v49, %v2564_v58  ;;  %1782 = vmatprep.mubr.bf16.mxu1 %v20214_v0  ;;  %v17364_v51 = vld [vmem:[%s20199_s0 + $0x20] sm:$0xff]  }
 0x1d6   : > { %v869_v3 = vpop.f32.mrb[36].mxu0  ;;  %v1062_v17 = vpop.f32.mrb[36].mxu1 }
 0x1d7   : > { %v2577_v5 = vmax.f32 %v869_v3, 0.0  ;;  %v871_v56 = vpop.f32.mrb[37].mxu0  ;;  %v2579_v18 = vmax.f32 %v1062_v17, 0.0  ;;  %v1064_v52 = vpop.f32.mrb[37].mxu1 }
 0x1d8   : > { %v2578_v19 = vmax.f32 %v871_v56, 0.0  ;;  %v873_v26 = vpop.f32.mrb[38].mxu0  ;;  %v2580_v4 = vmax.f32 %v1064_v52, 0.0  ;;  %v1066_v9 = vpop.f32.mrb[38].mxu1 }
 0x1d9   : > { %v2818_v28 = vadd.f32 %v2817_v50, %v2577_v5  ;;  %v2593_v31 = vmax.f32 %v873_v26, 0.0  ;;  %v875_v32 = vpop.f32.mrb[39].mxu0  ;;  %v2892_v35 = vadd.f32 %v2891_v60, %v2579_v18  ;;  %v2595_v40 = vmax.f32 %v1066_v9, 0.0  ;;  %v1068_v45 = vpop.f32.mrb[39].mxu1 }
 0x1da   : > { %v2855_v55 = vadd.f32 %v2854_v2, %v2578_v19  ;;  %v2594_v41 = vmax.f32 %v875_v32, 0.0  ;;  %v2929_v47 = vadd.f32 %v2928_v53, %v2580_v4  ;;  %v2596_v54 = vmax.f32 %v1068_v45, 0.0  ;;  %v17375_v45 = vld [vmem:[%s20199_s0 + $0x28] sm:$0xff]  }
 0x1db   : > { %v2819_v48 = vadd.f32 %v2818_v28, %v2593_v31  ;;  %14734 = vmatmul.mubr.msk.bf16.gmra.mrb[144].mxu0 %vm696_vm0, %v17364_v51  ;;  %v2893_v57 = vadd.f32 %v2892_v35, %v2595_v40  ;;  %14750 = vmatmul.mubr.msk.bf16.gmra.mrb[144].mxu1 %vm696_vm0, %v17364_v51 }
 0x1dc   : > { %v2856_v49 = vadd.f32 %v2855_v55, %v2594_v41  ;;  %1599 = vmatprep.mubr.bf16.mxu0 %v20214_v0  ;;  %v2930_v50 = vadd.f32 %v2929_v47, %v2596_v54  ;;  %1792 = vmatprep.mubr.bf16.mxu1 %v20214_v0 }
 0x1de   : > { %v879_v58 = vpop.f32.mrb[40].mxu0  ;;  %v1072_v2 = vpop.f32.mrb[40].mxu1 }
 0x1df   : > { %v2609_v60 = vmax.f32 %v879_v58, 0.0  ;;  %v881_v53 = vpop.f32.mrb[41].mxu0  ;;  %v2611_v3 = vmax.f32 %v1072_v2, 0.0  ;;  %v1074_v17 = vpop.f32.mrb[41].mxu1 }
 0x1e0   : > { %v2610_v5 = vmax.f32 %v881_v53, 0.0  ;;  %v883_v56 = vpop.f32.mrb[42].mxu0  ;;  %v2612_v19 = vmax.f32 %v1074_v17, 0.0  ;;  %v1076_v26 = vpop.f32.mrb[42].mxu1 }
 0x1e1   : > { %v2820_v18 = vadd.f32 %v2819_v48, %v2609_v60  ;;  %v2625_v52 = vmax.f32 %v883_v56, 0.0  ;;  %v885_v28 = vpop.f32.mrb[43].mxu0  ;;  %v2894_v4 = vadd.f32 %v2893_v57, %v2611_v3  ;;  %v2627_v9 = vmax.f32 %v1076_v26, 0.0  ;;  %v1078_v35 = vpop.f32.mrb[43].mxu1 }
 0x1e2   : > { %v2857_v31 = vadd.f32 %v2856_v49, %v2610_v5  ;;  %v2626_v32 = vmax.f32 %v885_v28, 0.0  ;;  %v2931_v55 = vadd.f32 %v2930_v50, %v2612_v19  ;;  %v2628_v41 = vmax.f32 %v1078_v35, 0.0 }
 0x1e3   : > { %v2821_v40 = vadd.f32 %v2820_v18, %v2625_v52  ;;  %14735 = vmatmul.mubr.msk.bf16.gmra.mrb[148].mxu0 %vm696_vm0, %v17375_v45  ;;  %v2895_v47 = vadd.f32 %v2894_v4, %v2627_v9  ;;  %14751 = vmatmul.mubr.msk.bf16.gmra.mrb[148].mxu1 %vm696_vm0, %v17375_v45 }
 0x1e4   : > { %v2858_v48 = vadd.f32 %v2857_v31, %v2626_v32  ;;  %1609 = vmatprep.mubr.bf16.mxu0 %v20214_v0  ;;  %v2932_v54 = vadd.f32 %v2931_v55, %v2628_v41  ;;  %1802 = vmatprep.mubr.bf16.mxu1 %v20214_v0  ;;  %v17386_v55 = vld [vmem:[%s20199_s0 + $0x30] sm:$0xff]  }
 0x1e6   : > { %v889_v57 = vpop.f32.mrb[44].mxu0  ;;  %v1082_v50 = vpop.f32.mrb[44].mxu1 }
 0x1e7   : > { %v2641_v49 = vmax.f32 %v889_v57, 0.0  ;;  %v891_v58 = vpop.f32.mrb[45].mxu0  ;;  %v2643_v60 = vmax.f32 %v1082_v50, 0.0  ;;  %v1084_v53 = vpop.f32.mrb[45].mxu1 }
 0x1e8   : > { %v2642_v2 = vmax.f32 %v891_v58, 0.0  ;;  %v893_v3 = vpop.f32.mrb[46].mxu0  ;;  %v2644_v17 = vmax.f32 %v1084_v53, 0.0  ;;  %v1086_v18 = vpop.f32.mrb[46].mxu1 }
 0x1e9   : > { %v2822_v5 = vadd.f32 %v2821_v40, %v2641_v49  ;;  %v2657_v56 = vmax.f32 %v893_v3, 0.0  ;;  %v895_v19 = vpop.f32.mrb[47].mxu0  ;;  %v2896_v52 = vadd.f32 %v2895_v47, %v2643_v60  ;;  %v2659_v28 = vmax.f32 %v1086_v18, 0.0  ;;  %v1088_v31 = vpop.f32.mrb[47].mxu1 }
 0x1ea   : > { %v2859_v26 = vadd.f32 %v2858_v48, %v2642_v2  ;;  %v2658_v4 = vmax.f32 %v895_v19, 0.0  ;;  %v2933_v9 = vadd.f32 %v2932_v54, %v2644_v17  ;;  %v2660_v35 = vmax.f32 %v1088_v31, 0.0 }
 0x1eb   : > { %v2823_v32 = vadd.f32 %v2822_v5, %v2657_v56  ;;  %14736 = vmatmul.mubr.msk.bf16.gmra.mrb[152].mxu0 %vm696_vm0, %v17386_v55  ;;  %v2897_v40 = vadd.f32 %v2896_v52, %v2659_v28  ;;  %14752 = vmatmul.mubr.msk.bf16.gmra.mrb[152].mxu1 %vm696_vm0, %v17386_v55 }
 0x1ec   : > { %v2860_v41 = vadd.f32 %v2859_v26, %v2658_v4  ;;  %1619 = vmatprep.mubr.bf16.mxu0 %v20214_v0  ;;  %v2934_v47 = vadd.f32 %v2933_v9, %v2660_v35  ;;  %1812 = vmatprep.mubr.bf16.mxu1 %v20214_v0  ;;  %v17397_v35 = vld [vmem:[%s20199_s0 + $0x38] sm:$0xff]  }
 0x1ee   : > { %v899_v48 = vpop.f32.mrb[48].mxu0  ;;  %v1092_v57 = vpop.f32.mrb[48].mxu1 }
 0x1ef   : > { %v2673_v54 = vmax.f32 %v899_v48, 0.0  ;;  %v901_v49 = vpop.f32.mrb[49].mxu0  ;;  %v2675_v50 = vmax.f32 %v1092_v57, 0.0  ;;  %v1094_v60 = vpop.f32.mrb[49].mxu1 }
 0x1f0   : > { %v2674_v58 = vmax.f32 %v901_v49, 0.0  ;;  %v903_v2 = vpop.f32.mrb[50].mxu0  ;;  %v2676_v3 = vmax.f32 %v1094_v60, 0.0  ;;  %v1096_v17 = vpop.f32.mrb[50].mxu1 }
 0x1f1   : > { %v2824_v53 = vadd.f32 %v2823_v32, %v2673_v54  ;;  %v2689_v5 = vmax.f32 %v903_v2, 0.0  ;;  %v905_v56 = vpop.f32.mrb[51].mxu0  ;;  %v2898_v18 = vadd.f32 %v2897_v40, %v2675_v50  ;;  %v2691_v52 = vmax.f32 %v1096_v17, 0.0  ;;  %v1098_v28 = vpop.f32.mrb[51].mxu1 }
 0x1f2   : > { %v2861_v19 = vadd.f32 %v2860_v41, %v2674_v58  ;;  %v2690_v26 = vmax.f32 %v905_v56, 0.0  ;;  %v2935_v4 = vadd.f32 %v2934_v47, %v2676_v3  ;;  %v2692_v9 = vmax.f32 %v1098_v28, 0.0 }
 0x1f3   : > { %v2825_v31 = vadd.f32 %v2824_v53, %v2689_v5  ;;  %14737 = vmatmul.mubr.msk.bf16.gmra.mrb[156].mxu0 %vm696_vm0, %v17397_v35  ;;  %v2899_v32 = vadd.f32 %v2898_v18, %v2691_v52  ;;  %14753 = vmatmul.mubr.msk.bf16.gmra.mrb[156].mxu1 %vm696_vm0, %v17397_v35 }
 0x1f4   : > { %v2862_v48 = vadd.f32 %v2861_v19, %v2690_v26  ;;  %1629 = vmatprep.mubr.bf16.mxu0 %v20214_v0  ;;  %v2936_v40 = vadd.f32 %v2935_v4, %v2692_v9  ;;  %1822 = vmatprep.mubr.bf16.mxu1 %v20214_v0 }
 0x1f6   : > { %v909_v41 = vpop.f32.mrb[52].mxu0  ;;  %v1102_v54 = vpop.f32.mrb[52].mxu1 }
 0x1f7   : > { %v2705_v47 = vmax.f32 %v909_v41, 0.0  ;;  %v911_v57 = vpop.f32.mrb[53].mxu0  ;;  %v2707_v49 = vmax.f32 %v1102_v54, 0.0  ;;  %v1104_v58 = vpop.f32.mrb[53].mxu1  ;;  %v17408_v41 = vld [vmem:[%s20199_s0 + $0x40] sm:$0xff]  }
 0x1f8   : > { %v2706_v50 = vmax.f32 %v911_v57, 0.0  ;;  %v913_v60 = vpop.f32.mrb[54].mxu0  ;;  %v2708_v53 = vmax.f32 %v1104_v58, 0.0  ;;  %v1106_v5 = vpop.f32.mrb[54].mxu1 }
 0x1f9   : > { %v2826_v2 = vadd.f32 %v2825_v31, %v2705_v47  ;;  %v2721_v3 = vmax.f32 %v913_v60, 0.0  ;;  %v915_v17 = vpop.f32.mrb[55].mxu0  ;;  %v2900_v56 = vadd.f32 %v2899_v32, %v2707_v49  ;;  %v2723_v19 = vmax.f32 %v1106_v5, 0.0  ;;  %v1108_v26 = vpop.f32.mrb[55].mxu1 }
 0x1fa   : > { %v2863_v18 = vadd.f32 %v2862_v48, %v2706_v50  ;;  %v2722_v52 = vmax.f32 %v915_v17, 0.0  ;;  %v2937_v28 = vadd.f32 %v2936_v40, %v2708_v53  ;;  %v2724_v9 = vmax.f32 %v1108_v26, 0.0 }
 0x1fb   : > { %v2827_v4 = vadd.f32 %v2826_v2, %v2721_v3  ;;  %14738 = vmatmul.mubr.msk.bf16.gmra.mrb[160].mxu0 %vm696_vm0, %v17408_v41  ;;  %v2901_v31 = vadd.f32 %v2900_v56, %v2723_v19  ;;  %14754 = vmatmul.mubr.msk.bf16.gmra.mrb[160].mxu1 %vm696_vm0, %v17408_v41 }
 0x1fc   : > { %v2864_v47 = vadd.f32 %v2863_v18, %v2722_v52  ;;  %1639 = vmatprep.mubr.bf16.mxu0 %v20214_v0  ;;  %v2938_v32 = vadd.f32 %v2937_v28, %v2724_v9  ;;  %1832 = vmatprep.mubr.bf16.mxu1 %v20214_v0 }
 0x1fe   : > { %v919_v48 = vpop.f32.mrb[56].mxu0  ;;  %v1112_v54 = vpop.f32.mrb[56].mxu1 }
 0x1ff   : > { %v2737_v40 = vmax.f32 %v919_v48, 0.0  ;;  %v921_v57 = vpop.f32.mrb[57].mxu0  ;;  %v2739_v49 = vmax.f32 %v1112_v54, 0.0  ;;  %v1114_v58 = vpop.f32.mrb[57].mxu1  ;;  %v17419_v48 = vld [vmem:[%s20199_s0 + $0x48] sm:$0xff]  }
 0x200   : > { %v2738_v50 = vmax.f32 %v921_v57, 0.0  ;;  %v923_v60 = vpop.f32.mrb[58].mxu0  ;;  %v2740_v53 = vmax.f32 %v1114_v58, 0.0  ;;  %v1116_v5 = vpop.f32.mrb[58].mxu1 }
 0x201   : > { %v2828_v2 = vadd.f32 %v2827_v4, %v2737_v40  ;;  %v2753_v3 = vmax.f32 %v923_v60, 0.0  ;;  %v925_v17 = vpop.f32.mrb[59].mxu0  ;;  %v2902_v56 = vadd.f32 %v2901_v31, %v2739_v49  ;;  %v2755_v19 = vmax.f32 %v1116_v5, 0.0  ;;  %v1118_v26 = vpop.f32.mrb[59].mxu1 }
 0x202   : > { %v2865_v18 = vadd.f32 %v2864_v47, %v2738_v50  ;;  %v2754_v52 = vmax.f32 %v925_v17, 0.0  ;;  %v2939_v28 = vadd.f32 %v2938_v32, %v2740_v53  ;;  %v2756_v0 = vmax.f32 %v1118_v26, 0.0 }
 0x203   : > { %v2829_v9 = vadd.f32 %v2828_v2, %v2753_v3  ;;  %14739 = vmatmul.mubr.msk.bf16.gmra.mrb[164].mxu0 %vm696_vm0, %v17419_v48  ;;  %v2903_v4 = vadd.f32 %v2902_v56, %v2755_v19  ;;  %14755 = vmatmul.mubr.msk.bf16.gmra.mrb[164].mxu1 %vm696_vm0, %v17419_v48  ;;  %v20254_v31 = vmov 0  }
 0x204   : > { %v2866_v40 = vadd.f32 %v2865_v18, %v2754_v52  ;;  %1649 = vmatprep.mubr.bf16.mxu0 %v20254_v31  ;;  %v2940_v47 = vadd.f32 %v2939_v28, %v2756_v0  ;;  %1842 = vmatprep.mubr.bf16.mxu1 %v20254_v31 }
 0x206   : > { %v929_v32 = vpop.f32.mrb[60].mxu0  ;;  %v1122_v57 = vpop.f32.mrb[60].mxu1 }
 0x207   : > { %v2769_v54 = vmax.f32 %v929_v32, 0.0  ;;  %v931_v49 = vpop.f32.mrb[61].mxu0  ;;  %v2771_v50 = vmax.f32 %v1122_v57, 0.0  ;;  %v1124_v60 = vpop.f32.mrb[61].mxu1  ;;  %v17432_v57 = vld [vmem:[%s20199_s0 + $0x50] sm:$0xff]  }
 0x208   : > { %v2770_v58 = vmax.f32 %v931_v49, 0.0  ;;  %v933_v2 = vpop.f32.mrb[62].mxu0  ;;  %v2772_v3 = vmax.f32 %v1124_v60, 0.0  ;;  %v1126_v17 = vpop.f32.mrb[62].mxu1 }
 0x209   : > { %v2830_v53 = vadd.f32 %v2829_v9, %v2769_v54  ;;  %v2785_v5 = vmax.f32 %v933_v2, 0.0  ;;  %v935_v56 = vpop.f32.mrb[63].mxu0  ;;  %v2904_v18 = vadd.f32 %v2903_v4, %v2771_v50  ;;  %v2787_v52 = vmax.f32 %v1126_v17, 0.0  ;;  %v1128_v0 = vpop.f32.mrb[63].mxu1 }
 0x20a   : > { %v2867_v19 = vadd.f32 %v2866_v40, %v2770_v58  ;;  %v2786_v26 = vmax.f32 %v935_v56, 0.0  ;;  %v2941_v28 = vadd.f32 %v2940_v47, %v2772_v3  ;;  %v2788_v32 = vmax.f32 %v1128_v0, 0.0 }
 0x20b   : > { %v17427_v46 = vadd.f32 %v2830_v53, %v2785_v5  ;;  %14740 = vmatmul.mubr.msk.bf16.gmra.mrb[168].mxu0 %vm696_vm0, %v17432_v57  ;;  %v17436_v9 = vadd.f32 %v2904_v18, %v2787_v52  ;;  %14756 = vmatmul.mubr.msk.bf16.gmra.mrb[168].mxu1 %vm696_vm0, %v17432_v57 }
 0x20c   : > { %v17438_v54 = vadd.f32 %v2867_v19, %v2786_v26  ;;  %1659 = vmatprep.mubr.bf16.mxu0 %v20254_v31  ;;  %v17443_v4 = vadd.f32 %v2941_v28, %v2788_v32  ;;  %1852 = vmatprep.mubr.bf16.mxu1 %v20254_v31  ;;  %v17449_v28 = vld [vmem:[%s20199_s0 + $0x58] sm:$0xff]  }
 0x20d   : > { %20255 = vst [vmem:[#allocation22_spill] sm:$0xff] %v17427_v46  ;;  %20256 = vst [vmem:[#allocation23_spill] sm:$0xff] %v17436_v9 }
 0x20e   : > { %20257 = vst [vmem:[#allocation24_spill] sm:$0xff] %v17438_v54  ;;  %20258 = vst [vmem:[#allocation25_spill] sm:$0xff] %v17443_v4  ;;  %v1165_v40 = vpop.f32.mrb[64].mxu0  ;;  %v1358_v47 = vpop.f32.mrb[64].mxu1 }
 0x20f   : > { %v1167_v49 = vpop.f32.mrb[65].mxu0  ;;  %v2295_v50 = vmax.f32 %v1358_v47, 0.0  ;;  %v1360_v58 = vpop.f32.mrb[65].mxu1  ;;  %v2293_v2 = vmax.f32 %v1165_v40, 0.0 }
 0x210   : > { %v1169_v60 = vpop.f32.mrb[66].mxu0  ;;  %v2296_v53 = vmax.f32 %v1360_v58, 0.0  ;;  %v1362_v5 = vpop.f32.mrb[66].mxu1  ;;  %v2294_v56 = vmax.f32 %v1167_v49, 0.0 }
 0x211   : > { %v2309_v3 = vmax.f32 %v1169_v60, 0.0  ;;  %v1171_v17 = vpop.f32.mrb[67].mxu0  ;;  %v2311_v18 = vmax.f32 %v1362_v5, 0.0  ;;  %v1364_v52 = vpop.f32.mrb[67].mxu1 }
 0x212   : > { %v2310_v19 = vmax.f32 %v1171_v17, 0.0  ;;  %v2312_v0 = vmax.f32 %v1364_v52, 0.0 }
 0x213   : > { %v2949_v26 = vadd.f32 %v2309_v3, %v2293_v2  ;;  %14741 = vmatmul.mubr.msk.bf16.gmra.mrb[172].mxu0 %vm696_vm0, %v17449_v28  ;;  %v3023_v32 = vadd.f32 %v2311_v18, %v2295_v50  ;;  %14757 = vmatmul.mubr.msk.bf16.gmra.mrb[172].mxu1 %vm696_vm0, %v17449_v28 }
 0x214   : > { %v2986_v40 = vadd.f32 %v2310_v19, %v2294_v56  ;;  %v3060_v47 = vadd.f32 %v2312_v0, %v2296_v53  ;;  %1669 = vmatprep.mubr.bf16.mxu0 %v20254_v31  ;;  %1862 = vmatprep.mubr.bf16.mxu1 %v20254_v31 }
 0x216   : > { %v1175_v49 = vpop.f32.mrb[68].mxu0  ;;  %v1368_v60 = vpop.f32.mrb[68].mxu1 }
 0x217   : > { %v2325_v58 = vmax.f32 %v1175_v49, 0.0  ;;  %v1177_v2 = vpop.f32.mrb[69].mxu0  ;;  %v2327_v3 = vmax.f32 %v1368_v60, 0.0  ;;  %v1370_v17 = vpop.f32.mrb[69].mxu1  ;;  %v17460_v49 = vld [vmem:[%s20199_s0 + $0x60] sm:$0xff]  }
 0x218   : > { %v2326_v5 = vmax.f32 %v1177_v2, 0.0  ;;  %v1179_v52 = vpop.f32.mrb[70].mxu0  ;;  %v2328_v54 = vmax.f32 %v1370_v17, 0.0  ;;  %v1372_v50 = vpop.f32.mrb[70].mxu1 }
 0x219   : > { %v2950_v4 = vadd.f32 %v2949_v26, %v2325_v58  ;;  %v1181_v56 = vpop.f32.mrb[71].mxu0  ;;  %v3024_v18 = vadd.f32 %v3023_v32, %v2327_v3  ;;  %v1374_v9 = vpop.f32.mrb[71].mxu1  ;;  %v2341_v0 = vmax.f32 %v1179_v52, 0.0  ;;  %v2343_v46 = vmax.f32 %v1372_v50, 0.0 }
 0x21a   : > { %v2987_v19 = vadd.f32 %v2986_v40, %v2326_v5  ;;  %v3061_v53 = vadd.f32 %v3060_v47, %v2328_v54  ;;  %v2342_v60 = vmax.f32 %v1181_v56, 0.0  ;;  %v2344_v2 = vmax.f32 %v1374_v9, 0.0 }
 0x21b   : > { %14742 = vmatmul.mubr.msk.bf16.gmra.mrb[176].mxu0 %vm696_vm0, %v17460_v49  ;;  %14758 = vmatmul.mubr.msk.bf16.gmra.mrb[176].mxu1 %vm696_vm0, %v17460_v49  ;;  %v2951_v26 = vadd.f32 %v2950_v4, %v2341_v0  ;;  %v3025_v32 = vadd.f32 %v3024_v18, %v2343_v46 }
 0x21c   : > { %1679 = vmatprep.mubr.bf16.mxu0 %v20254_v31  ;;  %1872 = vmatprep.mubr.bf16.mxu1 %v20254_v31  ;;  %v2988_v54 = vadd.f32 %v2987_v19, %v2342_v60  ;;  %v3062_v40 = vadd.f32 %v3061_v53, %v2344_v2  ;;  %v17471_v2 = vld [vmem:[%s20199_s0 + $0x68] sm:$0xff]  }
 0x21e   : > { %v1185_v47 = vpop.f32.mrb[72].mxu0  ;;  %v1378_v3 = vpop.f32.mrb[72].mxu1 }
 0x21f   : > { %v2357_v58 = vmax.f32 %v1185_v47, 0.0  ;;  %v1187_v5 = vpop.f32.mrb[73].mxu0  ;;  %v2359_v17 = vmax.f32 %v1378_v3, 0.0  ;;  %v1380_v50 = vpop.f32.mrb[73].mxu1 }
 0x220   : > { %v2358_v52 = vmax.f32 %v1187_v5, 0.0  ;;  %v1189_v56 = vpop.f32.mrb[74].mxu0  ;;  %v2360_v44 = vmax.f32 %v1380_v50, 0.0  ;;  %v1382_v23 = vpop.f32.mrb[74].mxu1 }
 0x221   : > { %v2952_v9 = vadd.f32 %v2951_v26, %v2357_v58  ;;  %v2373_v37 = vmax.f32 %v1189_v56, 0.0  ;;  %v1191_v13 = vpop.f32.mrb[75].mxu0  ;;  %v3026_v7 = vadd.f32 %v3025_v32, %v2359_v17  ;;  %v2375_v46 = vmax.f32 %v1382_v23, 0.0  ;;  %v1384_v0 = vpop.f32.mrb[75].mxu1 }
 0x222   : > { %v2989_v4 = vadd.f32 %v2988_v54, %v2358_v52  ;;  %v2374_v18 = vmax.f32 %v1191_v13, 0.0  ;;  %v3063_v19 = vadd.f32 %v3062_v40, %v2360_v44  ;;  %v2376_v60 = vmax.f32 %v1384_v0, 0.0 }
 0x223   : > { %v2953_v53 = vadd.f32 %v2952_v9, %v2373_v37  ;;  %14743 = vmatmul.mubr.msk.bf16.gmra.mrb[180].mxu0 %vm696_vm0, %v17471_v2  ;;  %v3027_v26 = vadd.f32 %v3026_v7, %v2375_v46  ;;  %14759 = vmatmul.mubr.msk.bf16.gmra.mrb[180].mxu1 %vm696_vm0, %v17471_v2 }
 0x224   : > { %v2990_v47 = vadd.f32 %v2989_v4, %v2374_v18  ;;  %1689 = vmatprep.mubr.bf16.mxu0 %v20254_v31  ;;  %v3064_v13 = vadd.f32 %v3063_v19, %v2376_v60  ;;  %1882 = vmatprep.mubr.bf16.mxu1 %v20254_v31 }
 0x226   : > { %v1195_v23 = vpop.f32.mrb[76].mxu0  ;;  %v1388_v44 = vpop.f32.mrb[76].mxu1 }
 0x227   : > { %v2389_v37 = vmax.f32 %v1195_v23, 0.0  ;;  %v1197_v32 = vpop.f32.mrb[77].mxu0  ;;  %v2391_v54 = vmax.f32 %v1388_v44, 0.0  ;;  %v1390_v58 = vpop.f32.mrb[77].mxu1  ;;  %v17482_v23 = vld [vmem:[%s20199_s0 + $0x70] sm:$0xff]  }
 0x228   : > { %v2390_v40 = vmax.f32 %v1197_v32, 0.0  ;;  %v1199_v3 = vpop.f32.mrb[78].mxu0  ;;  %v2392_v17 = vmax.f32 %v1390_v58, 0.0  ;;  %v1392_v52 = vpop.f32.mrb[78].mxu1 }
 0x229   : > { %v2954_v5 = vadd.f32 %v2953_v53, %v2389_v37  ;;  %v2405_v7 = vmax.f32 %v1199_v3, 0.0  ;;  %v1201_v50 = vpop.f32.mrb[79].mxu0  ;;  %v3028_v56 = vadd.f32 %v3027_v26, %v2391_v54  ;;  %v2407_v4 = vmax.f32 %v1392_v52, 0.0  ;;  %v1394_v18 = vpop.f32.mrb[79].mxu1 }
 0x22a   : > { %v2991_v9 = vadd.f32 %v2990_v47, %v2390_v40  ;;  %v2406_v46 = vmax.f32 %v1201_v50, 0.0  ;;  %v3065_v0 = vadd.f32 %v3064_v13, %v2392_v17  ;;  %v2408_v60 = vmax.f32 %v1394_v18, 0.0 }
 0x22b   : > { %v2955_v19 = vadd.f32 %v2954_v5, %v2405_v7  ;;  %14744 = vmatmul.mubr.msk.bf16.gmra.mrb[184].mxu0 %vm696_vm0, %v17482_v23  ;;  %v3029_v53 = vadd.f32 %v3028_v56, %v2407_v4  ;;  %14760 = vmatmul.mubr.msk.bf16.gmra.mrb[184].mxu1 %vm696_vm0, %v17482_v23 }
 0x22c   : > { %v2992_v37 = vadd.f32 %v2991_v9, %v2406_v46  ;;  %1699 = vmatprep.mubr.bf16.mxu0 %v20254_v31  ;;  %v3066_v26 = vadd.f32 %v3065_v0, %v2408_v60  ;;  %1892 = vmatprep.mubr.bf16.mxu1 %v20254_v31 }
 0x22e   : > { %v1205_v47 = vpop.f32.mrb[80].mxu0  ;;  %v1398_v44 = vpop.f32.mrb[80].mxu1 }
 0x22f   : > { %v2421_v13 = vmax.f32 %v1205_v47, 0.0  ;;  %v1207_v32 = vpop.f32.mrb[81].mxu0  ;;  %v2423_v54 = vmax.f32 %v1398_v44, 0.0  ;;  %v1400_v58 = vpop.f32.mrb[81].mxu1  ;;  %v17493_v47 = vld [vmem:[%s20199_s0 + $0x78] sm:$0xff]  }
 0x230   : > { %v2422_v40 = vmax.f32 %v1207_v32, 0.0  ;;  %v1209_v3 = vpop.f32.mrb[82].mxu0  ;;  %v2424_v17 = vmax.f32 %v1400_v58, 0.0  ;;  %v1402_v52 = vpop.f32.mrb[82].mxu1 }
 0x231   : > { %v2956_v5 = vadd.f32 %v2955_v19, %v2421_v13  ;;  %v2437_v7 = vmax.f32 %v1209_v3, 0.0  ;;  %v1211_v50 = vpop.f32.mrb[83].mxu0  ;;  %v3030_v56 = vadd.f32 %v3029_v53, %v2423_v54  ;;  %v2439_v4 = vmax.f32 %v1402_v52, 0.0  ;;  %v1404_v18 = vpop.f32.mrb[83].mxu1 }
 0x232   : > { %v2993_v9 = vadd.f32 %v2992_v37, %v2422_v40  ;;  %v2438_v46 = vmax.f32 %v1211_v50, 0.0  ;;  %v3067_v0 = vadd.f32 %v3066_v26, %v2424_v17  ;;  %v2440_v15 = vmax.f32 %v1404_v18, 0.0 }
 0x233   : > { %v2957_v60 = vadd.f32 %v2956_v5, %v2437_v7  ;;  %14745 = vmatmul.mubr.msk.bf16.gmra.mrb[188].mxu0 %vm696_vm0, %v17493_v47  ;;  %v3031_v19 = vadd.f32 %v3030_v56, %v2439_v4  ;;  %14761 = vmatmul.mubr.msk.bf16.gmra.mrb[188].mxu1 %vm696_vm0, %v17493_v47 }
 0x234   : > { %v2994_v13 = vadd.f32 %v2993_v9, %v2438_v46  ;;  %1935 = vmatprep.mubr.bf16.mxu0 %v20254_v31  ;;  %v3068_v53 = vadd.f32 %v3067_v0, %v2440_v15  ;;  %2128 = vmatprep.mubr.bf16.mxu1 %v20254_v31 }
 0x236   : > { %v1215_v37 = vpop.f32.mrb[84].mxu0  ;;  %v1408_v44 = vpop.f32.mrb[84].mxu1 }
 0x237   : > { %v2453_v26 = vmax.f32 %v1215_v37, 0.0  ;;  %v1217_v32 = vpop.f32.mrb[85].mxu0  ;;  %v2455_v54 = vmax.f32 %v1408_v44, 0.0  ;;  %v1410_v58 = vpop.f32.mrb[85].mxu1 }
 0x238   : > { %v2454_v40 = vmax.f32 %v1217_v32, 0.0  ;;  %v1219_v3 = vpop.f32.mrb[86].mxu0  ;;  %v2456_v17 = vmax.f32 %v1410_v58, 0.0  ;;  %v1412_v52 = vpop.f32.mrb[86].mxu1 }
 0x239   : > { %v2958_v5 = vadd.f32 %v2957_v60, %v2453_v26  ;;  %v2469_v7 = vmax.f32 %v1219_v3, 0.0  ;;  %v1221_v50 = vpop.f32.mrb[87].mxu0  ;;  %v3032_v56 = vadd.f32 %v3031_v19, %v2455_v54  ;;  %v2471_v4 = vmax.f32 %v1412_v52, 0.0  ;;  %v1414_v15 = vpop.f32.mrb[87].mxu1 }
 0x23a   : > { %v2995_v9 = vadd.f32 %v2994_v13, %v2454_v40  ;;  %v2470_v46 = vmax.f32 %v1221_v50, 0.0  ;;  %v3069_v18 = vadd.f32 %v3068_v53, %v2456_v17  ;;  %v2472_v8 = vmax.f32 %v1414_v15, 0.0 }
 0x23b   : > { %v2959_v0 = vadd.f32 %v2958_v5, %v2469_v7  ;;  %14762 = vmatmul.mubr.msk.bf16.vlgmr.msra.gmra.mrb[192].mxu0 %vm696_vm0, %v17306_v36  ;;  %v3033_v37 = vadd.f32 %v3032_v56, %v2471_v4  ;;  %14778 = vmatmul.mubr.msk.bf16.vlgmr.msra.gmra.mrb[192].mxu1 %vm696_vm0, %v17306_v36 }
 0x23c   : > { %v2996_v44 = vadd.f32 %v2995_v9, %v2470_v46  ;;  %3571 = vmatpush1.bf16.msra.mxu0 %v16949_v6  ;;  %v3070_v60 = vadd.f32 %v3069_v18, %v2472_v8  ;;  %3764 = vmatpush1.bf16.msra.mxu1 %v16953_v10 }
 0x23d   : > { %1945 = vmatprep.mubr.bf16.mxu0 %v20254_v31  ;;  %2138 = vmatprep.mubr.bf16.mxu1 %v20254_v31 }
 0x23e   : > { %v1225_v19 = vpop.f32.mrb[88].mxu0  ;;  %3572 = vmatprep.subr.bf16.mxu0 %v16955_v11  ;;  %v1418_v53 = vpop.f32.mrb[88].mxu1  ;;  %3765 = vmatprep.subr.bf16.mxu1 %v16958_v14 }
 0x23f   : > { %v2485_v13 = vmax.f32 %v1225_v19, 0.0  ;;  %v1227_v26 = vpop.f32.mrb[89].mxu0  ;;  %v2487_v32 = vmax.f32 %v1418_v53, 0.0  ;;  %v1420_v36 = vpop.f32.mrb[89].mxu1 }
 0x240   : > { %v2486_v54 = vmax.f32 %v1227_v26, 0.0  ;;  %v1229_v40 = vpop.f32.mrb[90].mxu0  ;;  %3573 = vmatpush1.bf16.msra.mxu0 %v16962_v16  ;;  %v2488_v10 = vmax.f32 %v1420_v36, 0.0  ;;  %v1422_v58 = vpop.f32.mrb[90].mxu1  ;;  %3766 = vmatpush1.bf16.msra.mxu1 %v16966_v20 }
 0x241   : > { %v2960_v6 = vadd.f32 %v2959_v0, %v2485_v13  ;;  %v2501_v8 = vmax.f32 %v1229_v40, 0.0  ;;  %v1231_v3 = vpop.f32.mrb[91].mxu0  ;;  %3956 = vmatprep.subr.bf16.mxu0 %v16968_v21  ;;  %v3034_v11 = vadd.f32 %v3033_v37, %v2487_v32  ;;  %v2503_v17 = vmax.f32 %v1422_v58, 0.0  ;;  %v1424_v14 = vpop.f32.mrb[91].mxu1  ;;  %4149 = vmatprep.subr.bf16.mxu1 %v16971_v22 }
 0x242   : > { %v2997_v5 = vadd.f32 %v2996_v44, %v2486_v54  ;;  %v2502_v7 = vmax.f32 %v1231_v3, 0.0  ;;  %v3071_v52 = vadd.f32 %v3070_v60, %v2488_v10  ;;  %v2504_v56 = vmax.f32 %v1424_v14, 0.0 }
 0x243   : > { %v2961_v50 = vadd.f32 %v2960_v6, %v2501_v8  ;;  %14763 = vmatmul.mubr.msk.bf16.gmra.mrb[196].mxu0 %vm696_vm0, %v17331_v27  ;;  %v3035_v16 = vadd.f32 %v3034_v11, %v2503_v17  ;;  %14779 = vmatmul.mubr.msk.bf16.gmra.mrb[196].mxu1 %vm696_vm0, %v17331_v27 }
 0x244   : > { %v2998_v9 = vadd.f32 %v2997_v5, %v2502_v7  ;;  %1955 = vmatprep.mubr.bf16.mxu0 %v20254_v31  ;;  %v3072_v20 = vadd.f32 %v3071_v52, %v2504_v56  ;;  %2148 = vmatprep.mubr.bf16.mxu1 %v20254_v31 }
 0x246   : > { %v1235_v21 = vpop.f32.mrb[92].mxu0  ;;  %v1428_v46 = vpop.f32.mrb[92].mxu1 }
 0x247   : > { %v2517_v4 = vmax.f32 %v1235_v21, 0.0  ;;  %v1237_v22 = vpop.f32.mrb[93].mxu0  ;;  %v2519_v15 = vmax.f32 %v1428_v46, 0.0  ;;  %v1430_v0 = vpop.f32.mrb[93].mxu1 }
 0x248   : > { %v2518_v18 = vmax.f32 %v1237_v22, 0.0  ;;  %v1239_v37 = vpop.f32.mrb[94].mxu0  ;;  %v2520_v60 = vmax.f32 %v1430_v0, 0.0  ;;  %v1432_v13 = vpop.f32.mrb[94].mxu1 }
 0x249   : > { %v2962_v44 = vadd.f32 %v2961_v50, %v2517_v4  ;;  %v2533_v19 = vmax.f32 %v1239_v37, 0.0  ;;  %v1241_v53 = vpop.f32.mrb[95].mxu0  ;;  %v3036_v26 = vadd.f32 %v3035_v16, %v2519_v15  ;;  %v2535_v32 = vmax.f32 %v1432_v13, 0.0  ;;  %v1434_v36 = vpop.f32.mrb[95].mxu1 }
 0x24a   : > { %v2999_v27 = vadd.f32 %v2998_v9, %v2518_v18  ;;  %v2534_v54 = vmax.f32 %v1241_v53, 0.0  ;;  %v3073_v40 = vadd.f32 %v3072_v20, %v2520_v60  ;;  %v2536_v10 = vmax.f32 %v1434_v36, 0.0 }
 0x24b   : > { %v2963_v6 = vadd.f32 %v2962_v44, %v2533_v19  ;;  %14764 = vmatmul.mubr.msk.bf16.gmra.mrb[200].mxu0 %vm696_vm0, %v17342_v12  ;;  %v3037_v8 = vadd.f32 %v3036_v26, %v2535_v32  ;;  %14780 = vmatmul.mubr.msk.bf16.gmra.mrb[200].mxu1 %vm696_vm0, %v17342_v12 }
 0x24c   : > { %v3000_v58 = vadd.f32 %v2999_v27, %v2534_v54  ;;  %1965 = vmatprep.mubr.bf16.mxu0 %v20254_v31  ;;  %v3074_v3 = vadd.f32 %v3073_v40, %v2536_v10  ;;  %2158 = vmatprep.mubr.bf16.mxu1 %v20254_v31 }
 0x24e   : > { %v1245_v11 = vpop.f32.mrb[96].mxu0  ;;  %v1438_v17 = vpop.f32.mrb[96].mxu1 }
 0x24f   : > { %v2549_v5 = vmax.f32 %v1245_v11, 0.0  ;;  %v1247_v7 = vpop.f32.mrb[97].mxu0  ;;  %v2551_v14 = vmax.f32 %v1438_v17, 0.0  ;;  %v1440_v50 = vpop.f32.mrb[97].mxu1 }
 0x250   : > { %v2550_v52 = vmax.f32 %v1247_v7, 0.0  ;;  %v1249_v56 = vpop.f32.mrb[98].mxu0  ;;  %v2552_v9 = vmax.f32 %v1440_v50, 0.0  ;;  %v1442_v21 = vpop.f32.mrb[98].mxu1 }
 0x251   : > { %v2964_v16 = vadd.f32 %v2963_v6, %v2549_v5  ;;  %v2565_v20 = vmax.f32 %v1249_v56, 0.0  ;;  %v1251_v4 = vpop.f32.mrb[99].mxu0  ;;  %v3038_v46 = vadd.f32 %v3037_v8, %v2551_v14  ;;  %v2567_v22 = vmax.f32 %v1442_v21, 0.0  ;;  %v1444_v18 = vpop.f32.mrb[99].mxu1 }
 0x252   : > { %v3001_v12 = vadd.f32 %v3000_v58, %v2550_v52  ;;  %v2566_v15 = vmax.f32 %v1251_v4, 0.0  ;;  %v3075_v0 = vadd.f32 %v3074_v3, %v2552_v9  ;;  %v2568_v44 = vmax.f32 %v1444_v18, 0.0 }
 0x253   : > { %v2965_v37 = vadd.f32 %v2964_v16, %v2565_v20  ;;  %14765 = vmatmul.mubr.msk.bf16.gmra.mrb[204].mxu0 %vm696_vm0, %v17353_v59  ;;  %v3039_v60 = vadd.f32 %v3038_v46, %v2567_v22  ;;  %14781 = vmatmul.mubr.msk.bf16.gmra.mrb[204].mxu1 %vm696_vm0, %v17353_v59 }
 0x254   : > { %v3002_v19 = vadd.f32 %v3001_v12, %v2566_v15  ;;  %1975 = vmatprep.mubr.bf16.mxu0 %v20254_v31  ;;  %v3076_v13 = vadd.f32 %v3075_v0, %v2568_v44  ;;  %2168 = vmatprep.mubr.bf16.mxu1 %v20254_v31 }
 0x256   : > { %v1255_v53 = vpop.f32.mrb[100].mxu0  ;;  %v1448_v27 = vpop.f32.mrb[100].mxu1 }
 0x257   : > { %v2581_v26 = vmax.f32 %v1255_v53, 0.0  ;;  %v1257_v32 = vpop.f32.mrb[101].mxu0  ;;  %v2583_v54 = vmax.f32 %v1448_v27, 0.0  ;;  %v1450_v40 = vpop.f32.mrb[101].mxu1 }
 0x258   : > { %v2582_v36 = vmax.f32 %v1257_v32, 0.0  ;;  %v1259_v6 = vpop.f32.mrb[102].mxu0  ;;  %v2584_v8 = vmax.f32 %v1450_v40, 0.0  ;;  %v1452_v3 = vpop.f32.mrb[102].mxu1 }
 0x259   : > { %v2966_v10 = vadd.f32 %v2965_v37, %v2581_v26  ;;  %v2597_v58 = vmax.f32 %v1259_v6, 0.0  ;;  %v1261_v11 = vpop.f32.mrb[103].mxu0  ;;  %v3040_v5 = vadd.f32 %v3039_v60, %v2583_v54  ;;  %v2599_v17 = vmax.f32 %v1452_v3, 0.0  ;;  %v1454_v14 = vpop.f32.mrb[103].mxu1 }
 0x25a   : > { %v3003_v59 = vadd.f32 %v3002_v19, %v2582_v36  ;;  %v2598_v7 = vmax.f32 %v1261_v11, 0.0  ;;  %v3077_v52 = vadd.f32 %v3076_v13, %v2584_v8  ;;  %v2600_v56 = vmax.f32 %v1454_v14, 0.0 }
 0x25b   : > { %v2967_v50 = vadd.f32 %v2966_v10, %v2597_v58  ;;  %14766 = vmatmul.mubr.msk.bf16.gmra.mrb[208].mxu0 %vm696_vm0, %v17364_v51  ;;  %v3041_v16 = vadd.f32 %v3040_v5, %v2599_v17  ;;  %14782 = vmatmul.mubr.msk.bf16.gmra.mrb[208].mxu1 %vm696_vm0, %v17364_v51 }
 0x25c   : > { %v3004_v9 = vadd.f32 %v3003_v59, %v2598_v7  ;;  %1985 = vmatprep.mubr.bf16.mxu0 %v20254_v31  ;;  %v3078_v20 = vadd.f32 %v3077_v52, %v2600_v56  ;;  %2178 = vmatprep.mubr.bf16.mxu1 %v20254_v31 }
 0x25e   : > { %v1265_v21 = vpop.f32.mrb[104].mxu0  ;;  %v1458_v46 = vpop.f32.mrb[104].mxu1 }
 0x25f   : > { %v2613_v4 = vmax.f32 %v1265_v21, 0.0  ;;  %v1267_v12 = vpop.f32.mrb[105].mxu0  ;;  %v2615_v22 = vmax.f32 %v1458_v46, 0.0  ;;  %v1460_v18 = vpop.f32.mrb[105].mxu1 }
 0x260   : > { %v2614_v15 = vmax.f32 %v1267_v12, 0.0  ;;  %v1269_v0 = vpop.f32.mrb[106].mxu0  ;;  %v2616_v44 = vmax.f32 %v1460_v18, 0.0  ;;  %v1462_v19 = vpop.f32.mrb[106].mxu1 }
 0x261   : > { %v2968_v37 = vadd.f32 %v2967_v50, %v2613_v4  ;;  %v2629_v60 = vmax.f32 %v1269_v0, 0.0  ;;  %v1271_v13 = vpop.f32.mrb[107].mxu0  ;;  %v3042_v53 = vadd.f32 %v3041_v16, %v2615_v22  ;;  %v2631_v26 = vmax.f32 %v1462_v19, 0.0  ;;  %v1464_v32 = vpop.f32.mrb[107].mxu1 }
 0x262   : > { %v3005_v51 = vadd.f32 %v3004_v9, %v2614_v15  ;;  %v2630_v27 = vmax.f32 %v1271_v13, 0.0  ;;  %v3079_v54 = vadd.f32 %v3078_v20, %v2616_v44  ;;  %v2632_v40 = vmax.f32 %v1464_v32, 0.0 }
 0x263   : > { %v2969_v36 = vadd.f32 %v2968_v37, %v2629_v60  ;;  %14767 = vmatmul.mubr.msk.bf16.gmra.mrb[212].mxu0 %vm696_vm0, %v17375_v45  ;;  %v3043_v6 = vadd.f32 %v3042_v53, %v2631_v26  ;;  %14783 = vmatmul.mubr.msk.bf16.gmra.mrb[212].mxu1 %vm696_vm0, %v17375_v45 }
 0x264   : > { %v3006_v10 = vadd.f32 %v3005_v51, %v2630_v27  ;;  %1995 = vmatprep.mubr.bf16.mxu0 %v20254_v31  ;;  %v3080_v8 = vadd.f32 %v3079_v54, %v2632_v40  ;;  %2188 = vmatprep.mubr.bf16.mxu1 %v20254_v31 }
 0x266   : > { %v1275_v58 = vpop.f32.mrb[108].mxu0  ;;  %v1468_v11 = vpop.f32.mrb[108].mxu1 }
 0x267   : > { %v2645_v3 = vmax.f32 %v1275_v58, 0.0  ;;  %v1277_v5 = vpop.f32.mrb[109].mxu0  ;;  %v2647_v59 = vmax.f32 %v1468_v11, 0.0  ;;  %v1470_v7 = vpop.f32.mrb[109].mxu1 }
 0x268   : > { %v2646_v17 = vmax.f32 %v1277_v5, 0.0  ;;  %v1279_v14 = vpop.f32.mrb[110].mxu0  ;;  %v2648_v50 = vmax.f32 %v1470_v7, 0.0  ;;  %v1472_v16 = vpop.f32.mrb[110].mxu1 }
 0x269   : > { %v2970_v52 = vadd.f32 %v2969_v36, %v2645_v3  ;;  %v2661_v56 = vmax.f32 %v1279_v14, 0.0  ;;  %v1281_v9 = vpop.f32.mrb[111].mxu0  ;;  %v3044_v20 = vadd.f32 %v3043_v6, %v2647_v59  ;;  %v2663_v21 = vmax.f32 %v1472_v16, 0.0  ;;  %v1474_v46 = vpop.f32.mrb[111].mxu1 }
 0x26a   : > { %v3007_v45 = vadd.f32 %v3006_v10, %v2646_v17  ;;  %v2662_v4 = vmax.f32 %v1281_v9, 0.0  ;;  %v3081_v12 = vadd.f32 %v3080_v8, %v2648_v50  ;;  %v2664_v15 = vmax.f32 %v1474_v46, 0.0 }
 0x26b   : > { %v2971_v22 = vadd.f32 %v2970_v52, %v2661_v56  ;;  %14768 = vmatmul.mubr.msk.bf16.gmra.mrb[216].mxu0 %vm696_vm0, %v17386_v55  ;;  %v3045_v18 = vadd.f32 %v3044_v20, %v2663_v21  ;;  %14784 = vmatmul.mubr.msk.bf16.gmra.mrb[216].mxu1 %vm696_vm0, %v17386_v55 }
 0x26c   : > { %v3008_v0 = vadd.f32 %v3007_v45, %v2662_v4  ;;  %2005 = vmatprep.mubr.bf16.mxu0 %v20254_v31  ;;  %v3082_v37 = vadd.f32 %v3081_v12, %v2664_v15  ;;  %2198 = vmatprep.mubr.bf16.mxu1 %v20254_v31 }
 0x26e   : > { %v1285_v44 = vpop.f32.mrb[112].mxu0  ;;  %v1478_v19 = vpop.f32.mrb[112].mxu1 }
 0x26f   : > { %v2677_v60 = vmax.f32 %v1285_v44, 0.0  ;;  %v1287_v13 = vpop.f32.mrb[113].mxu0  ;;  %v2679_v53 = vmax.f32 %v1478_v19, 0.0  ;;  %v1480_v26 = vpop.f32.mrb[113].mxu1 }
 0x270   : > { %v2678_v51 = vmax.f32 %v1287_v13, 0.0  ;;  %v1289_v27 = vpop.f32.mrb[114].mxu0  ;;  %v2680_v54 = vmax.f32 %v1480_v26, 0.0  ;;  %v1482_v40 = vpop.f32.mrb[114].mxu1 }
 0x271   : > { %v2972_v32 = vadd.f32 %v2971_v22, %v2677_v60  ;;  %v2693_v36 = vmax.f32 %v1289_v27, 0.0  ;;  %v1291_v6 = vpop.f32.mrb[115].mxu0  ;;  %v3046_v10 = vadd.f32 %v3045_v18, %v2679_v53  ;;  %v2695_v8 = vmax.f32 %v1482_v40, 0.0  ;;  %v1484_v3 = vpop.f32.mrb[115].mxu1 }
 0x272   : > { %v3009_v55 = vadd.f32 %v3008_v0, %v2678_v51  ;;  %v2694_v58 = vmax.f32 %v1291_v6, 0.0  ;;  %v3083_v11 = vadd.f32 %v3082_v37, %v2680_v54  ;;  %v2696_v59 = vmax.f32 %v1484_v3, 0.0 }
 0x273   : > { %v2973_v5 = vadd.f32 %v2972_v32, %v2693_v36  ;;  %14769 = vmatmul.mubr.msk.bf16.gmra.mrb[220].mxu0 %vm696_vm0, %v17397_v35  ;;  %v3047_v17 = vadd.f32 %v3046_v10, %v2695_v8  ;;  %14785 = vmatmul.mubr.msk.bf16.gmra.mrb[220].mxu1 %vm696_vm0, %v17397_v35 }
 0x274   : > { %v3010_v7 = vadd.f32 %v3009_v55, %v2694_v58  ;;  %2015 = vmatprep.mubr.bf16.mxu0 %v20254_v31  ;;  %v3084_v14 = vadd.f32 %v3083_v11, %v2696_v59  ;;  %2208 = vmatprep.mubr.bf16.mxu1 %v20254_v31 }
 0x276   : > { %v1295_v52 = vpop.f32.mrb[116].mxu0  ;;  %v1488_v56 = vpop.f32.mrb[116].mxu1 }
 0x277   : > { %v2709_v50 = vmax.f32 %v1295_v52, 0.0  ;;  %v1297_v16 = vpop.f32.mrb[117].mxu0  ;;  %v2711_v9 = vmax.f32 %v1488_v56, 0.0  ;;  %v1490_v45 = vpop.f32.mrb[117].mxu1 }
 0x278   : > { %v2710_v20 = vmax.f32 %v1297_v16, 0.0  ;;  %v1299_v21 = vpop.f32.mrb[118].mxu0  ;;  %v2712_v46 = vmax.f32 %v1490_v45, 0.0  ;;  %v1492_v22 = vpop.f32.mrb[118].mxu1 }
 0x279   : > { %v2974_v4 = vadd.f32 %v2973_v5, %v2709_v50  ;;  %v2725_v12 = vmax.f32 %v1299_v21, 0.0  ;;  %v1301_v15 = vpop.f32.mrb[119].mxu0  ;;  %v3048_v18 = vadd.f32 %v3047_v17, %v2711_v9  ;;  %v2727_v0 = vmax.f32 %v1492_v22, 0.0  ;;  %v1494_v44 = vpop.f32.mrb[119].mxu1 }
 0x27a   : > { %v3011_v35 = vadd.f32 %v3010_v7, %v2710_v20  ;;  %v2726_v37 = vmax.f32 %v1301_v15, 0.0  ;;  %v3085_v60 = vadd.f32 %v3084_v14, %v2712_v46  ;;  %v2728_v13 = vmax.f32 %v1494_v44, 0.0 }
 0x27b   : > { %v2975_v19 = vadd.f32 %v2974_v4, %v2725_v12  ;;  %14770 = vmatmul.mubr.msk.bf16.gmra.mrb[224].mxu0 %vm696_vm0, %v17408_v41  ;;  %v3049_v53 = vadd.f32 %v3048_v18, %v2727_v0  ;;  %14786 = vmatmul.mubr.msk.bf16.gmra.mrb[224].mxu1 %vm696_vm0, %v17408_v41 }
 0x27c   : > { %v3012_v51 = vadd.f32 %v3011_v35, %v2726_v37  ;;  %2025 = vmatprep.mubr.bf16.mxu0 %v20254_v31  ;;  %v3086_v26 = vadd.f32 %v3085_v60, %v2728_v13  ;;  %2218 = vmatprep.mubr.bf16.mxu1 %v20254_v31 }
 0x27e   : > { %v1305_v27 = vpop.f32.mrb[120].mxu0  ;;  %v1498_v54 = vpop.f32.mrb[120].mxu1 }
 0x27f   : > { %v2741_v32 = vmax.f32 %v1305_v27, 0.0  ;;  %v1307_v36 = vpop.f32.mrb[121].mxu0  ;;  %v2743_v40 = vmax.f32 %v1498_v54, 0.0  ;;  %v1500_v10 = vpop.f32.mrb[121].mxu1 }
 0x280   : > { %v2742_v6 = vmax.f32 %v1307_v36, 0.0  ;;  %v1309_v55 = vpop.f32.mrb[122].mxu0  ;;  %v2744_v58 = vmax.f32 %v1500_v10, 0.0  ;;  %v1502_v11 = vpop.f32.mrb[122].mxu1 }
 0x281   : > { %v2976_v8 = vadd.f32 %v2975_v19, %v2741_v32  ;;  %v2757_v3 = vmax.f32 %v1309_v55, 0.0  ;;  %v1311_v5 = vpop.f32.mrb[123].mxu0  ;;  %v3050_v59 = vadd.f32 %v3049_v53, %v2743_v40  ;;  %v2759_v17 = vmax.f32 %v1502_v11, 0.0  ;;  %v1504_v14 = vpop.f32.mrb[123].mxu1 }
 0x282   : > { %v3013_v41 = vadd.f32 %v3012_v51, %v2742_v6  ;;  %v2758_v7 = vmax.f32 %v1311_v5, 0.0  ;;  %v3087_v52 = vadd.f32 %v3086_v26, %v2744_v58  ;;  %v2760_v56 = vmax.f32 %v1504_v14, 0.0 }
 0x283   : > { %v2977_v50 = vadd.f32 %v2976_v8, %v2757_v3  ;;  %14771 = vmatmul.mubr.msk.bf16.gmra.mrb[228].mxu0 %vm696_vm0, %v17419_v48  ;;  %v3051_v16 = vadd.f32 %v3050_v59, %v2759_v17  ;;  %14787 = vmatmul.mubr.msk.bf16.gmra.mrb[228].mxu1 %vm696_vm0, %v17419_v48 }
 0x284   : > { %v3014_v9 = vadd.f32 %v3013_v41, %v2758_v7  ;;  %2035 = vmatprep.mubr.bf16.mxu0 %v20254_v31  ;;  %v3088_v20 = vadd.f32 %v3087_v52, %v2760_v56  ;;  %2228 = vmatprep.mubr.bf16.mxu1 %v20254_v31 }
 0x286   : > { %v1315_v45 = vpop.f32.mrb[124].mxu0  ;;  %v1508_v4 = vpop.f32.mrb[124].mxu1 }
 0x287   : > { %v2773_v21 = vmax.f32 %v1315_v45, 0.0  ;;  %v1317_v46 = vpop.f32.mrb[125].mxu0  ;;  %v2775_v12 = vmax.f32 %v1508_v4, 0.0  ;;  %v1510_v15 = vpop.f32.mrb[125].mxu1 }
 0x288   : > { %v2774_v22 = vmax.f32 %v1317_v46, 0.0  ;;  %v1319_v18 = vpop.f32.mrb[126].mxu0  ;;  %v2776_v0 = vmax.f32 %v1510_v15, 0.0  ;;  %v1512_v44 = vpop.f32.mrb[126].mxu1 }
 0x289   : > { %v2978_v35 = vadd.f32 %v2977_v50, %v2773_v21  ;;  %v2789_v37 = vmax.f32 %v1319_v18, 0.0  ;;  %v1321_v60 = vpop.f32.mrb[127].mxu0  ;;  %v3052_v19 = vadd.f32 %v3051_v16, %v2775_v12  ;;  %v2791_v13 = vmax.f32 %v1512_v44, 0.0  ;;  %v1514_v51 = vpop.f32.mrb[127].mxu1 }
 0x28a   : > { %v3015_v48 = vadd.f32 %v3014_v9, %v2774_v22  ;;  %v2790_v53 = vmax.f32 %v1321_v60, 0.0  ;;  %v3089_v26 = vadd.f32 %v3088_v20, %v2776_v0  ;;  %v2792_v32 = vmax.f32 %v1514_v51, 0.0 }
 0x28b   : > { %v17569_v27 = vadd.f32 %v2978_v35, %v2789_v37  ;;  %14772 = vmatmul.mubr.msk.bf16.gmra.mrb[232].mxu0 %vm696_vm0, %v17432_v57  ;;  %v17573_v54 = vadd.f32 %v3052_v19, %v2791_v13  ;;  %14788 = vmatmul.mubr.msk.bf16.gmra.mrb[232].mxu1 %vm696_vm0, %v17432_v57 }
 0x28c   : > { %v17575_v36 = vadd.f32 %v3015_v48, %v2790_v53  ;;  %2045 = vmatprep.mubr.bf16.mxu0 %v20254_v31  ;;  %v17580_v40 = vadd.f32 %v3089_v26, %v2792_v32  ;;  %2238 = vmatprep.mubr.bf16.mxu1 %v20254_v31 }
 0x28e   : > { %v1551_v6 = vpop.f32.mrb[128].mxu0  ;;  %v1744_v10 = vpop.f32.mrb[128].mxu1 }
 0x28f   : > { %v1553_v55 = vpop.f32.mrb[129].mxu0  ;;  %v2299_v8 = vmax.f32 %v1744_v10, 0.0  ;;  %v1746_v58 = vpop.f32.mrb[129].mxu1  ;;  %v2297_v11 = vmax.f32 %v1551_v6, 0.0 }
 0x290   : > { %v1555_v3 = vpop.f32.mrb[130].mxu0  ;;  %v2300_v5 = vmax.f32 %v1746_v58, 0.0  ;;  %v1748_v41 = vpop.f32.mrb[130].mxu1  ;;  %v2298_v7 = vmax.f32 %v1553_v55, 0.0 }
 0x291   : > { %v2313_v59 = vmax.f32 %v1555_v3, 0.0  ;;  %v1557_v17 = vpop.f32.mrb[131].mxu0  ;;  %v2315_v14 = vmax.f32 %v1748_v41, 0.0  ;;  %v1750_v52 = vpop.f32.mrb[131].mxu1 }
 0x292   : > { %v2314_v57 = vmax.f32 %v1557_v17, 0.0  ;;  %v2316_v56 = vmax.f32 %v1750_v52, 0.0 }
 0x293   : > { %v3097_v50 = vadd.f32 %v2313_v59, %v2297_v11  ;;  %14773 = vmatmul.mubr.msk.bf16.gmra.mrb[236].mxu0 %vm696_vm0, %v17449_v28  ;;  %v3171_v16 = vadd.f32 %v2315_v14, %v2299_v8  ;;  %14789 = vmatmul.mubr.msk.bf16.gmra.mrb[236].mxu1 %vm696_vm0, %v17449_v28 }
 0x294   : > { %v3134_v9 = vadd.f32 %v2314_v57, %v2298_v7  ;;  %v3208_v20 = vadd.f32 %v2316_v56, %v2300_v5  ;;  %2055 = vmatprep.mubr.bf16.mxu0 %v20254_v31  ;;  %2248 = vmatprep.mubr.bf16.mxu1 %v20254_v31 }
 0x296   : > { %v1561_v45 = vpop.f32.mrb[132].mxu0  ;;  %v1754_v4 = vpop.f32.mrb[132].mxu1 }
 0x297   : > { %v2329_v21 = vmax.f32 %v1561_v45, 0.0  ;;  %v1563_v46 = vpop.f32.mrb[133].mxu0  ;;  %v2331_v12 = vmax.f32 %v1754_v4, 0.0  ;;  %v1756_v15 = vpop.f32.mrb[133].mxu1 }
 0x298   : > { %v2330_v22 = vmax.f32 %v1563_v46, 0.0  ;;  %v1565_v18 = vpop.f32.mrb[134].mxu0  ;;  %v2332_v0 = vmax.f32 %v1756_v15, 0.0  ;;  %v1758_v37 = vpop.f32.mrb[134].mxu1 }
 0x299   : > { %v3098_v35 = vadd.f32 %v3097_v50, %v2329_v21  ;;  %v1567_v44 = vpop.f32.mrb[135].mxu0  ;;  %v3172_v60 = vadd.f32 %v3171_v16, %v2331_v12  ;;  %v1760_v28 = vpop.f32.mrb[135].mxu1  ;;  %v2345_v13 = vmax.f32 %v1565_v18, 0.0  ;;  %v2347_v53 = vmax.f32 %v1758_v37, 0.0 }
 0x29a   : > { %v3135_v19 = vadd.f32 %v3134_v9, %v2330_v22  ;;  %v3209_v48 = vadd.f32 %v3208_v20, %v2332_v0  ;;  %v2346_v51 = vmax.f32 %v1567_v44, 0.0  ;;  %v2348_v26 = vmax.f32 %v1760_v28, 0.0 }
 0x29b   : > { %14774 = vmatmul.mubr.msk.bf16.gmra.mrb[240].mxu0 %vm696_vm0, %v17460_v49  ;;  %14790 = vmatmul.mubr.msk.bf16.gmra.mrb[240].mxu1 %vm696_vm0, %v17460_v49  ;;  %v3099_v32 = vadd.f32 %v3098_v35, %v2345_v13  ;;  %v3173_v6 = vadd.f32 %v3172_v60, %v2347_v53 }
 0x29c   : > { %2065 = vmatprep.mubr.bf16.mxu0 %v20254_v31  ;;  %2258 = vmatprep.mubr.bf16.mxu1 %v20254_v31  ;;  %v3136_v10 = vadd.f32 %v3135_v19, %v2346_v51  ;;  %v3210_v55 = vadd.f32 %v3209_v48, %v2348_v26 }
 0x29e   : > { %v1571_v8 = vpop.f32.mrb[136].mxu0  ;;  %v1764_v3 = vpop.f32.mrb[136].mxu1 }
 0x29f   : > { %v2361_v58 = vmax.f32 %v1571_v8, 0.0  ;;  %v1573_v11 = vpop.f32.mrb[137].mxu0  ;;  %v2363_v5 = vmax.f32 %v1764_v3, 0.0  ;;  %v1766_v41 = vpop.f32.mrb[137].mxu1 }
 0x2a0   : > { %v2362_v59 = vmax.f32 %v1573_v11, 0.0  ;;  %v1575_v17 = vpop.f32.mrb[138].mxu0  ;;  %v2364_v14 = vmax.f32 %v1766_v41, 0.0  ;;  %v1768_v49 = vpop.f32.mrb[138].mxu1 }
 0x2a1   : > { %v3100_v7 = vadd.f32 %v3099_v32, %v2361_v58  ;;  %v2377_v57 = vmax.f32 %v1575_v17, 0.0  ;;  %v1577_v52 = vpop.f32.mrb[139].mxu0  ;;  %v3174_v50 = vadd.f32 %v3173_v6, %v2363_v5  ;;  %v2379_v16 = vmax.f32 %v1768_v49, 0.0  ;;  %v1770_v20 = vpop.f32.mrb[139].mxu1 }
 0x2a2   : > { %v3137_v56 = vadd.f32 %v3136_v10, %v2362_v59  ;;  %v2378_v9 = vmax.f32 %v1577_v52, 0.0  ;;  %v3211_v45 = vadd.f32 %v3210_v55, %v2364_v14  ;;  %v2380_v4 = vmax.f32 %v1770_v20, 0.0 }
 0x2a3   : > { %v3101_v21 = vadd.f32 %v3100_v7, %v2377_v57  ;;  %14775 = vmatmul.mubr.msk.bf16.gmra.mrb[244].mxu0 %vm696_vm0, %v17471_v2  ;;  %v3175_v46 = vadd.f32 %v3174_v50, %v2379_v16  ;;  %14791 = vmatmul.mubr.msk.bf16.gmra.mrb[244].mxu1 %vm696_vm0, %v17471_v2 }
 0x2a4   : > { %v3138_v12 = vadd.f32 %v3137_v56, %v2378_v9  ;;  %2075 = vmatprep.mubr.bf16.mxu0 %v20254_v31  ;;  %v3212_v22 = vadd.f32 %v3211_v45, %v2380_v4  ;;  %2268 = vmatprep.mubr.bf16.mxu1 %v20254_v31 }
 0x2a6   : > { %v1581_v15 = vpop.f32.mrb[140].mxu0  ;;  %v1774_v35 = vpop.f32.mrb[140].mxu1 }
 0x2a7   : > { %v2393_v18 = vmax.f32 %v1581_v15, 0.0  ;;  %v1583_v0 = vpop.f32.mrb[141].mxu0  ;;  %v2395_v37 = vmax.f32 %v1774_v35, 0.0  ;;  %v1776_v60 = vpop.f32.mrb[141].mxu1 }
 0x2a8   : > { %v2394_v44 = vmax.f32 %v1583_v0, 0.0  ;;  %v1585_v19 = vpop.f32.mrb[142].mxu0  ;;  %v2396_v48 = vmax.f32 %v1776_v60, 0.0  ;;  %v1778_v53 = vpop.f32.mrb[142].mxu1 }
 0x2a9   : > { %v3102_v28 = vadd.f32 %v3101_v21, %v2393_v18  ;;  %v2409_v13 = vmax.f32 %v1585_v19, 0.0  ;;  %v1587_v51 = vpop.f32.mrb[143].mxu0  ;;  %v3176_v26 = vadd.f32 %v3175_v46, %v2395_v37  ;;  %v2411_v32 = vmax.f32 %v1778_v53, 0.0  ;;  %v1780_v10 = vpop.f32.mrb[143].mxu1 }
 0x2aa   : > { %v3139_v2 = vadd.f32 %v3138_v12, %v2394_v44  ;;  %v2410_v6 = vmax.f32 %v1587_v51, 0.0  ;;  %v3213_v55 = vadd.f32 %v3212_v22, %v2396_v48  ;;  %v2412_v58 = vmax.f32 %v1780_v10, 0.0 }
 0x2ab   : > { %v3103_v8 = vadd.f32 %v3102_v28, %v2409_v13  ;;  %14776 = vmatmul.mubr.msk.bf16.gmra.mrb[248].mxu0 %vm696_vm0, %v17482_v23  ;;  %v3177_v3 = vadd.f32 %v3176_v26, %v2411_v32  ;;  %14792 = vmatmul.mubr.msk.bf16.gmra.mrb[248].mxu1 %vm696_vm0, %v17482_v23  ;;  %v17616_v28 = vld [vmem:[%s20199_s0 + $0x80] sm:$0xff]  }
 0x2ac   : > { %v3140_v11 = vadd.f32 %v3139_v2, %v2410_v6  ;;  %2085 = vmatprep.mubr.bf16.mxu0 %v20254_v31  ;;  %v3214_v5 = vadd.f32 %v3213_v55, %v2412_v58  ;;  %2278 = vmatprep.mubr.bf16.mxu1 %v20254_v31 }
 0x2ae   : > { %v1591_v59 = vpop.f32.mrb[144].mxu0  ;;  %v1784_v17 = vpop.f32.mrb[144].mxu1 }
 0x2af   : > { %v2425_v41 = vmax.f32 %v1591_v59, 0.0  ;;  %v1593_v7 = vpop.f32.mrb[145].mxu0  ;;  %v2427_v14 = vmax.f32 %v1784_v17, 0.0  ;;  %v1786_v49 = vpop.f32.mrb[145].mxu1 }
 0x2b0   : > { %v2426_v57 = vmax.f32 %v1593_v7, 0.0  ;;  %v1595_v52 = vpop.f32.mrb[146].mxu0  ;;  %v2428_v56 = vmax.f32 %v1786_v49, 0.0  ;;  %v1788_v9 = vpop.f32.mrb[146].mxu1 }
 0x2b1   : > { %v3104_v50 = vadd.f32 %v3103_v8, %v2425_v41  ;;  %v2441_v16 = vmax.f32 %v1595_v52, 0.0  ;;  %v1597_v20 = vpop.f32.mrb[147].mxu0  ;;  %v3178_v45 = vadd.f32 %v3177_v3, %v2427_v14  ;;  %v2443_v21 = vmax.f32 %v1788_v9, 0.0  ;;  %v1790_v46 = vpop.f32.mrb[147].mxu1 }
 0x2b2   : > { %v3141_v23 = vadd.f32 %v3140_v11, %v2426_v57  ;;  %v2442_v4 = vmax.f32 %v1597_v20, 0.0  ;;  %v3215_v12 = vadd.f32 %v3214_v5, %v2428_v56  ;;  %v2444_v15 = vmax.f32 %v1790_v46, 0.0 }
 0x2b3   : > { %v3105_v22 = vadd.f32 %v3104_v50, %v2441_v16  ;;  %14777 = vmatmul.mubr.msk.bf16.gmra.mrb[252].mxu0 %vm696_vm0, %v17493_v47  ;;  %v3179_v18 = vadd.f32 %v3178_v45, %v2443_v21  ;;  %14793 = vmatmul.mubr.msk.bf16.gmra.mrb[252].mxu1 %vm696_vm0, %v17493_v47  ;;  %v17630_v50 = vld [vmem:[%s20199_s0 + $0x88] sm:$0xff]  }
 0x2b4   : > { %v3142_v35 = vadd.f32 %v3141_v23, %v2442_v4  ;;  %3602 = vmatprep.mubr.bf16.mxu0 %v20254_v31  ;;  %v3216_v0 = vadd.f32 %v3215_v12, %v2444_v15  ;;  %3795 = vmatprep.mubr.bf16.mxu1 %v20254_v31 }
 0x2b6   : > { %v1601_v37 = vpop.f32.mrb[148].mxu0  ;;  %v1794_v60 = vpop.f32.mrb[148].mxu1 }
 0x2b7   : > { %v2457_v44 = vmax.f32 %v1601_v37, 0.0  ;;  %v1603_v19 = vpop.f32.mrb[149].mxu0  ;;  %v2459_v48 = vmax.f32 %v1794_v60, 0.0  ;;  %v1796_v53 = vpop.f32.mrb[149].mxu1 }
 0x2b8   : > { %v2458_v13 = vmax.f32 %v1603_v19, 0.0  ;;  %v1605_v51 = vpop.f32.mrb[150].mxu0  ;;  %v2460_v47 = vmax.f32 %v1796_v53, 0.0  ;;  %v1798_v32 = vpop.f32.mrb[150].mxu1 }
 0x2b9   : > { %v3106_v26 = vadd.f32 %v3105_v22, %v2457_v44  ;;  %v2473_v2 = vmax.f32 %v1605_v51, 0.0  ;;  %v1607_v6 = vpop.f32.mrb[151].mxu0  ;;  %v3180_v10 = vadd.f32 %v3179_v18, %v2459_v48  ;;  %v2475_v8 = vmax.f32 %v1798_v32, 0.0  ;;  %v1800_v3 = vpop.f32.mrb[151].mxu1  ;;  %v17646_v44 = vld [vmem:[%s20199_s0 + $0x90] sm:$0xff]  }
 0x2ba   : > { %v3143_v55 = vadd.f32 %v3142_v35, %v2458_v13  ;;  %v2474_v58 = vmax.f32 %v1607_v6, 0.0  ;;  %v3217_v11 = vadd.f32 %v3216_v0, %v2460_v47  ;;  %v2476_v59 = vmax.f32 %v1800_v3, 0.0 }
 0x2bb   : > { %v3107_v5 = vadd.f32 %v3106_v26, %v2473_v2  ;;  %14810 = vmatmul.mubr.msk.bf16.vlgmr.msra.gmra.mrb[0].mxu0 %vm696_vm0, %v17616_v28  ;;  %v3181_v41 = vadd.f32 %v3180_v10, %v2475_v8  ;;  %14826 = vmatmul.mubr.msk.bf16.vlgmr.msra.gmra.mrb[0].mxu1 %vm696_vm0, %v17616_v28 }
 0x2bc   : > { %v3144_v17 = vadd.f32 %v3143_v55, %v2474_v58  ;;  %3957 = vmatpush1.bf16.msra.mxu0 %v16979_v24  ;;  %v3218_v7 = vadd.f32 %v3217_v11, %v2476_v59  ;;  %4150 = vmatpush1.bf16.msra.mxu1 %v16983_v25 }
 0x2bd   : > { %3612 = vmatprep.mubr.bf16.mxu0 %v20254_v31  ;;  %3805 = vmatprep.mubr.bf16.mxu1 %v20254_v31 }
 0x2be   : > { %v1611_v14 = vpop.f32.mrb[152].mxu0  ;;  %3958 = vmatprep.subr.bf16.mxu0 %v16996_v30  ;;  %v1804_v49 = vpop.f32.mrb[152].mxu1  ;;  %4151 = vmatprep.subr.bf16.mxu1 %v17005_v34 }
 0x2bf   : > { %v2489_v57 = vmax.f32 %v1611_v14, 0.0  ;;  %v1613_v52 = vpop.f32.mrb[153].mxu0  ;;  %v2491_v24 = vmax.f32 %v1804_v49, 0.0  ;;  %v1806_v25 = vpop.f32.mrb[153].mxu1  ;;  %v17657_v49 = vld [vmem:[%s20199_s0 + $0x98] sm:$0xff]  }
 0x2c0   : > { %v2490_v56 = vmax.f32 %v1613_v52, 0.0  ;;  %v1615_v16 = vpop.f32.mrb[154].mxu0  ;;  %3959 = vmatpush1.bf16.msra.mxu0 %v16994_v29  ;;  %v2492_v20 = vmax.f32 %v1806_v25, 0.0  ;;  %v1808_v30 = vpop.f32.mrb[154].mxu1  ;;  %4152 = vmatpush1.bf16.msra.mxu1 %v17003_v33 }
 0x2c1   : > { %v3108_v9 = vadd.f32 %v3107_v5, %v2489_v57  ;;  %v2505_v45 = vmax.f32 %v1615_v16, 0.0  ;;  %v1617_v23 = vpop.f32.mrb[155].mxu0  ;;  %4342 = vmatprep.subr.bf16.mxu0 %v17024_v39  ;;  %v3182_v21 = vadd.f32 %v3181_v41, %v2491_v24  ;;  %v2507_v46 = vmax.f32 %v1808_v30, 0.0  ;;  %v1810_v34 = vpop.f32.mrb[155].mxu1  ;;  %4535 = vmatprep.subr.bf16.mxu1 %v17028_v43 }
 0x2c2   : > { %v3145_v4 = vadd.f32 %v3144_v17, %v2490_v56  ;;  %v2506_v12 = vmax.f32 %v1617_v23, 0.0  ;;  %v3219_v22 = vadd.f32 %v3218_v7, %v2492_v20  ;;  %v2508_v18 = vmax.f32 %v1810_v34, 0.0 }
 0x2c3   : > { %v3109_v15 = vadd.f32 %v3108_v9, %v2505_v45  ;;  %14811 = vmatmul.mubr.msk.bf16.gmra.mrb[4].mxu0 %vm696_vm0, %v17630_v50  ;;  %v3183_v29 = vadd.f32 %v3182_v21, %v2507_v46  ;;  %14827 = vmatmul.mubr.msk.bf16.gmra.mrb[4].mxu1 %vm696_vm0, %v17630_v50 }
 0x2c4   : > { %v3146_v35 = vadd.f32 %v3145_v4, %v2506_v12  ;;  %3622 = vmatprep.mubr.bf16.mxu0 %v20254_v31  ;;  %v3220_v33 = vadd.f32 %v3219_v22, %v2508_v18  ;;  %3815 = vmatprep.mubr.bf16.mxu1 %v20254_v31 }
 0x2c6   : > { %v1621_v39 = vpop.f32.mrb[156].mxu0  ;;  %v1814_v37 = vpop.f32.mrb[156].mxu1 }
 0x2c7   : > { %v2521_v0 = vmax.f32 %v1621_v39, 0.0  ;;  %v1623_v43 = vpop.f32.mrb[157].mxu0  ;;  %v2523_v60 = vmax.f32 %v1814_v37, 0.0  ;;  %v1816_v48 = vpop.f32.mrb[157].mxu1 }
 0x2c8   : > { %v2522_v19 = vmax.f32 %v1623_v43, 0.0  ;;  %v1625_v13 = vpop.f32.mrb[158].mxu0  ;;  %v2524_v51 = vmax.f32 %v1816_v48, 0.0  ;;  %v1818_v47 = vpop.f32.mrb[158].mxu1  ;;  %v17668_v43 = vld [vmem:[%s20199_s0 + $0xa0] sm:$0xff]  }
 0x2c9   : > { %v3110_v53 = vadd.f32 %v3109_v15, %v2521_v0  ;;  %v2537_v26 = vmax.f32 %v1625_v13, 0.0  ;;  %v1627_v2 = vpop.f32.mrb[159].mxu0  ;;  %v3184_v32 = vadd.f32 %v3183_v29, %v2523_v60  ;;  %v2539_v10 = vmax.f32 %v1818_v47, 0.0  ;;  %v1820_v8 = vpop.f32.mrb[159].mxu1 }
 0x2ca   : > { %v3147_v6 = vadd.f32 %v3146_v35, %v2522_v19  ;;  %v2538_v55 = vmax.f32 %v1627_v2, 0.0  ;;  %v3221_v58 = vadd.f32 %v3220_v33, %v2524_v51  ;;  %v2540_v11 = vmax.f32 %v1820_v8, 0.0 }
 0x2cb   : > { %v3111_v3 = vadd.f32 %v3110_v53, %v2537_v26  ;;  %14812 = vmatmul.mubr.msk.bf16.gmra.mrb[8].mxu0 %vm696_vm0, %v17646_v44  ;;  %v3185_v5 = vadd.f32 %v3184_v32, %v2539_v10  ;;  %14828 = vmatmul.mubr.msk.bf16.gmra.mrb[8].mxu1 %vm696_vm0, %v17646_v44 }
 0x2cc   : > { %v3148_v59 = vadd.f32 %v3147_v6, %v2538_v55  ;;  %3632 = vmatprep.mubr.bf16.mxu0 %v20254_v31  ;;  %v3222_v41 = vadd.f32 %v3221_v58, %v2540_v11  ;;  %3825 = vmatprep.mubr.bf16.mxu1 %v20254_v31 }
 0x2ce   : > { %v1631_v17 = vpop.f32.mrb[160].mxu0  ;;  %v1824_v14 = vpop.f32.mrb[160].mxu1 }
 0x2cf   : > { %v2553_v7 = vmax.f32 %v1631_v17, 0.0  ;;  %v1633_v57 = vpop.f32.mrb[161].mxu0  ;;  %v2555_v52 = vmax.f32 %v1824_v14, 0.0  ;;  %v1826_v56 = vpop.f32.mrb[161].mxu1 }
 0x2d0   : > { %v2554_v24 = vmax.f32 %v1633_v57, 0.0  ;;  %v1635_v25 = vpop.f32.mrb[162].mxu0  ;;  %v2556_v9 = vmax.f32 %v1826_v56, 0.0  ;;  %v1828_v45 = vpop.f32.mrb[162].mxu1 }
 0x2d1   : > { %v3112_v16 = vadd.f32 %v3111_v3, %v2553_v7  ;;  %v2569_v20 = vmax.f32 %v1635_v25, 0.0  ;;  %v1637_v30 = vpop.f32.mrb[163].mxu0  ;;  %v3186_v23 = vadd.f32 %v3185_v5, %v2555_v52  ;;  %v2571_v4 = vmax.f32 %v1828_v45, 0.0  ;;  %v1830_v12 = vpop.f32.mrb[163].mxu1  ;;  %v17679_v52 = vld [vmem:[%s20199_s0 + $0xa8] sm:$0xff]  }
 0x2d2   : > { %v3149_v21 = vadd.f32 %v3148_v59, %v2554_v24  ;;  %v2570_v46 = vmax.f32 %v1637_v30, 0.0  ;;  %v3223_v34 = vadd.f32 %v3222_v41, %v2556_v9  ;;  %v2572_v15 = vmax.f32 %v1830_v12, 0.0 }
 0x2d3   : > { %v3113_v22 = vadd.f32 %v3112_v16, %v2569_v20  ;;  %14813 = vmatmul.mubr.msk.bf16.gmra.mrb[12].mxu0 %vm696_vm0, %v17657_v49  ;;  %v3187_v18 = vadd.f32 %v3186_v23, %v2571_v4  ;;  %14829 = vmatmul.mubr.msk.bf16.gmra.mrb[12].mxu1 %vm696_vm0, %v17657_v49 }
 0x2d4   : > { %v3150_v29 = vadd.f32 %v3149_v21, %v2570_v46  ;;  %3642 = vmatprep.mubr.bf16.mxu0 %v20254_v31  ;;  %v3224_v35 = vadd.f32 %v3223_v34, %v2572_v15  ;;  %3835 = vmatprep.mubr.bf16.mxu1 %v20254_v31 }
 0x2d6   : > { %v1641_v33 = vpop.f32.mrb[164].mxu0  ;;  %v1834_v0 = vpop.f32.mrb[164].mxu1 }
 0x2d7   : > { %v2585_v39 = vmax.f32 %v1641_v33, 0.0  ;;  %v1643_v37 = vpop.f32.mrb[165].mxu0  ;;  %v2587_v60 = vmax.f32 %v1834_v0, 0.0  ;;  %v1836_v48 = vpop.f32.mrb[165].mxu1 }
 0x2d8   : > { %v2586_v19 = vmax.f32 %v1643_v37, 0.0  ;;  %v1645_v13 = vpop.f32.mrb[166].mxu0  ;;  %v2588_v51 = vmax.f32 %v1836_v48, 0.0  ;;  %v1838_v47 = vpop.f32.mrb[166].mxu1 }
 0x2d9   : > { %v3114_v53 = vadd.f32 %v3113_v22, %v2585_v39  ;;  %v2601_v26 = vmax.f32 %v1645_v13, 0.0  ;;  %v1647_v2 = vpop.f32.mrb[167].mxu0  ;;  %v3188_v32 = vadd.f32 %v3187_v18, %v2587_v60  ;;  %v2603_v10 = vmax.f32 %v1838_v47, 0.0  ;;  %v1840_v8 = vpop.f32.mrb[167].mxu1 }
 0x2da   : > { %v3151_v6 = vadd.f32 %v3150_v29, %v2586_v19  ;;  %v2602_v55 = vmax.f32 %v1647_v2, 0.0  ;;  %v3225_v58 = vadd.f32 %v3224_v35, %v2588_v51  ;;  %v2604_v11 = vmax.f32 %v1840_v8, 0.0  ;;  %v17690_v19 = vld [vmem:[%s20199_s0 + $0xb0] sm:$0xff]  }
 0x2db   : > { %v3115_v3 = vadd.f32 %v3114_v53, %v2601_v26  ;;  %14814 = vmatmul.mubr.msk.bf16.gmra.mrb[16].mxu0 %vm696_vm0, %v17668_v43  ;;  %v3189_v5 = vadd.f32 %v3188_v32, %v2603_v10  ;;  %14830 = vmatmul.mubr.msk.bf16.gmra.mrb[16].mxu1 %vm696_vm0, %v17668_v43 }
 0x2dc   : > { %v3152_v59 = vadd.f32 %v3151_v6, %v2602_v55  ;;  %3652 = vmatprep.mubr.bf16.mxu0 %v20254_v31  ;;  %v3226_v41 = vadd.f32 %v3225_v58, %v2604_v11  ;;  %3845 = vmatprep.mubr.bf16.mxu1 %v20254_v31 }
 0x2de   : > { %v1651_v17 = vpop.f32.mrb[168].mxu0  ;;  %v1844_v14 = vpop.f32.mrb[168].mxu1 }
 0x2df   : > { %v2617_v7 = vmax.f32 %v1651_v17, 0.0  ;;  %v1653_v57 = vpop.f32.mrb[169].mxu0  ;;  %v2619_v24 = vmax.f32 %v1844_v14, 0.0  ;;  %v1846_v25 = vpop.f32.mrb[169].mxu1 }
 0x2e0   : > { %v2618_v56 = vmax.f32 %v1653_v57, 0.0  ;;  %v1655_v16 = vpop.f32.mrb[170].mxu0  ;;  %v2620_v20 = vmax.f32 %v1846_v25, 0.0  ;;  %v1848_v30 = vpop.f32.mrb[170].mxu1  ;;  %v17701_v25 = vld [vmem:[%s20199_s0 + $0xb8] sm:$0xff]  }
 0x2e1   : > { %v3116_v9 = vadd.f32 %v3115_v3, %v2617_v7  ;;  %v2633_v45 = vmax.f32 %v1655_v16, 0.0  ;;  %v1657_v23 = vpop.f32.mrb[171].mxu0  ;;  %v3190_v21 = vadd.f32 %v3189_v5, %v2619_v24  ;;  %v2635_v46 = vmax.f32 %v1848_v30, 0.0  ;;  %v1850_v34 = vpop.f32.mrb[171].mxu1 }
 0x2e2   : > { %v3153_v4 = vadd.f32 %v3152_v59, %v2618_v56  ;;  %v2634_v12 = vmax.f32 %v1657_v23, 0.0  ;;  %v3227_v22 = vadd.f32 %v3226_v41, %v2620_v20  ;;  %v2636_v18 = vmax.f32 %v1850_v34, 0.0 }
 0x2e3   : > { %v3117_v15 = vadd.f32 %v3116_v9, %v2633_v45  ;;  %14815 = vmatmul.mubr.msk.bf16.gmra.mrb[20].mxu0 %vm696_vm0, %v17679_v52  ;;  %v3191_v29 = vadd.f32 %v3190_v21, %v2635_v46  ;;  %14831 = vmatmul.mubr.msk.bf16.gmra.mrb[20].mxu1 %vm696_vm0, %v17679_v52 }
 0x2e4   : > { %v3154_v35 = vadd.f32 %v3153_v4, %v2634_v12  ;;  %3662 = vmatprep.mubr.bf16.mxu0 %v20254_v31  ;;  %v3228_v33 = vadd.f32 %v3227_v22, %v2636_v18  ;;  %3855 = vmatprep.mubr.bf16.mxu1 %v20254_v31 }
 0x2e6   : > { %v1661_v39 = vpop.f32.mrb[172].mxu0  ;;  %v1854_v37 = vpop.f32.mrb[172].mxu1 }
 0x2e7   : > { %v2649_v0 = vmax.f32 %v1661_v39, 0.0  ;;  %v1663_v60 = vpop.f32.mrb[173].mxu0  ;;  %v2651_v48 = vmax.f32 %v1854_v37, 0.0  ;;  %v1856_v53 = vpop.f32.mrb[173].mxu1 }
 0x2e8   : > { %v2650_v13 = vmax.f32 %v1663_v60, 0.0  ;;  %v1665_v51 = vpop.f32.mrb[174].mxu0  ;;  %v2652_v47 = vmax.f32 %v1856_v53, 0.0  ;;  %v1858_v32 = vpop.f32.mrb[174].mxu1 }
 0x2e9   : > { %v3118_v26 = vadd.f32 %v3117_v15, %v2649_v0  ;;  %v2665_v2 = vmax.f32 %v1665_v51, 0.0  ;;  %v1667_v6 = vpop.f32.mrb[175].mxu0  ;;  %v3192_v10 = vadd.f32 %v3191_v29, %v2651_v48  ;;  %v2667_v8 = vmax.f32 %v1858_v32, 0.0  ;;  %v1860_v3 = vpop.f32.mrb[175].mxu1  ;;  %v17712_v51 = vld [vmem:[%s20199_s0 + $0xc0] sm:$0xff]  }
 0x2ea   : > { %v3155_v55 = vadd.f32 %v3154_v35, %v2650_v13  ;;  %v2666_v58 = vmax.f32 %v1667_v6, 0.0  ;;  %v3229_v11 = vadd.f32 %v3228_v33, %v2652_v47  ;;  %v2668_v59 = vmax.f32 %v1860_v3, 0.0 }
 0x2eb   : > { %v3119_v5 = vadd.f32 %v3118_v26, %v2665_v2  ;;  %14816 = vmatmul.mubr.msk.bf16.gmra.mrb[24].mxu0 %vm696_vm0, %v17690_v19  ;;  %v3193_v41 = vadd.f32 %v3192_v10, %v2667_v8  ;;  %14832 = vmatmul.mubr.msk.bf16.gmra.mrb[24].mxu1 %vm696_vm0, %v17690_v19 }
 0x2ec   : > { %v3156_v17 = vadd.f32 %v3155_v55, %v2666_v58  ;;  %3672 = vmatprep.mubr.bf16.mxu0 %v20254_v31  ;;  %v3230_v7 = vadd.f32 %v3229_v11, %v2668_v59  ;;  %3865 = vmatprep.mubr.bf16.mxu1 %v20254_v31 }
 0x2ee   : > { %v1671_v14 = vpop.f32.mrb[176].mxu0  ;;  %v1864_v24 = vpop.f32.mrb[176].mxu1 }
 0x2ef   : > { %v2681_v57 = vmax.f32 %v1671_v14, 0.0  ;;  %v1673_v56 = vpop.f32.mrb[177].mxu0  ;;  %v2683_v16 = vmax.f32 %v1864_v24, 0.0  ;;  %v1866_v20 = vpop.f32.mrb[177].mxu1 }
 0x2f0   : > { %v2682_v9 = vmax.f32 %v1673_v56, 0.0  ;;  %v1675_v45 = vpop.f32.mrb[178].mxu0  ;;  %v2684_v23 = vmax.f32 %v1866_v20, 0.0  ;;  %v1868_v4 = vpop.f32.mrb[178].mxu1 }
 0x2f1   : > { %v3120_v30 = vadd.f32 %v3119_v5, %v2681_v57  ;;  %v2697_v21 = vmax.f32 %v1675_v45, 0.0  ;;  %v1677_v46 = vpop.f32.mrb[179].mxu0  ;;  %v3194_v12 = vadd.f32 %v3193_v41, %v2683_v16  ;;  %v2699_v22 = vmax.f32 %v1868_v4, 0.0  ;;  %v1870_v18 = vpop.f32.mrb[179].mxu1 }
 0x2f2   : > { %v3157_v34 = vadd.f32 %v3156_v17, %v2682_v9  ;;  %v2698_v15 = vmax.f32 %v1677_v46, 0.0  ;;  %v3231_v29 = vadd.f32 %v3230_v7, %v2684_v23  ;;  %v2700_v33 = vmax.f32 %v1870_v18, 0.0 }
 0x2f3   : > { %v3121_v35 = vadd.f32 %v3120_v30, %v2697_v21  ;;  %14817 = vmatmul.mubr.msk.bf16.gmra.mrb[28].mxu0 %vm696_vm0, %v17701_v25  ;;  %v3195_v39 = vadd.f32 %v3194_v12, %v2699_v22  ;;  %14833 = vmatmul.mubr.msk.bf16.gmra.mrb[28].mxu1 %vm696_vm0, %v17701_v25  ;;  %v17723_v30 = vld [vmem:[%s20199_s0 + $0xc8] sm:$0xff]  }
 0x2f4   : > { %v3158_v0 = vadd.f32 %v3157_v34, %v2698_v15  ;;  %3682 = vmatprep.mubr.bf16.mxu0 %v20254_v31  ;;  %v3232_v37 = vadd.f32 %v3231_v29, %v2700_v33  ;;  %3875 = vmatprep.mubr.bf16.mxu1 %v20254_v31 }
 0x2f6   : > { %v1681_v60 = vpop.f32.mrb[180].mxu0  ;;  %v1874_v13 = vpop.f32.mrb[180].mxu1 }
 0x2f7   : > { %v2713_v48 = vmax.f32 %v1681_v60, 0.0  ;;  %v1683_v53 = vpop.f32.mrb[181].mxu0  ;;  %v2715_v26 = vmax.f32 %v1874_v13, 0.0  ;;  %v1876_v2 = vpop.f32.mrb[181].mxu1 }
 0x2f8   : > { %v2714_v47 = vmax.f32 %v1683_v53, 0.0  ;;  %v1685_v32 = vpop.f32.mrb[182].mxu0  ;;  %v2716_v10 = vmax.f32 %v1876_v2, 0.0  ;;  %v1878_v8 = vpop.f32.mrb[182].mxu1 }
 0x2f9   : > { %v3122_v6 = vadd.f32 %v3121_v35, %v2713_v48  ;;  %v2729_v55 = vmax.f32 %v1685_v32, 0.0  ;;  %v1687_v58 = vpop.f32.mrb[183].mxu0  ;;  %v3196_v3 = vadd.f32 %v3195_v39, %v2715_v26  ;;  %v2731_v5 = vmax.f32 %v1878_v8, 0.0  ;;  %v1880_v41 = vpop.f32.mrb[183].mxu1 }
 0x2fa   : > { %v3159_v11 = vadd.f32 %v3158_v0, %v2714_v47  ;;  %v2730_v59 = vmax.f32 %v1687_v58, 0.0  ;;  %v3233_v17 = vadd.f32 %v3232_v37, %v2716_v10  ;;  %v2732_v14 = vmax.f32 %v1880_v41, 0.0  ;;  %v17734_v10 = vld [vmem:[%s20199_s0 + $0xd0] sm:$0xff]  }
 0x2fb   : > { %v3123_v7 = vadd.f32 %v3122_v6, %v2729_v55  ;;  %14818 = vmatmul.mubr.msk.bf16.gmra.mrb[32].mxu0 %vm696_vm0, %v17712_v51  ;;  %v3197_v57 = vadd.f32 %v3196_v3, %v2731_v5  ;;  %14834 = vmatmul.mubr.msk.bf16.gmra.mrb[32].mxu1 %vm696_vm0, %v17712_v51 }
 0x2fc   : > { %v3160_v24 = vadd.f32 %v3159_v11, %v2730_v59  ;;  %3692 = vmatprep.mubr.bf16.mxu0 %v20254_v31  ;;  %v3234_v56 = vadd.f32 %v3233_v17, %v2732_v14  ;;  %3885 = vmatprep.mubr.bf16.mxu1 %v20254_v31 }
 0x2fe   : > { %v1691_v16 = vpop.f32.mrb[184].mxu0  ;;  %v1884_v20 = vpop.f32.mrb[184].mxu1 }
 0x2ff   : > { %v2745_v9 = vmax.f32 %v1691_v16, 0.0  ;;  %v1693_v45 = vpop.f32.mrb[185].mxu0  ;;  %v2747_v23 = vmax.f32 %v1884_v20, 0.0  ;;  %v1886_v4 = vpop.f32.mrb[185].mxu1 }
 0x300   : > { %v2746_v21 = vmax.f32 %v1693_v45, 0.0  ;;  %v1695_v46 = vpop.f32.mrb[186].mxu0  ;;  %v2748_v34 = vmax.f32 %v1886_v4, 0.0  ;;  %v1888_v15 = vpop.f32.mrb[186].mxu1 }
 0x301   : > { %v3124_v12 = vadd.f32 %v3123_v7, %v2745_v9  ;;  %v2761_v22 = vmax.f32 %v1695_v46, 0.0  ;;  %v1697_v18 = vpop.f32.mrb[187].mxu0  ;;  %v3198_v29 = vadd.f32 %v3197_v57, %v2747_v23  ;;  %v2763_v33 = vmax.f32 %v1888_v15, 0.0  ;;  %v1890_v0 = vpop.f32.mrb[187].mxu1 }
 0x302   : > { %v3161_v35 = vadd.f32 %v3160_v24, %v2746_v21  ;;  %v2762_v39 = vmax.f32 %v1697_v18, 0.0  ;;  %v3235_v37 = vadd.f32 %v3234_v56, %v2748_v34  ;;  %v2764_v48 = vmax.f32 %v1890_v0, 0.0  ;;  %v17753_v34 = vld [vmem:[%s20199_s0 + $0xd8] sm:$0xff]  }
 0x303   : > { %v3125_v60 = vadd.f32 %v3124_v12, %v2761_v22  ;;  %14819 = vmatmul.mubr.msk.bf16.gmra.mrb[36].mxu0 %vm696_vm0, %v17723_v30  ;;  %v3199_v13 = vadd.f32 %v3198_v29, %v2763_v33  ;;  %14835 = vmatmul.mubr.msk.bf16.gmra.mrb[36].mxu1 %vm696_vm0, %v17723_v30 }
 0x304   : > { %v3162_v53 = vadd.f32 %v3161_v35, %v2762_v39  ;;  %3702 = vmatprep.mubr.bf16.mxu0 %v20254_v31  ;;  %v3236_v26 = vadd.f32 %v3235_v37, %v2764_v48  ;;  %3895 = vmatprep.mubr.bf16.mxu1 %v20254_v31 }
 0x306   : > { %v1701_v47 = vpop.f32.mrb[188].mxu0  ;;  %v1894_v32 = vpop.f32.mrb[188].mxu1 }
 0x307   : > { %v2777_v2 = vmax.f32 %v1701_v47, 0.0  ;;  %v1703_v6 = vpop.f32.mrb[189].mxu0  ;;  %v2779_v55 = vmax.f32 %v1894_v32, 0.0  ;;  %v1896_v58 = vpop.f32.mrb[189].mxu1 }
 0x308   : > { %v2778_v8 = vmax.f32 %v1703_v6, 0.0  ;;  %v1705_v3 = vpop.f32.mrb[190].mxu0  ;;  %v2780_v5 = vmax.f32 %v1896_v58, 0.0  ;;  %v1898_v41 = vpop.f32.mrb[190].mxu1 }
 0x309   : > { %v3126_v11 = vadd.f32 %v3125_v60, %v2777_v2  ;;  %v2793_v59 = vmax.f32 %v1705_v3, 0.0  ;;  %v1707_v17 = vpop.f32.mrb[191].mxu0  ;;  %v3200_v7 = vadd.f32 %v3199_v13, %v2779_v55  ;;  %v2795_v57 = vmax.f32 %v1898_v41, 0.0  ;;  %v1900_v56 = vpop.f32.mrb[191].mxu1  ;;  %v17764_v3 = vld [vmem:[%s20199_s0 + $0xe0] sm:$0xff]  }
 0x30a   : > { %v3163_v14 = vadd.f32 %v3162_v53, %v2778_v8  ;;  %v2794_v24 = vmax.f32 %v1707_v17, 0.0  ;;  %v3237_v16 = vadd.f32 %v3236_v26, %v2780_v5  ;;  %v2796_v20 = vmax.f32 %v1900_v56, 0.0 }
 0x30b   : > { %v17736_v9 = vadd.f32 %v3126_v11, %v2793_v59  ;;  %14820 = vmatmul.mubr.msk.bf16.gmra.mrb[40].mxu0 %vm696_vm0, %v17734_v10  ;;  %v17740_v45 = vadd.f32 %v3200_v7, %v2795_v57  ;;  %14836 = vmatmul.mubr.msk.bf16.gmra.mrb[40].mxu1 %vm696_vm0, %v17734_v10 }
 0x30c   : > { %v17742_v23 = vadd.f32 %v3163_v14, %v2794_v24  ;;  %3712 = vmatprep.mubr.bf16.mxu0 %v20254_v31  ;;  %v17747_v21 = vadd.f32 %v3237_v16, %v2796_v20  ;;  %3905 = vmatprep.mubr.bf16.mxu1 %v20254_v31 }
 0x30e   : > { %v1937_v4 = vpop.f32.mrb[192].mxu0  ;;  %v2130_v46 = vpop.f32.mrb[192].mxu1 }
 0x30f   : > { %v1939_v12 = vpop.f32.mrb[193].mxu0  ;;  %v2303_v22 = vmax.f32 %v2130_v46, 0.0  ;;  %v2132_v15 = vpop.f32.mrb[193].mxu1  ;;  %v2301_v29 = vmax.f32 %v1937_v4, 0.0 }
 0x310   : > { %v1941_v18 = vpop.f32.mrb[194].mxu0  ;;  %v2304_v35 = vmax.f32 %v2132_v15, 0.0  ;;  %v2134_v39 = vpop.f32.mrb[194].mxu1  ;;  %v2302_v37 = vmax.f32 %v1939_v12, 0.0 }
 0x311   : > { %v2317_v33 = vmax.f32 %v1941_v18, 0.0  ;;  %v1943_v0 = vpop.f32.mrb[195].mxu0  ;;  %v2319_v60 = vmax.f32 %v2134_v39, 0.0  ;;  %v2136_v13 = vpop.f32.mrb[195].mxu1 }
 0x312   : > { %v2318_v48 = vmax.f32 %v1943_v0, 0.0  ;;  %v2320_v26 = vmax.f32 %v2136_v13, 0.0 }
 0x313   : > { %v3245_v53 = vadd.f32 %v2317_v33, %v2301_v29  ;;  %14821 = vmatmul.mubr.msk.bf16.gmra.mrb[44].mxu0 %vm696_vm0, %v17753_v34  ;;  %v3319_v47 = vadd.f32 %v2319_v60, %v2303_v22  ;;  %14837 = vmatmul.mubr.msk.bf16.gmra.mrb[44].mxu1 %vm696_vm0, %v17753_v34  ;;  %v17775_v60 = vld [vmem:[%s20199_s0 + $0xe8] sm:$0xff]  }
 0x314   : > { %v3282_v2 = vadd.f32 %v2318_v48, %v2302_v37  ;;  %v3356_v32 = vadd.f32 %v2320_v26, %v2304_v35  ;;  %3722 = vmatprep.mubr.bf16.mxu0 %v20254_v31  ;;  %3915 = vmatprep.mubr.bf16.mxu1 %v20254_v31 }
 0x316   : > { %v1947_v6 = vpop.f32.mrb[196].mxu0  ;;  %v2140_v8 = vpop.f32.mrb[196].mxu1 }
 0x317   : > { %v2333_v55 = vmax.f32 %v1947_v6, 0.0  ;;  %v1949_v58 = vpop.f32.mrb[197].mxu0  ;;  %v2335_v11 = vmax.f32 %v2140_v8, 0.0  ;;  %v2142_v59 = vpop.f32.mrb[197].mxu1 }
 0x318   : > { %v2334_v5 = vmax.f32 %v1949_v58, 0.0  ;;  %v1951_v41 = vpop.f32.mrb[198].mxu0  ;;  %v2336_v7 = vmax.f32 %v2142_v59, 0.0  ;;  %v2144_v14 = vpop.f32.mrb[198].mxu1 }
 0x319   : > { %v3246_v17 = vadd.f32 %v3245_v53, %v2333_v55  ;;  %v1953_v57 = vpop.f32.mrb[199].mxu0  ;;  %v3320_v24 = vadd.f32 %v3319_v47, %v2335_v11  ;;  %v2146_v16 = vpop.f32.mrb[199].mxu1  ;;  %v2349_v4 = vmax.f32 %v1951_v41, 0.0  ;;  %v2351_v46 = vmax.f32 %v2144_v14, 0.0 }
 0x31a   : > { %v3283_v56 = vadd.f32 %v3282_v2, %v2334_v5  ;;  %v3357_v20 = vadd.f32 %v3356_v32, %v2336_v7  ;;  %v2350_v12 = vmax.f32 %v1953_v57, 0.0  ;;  %v2352_v22 = vmax.f32 %v2146_v16, 0.0 }
 0x31b   : > { %14822 = vmatmul.mubr.msk.bf16.gmra.mrb[48].mxu0 %vm696_vm0, %v17764_v3  ;;  %14838 = vmatmul.mubr.msk.bf16.gmra.mrb[48].mxu1 %vm696_vm0, %v17764_v3  ;;  %v3247_v15 = vadd.f32 %v3246_v17, %v2349_v4  ;;  %v3321_v18 = vadd.f32 %v3320_v24, %v2351_v46  ;;  %v17786_v46 = vld [vmem:[%s20199_s0 + $0xf0] sm:$0xff]  }
 0x31c   : > { %3732 = vmatprep.mubr.bf16.mxu0 %v20254_v31  ;;  %3925 = vmatprep.mubr.bf16.mxu1 %v20254_v31  ;;  %v3284_v29 = vadd.f32 %v3283_v56, %v2350_v12  ;;  %v3358_v35 = vadd.f32 %v3357_v20, %v2352_v22 }
 0x31e   : > { %v1957_v33 = vpop.f32.mrb[200].mxu0  ;;  %v2150_v0 = vpop.f32.mrb[200].mxu1 }
 0x31f   : > { %v2365_v39 = vmax.f32 %v1957_v33, 0.0  ;;  %v1959_v37 = vpop.f32.mrb[201].mxu0  ;;  %v2367_v48 = vmax.f32 %v2150_v0, 0.0  ;;  %v2152_v53 = vpop.f32.mrb[201].mxu1 }
 0x320   : > { %v2366_v13 = vmax.f32 %v1959_v37, 0.0  ;;  %v1961_v26 = vpop.f32.mrb[202].mxu0  ;;  %v2368_v2 = vmax.f32 %v2152_v53, 0.0  ;;  %v2154_v6 = vpop.f32.mrb[202].mxu1 }
 0x321   : > { %v3248_v47 = vadd.f32 %v3247_v15, %v2365_v39  ;;  %v2381_v32 = vmax.f32 %v1961_v26, 0.0  ;;  %v1963_v55 = vpop.f32.mrb[203].mxu0  ;;  %v3322_v8 = vadd.f32 %v3321_v18, %v2367_v48  ;;  %v2383_v11 = vmax.f32 %v2154_v6, 0.0  ;;  %v2156_v59 = vpop.f32.mrb[203].mxu1 }
 0x322   : > { %v3285_v58 = vadd.f32 %v3284_v29, %v2366_v13  ;;  %v2382_v5 = vmax.f32 %v1963_v55, 0.0  ;;  %v3359_v41 = vadd.f32 %v3358_v35, %v2368_v2  ;;  %v2384_v7 = vmax.f32 %v2156_v59, 0.0 }
 0x323   : > { %v3249_v17 = vadd.f32 %v3248_v47, %v2381_v32  ;;  %14823 = vmatmul.mubr.msk.bf16.gmra.mrb[52].mxu0 %vm696_vm0, %v17775_v60  ;;  %v3323_v14 = vadd.f32 %v3322_v8, %v2383_v11  ;;  %14839 = vmatmul.mubr.msk.bf16.gmra.mrb[52].mxu1 %vm696_vm0, %v17775_v60 }
 0x324   : > { %v3286_v57 = vadd.f32 %v3285_v58, %v2382_v5  ;;  %3742 = vmatprep.mubr.bf16.mxu0 %v20254_v31  ;;  %v3360_v24 = vadd.f32 %v3359_v41, %v2384_v7  ;;  %3935 = vmatprep.mubr.bf16.mxu1 %v20254_v31  ;;  %v17797_v41 = vld [vmem:[%s20199_s0 + $0xf8] sm:$0xff]  }
 0x326   : > { %v1967_v56 = vpop.f32.mrb[204].mxu0  ;;  %v2160_v20 = vpop.f32.mrb[204].mxu1 }
 0x327   : > { %v2397_v16 = vmax.f32 %v1967_v56, 0.0  ;;  %v1969_v4 = vpop.f32.mrb[205].mxu0  ;;  %v2399_v12 = vmax.f32 %v2160_v20, 0.0  ;;  %v2162_v15 = vpop.f32.mrb[205].mxu1 }
 0x328   : > { %v2398_v22 = vmax.f32 %v1969_v4, 0.0  ;;  %v1971_v18 = vpop.f32.mrb[206].mxu0  ;;  %v2400_v35 = vmax.f32 %v2162_v15, 0.0  ;;  %v2164_v39 = vpop.f32.mrb[206].mxu1 }
 0x329   : > { %v3250_v29 = vadd.f32 %v3249_v17, %v2397_v16  ;;  %v2413_v33 = vmax.f32 %v1971_v18, 0.0  ;;  %v1973_v0 = vpop.f32.mrb[207].mxu0  ;;  %v3324_v37 = vadd.f32 %v3323_v14, %v2399_v12  ;;  %v2415_v13 = vmax.f32 %v2164_v39, 0.0  ;;  %v2166_v26 = vpop.f32.mrb[207].mxu1 }
 0x32a   : > { %v3287_v48 = vadd.f32 %v3286_v57, %v2398_v22  ;;  %v2414_v53 = vmax.f32 %v1973_v0, 0.0  ;;  %v3361_v47 = vadd.f32 %v3360_v24, %v2400_v35  ;;  %v2416_v32 = vmax.f32 %v2166_v26, 0.0 }
 0x32b   : > { %v3251_v2 = vadd.f32 %v3250_v29, %v2413_v33  ;;  %14824 = vmatmul.mubr.msk.bf16.gmra.mrb[56].mxu0 %vm696_vm0, %v17786_v46  ;;  %v3325_v6 = vadd.f32 %v3324_v37, %v2415_v13  ;;  %14840 = vmatmul.mubr.msk.bf16.gmra.mrb[56].mxu1 %vm696_vm0, %v17786_v46 }
 0x32c   : > { %v3288_v55 = vadd.f32 %v3287_v48, %v2414_v53  ;;  %3752 = vmatprep.mubr.bf16.mxu0 %v20254_v31  ;;  %v3362_v8 = vadd.f32 %v3361_v47, %v2416_v32  ;;  %3945 = vmatprep.mubr.bf16.mxu1 %v20254_v31 }
 0x32e   : > { %v1977_v58 = vpop.f32.mrb[208].mxu0  ;;  %v2170_v5 = vpop.f32.mrb[208].mxu1 }
 0x32f   : > { %v2429_v11 = vmax.f32 %v1977_v58, 0.0  ;;  %v1979_v59 = vpop.f32.mrb[209].mxu0  ;;  %v2431_v17 = vmax.f32 %v2170_v5, 0.0  ;;  %v2172_v14 = vpop.f32.mrb[209].mxu1 }
 0x330   : > { %v2430_v7 = vmax.f32 %v1979_v59, 0.0  ;;  %v1981_v57 = vpop.f32.mrb[210].mxu0  ;;  %v2432_v56 = vmax.f32 %v2172_v14, 0.0  ;;  %v2174_v20 = vpop.f32.mrb[210].mxu1 }
 0x331   : > { %v3252_v24 = vadd.f32 %v3251_v2, %v2429_v11  ;;  %v2445_v16 = vmax.f32 %v1981_v57, 0.0  ;;  %v1983_v4 = vpop.f32.mrb[211].mxu0  ;;  %v3326_v12 = vadd.f32 %v3325_v6, %v2431_v17  ;;  %v2447_v15 = vmax.f32 %v2174_v20, 0.0  ;;  %v2176_v29 = vpop.f32.mrb[211].mxu1 }
 0x332   : > { %v3289_v22 = vadd.f32 %v3288_v55, %v2430_v7  ;;  %v2446_v18 = vmax.f32 %v1983_v4, 0.0  ;;  %v3363_v35 = vadd.f32 %v3362_v8, %v2432_v56  ;;  %v2448_v39 = vmax.f32 %v2176_v29, 0.0 }
 0x333   : > { %v3253_v33 = vadd.f32 %v3252_v24, %v2445_v16  ;;  %14825 = vmatmul.mubr.msk.bf16.gmra.mrb[60].mxu0 %vm696_vm0, %v17797_v41  ;;  %v3327_v0 = vadd.f32 %v3326_v12, %v2447_v15  ;;  %14841 = vmatmul.mubr.msk.bf16.gmra.mrb[60].mxu1 %vm696_vm0, %v17797_v41 }
 0x334   : > { %v3290_v37 = vadd.f32 %v3289_v22, %v2446_v18  ;;  %3988 = vmatprep.mubr.bf16.mxu0 %v20254_v31  ;;  %v3364_v48 = vadd.f32 %v3363_v35, %v2448_v39  ;;  %4181 = vmatprep.mubr.bf16.mxu1 %v20254_v31 }
 0x336   : > { %v1987_v13 = vpop.f32.mrb[212].mxu0  ;;  %v2180_v26 = vpop.f32.mrb[212].mxu1 }
 0x337   : > { %v2461_v53 = vmax.f32 %v1987_v13, 0.0  ;;  %v1989_v47 = vpop.f32.mrb[213].mxu0  ;;  %v2463_v2 = vmax.f32 %v2180_v26, 0.0  ;;  %v2182_v6 = vpop.f32.mrb[213].mxu1 }
 0x338   : > { %v2462_v32 = vmax.f32 %v1989_v47, 0.0  ;;  %v1991_v55 = vpop.f32.mrb[214].mxu0  ;;  %v2464_v58 = vmax.f32 %v2182_v6, 0.0  ;;  %v2184_v5 = vpop.f32.mrb[214].mxu1 }
 0x339   : > { %v3254_v8 = vadd.f32 %v3253_v33, %v2461_v53  ;;  %v2477_v11 = vmax.f32 %v1991_v55, 0.0  ;;  %v1993_v59 = vpop.f32.mrb[215].mxu0  ;;  %v3328_v17 = vadd.f32 %v3327_v0, %v2463_v2  ;;  %v2479_v14 = vmax.f32 %v2184_v5, 0.0  ;;  %v2186_v24 = vpop.f32.mrb[215].mxu1  ;;  %v20259_v53 = vld [vmem:[#allocation15_spill] sm:$0xff] }
 0x33a   : > { %v3291_v7 = vadd.f32 %v3290_v37, %v2462_v32  ;;  %v2478_v57 = vmax.f32 %v1993_v59, 0.0  ;;  %v3365_v56 = vadd.f32 %v3364_v48, %v2464_v58  ;;  %v2480_v20 = vmax.f32 %v2186_v24, 0.0  ;;  %v20260_v32 = vld [vmem:[#allocation17_spill] sm:$0xff] }
 0x33b   : > { %v3255_v16 = vadd.f32 %v3254_v8, %v2477_v11  ;;  %14842 = vmatmul.mubr.msk.bf16.vlgmr.msra.gmra.mrb[64].mxu0 %vm696_vm0, %v17616_v28  ;;  %v3329_v4 = vadd.f32 %v3328_v17, %v2479_v14  ;;  %14858 = vmatmul.mubr.msk.bf16.vlgmr.msra.gmra.mrb[64].mxu1 %vm696_vm0, %v17616_v28 }
 0x33c   : > { %v3292_v12 = vadd.f32 %v3291_v7, %v2478_v57  ;;  %4343 = vmatpush1.bf16.msra.mxu0 %v17022_v38  ;;  %v3366_v22 = vadd.f32 %v3365_v56, %v2480_v20  ;;  %4536 = vmatpush1.bf16.msra.mxu1 %v17026_v42 }
 0x33d   : > { %3998 = vmatprep.mubr.bf16.mxu0 %v20254_v31  ;;  %4191 = vmatprep.mubr.bf16.mxu1 %v20254_v31 }
 0x33e   : > { %v1997_v15 = vpop.f32.mrb[216].mxu0  ;;  %4344 = vmatprep.subr.bf16.mxu0 %v17181_v61  ;;  %v2190_v29 = vpop.f32.mrb[216].mxu1  ;;  %4537 = vmatprep.subr.bf16.mxu1 %v17185_v62 }
 0x33f   : > { %v2493_v18 = vmax.f32 %v1997_v15, 0.0  ;;  %v1999_v35 = vpop.f32.mrb[217].mxu0  ;;  %v2495_v33 = vmax.f32 %v2190_v29, 0.0  ;;  %v2192_v28 = vpop.f32.mrb[217].mxu1 }
 0x340   : > { %v2494_v39 = vmax.f32 %v1999_v35, 0.0  ;;  %v2001_v0 = vpop.f32.mrb[218].mxu0  ;;  %4345 = vmatpush1.bf16.msra.mxu0 %v17190_v63  ;;  %v2496_v42 = vmax.f32 %v2192_v28, 0.0  ;;  %v2194_v48 = vpop.f32.mrb[218].mxu1  ;;  %4538 = vmatpush1.bf16.msra.mxu1 %v17194_v1 }
 0x341   : > { %v3256_v38 = vadd.f32 %v3255_v16, %v2493_v18  ;;  %v2509_v37 = vmax.f32 %v2001_v0, 0.0  ;;  %v2003_v13 = vpop.f32.mrb[219].mxu0  ;;  %4728 = vmatprep.subr.bf16.mxu0 %v20259_v53  ;;  %v3330_v61 = vadd.f32 %v3329_v4, %v2495_v33  ;;  %v2511_v47 = vmax.f32 %v2194_v48, 0.0  ;;  %v2196_v62 = vpop.f32.mrb[219].mxu1  ;;  %4921 = vmatprep.subr.bf16.mxu1 %v20260_v32 }
 0x342   : > { %v3293_v26 = vadd.f32 %v3292_v12, %v2494_v39  ;;  %v2510_v2 = vmax.f32 %v2003_v13, 0.0  ;;  %v3367_v6 = vadd.f32 %v3366_v22, %v2496_v42  ;;  %v2512_v8 = vmax.f32 %v2196_v62, 0.0 }
 0x343   : > { %v3257_v55 = vadd.f32 %v3256_v38, %v2509_v37  ;;  %14843 = vmatmul.mubr.msk.bf16.gmra.mrb[68].mxu0 %vm696_vm0, %v17630_v50  ;;  %v3331_v63 = vadd.f32 %v3330_v61, %v2511_v47  ;;  %14859 = vmatmul.mubr.msk.bf16.gmra.mrb[68].mxu1 %vm696_vm0, %v17630_v50 }
 0x344   : > { %v3294_v58 = vadd.f32 %v3293_v26, %v2510_v2  ;;  %4008 = vmatprep.mubr.bf16.mxu0 %v20254_v31  ;;  %v3368_v1 = vadd.f32 %v3367_v6, %v2512_v8  ;;  %4201 = vmatprep.mubr.bf16.mxu1 %v20254_v31 }
 0x346   : > { %v2007_v11 = vpop.f32.mrb[220].mxu0  ;;  %v2200_v59 = vpop.f32.mrb[220].mxu1 }
 0x347   : > { %v2525_v5 = vmax.f32 %v2007_v11, 0.0  ;;  %v2009_v17 = vpop.f32.mrb[221].mxu0  ;;  %v2527_v7 = vmax.f32 %v2200_v59, 0.0  ;;  %v2202_v57 = vpop.f32.mrb[221].mxu1 }
 0x348   : > { %v2526_v14 = vmax.f32 %v2009_v17, 0.0  ;;  %v2011_v24 = vpop.f32.mrb[222].mxu0  ;;  %v2528_v16 = vmax.f32 %v2202_v57, 0.0  ;;  %v2204_v4 = vpop.f32.mrb[222].mxu1 }
 0x349   : > { %v3258_v56 = vadd.f32 %v3257_v55, %v2525_v5  ;;  %v2541_v20 = vmax.f32 %v2011_v24, 0.0  ;;  %v2013_v12 = vpop.f32.mrb[223].mxu0  ;;  %v3332_v22 = vadd.f32 %v3331_v63, %v2527_v7  ;;  %v2543_v15 = vmax.f32 %v2204_v4, 0.0  ;;  %v2206_v29 = vpop.f32.mrb[223].mxu1 }
 0x34a   : > { %v3295_v50 = vadd.f32 %v3294_v58, %v2526_v14  ;;  %v2542_v18 = vmax.f32 %v2013_v12, 0.0  ;;  %v3369_v35 = vadd.f32 %v3368_v1, %v2528_v16  ;;  %v2544_v39 = vmax.f32 %v2206_v29, 0.0 }
 0x34b   : > { %v3259_v33 = vadd.f32 %v3258_v56, %v2541_v20  ;;  %14844 = vmatmul.mubr.msk.bf16.gmra.mrb[72].mxu0 %vm696_vm0, %v17646_v44  ;;  %v3333_v28 = vadd.f32 %v3332_v22, %v2543_v15  ;;  %14860 = vmatmul.mubr.msk.bf16.gmra.mrb[72].mxu1 %vm696_vm0, %v17646_v44 }
 0x34c   : > { %v3296_v0 = vadd.f32 %v3295_v50, %v2542_v18  ;;  %4018 = vmatprep.mubr.bf16.mxu0 %v20254_v31  ;;  %v3370_v38 = vadd.f32 %v3369_v35, %v2544_v39  ;;  %4211 = vmatprep.mubr.bf16.mxu1 %v20254_v31 }
 0x34e   : > { %v2017_v42 = vpop.f32.mrb[224].mxu0  ;;  %v2210_v48 = vpop.f32.mrb[224].mxu1 }
 0x34f   : > { %v2557_v37 = vmax.f32 %v2017_v42, 0.0  ;;  %v2019_v13 = vpop.f32.mrb[225].mxu0  ;;  %v2559_v53 = vmax.f32 %v2210_v48, 0.0  ;;  %v2212_v26 = vpop.f32.mrb[225].mxu1 }
 0x350   : > { %v2558_v61 = vmax.f32 %v2019_v13, 0.0  ;;  %v2021_v47 = vpop.f32.mrb[226].mxu0  ;;  %v2560_v62 = vmax.f32 %v2212_v26, 0.0  ;;  %v2214_v6 = vpop.f32.mrb[226].mxu1 }
 0x351   : > { %v3260_v2 = vadd.f32 %v3259_v33, %v2557_v37  ;;  %v2573_v32 = vmax.f32 %v2021_v47, 0.0  ;;  %v2023_v55 = vpop.f32.mrb[227].mxu0  ;;  %v3334_v8 = vadd.f32 %v3333_v28, %v2559_v53  ;;  %v2575_v63 = vmax.f32 %v2214_v6, 0.0  ;;  %v2216_v1 = vpop.f32.mrb[227].mxu1 }
 0x352   : > { %v3297_v44 = vadd.f32 %v3296_v0, %v2558_v61  ;;  %v2574_v58 = vmax.f32 %v2023_v55, 0.0  ;;  %v3371_v11 = vadd.f32 %v3370_v38, %v2560_v62  ;;  %v2576_v59 = vmax.f32 %v2216_v1, 0.0 }
 0x353   : > { %v3261_v5 = vadd.f32 %v3260_v2, %v2573_v32  ;;  %14845 = vmatmul.mubr.msk.bf16.gmra.mrb[76].mxu0 %vm696_vm0, %v17657_v49  ;;  %v3335_v17 = vadd.f32 %v3334_v8, %v2575_v63  ;;  %14861 = vmatmul.mubr.msk.bf16.gmra.mrb[76].mxu1 %vm696_vm0, %v17657_v49 }
 0x354   : > { %v3298_v7 = vadd.f32 %v3297_v44, %v2574_v58  ;;  %4028 = vmatprep.mubr.bf16.mxu0 %v20254_v31  ;;  %v3372_v14 = vadd.f32 %v3371_v11, %v2576_v59  ;;  %4221 = vmatprep.mubr.bf16.mxu1 %v20254_v31 }
 0x356   : > { %v2027_v57 = vpop.f32.mrb[228].mxu0  ;;  %v2220_v56 = vpop.f32.mrb[228].mxu1 }
 0x357   : > { %v2589_v24 = vmax.f32 %v2027_v57, 0.0  ;;  %v2029_v16 = vpop.f32.mrb[229].mxu0  ;;  %v2591_v20 = vmax.f32 %v2220_v56, 0.0  ;;  %v2222_v12 = vpop.f32.mrb[229].mxu1 }
 0x358   : > { %v2590_v4 = vmax.f32 %v2029_v16, 0.0  ;;  %v2031_v22 = vpop.f32.mrb[230].mxu0  ;;  %v2592_v15 = vmax.f32 %v2222_v12, 0.0  ;;  %v2224_v29 = vpop.f32.mrb[230].mxu1 }
 0x359   : > { %v3262_v50 = vadd.f32 %v3261_v5, %v2589_v24  ;;  %v2605_v18 = vmax.f32 %v2031_v22, 0.0  ;;  %v2033_v35 = vpop.f32.mrb[231].mxu0  ;;  %v3336_v33 = vadd.f32 %v3335_v17, %v2591_v20  ;;  %v2607_v39 = vmax.f32 %v2224_v29, 0.0  ;;  %v2226_v0 = vpop.f32.mrb[231].mxu1 }
 0x35a   : > { %v3299_v49 = vadd.f32 %v3298_v7, %v2590_v4  ;;  %v2606_v28 = vmax.f32 %v2033_v35, 0.0  ;;  %v3373_v38 = vadd.f32 %v3372_v14, %v2592_v15  ;;  %v2608_v37 = vmax.f32 %v2226_v0, 0.0 }
 0x35b   : > { %v3263_v42 = vadd.f32 %v3262_v50, %v2605_v18  ;;  %14846 = vmatmul.mubr.msk.bf16.gmra.mrb[80].mxu0 %vm696_vm0, %v17668_v43  ;;  %v3337_v48 = vadd.f32 %v3336_v33, %v2607_v39  ;;  %14862 = vmatmul.mubr.msk.bf16.gmra.mrb[80].mxu1 %vm696_vm0, %v17668_v43 }
 0x35c   : > { %v3300_v13 = vadd.f32 %v3299_v49, %v2606_v28  ;;  %4038 = vmatprep.mubr.bf16.mxu0 %v20254_v31  ;;  %v3374_v53 = vadd.f32 %v3373_v38, %v2608_v37  ;;  %4231 = vmatprep.mubr.bf16.mxu1 %v20254_v31 }
 0x35e   : > { %v2037_v61 = vpop.f32.mrb[232].mxu0  ;;  %v2230_v47 = vpop.f32.mrb[232].mxu1 }
 0x35f   : > { %v2621_v26 = vmax.f32 %v2037_v61, 0.0  ;;  %v2039_v2 = vpop.f32.mrb[233].mxu0  ;;  %v2623_v62 = vmax.f32 %v2230_v47, 0.0  ;;  %v2232_v6 = vpop.f32.mrb[233].mxu1 }
 0x360   : > { %v2622_v32 = vmax.f32 %v2039_v2, 0.0  ;;  %v2041_v55 = vpop.f32.mrb[234].mxu0  ;;  %v2624_v44 = vmax.f32 %v2232_v6, 0.0  ;;  %v2234_v58 = vpop.f32.mrb[234].mxu1 }
 0x361   : > { %v3264_v8 = vadd.f32 %v3263_v42, %v2621_v26  ;;  %v2637_v63 = vmax.f32 %v2041_v55, 0.0  ;;  %v2043_v1 = vpop.f32.mrb[235].mxu0  ;;  %v3338_v11 = vadd.f32 %v3337_v48, %v2623_v62  ;;  %v2639_v5 = vmax.f32 %v2234_v58, 0.0  ;;  %v2236_v17 = vpop.f32.mrb[235].mxu1 }
 0x362   : > { %v3301_v43 = vadd.f32 %v3300_v13, %v2622_v32  ;;  %v2638_v59 = vmax.f32 %v2043_v1, 0.0  ;;  %v3375_v7 = vadd.f32 %v3374_v53, %v2624_v44  ;;  %v2640_v57 = vmax.f32 %v2236_v17, 0.0 }
 0x363   : > { %v3265_v14 = vadd.f32 %v3264_v8, %v2637_v63  ;;  %14847 = vmatmul.mubr.msk.bf16.gmra.mrb[84].mxu0 %vm696_vm0, %v17679_v52  ;;  %v3339_v24 = vadd.f32 %v3338_v11, %v2639_v5  ;;  %14863 = vmatmul.mubr.msk.bf16.gmra.mrb[84].mxu1 %vm696_vm0, %v17679_v52 }
 0x364   : > { %v3302_v56 = vadd.f32 %v3301_v43, %v2638_v59  ;;  %4048 = vmatprep.mubr.bf16.mxu0 %v20254_v31  ;;  %v3376_v16 = vadd.f32 %v3375_v7, %v2640_v57  ;;  %4241 = vmatprep.mubr.bf16.mxu1 %v20254_v31 }
 0x366   : > { %v2047_v20 = vpop.f32.mrb[236].mxu0  ;;  %v2240_v12 = vpop.f32.mrb[236].mxu1 }
 0x367   : > { %v2653_v4 = vmax.f32 %v2047_v20, 0.0  ;;  %v2049_v22 = vpop.f32.mrb[237].mxu0  ;;  %v2655_v50 = vmax.f32 %v2240_v12, 0.0  ;;  %v2242_v18 = vpop.f32.mrb[237].mxu1 }
 0x368   : > { %v2654_v15 = vmax.f32 %v2049_v22, 0.0  ;;  %v2051_v29 = vpop.f32.mrb[238].mxu0  ;;  %v2656_v33 = vmax.f32 %v2242_v18, 0.0  ;;  %v2244_v39 = vpop.f32.mrb[238].mxu1 }
 0x369   : > { %v3266_v35 = vadd.f32 %v3265_v14, %v2653_v4  ;;  %v2669_v49 = vmax.f32 %v2051_v29, 0.0  ;;  %v2053_v28 = vpop.f32.mrb[239].mxu0  ;;  %v3340_v0 = vadd.f32 %v3339_v24, %v2655_v50  ;;  %v2671_v38 = vmax.f32 %v2244_v39, 0.0  ;;  %v2246_v37 = vpop.f32.mrb[239].mxu1 }
 0x36a   : > { %v3303_v52 = vadd.f32 %v3302_v56, %v2654_v15  ;;  %v2670_v42 = vmax.f32 %v2053_v28, 0.0  ;;  %v3377_v48 = vadd.f32 %v3376_v16, %v2656_v33  ;;  %v2672_v53 = vmax.f32 %v2246_v37, 0.0 }
 0x36b   : > { %v3267_v13 = vadd.f32 %v3266_v35, %v2669_v49  ;;  %14848 = vmatmul.mubr.msk.bf16.gmra.mrb[88].mxu0 %vm696_vm0, %v17690_v19  ;;  %v3341_v61 = vadd.f32 %v3340_v0, %v2671_v38  ;;  %14864 = vmatmul.mubr.msk.bf16.gmra.mrb[88].mxu1 %vm696_vm0, %v17690_v19 }
 0x36c   : > { %v3304_v26 = vadd.f32 %v3303_v52, %v2670_v42  ;;  %4058 = vmatprep.mubr.bf16.mxu0 %v20254_v31  ;;  %v3378_v47 = vadd.f32 %v3377_v48, %v2672_v53  ;;  %4251 = vmatprep.mubr.bf16.mxu1 %v20254_v31 }
 0x36e   : > { %v2057_v2 = vpop.f32.mrb[240].mxu0  ;;  %v2250_v32 = vpop.f32.mrb[240].mxu1 }
 0x36f   : > { %v2685_v62 = vmax.f32 %v2057_v2, 0.0  ;;  %v2059_v6 = vpop.f32.mrb[241].mxu0  ;;  %v2687_v55 = vmax.f32 %v2250_v32, 0.0  ;;  %v2252_v44 = vpop.f32.mrb[241].mxu1 }
 0x370   : > { %v2686_v8 = vmax.f32 %v2059_v6, 0.0  ;;  %v2061_v63 = vpop.f32.mrb[242].mxu0  ;;  %v2688_v1 = vmax.f32 %v2252_v44, 0.0  ;;  %v2254_v43 = vpop.f32.mrb[242].mxu1 }
 0x371   : > { %v3268_v58 = vadd.f32 %v3267_v13, %v2685_v62  ;;  %v2701_v11 = vmax.f32 %v2061_v63, 0.0  ;;  %v2063_v5 = vpop.f32.mrb[243].mxu0  ;;  %v3342_v59 = vadd.f32 %v3341_v61, %v2687_v55  ;;  %v2703_v17 = vmax.f32 %v2254_v43, 0.0  ;;  %v2256_v14 = vpop.f32.mrb[243].mxu1 }
 0x372   : > { %v3305_v19 = vadd.f32 %v3304_v26, %v2686_v8  ;;  %v2702_v7 = vmax.f32 %v2063_v5, 0.0  ;;  %v3379_v57 = vadd.f32 %v3378_v47, %v2688_v1  ;;  %v2704_v56 = vmax.f32 %v2256_v14, 0.0 }
 0x373   : > { %v3269_v24 = vadd.f32 %v3268_v58, %v2701_v11  ;;  %14849 = vmatmul.mubr.msk.bf16.gmra.mrb[92].mxu0 %vm696_vm0, %v17701_v25  ;;  %v3343_v16 = vadd.f32 %v3342_v59, %v2703_v17  ;;  %14865 = vmatmul.mubr.msk.bf16.gmra.mrb[92].mxu1 %vm696_vm0, %v17701_v25 }
 0x374   : > { %v3306_v20 = vadd.f32 %v3305_v19, %v2702_v7  ;;  %4068 = vmatprep.mubr.bf16.mxu0 %v20254_v31  ;;  %v3380_v4 = vadd.f32 %v3379_v57, %v2704_v56  ;;  %4261 = vmatprep.mubr.bf16.mxu1 %v20254_v31 }
 0x376   : > { %v2067_v12 = vpop.f32.mrb[244].mxu0  ;;  %v2260_v50 = vpop.f32.mrb[244].mxu1 }
 0x377   : > { %v2717_v22 = vmax.f32 %v2067_v12, 0.0  ;;  %v2069_v15 = vpop.f32.mrb[245].mxu0  ;;  %v2719_v18 = vmax.f32 %v2260_v50, 0.0  ;;  %v2262_v35 = vpop.f32.mrb[245].mxu1 }
 0x378   : > { %v2718_v29 = vmax.f32 %v2069_v15, 0.0  ;;  %v2071_v33 = vpop.f32.mrb[246].mxu0  ;;  %v2720_v39 = vmax.f32 %v2262_v35, 0.0  ;;  %v2264_v0 = vpop.f32.mrb[246].mxu1 }
 0x379   : > { %v3270_v49 = vadd.f32 %v3269_v24, %v2717_v22  ;;  %v2733_v28 = vmax.f32 %v2071_v33, 0.0  ;;  %v2073_v52 = vpop.f32.mrb[247].mxu0  ;;  %v3344_v38 = vadd.f32 %v3343_v16, %v2719_v18  ;;  %v2735_v42 = vmax.f32 %v2264_v0, 0.0  ;;  %v2266_v48 = vpop.f32.mrb[247].mxu1 }
 0x37a   : > { %v3307_v25 = vadd.f32 %v3306_v20, %v2718_v29  ;;  %v2734_v37 = vmax.f32 %v2073_v52, 0.0  ;;  %v3381_v13 = vadd.f32 %v3380_v4, %v2720_v39  ;;  %v2736_v61 = vmax.f32 %v2266_v48, 0.0 }
 0x37b   : > { %v3271_v53 = vadd.f32 %v3270_v49, %v2733_v28  ;;  %14850 = vmatmul.mubr.msk.bf16.gmra.mrb[96].mxu0 %vm696_vm0, %v17712_v51  ;;  %v3345_v26 = vadd.f32 %v3344_v38, %v2735_v42  ;;  %14866 = vmatmul.mubr.msk.bf16.gmra.mrb[96].mxu1 %vm696_vm0, %v17712_v51 }
 0x37c   : > { %v3308_v47 = vadd.f32 %v3307_v25, %v2734_v37  ;;  %4078 = vmatprep.mubr.bf16.mxu0 %v20254_v31  ;;  %v3382_v2 = vadd.f32 %v3381_v13, %v2736_v61  ;;  %4271 = vmatprep.mubr.bf16.mxu1 %v20254_v31 }
 0x37e   : > { %v2077_v62 = vpop.f32.mrb[248].mxu0  ;;  %v2270_v6 = vpop.f32.mrb[248].mxu1 }
 0x37f   : > { %v2749_v32 = vmax.f32 %v2077_v62, 0.0  ;;  %v2079_v55 = vpop.f32.mrb[249].mxu0  ;;  %v2751_v8 = vmax.f32 %v2270_v6, 0.0  ;;  %v2272_v63 = vpop.f32.mrb[249].mxu1 }
 0x380   : > { %v2750_v44 = vmax.f32 %v2079_v55, 0.0  ;;  %v2081_v58 = vpop.f32.mrb[250].mxu0  ;;  %v2752_v11 = vmax.f32 %v2272_v63, 0.0  ;;  %v2274_v5 = vpop.f32.mrb[250].mxu1 }
 0x381   : > { %v3272_v1 = vadd.f32 %v3271_v53, %v2749_v32  ;;  %v2765_v43 = vmax.f32 %v2081_v58, 0.0  ;;  %v2083_v59 = vpop.f32.mrb[251].mxu0  ;;  %v3346_v19 = vadd.f32 %v3345_v26, %v2751_v8  ;;  %v2767_v17 = vmax.f32 %v2274_v5, 0.0  ;;  %v2276_v14 = vpop.f32.mrb[251].mxu1 }
 0x382   : > { %v3309_v51 = vadd.f32 %v3308_v47, %v2750_v44  ;;  %v2766_v7 = vmax.f32 %v2083_v59, 0.0  ;;  %v3383_v57 = vadd.f32 %v3382_v2, %v2752_v11  ;;  %v2768_v56 = vmax.f32 %v2276_v14, 0.0 }
 0x383   : > { %v3273_v24 = vadd.f32 %v3272_v1, %v2765_v43  ;;  %14851 = vmatmul.mubr.msk.bf16.gmra.mrb[100].mxu0 %vm696_vm0, %v17723_v30  ;;  %v3347_v16 = vadd.f32 %v3346_v19, %v2767_v17  ;;  %14867 = vmatmul.mubr.msk.bf16.gmra.mrb[100].mxu1 %vm696_vm0, %v17723_v30 }
 0x384   : > { %v3310_v20 = vadd.f32 %v3309_v51, %v2766_v7  ;;  %4088 = vmatprep.mubr.bf16.mxu0 %v20254_v31  ;;  %v3384_v4 = vadd.f32 %v3383_v57, %v2768_v56  ;;  %4281 = vmatprep.mubr.bf16.mxu1 %v20254_v31 }
 0x386   : > { %v2087_v12 = vpop.f32.mrb[252].mxu0  ;;  %v2280_v50 = vpop.f32.mrb[252].mxu1 }
 0x387   : > { %v2781_v22 = vmax.f32 %v2087_v12, 0.0  ;;  %v2089_v15 = vpop.f32.mrb[253].mxu0  ;;  %v2783_v18 = vmax.f32 %v2280_v50, 0.0  ;;  %v2282_v35 = vpop.f32.mrb[253].mxu1 }
 0x388   : > { %v2782_v29 = vmax.f32 %v2089_v15, 0.0  ;;  %v2091_v33 = vpop.f32.mrb[254].mxu0  ;;  %v2784_v39 = vmax.f32 %v2282_v35, 0.0  ;;  %v2284_v0 = vpop.f32.mrb[254].mxu1 }
 0x389   : > { %v3274_v49 = vadd.f32 %v3273_v24, %v2781_v22  ;;  %v2797_v28 = vmax.f32 %v2091_v33, 0.0  ;;  %v2093_v52 = vpop.f32.mrb[255].mxu0  ;;  %v3348_v38 = vadd.f32 %v3347_v16, %v2783_v18  ;;  %v2799_v25 = vmax.f32 %v2284_v0, 0.0  ;;  %v2286_v37 = vpop.f32.mrb[255].mxu1 }
 0x38a   : > { %v3311_v30 = vadd.f32 %v3310_v20, %v2782_v29  ;;  %v2798_v42 = vmax.f32 %v2093_v52, 0.0  ;;  %v3385_v48 = vadd.f32 %v3384_v4, %v2784_v39  ;;  %v2800_v53 = vmax.f32 %v2286_v37, 0.0 }
 0x38b   : > { %v17873_v13 = vadd.f32 %v3274_v49, %v2797_v28  ;;  %14852 = vmatmul.mubr.msk.bf16.gmra.mrb[104].mxu0 %vm696_vm0, %v17734_v10  ;;  %v17877_v61 = vadd.f32 %v3348_v38, %v2799_v25  ;;  %14868 = vmatmul.mubr.msk.bf16.gmra.mrb[104].mxu1 %vm696_vm0, %v17734_v10 }
 0x38c   : > { %v17879_v26 = vadd.f32 %v3311_v30, %v2798_v42  ;;  %4098 = vmatprep.mubr.bf16.mxu0 %v20254_v31  ;;  %v17884_v47 = vadd.f32 %v3385_v48, %v2800_v53  ;;  %4291 = vmatprep.mubr.bf16.mxu1 %v20254_v31 }
 0x38e   : > { %v3604_v2 = vpop.f32.mrb[0].mxu0  ;;  %v3797_v62 = vpop.f32.mrb[0].mxu1 }
 0x38f   : > { %v3606_v32 = vpop.f32.mrb[1].mxu0  ;;  %v3799_v6 = vpop.f32.mrb[1].mxu1  ;;  %v5116_v8 = vmax.f32 %v3797_v62, 0.0  ;;  %v5114_v58 = vmax.f32 %v3604_v2, 0.0 }
 0x390   : > { %v3608_v55 = vpop.f32.mrb[2].mxu0  ;;  %v3801_v44 = vpop.f32.mrb[2].mxu1  ;;  %v5117_v11 = vmax.f32 %v3799_v6, 0.0  ;;  %v5115_v19 = vmax.f32 %v3606_v32, 0.0 }
 0x391   : > { %v3610_v63 = vpop.f32.mrb[3].mxu0  ;;  %v5130_v1 = vmax.f32 %v3608_v55, 0.0  ;;  %v3803_v43 = vpop.f32.mrb[3].mxu1  ;;  %v5132_v5 = vmax.f32 %v3801_v44, 0.0 }
 0x392   : > { %v5131_v10 = vmax.f32 %v3610_v63, 0.0  ;;  %v5133_v51 = vmax.f32 %v3803_v43, 0.0 }
 0x393   : > { %14853 = vmatmul.mubr.msk.bf16.gmra.mrb[108].mxu0 %vm696_vm0, %v17753_v34  ;;  %v5626_v59 = vadd.f32 %v5130_v1, %v5114_v58  ;;  %14869 = vmatmul.mubr.msk.bf16.gmra.mrb[108].mxu1 %vm696_vm0, %v17753_v34  ;;  %v5700_v17 = vadd.f32 %v5132_v5, %v5116_v8 }
 0x394   : > { %4108 = vmatprep.mubr.bf16.mxu0 %v20254_v31  ;;  %4301 = vmatprep.mubr.bf16.mxu1 %v20254_v31  ;;  %v5663_v7 = vadd.f32 %v5131_v10, %v5115_v19  ;;  %v5737_v14 = vadd.f32 %v5133_v51, %v5117_v11 }
 0x396   : > { %v3614_v57 = vpop.f32.mrb[4].mxu0  ;;  %v3807_v24 = vpop.f32.mrb[4].mxu1 }
 0x397   : > { %v3616_v56 = vpop.f32.mrb[5].mxu0  ;;  %v5146_v16 = vmax.f32 %v3614_v57, 0.0  ;;  %v3809_v20 = vpop.f32.mrb[5].mxu1  ;;  %v5148_v12 = vmax.f32 %v3807_v24, 0.0 }
 0x398   : > { %v3618_v4 = vpop.f32.mrb[6].mxu0  ;;  %v5147_v22 = vmax.f32 %v3616_v56, 0.0  ;;  %v3811_v50 = vpop.f32.mrb[6].mxu1  ;;  %v5149_v52 = vmax.f32 %v3809_v20, 0.0 }
 0x399   : > { %v3620_v15 = vpop.f32.mrb[7].mxu0  ;;  %v5162_v18 = vmax.f32 %v3618_v4, 0.0  ;;  %v5627_v29 = vadd.f32 %v5626_v59, %v5146_v16  ;;  %v3813_v34 = vpop.f32.mrb[7].mxu1  ;;  %v5164_v35 = vmax.f32 %v3811_v50, 0.0  ;;  %v5701_v33 = vadd.f32 %v5700_v17, %v5148_v12 }
 0x39a   : > { %v5163_v39 = vmax.f32 %v3620_v15, 0.0  ;;  %v5664_v28 = vadd.f32 %v5663_v7, %v5147_v22  ;;  %v5165_v38 = vmax.f32 %v3813_v34, 0.0  ;;  %v5738_v42 = vadd.f32 %v5737_v14, %v5149_v52 }
 0x39b   : > { %14854 = vmatmul.mubr.msk.bf16.gmra.mrb[112].mxu0 %vm696_vm0, %v17764_v3  ;;  %v5628_v49 = vadd.f32 %v5627_v29, %v5162_v18  ;;  %14870 = vmatmul.mubr.msk.bf16.gmra.mrb[112].mxu1 %vm696_vm0, %v17764_v3  ;;  %v5702_v0 = vadd.f32 %v5701_v33, %v5164_v35 }
 0x39c   : > { %4118 = vmatprep.mubr.bf16.mxu0 %v20254_v31  ;;  %v5665_v30 = vadd.f32 %v5664_v28, %v5163_v39  ;;  %4311 = vmatprep.mubr.bf16.mxu1 %v20254_v31  ;;  %v5739_v6 = vadd.f32 %v5738_v42, %v5165_v38 }
 0x39e   : > { %v3624_v25 = vpop.f32.mrb[8].mxu0  ;;  %v3817_v48 = vpop.f32.mrb[8].mxu1 }
 0x39f   : > { %v5178_v37 = vmax.f32 %v3624_v25, 0.0  ;;  %v3626_v53 = vpop.f32.mrb[9].mxu0  ;;  %v5180_v2 = vmax.f32 %v3817_v48, 0.0  ;;  %v3819_v32 = vpop.f32.mrb[9].mxu1 }
 0x3a0   : > { %v5179_v62 = vmax.f32 %v3626_v53, 0.0  ;;  %v3628_v55 = vpop.f32.mrb[10].mxu0  ;;  %v5181_v3 = vmax.f32 %v3819_v32, 0.0  ;;  %v3821_v63 = vpop.f32.mrb[10].mxu1 }
 0x3a1   : > { %v5629_v8 = vadd.f32 %v5628_v49, %v5178_v37  ;;  %v5194_v44 = vmax.f32 %v3628_v55, 0.0  ;;  %v3630_v58 = vpop.f32.mrb[11].mxu0  ;;  %v5703_v1 = vadd.f32 %v5702_v0, %v5180_v2  ;;  %v5196_v43 = vmax.f32 %v3821_v63, 0.0  ;;  %v3823_v10 = vpop.f32.mrb[11].mxu1 }
 0x3a2   : > { %v5666_v11 = vadd.f32 %v5665_v30, %v5179_v62  ;;  %v5195_v5 = vmax.f32 %v3630_v58, 0.0  ;;  %v5740_v59 = vadd.f32 %v5739_v6, %v5181_v3  ;;  %v5197_v51 = vmax.f32 %v3823_v10, 0.0 }
 0x3a3   : > { %v5630_v19 = vadd.f32 %v5629_v8, %v5194_v44  ;;  %14855 = vmatmul.mubr.msk.bf16.gmra.mrb[116].mxu0 %vm696_vm0, %v17775_v60  ;;  %v5704_v17 = vadd.f32 %v5703_v1, %v5196_v43  ;;  %14871 = vmatmul.mubr.msk.bf16.gmra.mrb[116].mxu1 %vm696_vm0, %v17775_v60 }
 0x3a4   : > { %v5667_v7 = vadd.f32 %v5666_v11, %v5195_v5  ;;  %4128 = vmatprep.mubr.bf16.mxu0 %v20254_v31  ;;  %v5741_v14 = vadd.f32 %v5740_v59, %v5197_v51  ;;  %4321 = vmatprep.mubr.bf16.mxu1 %v20254_v31 }
 0x3a6   : > { %v3634_v57 = vpop.f32.mrb[12].mxu0  ;;  %v3827_v56 = vpop.f32.mrb[12].mxu1 }
 0x3a7   : > { %v5210_v24 = vmax.f32 %v3634_v57, 0.0  ;;  %v3636_v16 = vpop.f32.mrb[13].mxu0  ;;  %v5212_v20 = vmax.f32 %v3827_v56, 0.0  ;;  %v3829_v12 = vpop.f32.mrb[13].mxu1 }
 0x3a8   : > { %v5211_v4 = vmax.f32 %v3636_v16, 0.0  ;;  %v3638_v22 = vpop.f32.mrb[14].mxu0  ;;  %v5213_v15 = vmax.f32 %v3829_v12, 0.0  ;;  %v3831_v29 = vpop.f32.mrb[14].mxu1 }
 0x3a9   : > { %v5631_v50 = vadd.f32 %v5630_v19, %v5210_v24  ;;  %v5226_v18 = vmax.f32 %v3638_v22, 0.0  ;;  %v3640_v34 = vpop.f32.mrb[15].mxu0  ;;  %v5705_v35 = vadd.f32 %v5704_v17, %v5212_v20  ;;  %v5228_v33 = vmax.f32 %v3831_v29, 0.0  ;;  %v3833_v39 = vpop.f32.mrb[15].mxu1 }
 0x3aa   : > { %v5668_v60 = vadd.f32 %v5667_v7, %v5211_v4  ;;  %v5227_v49 = vmax.f32 %v3640_v34, 0.0  ;;  %v5742_v28 = vadd.f32 %v5741_v14, %v5213_v15  ;;  %v5229_v0 = vmax.f32 %v3833_v39, 0.0 }
 0x3ab   : > { %14856 = vmatmul.mubr.msk.bf16.gmra.mrb[120].mxu0 %vm696_vm0, %v17786_v46  ;;  %v5632_v52 = vadd.f32 %v5631_v50, %v5226_v18  ;;  %14872 = vmatmul.mubr.msk.bf16.gmra.mrb[120].mxu1 %vm696_vm0, %v17786_v46  ;;  %v5706_v38 = vadd.f32 %v5705_v35, %v5228_v33 }
 0x3ac   : > { %v5669_v30 = vadd.f32 %v5668_v60, %v5227_v49  ;;  %4138 = vmatprep.mubr.bf16.mxu0 %v20254_v31  ;;  %v5743_v25 = vadd.f32 %v5742_v28, %v5229_v0  ;;  %4331 = vmatprep.mubr.bf16.mxu1 %v20254_v31  ;;  %v16423_v28 = vld [vmem:[%s20199_s0 + $0x80] sm:$0xff]  }
 0x3ae   : > { %v3644_v42 = vpop.f32.mrb[16].mxu0  ;;  %v3837_v48 = vpop.f32.mrb[16].mxu1 }
 0x3af   : > { %v5242_v37 = vmax.f32 %v3644_v42, 0.0  ;;  %v3646_v53 = vpop.f32.mrb[17].mxu0  ;;  %v5244_v2 = vmax.f32 %v3837_v48, 0.0  ;;  %v3839_v32 = vpop.f32.mrb[17].mxu1  ;;  %v17926_v42 = vld [vmem:[%s16929_s7] sm:$0xff]  ;;  %v17932_v48 = vld [vmem:[%s16929_s7 + $0x8] sm:$0xff] }
 0x3b0   : > { %v5243_v62 = vmax.f32 %v3646_v53, 0.0  ;;  %v3648_v6 = vpop.f32.mrb[18].mxu0  ;;  %v5245_v8 = vmax.f32 %v3839_v32, 0.0  ;;  %v3841_v44 = vpop.f32.mrb[18].mxu1 }
 0x3b1   : > { %v5633_v55 = vadd.f32 %v5632_v52, %v5242_v37  ;;  %v5258_v3 = vmax.f32 %v3648_v6, 0.0  ;;  %v3650_v46 = vpop.f32.mrb[19].mxu0  ;;  %v5707_v63 = vadd.f32 %v5706_v38, %v5244_v2  ;;  %v5260_v1 = vmax.f32 %v3841_v44, 0.0  ;;  %v3843_v43 = vpop.f32.mrb[19].mxu1  ;;  %v20261_v38 = vld [vmem:[#allocation14_spill] sm:$0xff]  ;;  %v17929_v37 = vld [vmem:[%s16929_s7 + $0x20] sm:$0xff] }
 0x3b2   : > { %v5670_v58 = vadd.f32 %v5669_v30, %v5243_v62  ;;  %v5259_v11 = vmax.f32 %v3650_v46, 0.0  ;;  %v5744_v5 = vadd.f32 %v5743_v25, %v5245_v8  ;;  %v5261_v59 = vmax.f32 %v3843_v43, 0.0  ;;  %v20262_v25 = vld [vmem:[#allocation16_spill] sm:$0xff]  ;;  %v20263_v2 = vld [vmem:[#allocation18_spill] sm:$0xff]  ;;  %v20264_v44 = vld [vmem:[#allocation19_spill] sm:$0xff] }
 0x3b3   : > { %v5634_v10 = vadd.f32 %v5633_v55, %v5258_v3  ;;  %14857 = vmatmul.mubr.msk.bf16.gmra.mrb[124].mxu0 %vm696_vm0, %v17797_v41  ;;  %v5708_v19 = vadd.f32 %v5707_v63, %v5260_v1  ;;  %14873 = vmatmul.mubr.msk.bf16.gmra.mrb[124].mxu1 %vm696_vm0, %v17797_v41  ;;  %v14938_v62 = vcombine.low %v17926_v42, %v17929_v37  ;;  %v17941_v6 = vld [vmem:[%s16929_s7 + $0x28] sm:$0xff] }
 0x3b4   : > { %v5671_v51 = vadd.f32 %v5670_v58, %v5259_v11  ;;  %4374 = vmatprep.mubr.bf16.mxu0 %v20254_v31  ;;  %v5745_v17 = vadd.f32 %v5744_v5, %v5261_v59  ;;  %4567 = vmatprep.mubr.bf16.mxu1 %v20254_v31  ;;  %v14939_v32 = vcombine.high %v17926_v42, %v17929_v37  ;;  %v20265_v5 = vld [vmem:[#allocation20_spill] sm:$0xff] }
 0x3b5   : > { %v14940_v46 = vcombine.low %v17932_v48, %v17941_v6  ;;  %v14941_v63 = vcombine.high %v17932_v48, %v17941_v6  ;;  %v18124_v42 = vld [vmem:[%s16929_s7 + $0x408] sm:$0xff]  ;;  %v18133_v6 = vld [vmem:[%s16929_s7 + $0xe0] sm:$0xff] }
 0x3b6   : > { %v3654_v7 = vpop.f32.mrb[20].mxu0  ;;  %v3847_v57 = vpop.f32.mrb[20].mxu1 }
 0x3b7   : > { %v5274_v14 = vmax.f32 %v3654_v7, 0.0  ;;  %v3656_v24 = vpop.f32.mrb[21].mxu0  ;;  %v5276_v56 = vmax.f32 %v3847_v57, 0.0  ;;  %v3849_v20 = vpop.f32.mrb[21].mxu1  ;;  %v20266_v7 = vld [vmem:[#allocation21_spill] sm:$0xff] }
 0x3b8   : > { %v5275_v16 = vmax.f32 %v3656_v24, 0.0  ;;  %v3658_v4 = vpop.f32.mrb[22].mxu0  ;;  %v5277_v22 = vmax.f32 %v3849_v20, 0.0  ;;  %v3851_v15 = vpop.f32.mrb[22].mxu1 }
 0x3b9   : > { %v5635_v12 = vadd.f32 %v5634_v10, %v5274_v14  ;;  %v5290_v50 = vmax.f32 %v3658_v4, 0.0  ;;  %v3660_v18 = vpop.f32.mrb[23].mxu0  ;;  %v5709_v29 = vadd.f32 %v5708_v19, %v5276_v56  ;;  %v5292_v34 = vmax.f32 %v3851_v15, 0.0  ;;  %v3853_v60 = vpop.f32.mrb[23].mxu1 }
 0x3ba   : > { %v5672_v41 = vadd.f32 %v5671_v51, %v5275_v16  ;;  %v5291_v35 = vmax.f32 %v3660_v18, 0.0  ;;  %v5746_v33 = vadd.f32 %v5745_v17, %v5277_v22  ;;  %v5293_v39 = vmax.f32 %v3853_v60, 0.0  ;;  %v16424_v22 = vld [vmem:[%s20199_s0 + $0x88] sm:$0xff]  }
 0x3bb   : > { %v5636_v49 = vadd.f32 %v5635_v12, %v5290_v50  ;;  %14874 = vmatmul.mubr.msk.bf16.vlgmr.msra.gmra.mrb[128].mxu0 %vm696_vm0, %v16423_v28  ;;  %v5710_v0 = vadd.f32 %v5709_v29, %v5292_v34  ;;  %14890 = vmatmul.mubr.msk.bf16.vlgmr.msra.gmra.mrb[128].mxu1 %vm696_vm0, %v16423_v28 }
 0x3bc   : > { %v5673_v52 = vadd.f32 %v5672_v41, %v5291_v35  ;;  %4729 = vmatpush1.bf16.msra.mxu0 %v20261_v38  ;;  %v5747_v30 = vadd.f32 %v5746_v33, %v5293_v39  ;;  %4922 = vmatpush1.bf16.msra.mxu1 %v20262_v25 }
 0x3bd   : > { %4384 = vmatprep.mubr.bf16.mxu0 %v20254_v31  ;;  %4577 = vmatprep.mubr.bf16.mxu1 %v20254_v31 }
 0x3be   : > { %v3664_v53 = vpop.f32.mrb[24].mxu0  ;;  %4730 = vmatprep.subr.bf16.mxu0 %v20263_v2  ;;  %v3857_v8 = vpop.f32.mrb[24].mxu1  ;;  %4923 = vmatprep.subr.bf16.mxu1 %v20264_v44 }
 0x3bf   : > { %v5306_v55 = vmax.f32 %v3664_v53, 0.0  ;;  %v3666_v3 = vpop.f32.mrb[25].mxu0  ;;  %v5308_v58 = vmax.f32 %v3857_v8, 0.0  ;;  %v3859_v11 = vpop.f32.mrb[25].mxu1 }
 0x3c0   : > { %v5307_v1 = vmax.f32 %v3666_v3, 0.0  ;;  %v3668_v43 = vpop.f32.mrb[26].mxu0  ;;  %4731 = vmatpush1.bf16.msra.mxu0 %v20265_v5  ;;  %v5309_v59 = vmax.f32 %v3859_v11, 0.0  ;;  %v3861_v51 = vpop.f32.mrb[26].mxu1  ;;  %4924 = vmatpush1.bf16.msra.mxu1 %v20266_v7 }
 0x3c1   : > { %v5637_v10 = vadd.f32 %v5636_v49, %v5306_v55  ;;  %v5322_v19 = vmax.f32 %v3668_v43, 0.0  ;;  %v3670_v17 = vpop.f32.mrb[27].mxu0  ;;  %12453 = vmatprep.subr.bf16.mxu0 %v14939_v32  ;;  %v5711_v14 = vadd.f32 %v5710_v0, %v5308_v58  ;;  %v5324_v24 = vmax.f32 %v3861_v51, 0.0  ;;  %v3863_v16 = vpop.f32.mrb[27].mxu1  ;;  %12781 = vmatprep.subr.bf16.mxu1 %v14941_v63  ;;  %v16425_v63 = vld [vmem:[%s20199_s0 + $0x90] sm:$0xff]  }
 0x3c2   : > { %v5674_v57 = vadd.f32 %v5673_v52, %v5307_v1  ;;  %v5323_v56 = vmax.f32 %v3670_v17, 0.0  ;;  %v5748_v20 = vadd.f32 %v5747_v30, %v5309_v59  ;;  %v5325_v12 = vmax.f32 %v3863_v16, 0.0 }
 0x3c3   : > { %v5638_v4 = vadd.f32 %v5637_v10, %v5322_v19  ;;  %14875 = vmatmul.mubr.msk.bf16.gmra.mrb[132].mxu0 %vm696_vm0, %v16424_v22  ;;  %v5712_v50 = vadd.f32 %v5711_v14, %v5324_v24  ;;  %14891 = vmatmul.mubr.msk.bf16.gmra.mrb[132].mxu1 %vm696_vm0, %v16424_v22 }
 0x3c4   : > { %v5675_v15 = vadd.f32 %v5674_v57, %v5323_v56  ;;  %4394 = vmatprep.mubr.bf16.mxu0 %v20254_v31  ;;  %v5749_v18 = vadd.f32 %v5748_v20, %v5325_v12  ;;  %4587 = vmatprep.mubr.bf16.mxu1 %v20254_v31 }
 0x3c6   : > { %v3674_v29 = vpop.f32.mrb[28].mxu0  ;;  %v3867_v34 = vpop.f32.mrb[28].mxu1 }
 0x3c7   : > { %v5338_v41 = vmax.f32 %v3674_v29, 0.0  ;;  %v3676_v35 = vpop.f32.mrb[29].mxu0  ;;  %v5340_v60 = vmax.f32 %v3867_v34, 0.0  ;;  %v3869_v49 = vpop.f32.mrb[29].mxu1 }
 0x3c8   : > { %v5339_v33 = vmax.f32 %v3676_v35, 0.0  ;;  %v3678_v39 = vpop.f32.mrb[30].mxu0  ;;  %v5341_v0 = vmax.f32 %v3869_v49, 0.0  ;;  %v3871_v38 = vpop.f32.mrb[30].mxu1 }
 0x3c9   : > { %v5639_v28 = vadd.f32 %v5638_v4, %v5338_v41  ;;  %v5354_v52 = vmax.f32 %v3678_v39, 0.0  ;;  %v3680_v30 = vpop.f32.mrb[31].mxu0  ;;  %v5713_v25 = vadd.f32 %v5712_v50, %v5340_v60  ;;  %v5356_v2 = vmax.f32 %v3871_v38, 0.0  ;;  %v3873_v55 = vpop.f32.mrb[31].mxu1  ;;  %v16426_v41 = vld [vmem:[%s20199_s0 + $0x98] sm:$0xff]  }
 0x3ca   : > { %v5676_v53 = vadd.f32 %v5675_v15, %v5339_v33  ;;  %v5355_v32 = vmax.f32 %v3680_v30, 0.0  ;;  %v5750_v8 = vadd.f32 %v5749_v18, %v5341_v0  ;;  %v5357_v44 = vmax.f32 %v3873_v55, 0.0 }
 0x3cb   : > { %v5640_v3 = vadd.f32 %v5639_v28, %v5354_v52  ;;  %14876 = vmatmul.mubr.msk.bf16.gmra.mrb[136].mxu0 %vm696_vm0, %v16425_v63  ;;  %v5714_v58 = vadd.f32 %v5713_v25, %v5356_v2  ;;  %14892 = vmatmul.mubr.msk.bf16.gmra.mrb[136].mxu1 %vm696_vm0, %v16425_v63 }
 0x3cc   : > { %v5677_v1 = vadd.f32 %v5676_v53, %v5355_v32  ;;  %4404 = vmatprep.mubr.bf16.mxu0 %v20254_v31  ;;  %v5751_v11 = vadd.f32 %v5750_v8, %v5357_v44  ;;  %4597 = vmatprep.mubr.bf16.mxu1 %v20254_v31 }
 0x3ce   : > { %v3684_v43 = vpop.f32.mrb[32].mxu0  ;;  %v3877_v10 = vpop.f32.mrb[32].mxu1 }
 0x3cf   : > { %v5370_v5 = vmax.f32 %v3684_v43, 0.0  ;;  %v3686_v59 = vpop.f32.mrb[33].mxu0  ;;  %v5372_v19 = vmax.f32 %v3877_v10, 0.0  ;;  %v3879_v17 = vpop.f32.mrb[33].mxu1 }
 0x3d0   : > { %v5371_v51 = vmax.f32 %v3686_v59, 0.0  ;;  %v3688_v7 = vpop.f32.mrb[34].mxu0  ;;  %v5373_v57 = vmax.f32 %v3879_v17, 0.0  ;;  %v3881_v56 = vpop.f32.mrb[34].mxu1 }
 0x3d1   : > { %v5641_v14 = vadd.f32 %v5640_v3, %v5370_v5  ;;  %v5386_v24 = vmax.f32 %v3688_v7, 0.0  ;;  %v3690_v16 = vpop.f32.mrb[35].mxu0  ;;  %v5715_v20 = vadd.f32 %v5714_v58, %v5372_v19  ;;  %v5388_v12 = vmax.f32 %v3881_v56, 0.0  ;;  %v3883_v50 = vpop.f32.mrb[35].mxu1  ;;  %v16427_v5 = vld [vmem:[%s20199_s0 + $0xa0] sm:$0xff]  }
 0x3d2   : > { %v5678_v4 = vadd.f32 %v5677_v1, %v5371_v51  ;;  %v5387_v22 = vmax.f32 %v3690_v16, 0.0  ;;  %v5752_v15 = vadd.f32 %v5751_v11, %v5373_v57  ;;  %v5389_v29 = vmax.f32 %v3883_v50, 0.0 }
 0x3d3   : > { %v5642_v18 = vadd.f32 %v5641_v14, %v5386_v24  ;;  %14877 = vmatmul.mubr.msk.bf16.gmra.mrb[140].mxu0 %vm696_vm0, %v16426_v41  ;;  %v5716_v34 = vadd.f32 %v5715_v20, %v5388_v12  ;;  %14893 = vmatmul.mubr.msk.bf16.gmra.mrb[140].mxu1 %vm696_vm0, %v16426_v41 }
 0x3d4   : > { %v5679_v35 = vadd.f32 %v5678_v4, %v5387_v22  ;;  %4414 = vmatprep.mubr.bf16.mxu0 %v20254_v31  ;;  %v5753_v60 = vadd.f32 %v5752_v15, %v5389_v29  ;;  %4607 = vmatprep.mubr.bf16.mxu1 %v20254_v31 }
 0x3d6   : > { %v3694_v33 = vpop.f32.mrb[36].mxu0  ;;  %v3887_v39 = vpop.f32.mrb[36].mxu1 }
 0x3d7   : > { %v5402_v49 = vmax.f32 %v3694_v33, 0.0  ;;  %v3696_v28 = vpop.f32.mrb[37].mxu0  ;;  %v5404_v0 = vmax.f32 %v3887_v39, 0.0  ;;  %v3889_v38 = vpop.f32.mrb[37].mxu1 }
 0x3d8   : > { %v5403_v52 = vmax.f32 %v3696_v28, 0.0  ;;  %v3698_v30 = vpop.f32.mrb[38].mxu0  ;;  %v5405_v53 = vmax.f32 %v3889_v38, 0.0  ;;  %v3891_v32 = vpop.f32.mrb[38].mxu1 }
 0x3d9   : > { %v5643_v25 = vadd.f32 %v5642_v18, %v5402_v49  ;;  %v5418_v2 = vmax.f32 %v3698_v30, 0.0  ;;  %v3700_v55 = vpop.f32.mrb[39].mxu0  ;;  %v5717_v8 = vadd.f32 %v5716_v34, %v5404_v0  ;;  %v5420_v44 = vmax.f32 %v3891_v32, 0.0  ;;  %v3893_v58 = vpop.f32.mrb[39].mxu1  ;;  %v16428_v49 = vld [vmem:[%s20199_s0 + $0xa8] sm:$0xff]  }
 0x3da   : > { %v5680_v3 = vadd.f32 %v5679_v35, %v5403_v52  ;;  %v5419_v63 = vmax.f32 %v3700_v55, 0.0  ;;  %v5754_v1 = vadd.f32 %v5753_v60, %v5405_v53  ;;  %v5421_v43 = vmax.f32 %v3893_v58, 0.0 }
 0x3db   : > { %v5644_v11 = vadd.f32 %v5643_v25, %v5418_v2  ;;  %14878 = vmatmul.mubr.msk.bf16.gmra.mrb[144].mxu0 %vm696_vm0, %v16427_v5  ;;  %v5718_v10 = vadd.f32 %v5717_v8, %v5420_v44  ;;  %14894 = vmatmul.mubr.msk.bf16.gmra.mrb[144].mxu1 %vm696_vm0, %v16427_v5 }
 0x3dc   : > { %v5681_v59 = vadd.f32 %v5680_v3, %v5419_v63  ;;  %4424 = vmatprep.mubr.bf16.mxu0 %v20254_v31  ;;  %v5755_v19 = vadd.f32 %v5754_v1, %v5421_v43  ;;  %4617 = vmatprep.mubr.bf16.mxu1 %v20254_v31 }
 0x3de   : > { %v3704_v51 = vpop.f32.mrb[40].mxu0  ;;  %v3897_v7 = vpop.f32.mrb[40].mxu1 }
 0x3df   : > { %v5434_v17 = vmax.f32 %v3704_v51, 0.0  ;;  %v3706_v14 = vpop.f32.mrb[41].mxu0  ;;  %v5436_v57 = vmax.f32 %v3897_v7, 0.0  ;;  %v3899_v56 = vpop.f32.mrb[41].mxu1 }
 0x3e0   : > { %v5435_v24 = vmax.f32 %v3706_v14, 0.0  ;;  %v3708_v16 = vpop.f32.mrb[42].mxu0  ;;  %v5437_v4 = vmax.f32 %v3899_v56, 0.0  ;;  %v3901_v22 = vpop.f32.mrb[42].mxu1 }
 0x3e1   : > { %v5645_v20 = vadd.f32 %v5644_v11, %v5434_v17  ;;  %v5450_v12 = vmax.f32 %v3708_v16, 0.0  ;;  %v3710_v50 = vpop.f32.mrb[43].mxu0  ;;  %v5719_v15 = vadd.f32 %v5718_v10, %v5436_v57  ;;  %v5452_v29 = vmax.f32 %v3901_v22, 0.0  ;;  %v3903_v34 = vpop.f32.mrb[43].mxu1  ;;  %v16429_v17 = vld [vmem:[%s20199_s0 + $0xb0] sm:$0xff]  }
 0x3e2   : > { %v5682_v18 = vadd.f32 %v5681_v59, %v5435_v24  ;;  %v5451_v41 = vmax.f32 %v3710_v50, 0.0  ;;  %v5756_v35 = vadd.f32 %v5755_v19, %v5437_v4  ;;  %v5453_v33 = vmax.f32 %v3903_v34, 0.0 }
 0x3e3   : > { %v5646_v60 = vadd.f32 %v5645_v20, %v5450_v12  ;;  %14879 = vmatmul.mubr.msk.bf16.gmra.mrb[148].mxu0 %vm696_vm0, %v16428_v49  ;;  %v5720_v39 = vadd.f32 %v5719_v15, %v5452_v29  ;;  %14895 = vmatmul.mubr.msk.bf16.gmra.mrb[148].mxu1 %vm696_vm0, %v16428_v49 }
 0x3e4   : > { %v5683_v28 = vadd.f32 %v5682_v18, %v5451_v41  ;;  %4434 = vmatprep.mubr.bf16.mxu0 %v20254_v31  ;;  %v5757_v0 = vadd.f32 %v5756_v35, %v5453_v33  ;;  %4627 = vmatprep.mubr.bf16.mxu1 %v20254_v31 }
 0x3e6   : > { %v3714_v52 = vpop.f32.mrb[44].mxu0  ;;  %v3907_v30 = vpop.f32.mrb[44].mxu1 }
 0x3e7   : > { %v5466_v38 = vmax.f32 %v3714_v52, 0.0  ;;  %v3716_v25 = vpop.f32.mrb[45].mxu0  ;;  %v5468_v53 = vmax.f32 %v3907_v30, 0.0  ;;  %v3909_v32 = vpop.f32.mrb[45].mxu1 }
 0x3e8   : > { %v5467_v2 = vmax.f32 %v3716_v25, 0.0  ;;  %v3718_v55 = vpop.f32.mrb[46].mxu0  ;;  %v5469_v3 = vmax.f32 %v3909_v32, 0.0  ;;  %v3911_v63 = vpop.f32.mrb[46].mxu1 }
 0x3e9   : > { %v5647_v8 = vadd.f32 %v5646_v60, %v5466_v38  ;;  %v5482_v44 = vmax.f32 %v3718_v55, 0.0  ;;  %v3720_v58 = vpop.f32.mrb[47].mxu0  ;;  %v5721_v1 = vadd.f32 %v5720_v39, %v5468_v53  ;;  %v5484_v43 = vmax.f32 %v3911_v63, 0.0  ;;  %v3913_v10 = vpop.f32.mrb[47].mxu1  ;;  %v16430_v38 = vld [vmem:[%s20199_s0 + $0xb8] sm:$0xff]  }
 0x3ea   : > { %v5684_v11 = vadd.f32 %v5683_v28, %v5467_v2  ;;  %v5483_v5 = vmax.f32 %v3720_v58, 0.0  ;;  %v5758_v59 = vadd.f32 %v5757_v0, %v5469_v3  ;;  %v5485_v51 = vmax.f32 %v3913_v10, 0.0 }
 0x3eb   : > { %v5648_v19 = vadd.f32 %v5647_v8, %v5482_v44  ;;  %14880 = vmatmul.mubr.msk.bf16.gmra.mrb[152].mxu0 %vm696_vm0, %v16429_v17  ;;  %v5722_v7 = vadd.f32 %v5721_v1, %v5484_v43  ;;  %14896 = vmatmul.mubr.msk.bf16.gmra.mrb[152].mxu1 %vm696_vm0, %v16429_v17  ;;  %v20267_v1 = vld [vmem:[#allocation22_spill] sm:$0xff] }
 0x3ec   : > { %v5685_v14 = vadd.f32 %v5684_v11, %v5483_v5  ;;  %4444 = vmatprep.mubr.bf16.mxu0 %v20254_v31  ;;  %v5759_v57 = vadd.f32 %v5758_v59, %v5485_v51  ;;  %4637 = vmatprep.mubr.bf16.mxu1 %v20254_v31  ;;  %v2832_v11 = vrot.slane %v20267_v1, 4 }
 0x3ee   : > { %v3724_v24 = vpop.f32.mrb[48].mxu0  ;;  %v3917_v16 = vpop.f32.mrb[48].mxu1 }
 0x3ef   : > { %v5498_v56 = vmax.f32 %v3724_v24, 0.0  ;;  %v3726_v20 = vpop.f32.mrb[49].mxu0  ;;  %v5500_v4 = vmax.f32 %v3917_v16, 0.0  ;;  %v3919_v22 = vpop.f32.mrb[49].mxu1  ;;  %v20268_v24 = vld [vmem:[#allocation23_spill] sm:$0xff] }
 0x3f0   : > { %v5499_v12 = vmax.f32 %v3726_v20, 0.0  ;;  %v3728_v50 = vpop.f32.mrb[50].mxu0  ;;  %v5501_v18 = vmax.f32 %v3919_v22, 0.0  ;;  %v3921_v41 = vpop.f32.mrb[50].mxu1  ;;  %v20269_v22 = vld [vmem:[#allocation24_spill] sm:$0xff] }
 0x3f1   : > { %v5649_v15 = vadd.f32 %v5648_v19, %v5498_v56  ;;  %v5514_v29 = vmax.f32 %v3728_v50, 0.0  ;;  %v3730_v34 = vpop.f32.mrb[51].mxu0  ;;  %v5723_v35 = vadd.f32 %v5722_v7, %v5500_v4  ;;  %v5516_v33 = vmax.f32 %v3921_v41, 0.0  ;;  %v3923_v39 = vpop.f32.mrb[51].mxu1 }
 0x3f2   : > { %v5686_v60 = vadd.f32 %v5685_v14, %v5499_v12  ;;  %v5515_v49 = vmax.f32 %v3730_v34, 0.0  ;;  %v5760_v28 = vadd.f32 %v5759_v57, %v5501_v18  ;;  %v5517_v52 = vmax.f32 %v3923_v39, 0.0  ;;  %v16431_v12 = vld [vmem:[%s20199_s0 + $0xc0] sm:$0xff]  }
 0x3f3   : > { %v5650_v0 = vadd.f32 %v5649_v15, %v5514_v29  ;;  %14881 = vmatmul.mubr.msk.bf16.gmra.mrb[156].mxu0 %vm696_vm0, %v16430_v38  ;;  %v5724_v30 = vadd.f32 %v5723_v35, %v5516_v33  ;;  %14897 = vmatmul.mubr.msk.bf16.gmra.mrb[156].mxu1 %vm696_vm0, %v16430_v38  ;;  %v2906_v56 = vrot.slane %v20268_v24, 4  ;;  %v2869_v50 = vrot.slane %v20269_v22, 4 }
 0x3f4   : > { %v5687_v25 = vadd.f32 %v5686_v60, %v5515_v49  ;;  %4454 = vmatprep.mubr.bf16.mxu0 %v20254_v31  ;;  %v5761_v53 = vadd.f32 %v5760_v28, %v5517_v52  ;;  %4647 = vmatprep.mubr.bf16.mxu1 %v20254_v31  ;;  %v2833_v29 = vadd.f32 %v2832_v11, %v20267_v1 }
 0x3f5   : > { %v2907_v35 = vadd.f32 %v2906_v56, %v20268_v24  ;;  %v2870_v39 = vadd.f32 %v2869_v50, %v20269_v22 }
 0x3f6   : > { %v3734_v2 = vpop.f32.mrb[52].mxu0  ;;  %v3927_v55 = vpop.f32.mrb[52].mxu1 }
 0x3f7   : > { %v5530_v32 = vmax.f32 %v3734_v2, 0.0  ;;  %v3736_v8 = vpop.f32.mrb[53].mxu0  ;;  %v5532_v3 = vmax.f32 %v3927_v55, 0.0  ;;  %v3929_v63 = vpop.f32.mrb[53].mxu1  ;;  %v2908_v1 = vrot.slane %v2907_v35, 2 }
 0x3f8   : > { %v5531_v44 = vmax.f32 %v3736_v8, 0.0  ;;  %v3738_v58 = vpop.f32.mrb[54].mxu0  ;;  %v5533_v5 = vmax.f32 %v3929_v63, 0.0  ;;  %v3931_v59 = vpop.f32.mrb[54].mxu1 }
 0x3f9   : > { %v5651_v43 = vadd.f32 %v5650_v0, %v5530_v32  ;;  %v5546_v10 = vmax.f32 %v3738_v58, 0.0  ;;  %v3740_v19 = vpop.f32.mrb[55].mxu0  ;;  %v5725_v51 = vadd.f32 %v5724_v30, %v5532_v3  ;;  %v5548_v7 = vmax.f32 %v3931_v59, 0.0  ;;  %v3933_v57 = vpop.f32.mrb[55].mxu1 }
 0x3fa   : > { %v5688_v17 = vadd.f32 %v5687_v25, %v5531_v44  ;;  %v5547_v14 = vmax.f32 %v3740_v19, 0.0  ;;  %v5762_v16 = vadd.f32 %v5761_v53, %v5533_v5  ;;  %v5549_v4 = vmax.f32 %v3933_v57, 0.0  ;;  %v20270_v19 = vld [vmem:[#allocation25_spill] sm:$0xff] }
 0x3fb   : > { %v5652_v20 = vadd.f32 %v5651_v43, %v5546_v10  ;;  %14882 = vmatmul.mubr.msk.bf16.gmra.mrb[160].mxu0 %vm696_vm0, %v16431_v12  ;;  %v5726_v15 = vadd.f32 %v5725_v51, %v5548_v7  ;;  %14898 = vmatmul.mubr.msk.bf16.gmra.mrb[160].mxu1 %vm696_vm0, %v16431_v12  ;;  %v2834_v30 = vrot.slane %v2833_v29, 2  ;;  %v16432_v10 = vld [vmem:[%s20199_s0 + $0xc8] sm:$0xff]   ;;  %v2871_v59 = vrot.slane %v2870_v39, 2 }
 0x3fc   : > { %v5689_v18 = vadd.f32 %v5688_v17, %v5547_v14  ;;  %4464 = vmatprep.mubr.bf16.mxu0 %v20254_v31  ;;  %v5763_v41 = vadd.f32 %v5762_v16, %v5549_v4  ;;  %4657 = vmatprep.mubr.bf16.mxu1 %v20254_v31  ;;  %v2943_v51 = vrot.slane %v20270_v19, 4  ;;  %v2909_v56 = vadd.f32 %v2908_v1, %v2907_v35 }
 0x3fd   : > { %v2835_v14 = vadd.f32 %v2834_v30, %v2833_v29  ;;  %v18020_v12 = vadd.f32 %v2871_v59, %v2870_v39 }
 0x3fe   : > { %v3744_v34 = vpop.f32.mrb[56].mxu0  ;;  %v3937_v33 = vpop.f32.mrb[56].mxu1  ;;  %v18023_v22 = vadd.f32 %v2943_v51, %v20270_v19  ;;  %v2910_v39 = vrot.slane %v2909_v56, 1 }
 0x3ff   : > { %v5562_v60 = vmax.f32 %v3744_v34, 0.0  ;;  %v3746_v49 = vpop.f32.mrb[57].mxu0  ;;  %v5564_v28 = vmax.f32 %v3937_v33, 0.0  ;;  %v3939_v52 = vpop.f32.mrb[57].mxu1  ;;  %v2836_v34 = vrot.slane %v2835_v14, 1  ;;  %v2873_v1 = vrot.slane %v18020_v12, 1 }
 0x400   : > { %v5563_v0 = vmax.f32 %v3746_v49, 0.0  ;;  %v3748_v38 = vpop.f32.mrb[58].mxu0  ;;  %v5565_v53 = vmax.f32 %v3939_v52, 0.0  ;;  %v3941_v32 = vpop.f32.mrb[58].mxu1 }
 0x401   : > { %v5653_v25 = vadd.f32 %v5652_v20, %v5562_v60  ;;  %v5578_v2 = vmax.f32 %v3748_v38, 0.0  ;;  %v3750_v55 = vpop.f32.mrb[59].mxu0  ;;  %v5727_v8 = vadd.f32 %v5726_v15, %v5564_v28  ;;  %v5580_v44 = vmax.f32 %v3941_v32, 0.0  ;;  %v3943_v58 = vpop.f32.mrb[59].mxu1  ;;  %v16433_v32 = vld [vmem:[%s20199_s0 + $0xd0] sm:$0xff]  }
 0x402   : > { %v5690_v3 = vadd.f32 %v5689_v18, %v5563_v0  ;;  %v5579_v63 = vmax.f32 %v3750_v55, 0.0  ;;  %v5764_v11 = vadd.f32 %v5763_v41, %v5565_v53  ;;  %v5581_v5 = vmax.f32 %v3943_v58, 0.0 }
 0x403   : > { %v5654_v43 = vadd.f32 %v5653_v25, %v5578_v2  ;;  %14883 = vmatmul.mubr.msk.bf16.gmra.mrb[164].mxu0 %vm696_vm0, %v16432_v10  ;;  %v5728_v17 = vadd.f32 %v5727_v8, %v5580_v44  ;;  %14899 = vmatmul.mubr.msk.bf16.gmra.mrb[164].mxu1 %vm696_vm0, %v16432_v10  ;;  %v2837_v58 = vadd.f32 %v2836_v34, %v2835_v14 }
 0x404   : > { %v5691_v7 = vadd.f32 %v5690_v3, %v5579_v63  ;;  %4474 = vmatprep.mubr.bf16.mxu0 %v20254_v31  ;;  %v5765_v57 = vadd.f32 %v5764_v11, %v5581_v5  ;;  %4667 = vmatprep.mubr.bf16.mxu1 %v20254_v31  ;;  %v2945_v3 = vrot.slane %v18023_v22, 2  ;;  %v2911_v10 = vadd.f32 %v2910_v39, %v2909_v56 }
 0x406   : > { %v3754_v24 = vpop.f32.mrb[60].mxu0  ;;  %v3947_v20 = vpop.f32.mrb[60].mxu1 }
 0x407   : > { %v5594_v16 = vmax.f32 %v3754_v24, 0.0  ;;  %v3756_v4 = vpop.f32.mrb[61].mxu0  ;;  %v5596_v50 = vmax.f32 %v3947_v20, 0.0  ;;  %v3949_v18 = vpop.f32.mrb[61].mxu1 }
 0x408   : > { %v5595_v15 = vmax.f32 %v3756_v4, 0.0  ;;  %v3758_v41 = vpop.f32.mrb[62].mxu0  ;;  %v5597_v29 = vmax.f32 %v3949_v18, 0.0  ;;  %v3951_v49 = vpop.f32.mrb[62].mxu1 }
 0x409   : > { %v5655_v60 = vadd.f32 %v5654_v43, %v5594_v16  ;;  %v5610_v33 = vmax.f32 %v3758_v41, 0.0  ;;  %v3760_v28 = vpop.f32.mrb[63].mxu0  ;;  %v5729_v0 = vadd.f32 %v5728_v17, %v5596_v50  ;;  %v5612_v52 = vmax.f32 %v3951_v49, 0.0  ;;  %v3953_v30 = vpop.f32.mrb[63].mxu1 }
 0x40a   : > { %v5692_v35 = vadd.f32 %v5691_v7, %v5595_v15  ;;  %v5611_v38 = vmax.f32 %v3760_v28, 0.0  ;;  %v5766_v25 = vadd.f32 %v5765_v57, %v5597_v29  ;;  %v5613_v2 = vmax.f32 %v3953_v30, 0.0  ;;  %v16434_v30 = vld [vmem:[%s20199_s0 + $0xd8] sm:$0xff]  }
 0x40b   : > { %v5656_v53 = vadd.f32 %v5655_v60, %v5610_v33  ;;  %14884 = vmatmul.mubr.msk.bf16.gmra.mrb[168].mxu0 %vm696_vm0, %v16433_v32  ;;  %v5730_v55 = vadd.f32 %v5729_v0, %v5612_v52  ;;  %14900 = vmatmul.mubr.msk.bf16.gmra.mrb[168].mxu1 %vm696_vm0, %v16433_v32  ;;  %v2946_v32 = vadd.f32 %v2945_v3, %v18023_v22 }
 0x40c   : > { %v5693_v8 = vadd.f32 %v5692_v35, %v5611_v38  ;;  %4484 = vmatprep.mubr.bf16.mxu0 %v20254_v31  ;;  %v5767_v63 = vadd.f32 %v5766_v25, %v5613_v2  ;;  %4677 = vmatprep.mubr.bf16.mxu1 %v20254_v31 }
 0x40d   : > { %v5657_v44 = vrot.slane %v5656_v53, 4  ;;  %v5731_v11 = vrot.slane %v5730_v55, 4 }
 0x40e   : > { %v5694_v43 = vrot.slane %v5693_v8, 4  ;;  %v3990_v5 = vpop.f32.mrb[64].mxu0  ;;  %v5768_v19 = vrot.slane %v5767_v63, 4  ;;  %v4183_v17 = vpop.f32.mrb[64].mxu1 }
 0x40f   : > { %v5658_v59 = vadd.f32 %v5657_v44, %v5656_v53  ;;  %v5118_v51 = vmax.f32 %v3990_v5, 0.0  ;;  %v3992_v7 = vpop.f32.mrb[65].mxu0  ;;  %v5732_v57 = vadd.f32 %v5731_v11, %v5730_v55  ;;  %v5120_v16 = vmax.f32 %v4183_v17, 0.0  ;;  %v4185_v4 = vpop.f32.mrb[65].mxu1 }
 0x410   : > { %v5695_v24 = vadd.f32 %v5694_v43, %v5693_v8  ;;  %v5119_v20 = vmax.f32 %v3992_v7, 0.0  ;;  %v3994_v50 = vpop.f32.mrb[66].mxu0  ;;  %v5769_v18 = vadd.f32 %v5768_v19, %v5767_v63  ;;  %v5121_v14 = vmax.f32 %v4185_v4, 0.0  ;;  %v4187_v34 = vpop.f32.mrb[66].mxu1 }
 0x411   : > { %v5659_v15 = vrot.slane %v5658_v59, 2  ;;  %v5134_v41 = vmax.f32 %v3994_v50, 0.0  ;;  %v3996_v60 = vpop.f32.mrb[67].mxu0  ;;  %v5733_v29 = vrot.slane %v5732_v57, 2  ;;  %v5136_v56 = vmax.f32 %v4187_v34, 0.0  ;;  %v4189_v28 = vpop.f32.mrb[67].mxu1 }
 0x412   : > { %v5696_v33 = vrot.slane %v5695_v24, 2  ;;  %v5135_v49 = vmax.f32 %v3996_v60, 0.0  ;;  %v5770_v35 = vrot.slane %v5769_v18, 2  ;;  %v5137_v38 = vmax.f32 %v4189_v28, 0.0  ;;  %v16435_v28 = vld [vmem:[%s20199_s0 + $0xe0] sm:$0xff]  }
 0x413   : > { %v5660_v0 = vadd.f32 %v5659_v15, %v5658_v59  ;;  %v5774_v52 = vadd.f32 %v5134_v41, %v5118_v51  ;;  %14885 = vmatmul.mubr.msk.bf16.gmra.mrb[172].mxu0 %vm696_vm0, %v16434_v30  ;;  %v5734_v39 = vadd.f32 %v5733_v29, %v5732_v57  ;;  %v5848_v53 = vadd.f32 %v5136_v56, %v5120_v16 }
 0x414   : > { %v5697_v25 = vadd.f32 %v5696_v33, %v5695_v24  ;;  %v5811_v2 = vadd.f32 %v5135_v49, %v5119_v20  ;;  %14901 = vmatmul.mubr.msk.bf16.gmra.mrb[172].mxu1 %vm696_vm0, %v16434_v30  ;;  %v5771_v8 = vadd.f32 %v5770_v35, %v5769_v18  ;;  %v5885_v44 = vadd.f32 %v5137_v38, %v5121_v14 }
 0x415   : > { %v5661_v55 = vrot.slane %v5660_v0, 1  ;;  %4494 = vmatprep.mubr.bf16.mxu0 %v20254_v31  ;;  %4687 = vmatprep.mubr.bf16.mxu1 %v20254_v31  ;;  %v3394_v63 = vmul.f32 0.00390625, %v2837_v58  ;;  %v2874_v11 = vadd.f32 %v2873_v1, %v18020_v12  ;;  %v5735_v43 = vrot.slane %v5734_v39, 1 }
 0x416   : > { %v5698_v5 = vrot.slane %v5697_v25, 1  ;;  %v4000_v59 = vpop.f32.mrb[68].mxu0  ;;  %v3396_v19 = vmul.f32 0.00390625, %v2911_v10  ;;  %v4193_v7 = vpop.f32.mrb[68].mxu1  ;;  %v5772_v15 = vrot.slane %v5771_v8, 1 }
 0x417   : > { %v5662_v51 = vadd.f32 %v5661_v55, %v5660_v0  ;;  %v5150_v17 = vmax.f32 %v4000_v59, 0.0  ;;  %v4002_v57 = vpop.f32.mrb[69].mxu0  ;;  %v5736_v22 = vadd.f32 %v5735_v43, %v5734_v39  ;;  %v5152_v24 = vmax.f32 %v4193_v7, 0.0  ;;  %v4195_v20 = vpop.f32.mrb[69].mxu1 }
 0x418   : > { %v5699_v3 = vadd.f32 %v5698_v5, %v5697_v25  ;;  %v5151_v16 = vmax.f32 %v4002_v57, 0.0  ;;  %v4004_v4 = vpop.f32.mrb[70].mxu0  ;;  %v5153_v18 = vmax.f32 %v4195_v20, 0.0  ;;  %v4197_v12 = vpop.f32.mrb[70].mxu1  ;;  %v3395_v29 = vmul.f32 0.00390625, %v2874_v11 }
 0x419   : > { %v6218_v50 = vmul.f32 0.00390625, %v5662_v51  ;;  %v5775_v58 = vadd.f32 %v5774_v52, %v5150_v17  ;;  %v4006_v1 = vpop.f32.mrb[71].mxu0  ;;  %v6220_v14 = vmul.f32 0.00390625, %v5736_v22  ;;  %v5849_v10 = vadd.f32 %v5848_v53, %v5152_v24  ;;  %v4199_v60 = vpop.f32.mrb[71].mxu1 }
 0x41a   : > { %v6219_v41 = vmul.f32 0.00390625, %v5699_v3  ;;  %v5812_v34 = vadd.f32 %v5811_v2, %v5151_v16  ;;  %v5886_v56 = vadd.f32 %v5885_v44, %v5153_v18  ;;  %v5166_v49 = vmax.f32 %v4004_v4, 0.0 }
 0x41b   : > { %v18044_v33 = vsel %vm6234_vm1, %v3394_v63, %v6218_v50  ;;  %14886 = vmatmul.mubr.msk.bf16.gmra.mrb[176].mxu0 %vm696_vm0, %v16435_v28  ;;  %v2947_v0 = vrot.slane %v2946_v32, 1  ;;  %v18051_v35 = vsel %vm6234_vm1, %v3396_v19, %v6220_v14  ;;  %v5168_v52 = vmax.f32 %v4197_v12, 0.0 }
 0x41c   : > { %v5167_v38 = vmax.f32 %v4006_v1, 0.0  ;;  %14902 = vmatmul.mubr.msk.bf16.gmra.mrb[176].mxu1 %vm696_vm0, %v16435_v28  ;;  %4504 = vmatprep.mubr.bf16.mxu0 %v20254_v31  ;;  %v5773_v30 = vadd.f32 %v5772_v15, %v5771_v8  ;;  %v5776_v39 = vadd.f32 %v5775_v58, %v5166_v49  ;;  %v5169_v25 = vmax.f32 %v4199_v60, 0.0 }
 0x41d   : > { %4697 = vmatprep.mubr.bf16.mxu1 %v20254_v31  ;;  %v18057_v53 = vsel %vm6234_vm1, %v3395_v29, %v6219_v41  ;;  %v5850_v2 = vadd.f32 %v5849_v10, %v5168_v52  ;;  %v2948_v59 = vadd.f32 %v2947_v0, %v2946_v32  ;;  %v16436_v32 = vld [vmem:[%s20199_s0 + $0xe8] sm:$0xff]  }
 0x41e   : > { %v5813_v55 = vadd.f32 %v5812_v34, %v5167_v38  ;;  %v4010_v44 = vpop.f32.mrb[72].mxu0  ;;  %v5887_v63 = vadd.f32 %v5886_v56, %v5169_v25  ;;  %v4203_v43 = vpop.f32.mrb[72].mxu1  ;;  %v6221_v8 = vmul.f32 0.00390625, %v5773_v30 }
 0x41f   : > { %v5182_v11 = vmax.f32 %v4010_v44, 0.0  ;;  %v4012_v5 = vpop.f32.mrb[73].mxu0  ;;  %v5184_v19 = vmax.f32 %v4203_v43, 0.0  ;;  %v4205_v17 = vpop.f32.mrb[73].mxu1  ;;  %v3397_v14 = vmul.f32 0.00390625, %v2948_v59 }
 0x420   : > { %v5183_v51 = vmax.f32 %v4012_v5, 0.0  ;;  %v4014_v7 = vpop.f32.mrb[74].mxu0  ;;  %v5185_v22 = vmax.f32 %v4205_v17, 0.0  ;;  %v4207_v24 = vpop.f32.mrb[74].mxu1 }
 0x421   : > { %v5777_v57 = vadd.f32 %v5776_v39, %v5182_v11  ;;  %v5198_v3 = vmax.f32 %v4014_v7, 0.0  ;;  %v4016_v16 = vpop.f32.mrb[75].mxu0  ;;  %v5851_v20 = vadd.f32 %v5850_v2, %v5184_v19  ;;  %v5200_v50 = vmax.f32 %v4207_v24, 0.0  ;;  %v4209_v58 = vpop.f32.mrb[75].mxu1  ;;  %v16437_v7 = vld [vmem:[%s20199_s0 + $0xf0] sm:$0xff]  }
 0x422   : > { %v5814_v4 = vadd.f32 %v5813_v55, %v5183_v51  ;;  %v5199_v15 = vmax.f32 %v4016_v16, 0.0  ;;  %v5888_v18 = vadd.f32 %v5887_v63, %v5185_v22  ;;  %v5201_v1 = vmax.f32 %v4209_v58, 0.0 }
 0x423   : > { %v5778_v12 = vadd.f32 %v5777_v57, %v5198_v3  ;;  %14887 = vmatmul.mubr.msk.bf16.gmra.mrb[180].mxu0 %vm696_vm0, %v16436_v32  ;;  %v5852_v41 = vadd.f32 %v5851_v20, %v5200_v50  ;;  %v18067_v29 = vsel %vm6234_vm1, %v3397_v14, %v6221_v8 }
 0x424   : > { %v5815_v10 = vadd.f32 %v5814_v4, %v5199_v15  ;;  %14903 = vmatmul.mubr.msk.bf16.gmra.mrb[180].mxu1 %vm696_vm0, %v16436_v32  ;;  %4514 = vmatprep.mubr.bf16.mxu0 %v20254_v31  ;;  %v5889_v34 = vadd.f32 %v5888_v18, %v5201_v1 }
 0x425   : > { %4707 = vmatprep.mubr.bf16.mxu1 %v20254_v31 }
 0x426   : > { %v4020_v60 = vpop.f32.mrb[76].mxu0  ;;  %v4213_v49 = vpop.f32.mrb[76].mxu1 }
 0x427   : > { %v5214_v56 = vmax.f32 %v4020_v60, 0.0  ;;  %v4022_v28 = vpop.f32.mrb[77].mxu0  ;;  %v5216_v0 = vmax.f32 %v4213_v49, 0.0  ;;  %v4215_v38 = vpop.f32.mrb[77].mxu1 }
 0x428   : > { %v5215_v52 = vmax.f32 %v4022_v28, 0.0  ;;  %v4024_v30 = vpop.f32.mrb[78].mxu0  ;;  %v5217_v25 = vmax.f32 %v4215_v38, 0.0  ;;  %v4217_v55 = vpop.f32.mrb[78].mxu1 }
 0x429   : > { %v5779_v39 = vadd.f32 %v5778_v12, %v5214_v56  ;;  %v5230_v2 = vmax.f32 %v4024_v30, 0.0  ;;  %v4026_v44 = vpop.f32.mrb[79].mxu0  ;;  %v5853_v63 = vadd.f32 %v5852_v41, %v5216_v0  ;;  %v5232_v43 = vmax.f32 %v4217_v55, 0.0  ;;  %v4219_v59 = vpop.f32.mrb[79].mxu1  ;;  %v6279_v55 = vld [vmem:[%s16929_s7 + $0x60] sm:$0xff] }
 0x42a   : > { %v5816_v11 = vadd.f32 %v5815_v10, %v5215_v52  ;;  %v5231_v5 = vmax.f32 %v4026_v44, 0.0  ;;  %v5890_v19 = vadd.f32 %v5889_v34, %v5217_v25  ;;  %v5233_v17 = vmax.f32 %v4219_v59, 0.0  ;;  %v16438_v52 = vld [vmem:[%s20199_s0 + $0xf8] sm:$0xff]  }
 0x42b   : > { %v5780_v51 = vadd.f32 %v5779_v39, %v5230_v2  ;;  %14888 = vmatmul.mubr.msk.bf16.gmra.mrb[184].mxu0 %vm696_vm0, %v16437_v7  ;;  %v5854_v8 = vadd.f32 %v5853_v63, %v5232_v43  ;;  %v6275_v2 = vld [vmem:[%s16929_s7 + $0x40] sm:$0xff] }
 0x42c   : > { %v5817_v57 = vadd.f32 %v5816_v11, %v5231_v5  ;;  %14904 = vmatmul.mubr.msk.bf16.gmra.mrb[184].mxu1 %vm696_vm0, %v16437_v7  ;;  %4524 = vmatprep.mubr.bf16.mxu0 %v20254_v31  ;;  %v5891_v22 = vadd.f32 %v5890_v19, %v5233_v17  ;;  %v6280_v17 = vld [vmem:[%s16929_s7 + $0x68] sm:$0xff] }
 0x42d   : > { %4717 = vmatprep.mubr.bf16.mxu1 %v20254_v31 }
 0x42e   : > { %v4030_v3 = vpop.f32.mrb[80].mxu0  ;;  %v4223_v16 = vpop.f32.mrb[80].mxu1 }
 0x42f   : > { %v5246_v24 = vmax.f32 %v4030_v3, 0.0  ;;  %v4032_v20 = vpop.f32.mrb[81].mxu0  ;;  %v5248_v4 = vmax.f32 %v4223_v16, 0.0  ;;  %v4225_v15 = vpop.f32.mrb[81].mxu1 }
 0x430   : > { %v5247_v50 = vmax.f32 %v4032_v20, 0.0  ;;  %v4034_v58 = vpop.f32.mrb[82].mxu0  ;;  %v5249_v12 = vmax.f32 %v4225_v15, 0.0  ;;  %v4227_v32 = vpop.f32.mrb[82].mxu1 }
 0x431   : > { %v5781_v18 = vadd.f32 %v5780_v51, %v5246_v24  ;;  %v5262_v1 = vmax.f32 %v4034_v58, 0.0  ;;  %v4036_v14 = vpop.f32.mrb[83].mxu0  ;;  %v5855_v41 = vadd.f32 %v5854_v8, %v5248_v4  ;;  %v5264_v34 = vmax.f32 %v4227_v32, 0.0  ;;  %v4229_v56 = vpop.f32.mrb[83].mxu1  ;;  %v18086_v51 = vld [vmem:[%s16929_s7 + $0x48] sm:$0xff]  ;;  %v18090_v58 = vld [vmem:[%s16929_s7 + $0x80] sm:$0xff] }
 0x432   : > { %v5818_v10 = vadd.f32 %v5817_v57, %v5247_v50  ;;  %v5263_v60 = vmax.f32 %v4036_v14, 0.0  ;;  %v5892_v49 = vadd.f32 %v5891_v22, %v5249_v12  ;;  %v5265_v0 = vmax.f32 %v4229_v56, 0.0  ;;  %v16439_v14 = vld [vmem:[%s20199_s0 + $0x80] sm:$0xff]  }
 0x433   : > { %v5782_v28 = vadd.f32 %v5781_v18, %v5262_v1  ;;  %14889 = vmatmul.mubr.msk.bf16.gmra.mrb[188].mxu0 %vm696_vm0, %v16438_v52  ;;  %v5856_v38 = vadd.f32 %v5855_v41, %v5264_v34  ;;  %v14947_v24 = vcombine.high %v6275_v2, %v6279_v55  ;;  %v18093_v18 = vld [vmem:[%s16929_s7 + $0xa0] sm:$0xff]  ;;  %v14949_v41 = vcombine.high %v18086_v51, %v6280_v17  ;;  %v18104_v34 = vld [vmem:[%s16929_s7 + $0xa8] sm:$0xff] }
 0x434   : > { %v5819_v30 = vadd.f32 %v5818_v10, %v5263_v60  ;;  %14905 = vmatmul.mubr.msk.bf16.gmra.mrb[188].mxu1 %vm696_vm0, %v16438_v52  ;;  %4760 = vmatprep.mubr.bf16.mxu0 %v20254_v31  ;;  %v5893_v39 = vadd.f32 %v5892_v49, %v5265_v0  ;;  %v18101_v10 = vld [vmem:[%s16929_s7 + $0x88] sm:$0xff]  ;;  %v14946_v49 = vcombine.low %v6275_v2, %v6279_v55 }
 0x435   : > { %4953 = vmatprep.mubr.bf16.mxu1 %v20254_v31  ;;  %v14948_v0 = vcombine.low %v18086_v51, %v6280_v17  ;;  %v14955_v52 = vcombine.high %v18090_v58, %v18093_v18  ;;  %v14957_v48 = vcombine.high %v18101_v10, %v18104_v34  ;;  %v18147_v51 = vld [vmem:[%s16929_s7 + $0xc8] sm:$0xff] }
 0x436   : > { %v4040_v25 = vpop.f32.mrb[84].mxu0  ;;  %v4233_v63 = vpop.f32.mrb[84].mxu1  ;;  %v18150_v17 = vld [vmem:[%s16929_s7 + $0xe8] sm:$0xff] }
 0x437   : > { %v5278_v44 = vmax.f32 %v4040_v25, 0.0  ;;  %v4042_v11 = vpop.f32.mrb[85].mxu0  ;;  %v5280_v43 = vmax.f32 %v4233_v63, 0.0  ;;  %v4235_v59 = vpop.f32.mrb[85].mxu1 }
 0x438   : > { %v5279_v5 = vmax.f32 %v4042_v11, 0.0  ;;  %v4044_v19 = vpop.f32.mrb[86].mxu0  ;;  %v5281_v8 = vmax.f32 %v4235_v59, 0.0  ;;  %v4237_v22 = vpop.f32.mrb[86].mxu1  ;;  %v14954_v59 = vcombine.low %v18090_v58, %v18093_v18 }
 0x439   : > { %v5783_v7 = vadd.f32 %v5782_v28, %v5278_v44  ;;  %v5294_v57 = vmax.f32 %v4044_v19, 0.0  ;;  %v4046_v3 = vpop.f32.mrb[87].mxu0  ;;  %v5857_v16 = vadd.f32 %v5856_v38, %v5280_v43  ;;  %v5296_v4 = vmax.f32 %v4237_v22, 0.0  ;;  %v4239_v15 = vpop.f32.mrb[87].mxu1  ;;  %v18118_v38 = vld [vmem:[%s16929_s7 + $0x400] sm:$0xff] }
 0x43a   : > { %v5820_v20 = vadd.f32 %v5819_v30, %v5279_v5  ;;  %v5295_v50 = vmax.f32 %v4046_v3, 0.0  ;;  %v5894_v12 = vadd.f32 %v5893_v39, %v5281_v8  ;;  %v5297_v32 = vmax.f32 %v4239_v15, 0.0  ;;  %v18121_v30 = vld [vmem:[%s16929_s7 + $0x420] sm:$0xff]  ;;  %v18138_v39 = vld [vmem:[%s16929_s7 + $0x428] sm:$0xff] }
 0x43b   : > { %v5784_v1 = vadd.f32 %v5783_v7, %v5294_v57  ;;  %14906 = vmatmul.mubr.msk.bf16.vlgmr.msra.gmra.mrb[192].mxu0 %vm696_vm0, %v16439_v14  ;;  %v5858_v60 = vadd.f32 %v5857_v16, %v5296_v4  ;;  %v15068_v44 = vcombine.low %v18124_v42, %v18138_v39  ;;  %v14956_v19 = vcombine.low %v18101_v10, %v18104_v34 }
 0x43c   : > { %v5821_v56 = vadd.f32 %v5820_v20, %v5295_v50  ;;  %14922 = vmatmul.mubr.msk.bf16.vlgmr.msra.gmra.mrb[192].mxu1 %vm696_vm0, %v16439_v14  ;;  %12454 = vmatpush1.bf16.msra.mxu0 %v14938_v62  ;;  %v5895_v28 = vadd.f32 %v5894_v12, %v5297_v32  ;;  %v18130_v62 = vld [vmem:[%s16929_s7 + $0xc0] sm:$0xff]  ;;  %v14965_v32 = vcombine.high %v18147_v51, %v18150_v17 }
 0x43d   : > { %12782 = vmatpush1.bf16.msra.mxu1 %v14940_v46  ;;  %4770 = vmatprep.mubr.bf16.mxu0 %v20254_v31  ;;  %v15066_v46 = vcombine.low %v18118_v38, %v18121_v30  ;;  %v18161_v14 = vld [vmem:[%s16929_s7 + $0x100] sm:$0xff] }
 0x43e   : > { %v4050_v37 = vpop.f32.mrb[88].mxu0  ;;  %4963 = vmatprep.mubr.bf16.mxu1 %v20254_v31  ;;  %12455 = vmatprep.subr.bf16.mxu0 %v14947_v24  ;;  %v4243_v2 = vpop.f32.mrb[88].mxu1  ;;  %v14963_v24 = vcombine.high %v18130_v62, %v18133_v6 }
 0x43f   : > { %v5310_v25 = vmax.f32 %v4050_v37, 0.0  ;;  %v4052_v55 = vpop.f32.mrb[89].mxu0  ;;  %12783 = vmatprep.subr.bf16.mxu1 %v14949_v41  ;;  %v5312_v63 = vmax.f32 %v4243_v2, 0.0  ;;  %v4245_v43 = vpop.f32.mrb[89].mxu1  ;;  %v6303_v41 = vld [vmem:[%s16929_s7 + $0x120] sm:$0xff] }
 0x440   : > { %v5311_v11 = vmax.f32 %v4052_v55, 0.0  ;;  %v4054_v5 = vpop.f32.mrb[90].mxu0  ;;  %12456 = vmatpush1.bf16.msra.mxu0 %v14946_v49  ;;  %v5313_v8 = vmax.f32 %v4245_v43, 0.0  ;;  %v4247_v22 = vpop.f32.mrb[90].mxu1  ;;  %v14971_v37 = vcombine.high %v18161_v14, %v6303_v41 }
 0x441   : > { %v5785_v7 = vadd.f32 %v5784_v1, %v5310_v25  ;;  %v5326_v57 = vmax.f32 %v4054_v5, 0.0  ;;  %v4056_v3 = vpop.f32.mrb[91].mxu0  ;;  %12784 = vmatpush1.bf16.msra.mxu1 %v14948_v0  ;;  %12457 = vmatprep.subr.bf16.mxu0 %v14955_v52  ;;  %v5859_v16 = vadd.f32 %v5858_v60, %v5312_v63  ;;  %v5328_v4 = vmax.f32 %v4247_v22, 0.0  ;;  %v4249_v15 = vpop.f32.mrb[91].mxu1  ;;  %v16440_v1 = vld [vmem:[%s20199_s0 + $0x88] sm:$0xff]   ;;  %v18178_v25 = vld [vmem:[%s16929_s7 + $0x160] sm:$0xff] }
 0x442   : > { %v5822_v20 = vadd.f32 %v5821_v56, %v5311_v11  ;;  %v5327_v50 = vmax.f32 %v4056_v3, 0.0  ;;  %12785 = vmatprep.subr.bf16.mxu1 %v14957_v48  ;;  %v5896_v58 = vadd.f32 %v5895_v28, %v5313_v8  ;;  %v5329_v12 = vmax.f32 %v4249_v15, 0.0  ;;  %v6300_v60 = vld [vmem:[%s16929_s7 + $0x108] sm:$0xff]  ;;  %v18175_v48 = vld [vmem:[%s16929_s7 + $0x140] sm:$0xff] }
 0x443   : > { %v5786_v18 = vadd.f32 %v5785_v7, %v5326_v57  ;;  %14907 = vmatmul.mubr.msk.bf16.gmra.mrb[196].mxu0 %vm696_vm0, %v16440_v1  ;;  %v5860_v10 = vadd.f32 %v5859_v16, %v5328_v4  ;;  %v6304_v56 = vld [vmem:[%s16929_s7 + $0x128] sm:$0xff]  ;;  %v14962_v28 = vcombine.low %v18130_v62, %v18133_v6  ;;  %v14964_v52 = vcombine.low %v18147_v51, %v18150_v17 }
 0x444   : > { %v5823_v34 = vadd.f32 %v5822_v20, %v5327_v50  ;;  %14923 = vmatmul.mubr.msk.bf16.gmra.mrb[196].mxu1 %vm696_vm0, %v16440_v1  ;;  %4780 = vmatprep.mubr.bf16.mxu0 %v20254_v31  ;;  %v5897_v49 = vadd.f32 %v5896_v58, %v5329_v12  ;;  %v14973_v11 = vcombine.high %v6300_v60, %v6304_v56  ;;  %v18182_v51 = vld [vmem:[%s16929_s7 + $0x148] sm:$0xff]  ;;  %v16441_v1 = vld [vmem:[%s20199_s0 + $0x90] sm:$0xff]  }
 0x445   : > { %4973 = vmatprep.mubr.bf16.mxu1 %v20254_v31  ;;  %12458 = vmatpush1.bf16.msra.mxu0 %v14954_v59  ;;  %v14970_v59 = vcombine.low %v18161_v14, %v6303_v41  ;;  %v18185_v17 = vld [vmem:[%s16929_s7 + $0x168] sm:$0xff]  ;;  %v18196_v14 = vld [vmem:[%s16929_s7 + $0x180] sm:$0xff] }
 0x446   : > { %v4060_v0 = vpop.f32.mrb[92].mxu0  ;;  %12786 = vmatpush1.bf16.msra.mxu1 %v14956_v19  ;;  %12459 = vmatprep.subr.bf16.mxu0 %v14963_v24  ;;  %v4253_v55 = vpop.f32.mrb[92].mxu1  ;;  %v14972_v19 = vcombine.low %v6300_v60, %v6304_v56  ;;  %v14979_v24 = vcombine.high %v18175_v48, %v18178_v25  ;;  %v6319_v41 = vld [vmem:[%s16929_s7 + $0x1a0] sm:$0xff]  ;;  %v6316_v60 = vld [vmem:[%s16929_s7 + $0x188] sm:$0xff] }
 0x447   : > { %v5342_v2 = vmax.f32 %v4060_v0, 0.0  ;;  %v4062_v63 = vpop.f32.mrb[93].mxu0  ;;  %12787 = vmatprep.subr.bf16.mxu1 %v14965_v32  ;;  %v5344_v62 = vmax.f32 %v4253_v55, 0.0  ;;  %v4255_v43 = vpop.f32.mrb[93].mxu1  ;;  %v14981_v32 = vcombine.high %v18182_v51, %v18185_v17  ;;  %v6320_v56 = vld [vmem:[%s16929_s7 + $0x1a8] sm:$0xff]  ;;  %v18213_v55 = vld [vmem:[%s16929_s7 + $0x1e0] sm:$0xff] }
 0x448   : > { %v5343_v6 = vmax.f32 %v4062_v63, 0.0  ;;  %v4064_v5 = vpop.f32.mrb[94].mxu0  ;;  %v5345_v8 = vmax.f32 %v4255_v43, 0.0  ;;  %v4257_v22 = vpop.f32.mrb[94].mxu1 }
 0x449   : > { %v5787_v7 = vadd.f32 %v5786_v18, %v5342_v2  ;;  %v5358_v57 = vmax.f32 %v4064_v5, 0.0  ;;  %v4066_v3 = vpop.f32.mrb[95].mxu0  ;;  %12460 = vmatpush1.bf16.msra.mxu0 %v14962_v28  ;;  %v5861_v16 = vadd.f32 %v5860_v10, %v5344_v62  ;;  %v5360_v4 = vmax.f32 %v4257_v22, 0.0  ;;  %v4259_v15 = vpop.f32.mrb[95].mxu1  ;;  %v18210_v2 = vld [vmem:[%s16929_s7 + $0x1c0] sm:$0xff] }
 0x44a   : > { %v5824_v20 = vadd.f32 %v5823_v34, %v5343_v6  ;;  %v5359_v50 = vmax.f32 %v4066_v3, 0.0  ;;  %12788 = vmatpush1.bf16.msra.mxu1 %v14964_v52  ;;  %12461 = vmatprep.subr.bf16.mxu0 %v14971_v37  ;;  %v5898_v58 = vadd.f32 %v5897_v49, %v5345_v8  ;;  %v5361_v12 = vmax.f32 %v4259_v15, 0.0 }
 0x44b   : > { %v5788_v18 = vadd.f32 %v5787_v7, %v5358_v57  ;;  %14908 = vmatmul.mubr.msk.bf16.gmra.mrb[200].mxu0 %vm696_vm0, %v16441_v1  ;;  %12789 = vmatprep.subr.bf16.mxu1 %v14973_v11  ;;  %v5862_v10 = vadd.f32 %v5861_v16, %v5360_v4  ;;  %v14978_v28 = vcombine.low %v18175_v48, %v18178_v25 }
 0x44c   : > { %v5825_v34 = vadd.f32 %v5824_v20, %v5359_v50  ;;  %14924 = vmatmul.mubr.msk.bf16.gmra.mrb[200].mxu1 %vm696_vm0, %v16441_v1  ;;  %4790 = vmatprep.mubr.bf16.mxu0 %v20254_v31  ;;  %v5899_v49 = vadd.f32 %v5898_v58, %v5361_v12  ;;  %v14980_v52 = vcombine.low %v18182_v51, %v18185_v17  ;;  %v18217_v51 = vld [vmem:[%s16929_s7 + $0x1c8] sm:$0xff]  ;;  %v16442_v1 = vld [vmem:[%s20199_s0 + $0x98] sm:$0xff]  }
 0x44d   : > { %4983 = vmatprep.mubr.bf16.mxu1 %v20254_v31  ;;  %12462 = vmatpush1.bf16.msra.mxu0 %v14970_v59  ;;  %v14987_v37 = vcombine.high %v18196_v14, %v6319_v41  ;;  %v14989_v6 = vcombine.high %v6316_v60, %v6320_v56  ;;  %v14986_v59 = vcombine.low %v18196_v14, %v6319_v41  ;;  %v18220_v17 = vld [vmem:[%s16929_s7 + $0x1e8] sm:$0xff]  ;;  %v18231_v14 = vld [vmem:[%s16929_s7 + $0x200] sm:$0xff] }
 0x44e   : > { %v4070_v0 = vpop.f32.mrb[96].mxu0  ;;  %12790 = vmatpush1.bf16.msra.mxu1 %v14972_v19  ;;  %12463 = vmatprep.subr.bf16.mxu0 %v14979_v24  ;;  %v4263_v11 = vpop.f32.mrb[96].mxu1  ;;  %v14988_v19 = vcombine.low %v6316_v60, %v6320_v56  ;;  %v14995_v24 = vcombine.high %v18210_v2, %v18213_v55  ;;  %v6335_v41 = vld [vmem:[%s16929_s7 + $0x220] sm:$0xff]  ;;  %v6332_v60 = vld [vmem:[%s16929_s7 + $0x208] sm:$0xff] }
 0x44f   : > { %v5374_v63 = vmax.f32 %v4070_v0, 0.0  ;;  %v4072_v62 = vpop.f32.mrb[97].mxu0  ;;  %12791 = vmatprep.subr.bf16.mxu1 %v14981_v32  ;;  %v5376_v48 = vmax.f32 %v4263_v11, 0.0  ;;  %v4265_v43 = vpop.f32.mrb[97].mxu1  ;;  %v14997_v32 = vcombine.high %v18217_v51, %v18220_v17  ;;  %v6336_v56 = vld [vmem:[%s16929_s7 + $0x228] sm:$0xff]  ;;  %v18248_v11 = vld [vmem:[%s16929_s7 + $0x260] sm:$0xff] }
 0x450   : > { %v5375_v25 = vmax.f32 %v4072_v62, 0.0  ;;  %v4074_v5 = vpop.f32.mrb[98].mxu0  ;;  %v5377_v8 = vmax.f32 %v4265_v43, 0.0  ;;  %v4267_v22 = vpop.f32.mrb[98].mxu1 }
 0x451   : > { %v5789_v7 = vadd.f32 %v5788_v18, %v5374_v63  ;;  %v5390_v57 = vmax.f32 %v4074_v5, 0.0  ;;  %v4076_v3 = vpop.f32.mrb[99].mxu0  ;;  %12464 = vmatpush1.bf16.msra.mxu0 %v14978_v28  ;;  %v5863_v16 = vadd.f32 %v5862_v10, %v5376_v48  ;;  %v5392_v4 = vmax.f32 %v4267_v22, 0.0  ;;  %v4269_v15 = vpop.f32.mrb[99].mxu1  ;;  %v18245_v63 = vld [vmem:[%s16929_s7 + $0x240] sm:$0xff] }
 0x452   : > { %v5826_v20 = vadd.f32 %v5825_v34, %v5375_v25  ;;  %v5391_v50 = vmax.f32 %v4076_v3, 0.0  ;;  %12792 = vmatpush1.bf16.msra.mxu1 %v14980_v52  ;;  %12465 = vmatprep.subr.bf16.mxu0 %v14987_v37  ;;  %v5900_v58 = vadd.f32 %v5899_v49, %v5377_v8  ;;  %v5393_v12 = vmax.f32 %v4269_v15, 0.0 }
 0x453   : > { %v5790_v18 = vadd.f32 %v5789_v7, %v5390_v57  ;;  %14909 = vmatmul.mubr.msk.bf16.gmra.mrb[204].mxu0 %vm696_vm0, %v16442_v1  ;;  %12793 = vmatprep.subr.bf16.mxu1 %v14989_v6  ;;  %v5864_v10 = vadd.f32 %v5863_v16, %v5392_v4  ;;  %v14994_v28 = vcombine.low %v18210_v2, %v18213_v55 }
 0x454   : > { %v5827_v34 = vadd.f32 %v5826_v20, %v5391_v50  ;;  %14925 = vmatmul.mubr.msk.bf16.gmra.mrb[204].mxu1 %vm696_vm0, %v16442_v1  ;;  %4800 = vmatprep.mubr.bf16.mxu0 %v20254_v31  ;;  %v5901_v49 = vadd.f32 %v5900_v58, %v5393_v12  ;;  %v14996_v52 = vcombine.low %v18217_v51, %v18220_v17  ;;  %v18252_v51 = vld [vmem:[%s16929_s7 + $0x248] sm:$0xff]  ;;  %v16443_v1 = vld [vmem:[%s20199_s0 + $0xa0] sm:$0xff]  }
 0x455   : > { %4993 = vmatprep.mubr.bf16.mxu1 %v20254_v31  ;;  %12466 = vmatpush1.bf16.msra.mxu0 %v14986_v59  ;;  %v15003_v37 = vcombine.high %v18231_v14, %v6335_v41  ;;  %v15005_v25 = vcombine.high %v6332_v60, %v6336_v56  ;;  %v15002_v59 = vcombine.low %v18231_v14, %v6335_v41  ;;  %v18255_v17 = vld [vmem:[%s16929_s7 + $0x268] sm:$0xff]  ;;  %v18266_v14 = vld [vmem:[%s16929_s7 + $0x280] sm:$0xff] }
 0x456   : > { %v4080_v0 = vpop.f32.mrb[100].mxu0  ;;  %12794 = vmatpush1.bf16.msra.mxu1 %v14988_v19  ;;  %12467 = vmatprep.subr.bf16.mxu0 %v14995_v24  ;;  %v4273_v6 = vpop.f32.mrb[100].mxu1  ;;  %v15004_v19 = vcombine.low %v6332_v60, %v6336_v56  ;;  %v15011_v24 = vcombine.high %v18245_v63, %v18248_v11  ;;  %v6351_v41 = vld [vmem:[%s16929_s7 + $0x2a0] sm:$0xff]  ;;  %v6348_v60 = vld [vmem:[%s16929_s7 + $0x288] sm:$0xff] }
 0x457   : > { %v5406_v62 = vmax.f32 %v4080_v0, 0.0  ;;  %v4082_v48 = vpop.f32.mrb[101].mxu0  ;;  %12795 = vmatprep.subr.bf16.mxu1 %v14997_v32  ;;  %v5408_v2 = vmax.f32 %v4273_v6, 0.0  ;;  %v4275_v43 = vpop.f32.mrb[101].mxu1  ;;  %v15013_v32 = vcombine.high %v18252_v51, %v18255_v17  ;;  %v6352_v56 = vld [vmem:[%s16929_s7 + $0x2a8] sm:$0xff]  ;;  %v18283_v6 = vld [vmem:[%s16929_s7 + $0x2e0] sm:$0xff] }
 0x458   : > { %v5407_v55 = vmax.f32 %v4082_v48, 0.0  ;;  %v4084_v5 = vpop.f32.mrb[102].mxu0  ;;  %v5409_v8 = vmax.f32 %v4275_v43, 0.0  ;;  %v4277_v22 = vpop.f32.mrb[102].mxu1 }
 0x459   : > { %v5791_v7 = vadd.f32 %v5790_v18, %v5406_v62  ;;  %v5422_v57 = vmax.f32 %v4084_v5, 0.0  ;;  %v4086_v3 = vpop.f32.mrb[103].mxu0  ;;  %12468 = vmatpush1.bf16.msra.mxu0 %v14994_v28  ;;  %v5865_v16 = vadd.f32 %v5864_v10, %v5408_v2  ;;  %v5424_v4 = vmax.f32 %v4277_v22, 0.0  ;;  %v4279_v15 = vpop.f32.mrb[103].mxu1  ;;  %v18280_v62 = vld [vmem:[%s16929_s7 + $0x2c0] sm:$0xff] }
 0x45a   : > { %v5828_v20 = vadd.f32 %v5827_v34, %v5407_v55  ;;  %v5423_v50 = vmax.f32 %v4086_v3, 0.0  ;;  %12796 = vmatpush1.bf16.msra.mxu1 %v14996_v52  ;;  %12469 = vmatprep.subr.bf16.mxu0 %v15003_v37  ;;  %v5902_v58 = vadd.f32 %v5901_v49, %v5409_v8  ;;  %v5425_v12 = vmax.f32 %v4279_v15, 0.0 }
 0x45b   : > { %v5792_v18 = vadd.f32 %v5791_v7, %v5422_v57  ;;  %14910 = vmatmul.mubr.msk.bf16.gmra.mrb[208].mxu0 %vm696_vm0, %v16443_v1  ;;  %12797 = vmatprep.subr.bf16.mxu1 %v15005_v25  ;;  %v5866_v10 = vadd.f32 %v5865_v16, %v5424_v4  ;;  %v15010_v28 = vcombine.low %v18245_v63, %v18248_v11 }
 0x45c   : > { %v5829_v34 = vadd.f32 %v5828_v20, %v5423_v50  ;;  %14926 = vmatmul.mubr.msk.bf16.gmra.mrb[208].mxu1 %vm696_vm0, %v16443_v1  ;;  %4810 = vmatprep.mubr.bf16.mxu0 %v20254_v31  ;;  %v5903_v49 = vadd.f32 %v5902_v58, %v5425_v12  ;;  %v15012_v52 = vcombine.low %v18252_v51, %v18255_v17  ;;  %v18287_v51 = vld [vmem:[%s16929_s7 + $0x2c8] sm:$0xff] }
 0x45d   : > { %5003 = vmatprep.mubr.bf16.mxu1 %v20254_v31  ;;  %12470 = vmatpush1.bf16.msra.mxu0 %v15002_v59  ;;  %v15019_v37 = vcombine.high %v18266_v14, %v6351_v41  ;;  %v15021_v55 = vcombine.high %v6348_v60, %v6352_v56  ;;  %v15018_v59 = vcombine.low %v18266_v14, %v6351_v41  ;;  %v18290_v17 = vld [vmem:[%s16929_s7 + $0x2e8] sm:$0xff]  ;;  %v18301_v14 = vld [vmem:[%s16929_s7 + $0x300] sm:$0xff] }
 0x45e   : > { %v4090_v0 = vpop.f32.mrb[104].mxu0  ;;  %12798 = vmatpush1.bf16.msra.mxu1 %v15004_v19  ;;  %12471 = vmatprep.subr.bf16.mxu0 %v15011_v24  ;;  %v4283_v25 = vpop.f32.mrb[104].mxu1  ;;  %v15020_v19 = vcombine.low %v6348_v60, %v6352_v56  ;;  %v15027_v24 = vcombine.high %v18280_v62, %v18283_v6  ;;  %v16444_v1 = vld [vmem:[%s20199_s0 + $0xa8] sm:$0xff]   ;;  %v6367_v41 = vld [vmem:[%s16929_s7 + $0x320] sm:$0xff] }
 0x45f   : > { %v5438_v48 = vmax.f32 %v4090_v0, 0.0  ;;  %v4092_v2 = vpop.f32.mrb[105].mxu0  ;;  %12799 = vmatprep.subr.bf16.mxu1 %v15013_v32  ;;  %v5440_v63 = vmax.f32 %v4283_v25, 0.0  ;;  %v4285_v43 = vpop.f32.mrb[105].mxu1  ;;  %v15029_v32 = vcombine.high %v18287_v51, %v18290_v17  ;;  %v6364_v60 = vld [vmem:[%s16929_s7 + $0x308] sm:$0xff]  ;;  %v18318_v25 = vld [vmem:[%s16929_s7 + $0x360] sm:$0xff] }
 0x460   : > { %v5439_v11 = vmax.f32 %v4092_v2, 0.0  ;;  %v4094_v5 = vpop.f32.mrb[106].mxu0  ;;  %v5441_v8 = vmax.f32 %v4285_v43, 0.0  ;;  %v4287_v22 = vpop.f32.mrb[106].mxu1  ;;  %v6368_v56 = vld [vmem:[%s16929_s7 + $0x328] sm:$0xff] }
 0x461   : > { %v5793_v7 = vadd.f32 %v5792_v18, %v5438_v48  ;;  %v5454_v57 = vmax.f32 %v4094_v5, 0.0  ;;  %v4096_v3 = vpop.f32.mrb[107].mxu0  ;;  %12472 = vmatpush1.bf16.msra.mxu0 %v15010_v28  ;;  %v5867_v16 = vadd.f32 %v5866_v10, %v5440_v63  ;;  %v5456_v4 = vmax.f32 %v4287_v22, 0.0  ;;  %v4289_v15 = vpop.f32.mrb[107].mxu1  ;;  %v18315_v48 = vld [vmem:[%s16929_s7 + $0x340] sm:$0xff] }
 0x462   : > { %v5830_v20 = vadd.f32 %v5829_v34, %v5439_v11  ;;  %v5455_v50 = vmax.f32 %v4096_v3, 0.0  ;;  %12800 = vmatpush1.bf16.msra.mxu1 %v15012_v52  ;;  %12473 = vmatprep.subr.bf16.mxu0 %v15019_v37  ;;  %v5904_v58 = vadd.f32 %v5903_v49, %v5441_v8  ;;  %v5457_v12 = vmax.f32 %v4289_v15, 0.0 }
 0x463   : > { %v5794_v18 = vadd.f32 %v5793_v7, %v5454_v57  ;;  %14911 = vmatmul.mubr.msk.bf16.gmra.mrb[212].mxu0 %vm696_vm0, %v16444_v1  ;;  %12801 = vmatprep.subr.bf16.mxu1 %v15021_v55  ;;  %v5868_v10 = vadd.f32 %v5867_v16, %v5456_v4  ;;  %v15026_v28 = vcombine.low %v18280_v62, %v18283_v6 }
 0x464   : > { %v5831_v34 = vadd.f32 %v5830_v20, %v5455_v50  ;;  %14927 = vmatmul.mubr.msk.bf16.gmra.mrb[212].mxu1 %vm696_vm0, %v16444_v1  ;;  %4820 = vmatprep.mubr.bf16.mxu0 %v20254_v31  ;;  %v5905_v49 = vadd.f32 %v5904_v58, %v5457_v12  ;;  %v15028_v52 = vcombine.low %v18287_v51, %v18290_v17  ;;  %v18322_v51 = vld [vmem:[%s16929_s7 + $0x348] sm:$0xff]  ;;  %v16445_v1 = vld [vmem:[%s20199_s0 + $0xb0] sm:$0xff]  }
 0x465   : > { %5013 = vmatprep.mubr.bf16.mxu1 %v20254_v31  ;;  %12474 = vmatpush1.bf16.msra.mxu0 %v15018_v59  ;;  %v15035_v37 = vcombine.high %v18301_v14, %v6367_v41  ;;  %v15037_v11 = vcombine.high %v6364_v60, %v6368_v56  ;;  %v15034_v59 = vcombine.low %v18301_v14, %v6367_v41  ;;  %v18325_v17 = vld [vmem:[%s16929_s7 + $0x368] sm:$0xff]  ;;  %v6379_v14 = vld [vmem:[%s16929_s7 + $0x380] sm:$0xff] }
 0x466   : > { %v4100_v0 = vpop.f32.mrb[108].mxu0  ;;  %12802 = vmatpush1.bf16.msra.mxu1 %v15020_v19  ;;  %12475 = vmatprep.subr.bf16.mxu0 %v15027_v24  ;;  %v4293_v55 = vpop.f32.mrb[108].mxu1  ;;  %v15036_v19 = vcombine.low %v6364_v60, %v6368_v56  ;;  %v15043_v24 = vcombine.high %v18315_v48, %v18318_v25  ;;  %v6383_v41 = vld [vmem:[%s16929_s7 + $0x3a0] sm:$0xff]  ;;  %v6380_v60 = vld [vmem:[%s16929_s7 + $0x388] sm:$0xff] }
 0x467   : > { %v5470_v2 = vmax.f32 %v4100_v0, 0.0  ;;  %v4102_v63 = vpop.f32.mrb[109].mxu0  ;;  %12803 = vmatprep.subr.bf16.mxu1 %v15029_v32  ;;  %v5472_v62 = vmax.f32 %v4293_v55, 0.0  ;;  %v4295_v43 = vpop.f32.mrb[109].mxu1  ;;  %v15045_v32 = vcombine.high %v18322_v51, %v18325_v17  ;;  %v6384_v56 = vld [vmem:[%s16929_s7 + $0x3a8] sm:$0xff]  ;;  %v18350_v55 = vld [vmem:[%s16929_s7 + $0x3e0] sm:$0xff] }
 0x468   : > { %v5471_v6 = vmax.f32 %v4102_v63, 0.0  ;;  %v4104_v5 = vpop.f32.mrb[110].mxu0  ;;  %v5473_v8 = vmax.f32 %v4295_v43, 0.0  ;;  %v4297_v22 = vpop.f32.mrb[110].mxu1 }
 0x469   : > { %v5795_v7 = vadd.f32 %v5794_v18, %v5470_v2  ;;  %v5486_v57 = vmax.f32 %v4104_v5, 0.0  ;;  %v4106_v3 = vpop.f32.mrb[111].mxu0  ;;  %12476 = vmatpush1.bf16.msra.mxu0 %v15026_v28  ;;  %v5869_v16 = vadd.f32 %v5868_v10, %v5472_v62  ;;  %v5488_v4 = vmax.f32 %v4297_v22, 0.0  ;;  %v4299_v15 = vpop.f32.mrb[111].mxu1  ;;  %v18347_v2 = vld [vmem:[%s16929_s7 + $0x3c0] sm:$0xff] }
 0x46a   : > { %v5832_v20 = vadd.f32 %v5831_v34, %v5471_v6  ;;  %v5487_v50 = vmax.f32 %v4106_v3, 0.0  ;;  %12804 = vmatpush1.bf16.msra.mxu1 %v15028_v52  ;;  %12477 = vmatprep.subr.bf16.mxu0 %v15035_v37  ;;  %v5906_v58 = vadd.f32 %v5905_v49, %v5473_v8  ;;  %v5489_v12 = vmax.f32 %v4299_v15, 0.0  ;;  %v6392_v8 = vld [vmem:[%s16929_s7 + $0x3e8] sm:$0xff] }
 0x46b   : > { %v5796_v18 = vadd.f32 %v5795_v7, %v5486_v57  ;;  %14912 = vmatmul.mubr.msk.bf16.gmra.mrb[216].mxu0 %vm696_vm0, %v16445_v1  ;;  %12805 = vmatprep.subr.bf16.mxu1 %v15037_v11  ;;  %v5870_v10 = vadd.f32 %v5869_v16, %v5488_v4  ;;  %v15042_v28 = vcombine.low %v18315_v48, %v18318_v25  ;;  %v6388_v7 = vld [vmem:[%s16929_s7 + $0x3c8] sm:$0xff] }
 0x46c   : > { %v5833_v34 = vadd.f32 %v5832_v20, %v5487_v50  ;;  %14928 = vmatmul.mubr.msk.bf16.gmra.mrb[216].mxu1 %vm696_vm0, %v16445_v1  ;;  %4830 = vmatprep.mubr.bf16.mxu0 %v20254_v31  ;;  %v5907_v49 = vadd.f32 %v5906_v58, %v5489_v12  ;;  %v15044_v52 = vcombine.low %v18322_v51, %v18325_v17 }
 0x46d   : > { %5023 = vmatprep.mubr.bf16.mxu1 %v20254_v31  ;;  %12478 = vmatpush1.bf16.msra.mxu0 %v15034_v59  ;;  %v15051_v37 = vcombine.high %v6379_v14, %v6383_v41  ;;  %v15053_v6 = vcombine.high %v6380_v60, %v6384_v56  ;;  %v15050_v59 = vcombine.low %v6379_v14, %v6383_v41 }
 0x46e   : > { %v4110_v0 = vpop.f32.mrb[112].mxu0  ;;  %12806 = vmatpush1.bf16.msra.mxu1 %v15036_v19  ;;  %12479 = vmatprep.subr.bf16.mxu0 %v15043_v24  ;;  %v4303_v11 = vpop.f32.mrb[112].mxu1  ;;  %v15052_v19 = vcombine.low %v6380_v60, %v6384_v56  ;;  %v15059_v24 = vcombine.high %v18347_v2, %v18350_v55  ;;  %v15060_v56 = vcombine.low %v6388_v7, %v6392_v8 }
 0x46f   : > { %v5502_v63 = vmax.f32 %v4110_v0, 0.0  ;;  %v4112_v62 = vpop.f32.mrb[113].mxu0  ;;  %12807 = vmatprep.subr.bf16.mxu1 %v15045_v32  ;;  %v5504_v43 = vmax.f32 %v4303_v11, 0.0  ;;  %v4305_v25 = vpop.f32.mrb[113].mxu1  ;;  %v15061_v32 = vcombine.high %v6388_v7, %v6392_v8 }
 0x470   : > { %v5503_v48 = vmax.f32 %v4112_v62, 0.0  ;;  %v4114_v5 = vpop.f32.mrb[114].mxu0  ;;  %v5505_v17 = vmax.f32 %v4305_v25, 0.0  ;;  %v4307_v22 = vpop.f32.mrb[114].mxu1 }
 0x471   : > { %v5797_v51 = vadd.f32 %v5796_v18, %v5502_v63  ;;  %v5518_v57 = vmax.f32 %v4114_v5, 0.0  ;;  %v4116_v3 = vpop.f32.mrb[115].mxu0  ;;  %12480 = vmatpush1.bf16.msra.mxu0 %v15042_v28  ;;  %v5871_v16 = vadd.f32 %v5870_v10, %v5504_v43  ;;  %v5520_v4 = vmax.f32 %v4307_v22, 0.0  ;;  %v4309_v15 = vpop.f32.mrb[115].mxu1  ;;  %v16446_v18 = vld [vmem:[%s20199_s0 + $0xb8] sm:$0xff]  }
 0x472   : > { %v5834_v20 = vadd.f32 %v5833_v34, %v5503_v48  ;;  %v5519_v50 = vmax.f32 %v4116_v3, 0.0  ;;  %12808 = vmatpush1.bf16.msra.mxu1 %v15044_v52  ;;  %12481 = vmatprep.subr.bf16.mxu0 %v15051_v37  ;;  %v5908_v58 = vadd.f32 %v5907_v49, %v5505_v17  ;;  %v5521_v1 = vmax.f32 %v4309_v15, 0.0 }
 0x473   : > { %v5798_v12 = vadd.f32 %v5797_v51, %v5518_v57  ;;  %14913 = vmatmul.mubr.msk.bf16.gmra.mrb[220].mxu0 %vm696_vm0, %v16446_v18  ;;  %12809 = vmatprep.subr.bf16.mxu1 %v15053_v6  ;;  %v5872_v14 = vadd.f32 %v5871_v16, %v5520_v4  ;;  %v15058_v34 = vcombine.low %v18347_v2, %v18350_v55  ;;  %v2980_v2 = vrot.slane %v17569_v27, 4 }
 0x474   : > { %v5835_v41 = vadd.f32 %v5834_v20, %v5519_v50  ;;  %14929 = vmatmul.mubr.msk.bf16.gmra.mrb[220].mxu1 %vm696_vm0, %v16446_v18  ;;  %4840 = vmatprep.mubr.bf16.mxu0 %v20254_v31  ;;  %v5909_v10 = vadd.f32 %v5908_v58, %v5521_v1  ;;  %v15067_v49 = vcombine.high %v18118_v38, %v18121_v30  ;;  %v3054_v17 = vrot.slane %v17573_v54, 4 }
 0x475   : > { %5033 = vmatprep.mubr.bf16.mxu1 %v20254_v31  ;;  %12482 = vmatpush1.bf16.msra.mxu0 %v15050_v59  ;;  %v15069_v37 = vcombine.high %v18124_v42, %v18138_v39  ;;  %v3017_v16 = vrot.slane %v17575_v36, 4  ;;  %v2981_v50 = vadd.f32 %v2980_v2, %v17569_v27 }
 0x476   : > { %v4120_v60 = vpop.f32.mrb[116].mxu0  ;;  %12810 = vmatpush1.bf16.msra.mxu1 %v15052_v19  ;;  %12483 = vmatprep.subr.bf16.mxu0 %v15059_v24  ;;  %v4313_v0 = vpop.f32.mrb[116].mxu1  ;;  %v16447_v24 = vld [vmem:[%s20199_s0 + $0xc0] sm:$0xff]  }
 0x477   : > { %v5534_v28 = vmax.f32 %v4120_v60, 0.0  ;;  %v4122_v52 = vpop.f32.mrb[117].mxu0  ;;  %12811 = vmatprep.subr.bf16.mxu1 %v15061_v32  ;;  %v5536_v63 = vmax.f32 %v4313_v0, 0.0  ;;  %v4315_v62 = vpop.f32.mrb[117].mxu1 }
 0x478   : > { %v5535_v11 = vmax.f32 %v4122_v52, 0.0  ;;  %v4124_v6 = vpop.f32.mrb[118].mxu0  ;;  %v5537_v43 = vmax.f32 %v4315_v62, 0.0  ;;  %v4317_v25 = vpop.f32.mrb[118].mxu1 }
 0x479   : > { %v5799_v55 = vadd.f32 %v5798_v12, %v5534_v28  ;;  %v5550_v48 = vmax.f32 %v4124_v6, 0.0  ;;  %v4126_v5 = vpop.f32.mrb[119].mxu0  ;;  %12484 = vmatpush1.bf16.msra.mxu0 %v15058_v34  ;;  %v5873_v59 = vadd.f32 %v5872_v14, %v5536_v63  ;;  %v5552_v7 = vmax.f32 %v4317_v25, 0.0  ;;  %v4319_v51 = vpop.f32.mrb[119].mxu1 }
 0x47a   : > { %v5836_v19 = vadd.f32 %v5835_v41, %v5535_v11  ;;  %v5551_v8 = vmax.f32 %v4126_v5, 0.0  ;;  %12812 = vmatpush1.bf16.msra.mxu1 %v15060_v56  ;;  %12494 = vmatprep.subr.bf16.mxu0 %v15067_v49  ;;  %v5910_v57 = vadd.f32 %v5909_v10, %v5537_v43  ;;  %v5553_v3 = vmax.f32 %v4319_v51, 0.0 }
 0x47b   : > { %v5800_v22 = vadd.f32 %v5799_v55, %v5550_v48  ;;  %14914 = vmatmul.mubr.msk.bf16.gmra.mrb[224].mxu0 %vm696_vm0, %v16447_v24  ;;  %12822 = vmatprep.subr.bf16.mxu1 %v15069_v37  ;;  %v5874_v20 = vadd.f32 %v5873_v59, %v5552_v7  ;;  %v3055_v12 = vadd.f32 %v3054_v17, %v17573_v54  ;;  %v2982_v56 = vrot.slane %v2981_v50, 2 }
 0x47c   : > { %v5837_v4 = vadd.f32 %v5836_v19, %v5551_v8  ;;  %14930 = vmatmul.mubr.msk.bf16.gmra.mrb[224].mxu1 %vm696_vm0, %v16447_v24  ;;  %4850 = vmatprep.mubr.bf16.mxu0 %v20254_v31  ;;  %v5911_v15 = vadd.f32 %v5910_v57, %v5553_v3  ;;  %v3018_v14 = vadd.f32 %v3017_v16, %v17575_v36  ;;  %v16448_v36 = vld [vmem:[%s20199_s0 + $0xc8] sm:$0xff]  }
 0x47d   : > { %5043 = vmatprep.mubr.bf16.mxu1 %v20254_v31  ;;  %v3056_v6 = vrot.slane %v3055_v12, 2  ;;  %v2983_v59 = vadd.f32 %v2982_v56, %v2981_v50 }
 0x47e   : > { %v4130_v58 = vpop.f32.mrb[120].mxu0  ;;  %v4323_v18 = vpop.f32.mrb[120].mxu1  ;;  %v3019_v48 = vrot.slane %v3018_v14, 2 }
 0x47f   : > { %v5566_v1 = vmax.f32 %v4130_v58, 0.0  ;;  %v4132_v32 = vpop.f32.mrb[121].mxu0  ;;  %v5568_v41 = vmax.f32 %v4323_v18, 0.0  ;;  %v4325_v34 = vpop.f32.mrb[121].mxu1  ;;  %v3057_v8 = vadd.f32 %v3056_v6, %v3055_v12 }
 0x480   : > { %v5567_v10 = vmax.f32 %v4132_v32, 0.0  ;;  %v4134_v60 = vpop.f32.mrb[122].mxu0  ;;  %v5569_v28 = vmax.f32 %v4325_v34, 0.0  ;;  %v4327_v27 = vpop.f32.mrb[122].mxu1 }
 0x481   : > { %v5801_v49 = vadd.f32 %v5800_v22, %v5566_v1  ;;  %v5582_v0 = vmax.f32 %v4134_v60, 0.0  ;;  %v4136_v52 = vpop.f32.mrb[123].mxu0  ;;  %v5875_v37 = vadd.f32 %v5874_v20, %v5568_v41  ;;  %v5584_v11 = vmax.f32 %v4327_v27, 0.0  ;;  %v4329_v54 = vpop.f32.mrb[123].mxu1 }
 0x482   : > { %v5838_v63 = vadd.f32 %v5837_v4, %v5567_v10  ;;  %v5583_v62 = vmax.f32 %v4136_v52, 0.0  ;;  %v5912_v2 = vadd.f32 %v5911_v15, %v5569_v28  ;;  %v5585_v43 = vmax.f32 %v4329_v54, 0.0  ;;  %v16449_v28 = vld [vmem:[%s20199_s0 + $0xd0] sm:$0xff]  }
 0x483   : > { %v5802_v55 = vadd.f32 %v5801_v49, %v5582_v0  ;;  %14915 = vmatmul.mubr.msk.bf16.gmra.mrb[228].mxu0 %vm696_vm0, %v16448_v36  ;;  %v5876_v25 = vadd.f32 %v5875_v37, %v5584_v11  ;;  %v18389_v22 = vadd.f32 %v3019_v48, %v3018_v14  ;;  %v2984_v4 = vrot.slane %v2983_v59, 1 }
 0x484   : > { %v5839_v5 = vadd.f32 %v5838_v63, %v5583_v62  ;;  %14931 = vmatmul.mubr.msk.bf16.gmra.mrb[228].mxu1 %vm696_vm0, %v16448_v36  ;;  %4860 = vmatprep.mubr.bf16.mxu0 %v20254_v31  ;;  %v5913_v19 = vadd.f32 %v5912_v2, %v5585_v43  ;;  %v3058_v60 = vrot.slane %v3057_v8, 1  ;;  %v3091_v63 = vrot.slane %v17580_v40, 4 }
 0x485   : > { %5053 = vmatprep.mubr.bf16.mxu1 %v20254_v31  ;;  %v2985_v6 = vadd.f32 %v2984_v4, %v2983_v59 }
 0x486   : > { %v4140_v7 = vpop.f32.mrb[124].mxu0  ;;  %v4333_v17 = vpop.f32.mrb[124].mxu1  ;;  %v3059_v2 = vadd.f32 %v3058_v60, %v3057_v8 }
 0x487   : > { %v5598_v51 = vmax.f32 %v4140_v7, 0.0  ;;  %v4142_v57 = vpop.f32.mrb[125].mxu0  ;;  %v5600_v3 = vmax.f32 %v4333_v17, 0.0  ;;  %v4335_v16 = vpop.f32.mrb[125].mxu1 }
 0x488   : > { %v5599_v24 = vmax.f32 %v4142_v57, 0.0  ;;  %v4144_v20 = vpop.f32.mrb[126].mxu0  ;;  %v5601_v58 = vmax.f32 %v4335_v16, 0.0  ;;  %v4337_v18 = vpop.f32.mrb[126].mxu1 }
 0x489   : > { %v5803_v15 = vadd.f32 %v5802_v55, %v5598_v51  ;;  %v5614_v1 = vmax.f32 %v4144_v20, 0.0  ;;  %v4146_v50 = vpop.f32.mrb[127].mxu0  ;;  %v5877_v32 = vadd.f32 %v5876_v25, %v5600_v3  ;;  %v5616_v10 = vmax.f32 %v4337_v18, 0.0  ;;  %v4339_v12 = vpop.f32.mrb[127].mxu1 }
 0x48a   : > { %v5840_v41 = vadd.f32 %v5839_v5, %v5599_v24  ;;  %v5615_v34 = vmax.f32 %v4146_v50, 0.0  ;;  %v5914_v56 = vadd.f32 %v5913_v19, %v5601_v58  ;;  %v5617_v14 = vmax.f32 %v4339_v12, 0.0 }
 0x48b   : > { %v5804_v49 = vadd.f32 %v5803_v15, %v5614_v1  ;;  %14916 = vmatmul.mubr.msk.bf16.gmra.mrb[232].mxu0 %vm696_vm0, %v16449_v28  ;;  %v5878_v0 = vadd.f32 %v5877_v32, %v5616_v10  ;;  %v3021_v55 = vrot.slane %v18389_v22, 1  ;;  %v16450_v10 = vld [vmem:[%s20199_s0 + $0xd8] sm:$0xff]  }
 0x48c   : > { %v5841_v27 = vadd.f32 %v5840_v41, %v5615_v34  ;;  %14932 = vmatmul.mubr.msk.bf16.gmra.mrb[232].mxu1 %vm696_vm0, %v16449_v28  ;;  %4870 = vmatprep.mubr.bf16.mxu0 %v20254_v31  ;;  %v5915_v37 = vadd.f32 %v5914_v56, %v5617_v14 }
 0x48d   : > { %v5805_v52 = vrot.slane %v5804_v49, 4  ;;  %5063 = vmatprep.mubr.bf16.mxu1 %v20254_v31  ;;  %v5879_v11 = vrot.slane %v5878_v0, 4 }
 0x48e   : > { %v5842_v62 = vrot.slane %v5841_v27, 4  ;;  %v4376_v54 = vpop.f32.mrb[128].mxu0  ;;  %v4569_v36 = vpop.f32.mrb[128].mxu1  ;;  %v5916_v50 = vrot.slane %v5915_v37, 4 }
 0x48f   : > { %v5806_v43 = vadd.f32 %v5805_v52, %v5804_v49  ;;  %v4378_v48 = vpop.f32.mrb[129].mxu0  ;;  %v5880_v25 = vadd.f32 %v5879_v11, %v5878_v0  ;;  %v5122_v19 = vmax.f32 %v4376_v54, 0.0  ;;  %v5124_v7 = vmax.f32 %v4569_v36, 0.0  ;;  %v4571_v51 = vpop.f32.mrb[129].mxu1 }
 0x490   : > { %v5843_v5 = vadd.f32 %v5842_v62, %v5841_v27  ;;  %v4380_v17 = vpop.f32.mrb[130].mxu0  ;;  %v5123_v3 = vmax.f32 %v4378_v48, 0.0  ;;  %v5125_v24 = vmax.f32 %v4571_v51, 0.0  ;;  %v4573_v20 = vpop.f32.mrb[130].mxu1  ;;  %v3022_v49 = vadd.f32 %v3021_v55, %v18389_v22 }
 0x491   : > { %v5807_v57 = vrot.slane %v5806_v43, 2  ;;  %v5138_v16 = vmax.f32 %v4380_v17, 0.0  ;;  %v4382_v15 = vpop.f32.mrb[131].mxu0  ;;  %v5881_v58 = vrot.slane %v5880_v25, 2  ;;  %v5140_v8 = vmax.f32 %v4573_v20, 0.0  ;;  %v4575_v1 = vpop.f32.mrb[131].mxu1 }
 0x492   : > { %v5844_v59 = vrot.slane %v5843_v5, 2  ;;  %v5139_v4 = vmax.f32 %v4382_v15, 0.0  ;;  %v5141_v41 = vmax.f32 %v4575_v1, 0.0  ;;  %v3398_v0 = vmul.f32 0.00390625, %v2985_v6  ;;  %v16451_v1 = vld [vmem:[%s20199_s0 + $0xe0] sm:$0xff]  }
 0x493   : > { %v5808_v18 = vadd.f32 %v5807_v57, %v5806_v43  ;;  %v5922_v32 = vadd.f32 %v5138_v16, %v5122_v19  ;;  %14917 = vmatmul.mubr.msk.bf16.gmra.mrb[236].mxu0 %vm696_vm0, %v16450_v10  ;;  %v5882_v34 = vadd.f32 %v5881_v58, %v5880_v25  ;;  %v5996_v60 = vadd.f32 %v5140_v8, %v5124_v7 }
 0x494   : > { %v5845_v12 = vadd.f32 %v5844_v59, %v5843_v5  ;;  %v5959_v56 = vadd.f32 %v5139_v4, %v5123_v3  ;;  %14933 = vmatmul.mubr.msk.bf16.gmra.mrb[236].mxu1 %vm696_vm0, %v16450_v10  ;;  %v6033_v28 = vadd.f32 %v5141_v41, %v5125_v24  ;;  %4880 = vmatprep.mubr.bf16.mxu0 %v20254_v31  ;;  %v3400_v54 = vmul.f32 0.00390625, %v3059_v2 }
 0x495   : > { %v5809_v14 = vrot.slane %v5808_v18, 1  ;;  %5073 = vmatprep.mubr.bf16.mxu1 %v20254_v31  ;;  %v3092_v27 = vadd.f32 %v3091_v63, %v17580_v40  ;;  %v5883_v52 = vrot.slane %v5882_v34, 1  ;;  %v5917_v36 = vadd.f32 %v5916_v50, %v5915_v37 }
 0x496   : > { %v5846_v11 = vrot.slane %v5845_v12, 1  ;;  %v4386_v62 = vpop.f32.mrb[132].mxu0  ;;  %v4579_v25 = vpop.f32.mrb[132].mxu1  ;;  %v3399_v57 = vmul.f32 0.00390625, %v3022_v49 }
 0x497   : > { %v5810_v43 = vadd.f32 %v5809_v14, %v5808_v18  ;;  %v5154_v48 = vmax.f32 %v4386_v62, 0.0  ;;  %v4388_v5 = vpop.f32.mrb[133].mxu0  ;;  %v5884_v19 = vadd.f32 %v5883_v52, %v5882_v34  ;;  %v5156_v55 = vmax.f32 %v4579_v25, 0.0  ;;  %v4581_v51 = vpop.f32.mrb[133].mxu1 }
 0x498   : > { %v5847_v22 = vadd.f32 %v5846_v11, %v5845_v12  ;;  %v5155_v7 = vmax.f32 %v4388_v5, 0.0  ;;  %v4390_v17 = vpop.f32.mrb[134].mxu0  ;;  %v5157_v24 = vmax.f32 %v4581_v51, 0.0  ;;  %v4583_v40 = vpop.f32.mrb[134].mxu1  ;;  %v5918_v59 = vrot.slane %v5917_v36, 2 }
 0x499   : > { %v6222_v3 = vmul.f32 0.00390625, %v5810_v43  ;;  %v5923_v6 = vadd.f32 %v5922_v32, %v5154_v48  ;;  %v4392_v63 = vpop.f32.mrb[135].mxu0  ;;  %v6224_v16 = vmul.f32 0.00390625, %v5884_v19  ;;  %v5997_v2 = vadd.f32 %v5996_v60, %v5156_v55  ;;  %v4585_v37 = vpop.f32.mrb[135].mxu1 }
 0x49a   : > { %v6223_v20 = vmul.f32 0.00390625, %v5847_v22  ;;  %v5960_v15 = vadd.f32 %v5959_v56, %v5155_v7  ;;  %v6034_v8 = vadd.f32 %v6033_v28, %v5157_v24  ;;  %v5170_v4 = vmax.f32 %v4390_v17, 0.0 }
 0x49b   : > { %v18410_v58 = vsel %vm6234_vm1, %v3398_v0, %v6222_v3  ;;  %14918 = vmatmul.mubr.msk.bf16.gmra.mrb[240].mxu0 %vm696_vm0, %v16451_v1  ;;  %v18417_v18 = vsel %vm6234_vm1, %v3400_v54, %v6224_v16  ;;  %v5172_v50 = vmax.f32 %v4583_v40, 0.0  ;;  %v5171_v32 = vmax.f32 %v4392_v63, 0.0  ;;  %v16452_v16 = vld [vmem:[%s20199_s0 + $0xe8] sm:$0xff]  }
 0x49c   : > { %14934 = vmatmul.mubr.msk.bf16.gmra.mrb[240].mxu1 %vm696_vm0, %v16451_v1  ;;  %4890 = vmatprep.mubr.bf16.mxu0 %v20254_v31  ;;  %v3093_v41 = vrot.slane %v3092_v27, 2  ;;  %v5924_v10 = vadd.f32 %v5923_v6, %v5170_v4  ;;  %v5173_v34 = vmax.f32 %v4585_v37, 0.0  ;;  %v18423_v12 = vsel %vm6234_vm1, %v3399_v57, %v6223_v20 }
 0x49d   : > { %5083 = vmatprep.mubr.bf16.mxu1 %v20254_v31  ;;  %v5998_v60 = vadd.f32 %v5997_v2, %v5172_v50  ;;  %v5961_v56 = vadd.f32 %v5960_v15, %v5171_v32  ;;  %v5919_v14 = vadd.f32 %v5918_v59, %v5917_v36 }
 0x49e   : > { %v4396_v49 = vpop.f32.mrb[136].mxu0  ;;  %v6035_v28 = vadd.f32 %v6034_v8, %v5173_v34  ;;  %v4589_v52 = vpop.f32.mrb[136].mxu1  ;;  %v3094_v25 = vadd.f32 %v3093_v41, %v3092_v27 }
 0x49f   : > { %v5186_v0 = vmax.f32 %v4396_v49, 0.0  ;;  %v4398_v11 = vpop.f32.mrb[137].mxu0  ;;  %v5188_v62 = vmax.f32 %v4589_v52, 0.0  ;;  %v4591_v43 = vpop.f32.mrb[137].mxu1  ;;  %v5920_v36 = vrot.slane %v5919_v14, 1 }
 0x4a0   : > { %v5187_v54 = vmax.f32 %v4398_v11, 0.0  ;;  %v4400_v48 = vpop.f32.mrb[138].mxu0  ;;  %v5189_v19 = vmax.f32 %v4591_v43, 0.0  ;;  %v4593_v55 = vpop.f32.mrb[138].mxu1  ;;  %v3095_v2 = vrot.slane %v3094_v25, 1 }
 0x4a1   : > { %v5925_v5 = vadd.f32 %v5924_v10, %v5186_v0  ;;  %v5202_v22 = vmax.f32 %v4400_v48, 0.0  ;;  %v4402_v7 = vpop.f32.mrb[139].mxu0  ;;  %v5999_v51 = vadd.f32 %v5998_v60, %v5188_v62  ;;  %v5204_v57 = vmax.f32 %v4593_v55, 0.0  ;;  %v4595_v6 = vpop.f32.mrb[139].mxu1 }
 0x4a2   : > { %v5962_v17 = vadd.f32 %v5961_v56, %v5187_v54  ;;  %v5203_v3 = vmax.f32 %v4402_v7, 0.0  ;;  %v6036_v24 = vadd.f32 %v6035_v28, %v5189_v19  ;;  %v5205_v63 = vmax.f32 %v4595_v6, 0.0 }
 0x4a3   : > { %v5926_v40 = vadd.f32 %v5925_v5, %v5202_v22  ;;  %14919 = vmatmul.mubr.msk.bf16.gmra.mrb[244].mxu0 %vm696_vm0, %v16452_v16  ;;  %v6000_v27 = vadd.f32 %v5999_v51, %v5204_v57  ;;  %v5921_v59 = vadd.f32 %v5920_v36, %v5919_v14  ;;  %v3096_v34 = vadd.f32 %v3095_v2, %v3094_v25  ;;  %v16453_v22 = vld [vmem:[%s20199_s0 + $0xf0] sm:$0xff]  }
 0x4a4   : > { %v5963_v20 = vadd.f32 %v5962_v17, %v5203_v3  ;;  %14935 = vmatmul.mubr.msk.bf16.gmra.mrb[244].mxu1 %vm696_vm0, %v16452_v16  ;;  %4900 = vmatprep.mubr.bf16.mxu0 %v20254_v31  ;;  %v6037_v15 = vadd.f32 %v6036_v24, %v5205_v63 }
 0x4a5   : > { %5093 = vmatprep.mubr.bf16.mxu1 %v20254_v31  ;;  %v6225_v48 = vmul.f32 0.00390625, %v5921_v59  ;;  %v3401_v7 = vmul.f32 0.00390625, %v3096_v34  ;;  %v18444_v59 = vpack.c.bf16 %v18057_v53, %v18057_v53  ;;  %v16454_v34 = vld [vmem:[%s20199_s0 + $0xf8] sm:$0xff]  }
 0x4a6   : > { %v4406_v37 = vpop.f32.mrb[140].mxu0  ;;  %v4599_v4 = vpop.f32.mrb[140].mxu1 }
 0x4a7   : > { %v5218_v8 = vmax.f32 %v4406_v37, 0.0  ;;  %v4408_v1 = vpop.f32.mrb[141].mxu0  ;;  %v5220_v50 = vmax.f32 %v4599_v4, 0.0  ;;  %v4601_v41 = vpop.f32.mrb[141].mxu1  ;;  %v18440_v36 = vsel %vm6234_vm1, %v3401_v7, %v6225_v48 }
 0x4a8   : > { %v5219_v32 = vmax.f32 %v4408_v1, 0.0  ;;  %v4410_v10 = vpop.f32.mrb[142].mxu0  ;;  %v5221_v56 = vmax.f32 %v4601_v41, 0.0  ;;  %v4603_v28 = vpop.f32.mrb[142].mxu1 }
 0x4a9   : > { %v5927_v60 = vadd.f32 %v5926_v40, %v5218_v8  ;;  %v5234_v49 = vmax.f32 %v4410_v10, 0.0  ;;  %v4412_v0 = vpop.f32.mrb[143].mxu0  ;;  %v6001_v52 = vadd.f32 %v6000_v27, %v5220_v50  ;;  %v5236_v62 = vmax.f32 %v4603_v28, 0.0  ;;  %v4605_v43 = vpop.f32.mrb[143].mxu1  ;;  %v6403_v28 = vld [vmem:[%s16929_s7 + $0x440] sm:$0xff] }
 0x4aa   : > { %v5964_v11 = vadd.f32 %v5963_v20, %v5219_v32  ;;  %v5235_v54 = vmax.f32 %v4412_v0, 0.0  ;;  %v6038_v14 = vadd.f32 %v6037_v15, %v5221_v56  ;;  %v5237_v19 = vmax.f32 %v4605_v43, 0.0  ;;  %v6407_v0 = vld [vmem:[%s16929_s7 + $0x460] sm:$0xff] }
 0x4ab   : > { %v5928_v5 = vadd.f32 %v5927_v60, %v5234_v49  ;;  %14920 = vmatmul.mubr.msk.bf16.gmra.mrb[248].mxu0 %vm696_vm0, %v16453_v22  ;;  %v6002_v25 = vadd.f32 %v6001_v52, %v5236_v62 }
 0x4ac   : > { %v5965_v55 = vadd.f32 %v5964_v11, %v5235_v54  ;;  %14936 = vmatmul.mubr.msk.bf16.gmra.mrb[248].mxu1 %vm696_vm0, %v16453_v22  ;;  %4910 = vmatprep.mubr.bf16.mxu0 %v20254_v31  ;;  %v6039_v51 = vadd.f32 %v6038_v14, %v5237_v19  ;;  %v18457_v54 = vpack.c.bf16 %v18044_v33, %v18044_v33  ;;  %v6404_v22 = vld [vmem:[%s16929_s7 + $0x448] sm:$0xff] }
 0x4ad   : > { %5103 = vmatprep.mubr.bf16.mxu1 %v20254_v31  ;;  %v18461_v19 = vpack.c.bf16 %v18067_v29, %v18067_v29 }
 0x4ae   : > { %v4416_v17 = vpop.f32.mrb[144].mxu0  ;;  %v4609_v3 = vpop.f32.mrb[144].mxu1 }
 0x4af   : > { %v5250_v57 = vmax.f32 %v4416_v17, 0.0  ;;  %v4418_v6 = vpop.f32.mrb[145].mxu0  ;;  %v5252_v24 = vmax.f32 %v4609_v3, 0.0  ;;  %v4611_v63 = vpop.f32.mrb[145].mxu1 }
 0x4b0   : > { %v5251_v40 = vmax.f32 %v4418_v6, 0.0  ;;  %v4420_v16 = vpop.f32.mrb[146].mxu0  ;;  %v5253_v20 = vmax.f32 %v4611_v63, 0.0  ;;  %v4613_v15 = vpop.f32.mrb[146].mxu1 }
 0x4b1   : > { %v5929_v27 = vadd.f32 %v5928_v5, %v5250_v57  ;;  %v5266_v2 = vmax.f32 %v4420_v16, 0.0  ;;  %v4422_v37 = vpop.f32.mrb[147].mxu0  ;;  %v6003_v31 = vadd.f32 %v6002_v25, %v5252_v24  ;;  %v5268_v4 = vmax.f32 %v4613_v15, 0.0  ;;  %v4615_v50 = vpop.f32.mrb[147].mxu1  ;;  %v6408_v25 = vld [vmem:[%s16929_s7 + $0x468] sm:$0xff]  ;;  %v6411_v16 = vld [vmem:[%s16929_s7 + $0x480] sm:$0xff] }
 0x4b2   : > { %v5966_v8 = vadd.f32 %v5965_v55, %v5251_v40  ;;  %v5267_v1 = vmax.f32 %v4422_v37, 0.0  ;;  %v6040_v32 = vadd.f32 %v6039_v51, %v5253_v20  ;;  %v5269_v10 = vmax.f32 %v4615_v50, 0.0  ;;  %v6412_v37 = vld [vmem:[%s16929_s7 + $0x488] sm:$0xff] }
 0x4b3   : > { %v5930_v41 = vadd.f32 %v5929_v27, %v5266_v2  ;;  %14921 = vmatmul.mubr.msk.bf16.gmra.mrb[252].mxu0 %vm696_vm0, %v16454_v34  ;;  %v6004_v60 = vadd.f32 %v6003_v31, %v5268_v4  ;;  %v15075_v57 = vcombine.high %v6403_v28, %v6407_v0  ;;  %v6415_v27 = vld [vmem:[%s16929_s7 + $0x4a0] sm:$0xff]  ;;  %v15077_v15 = vcombine.high %v6404_v22, %v6408_v25  ;;  %v6416_v31 = vld [vmem:[%s16929_s7 + $0x4a8] sm:$0xff] }
 0x4b4   : > { %v5967_v56 = vadd.f32 %v5966_v8, %v5267_v1  ;;  %14937 = vmatmul.mubr.msk.bf16.gmra.mrb[252].mxu1 %vm696_vm0, %v16454_v34  ;;  %12485 = vmatprep.mubr.bf16.mxu0 %v18444_v59  ;;  %v6041_v53 = vadd.f32 %v6040_v32, %v5269_v10  ;;  %v15074_v1 = vcombine.low %v6403_v28, %v6407_v0  ;;  %v18479_v10 = vld [vmem:[%s16929_s7 + $0x4c0] sm:$0xff] }
 0x4b5   : > { %12813 = vmatprep.mubr.bf16.mxu1 %v18444_v59  ;;  %v15076_v32 = vcombine.low %v6404_v22, %v6408_v25  ;;  %v18482_v34 = vld [vmem:[%s16929_s7 + $0x4e0] sm:$0xff]  ;;  %v15085_v30 = vcombine.high %v6412_v37, %v6416_v31 }
 0x4b6   : > { %v4426_v49 = vpop.f32.mrb[148].mxu0  ;;  %v4619_v11 = vpop.f32.mrb[148].mxu1 }
 0x4b7   : > { %v5282_v52 = vmax.f32 %v4426_v49, 0.0  ;;  %v4428_v62 = vpop.f32.mrb[149].mxu0  ;;  %v5284_v43 = vmax.f32 %v4619_v11, 0.0  ;;  %v4621_v14 = vpop.f32.mrb[149].mxu1  ;;  %v15091_v11 = vcombine.high %v18479_v10, %v18482_v34 }
 0x4b8   : > { %v5283_v48 = vmax.f32 %v4428_v62, 0.0  ;;  %v4430_v5 = vpop.f32.mrb[150].mxu0  ;;  %v5285_v7 = vmax.f32 %v4621_v14, 0.0  ;;  %v4623_v17 = vpop.f32.mrb[150].mxu1 }
 0x4b9   : > { %v5931_v55 = vadd.f32 %v5930_v41, %v5282_v52  ;;  %v5298_v51 = vmax.f32 %v4430_v5, 0.0  ;;  %v4432_v33 = vpop.f32.mrb[151].mxu0  ;;  %v6005_v3 = vadd.f32 %v6004_v60, %v5284_v43  ;;  %v5300_v24 = vmax.f32 %v4623_v17, 0.0  ;;  %v4625_v63 = vpop.f32.mrb[151].mxu1  ;;  %v18489_v60 = vld [vmem:[%s16929_s7 + $0x4e8] sm:$0xff] }
 0x4ba   : > { %v5968_v6 = vadd.f32 %v5967_v56, %v5283_v48  ;;  %v5299_v40 = vmax.f32 %v4432_v33, 0.0  ;;  %v6042_v20 = vadd.f32 %v6041_v53, %v5285_v7  ;;  %v5301_v2 = vmax.f32 %v4625_v63, 0.0  ;;  %v6427_v33 = vld [vmem:[%s16929_s7 + $0x500] sm:$0xff]  ;;  %v6432_v63 = vld [vmem:[%s16929_s7 + $0x528] sm:$0xff] }
 0x4bb   : > { %v5932_v29 = vadd.f32 %v5931_v55, %v5298_v51  ;;  %12486 = vmatmul.mubr.bf16.vlgmr.msra.gmra.mrb[0].mxu0 %v18457_v54  ;;  %v6006_v8 = vadd.f32 %v6005_v3, %v5300_v24  ;;  %v15083_v41 = vcombine.high %v6411_v16, %v6415_v27  ;;  %v15084_v52 = vcombine.low %v6412_v37, %v6416_v31  ;;  %v6435_v37 = vld [vmem:[%s16929_s7 + $0x540] sm:$0xff] }
 0x4bc   : > { %v5969_v4 = vadd.f32 %v5968_v6, %v5299_v40  ;;  %12495 = vmatpush1.bf16.msra.mxu0 %v15066_v46  ;;  %12814 = vmatmul.mubr.bf16.vlgmr.msra.gmra.mrb[0].mxu1 %v18457_v54  ;;  %v6043_v50 = vadd.f32 %v6042_v20, %v5301_v2  ;;  %v18486_v46 = vld [vmem:[%s16929_s7 + $0x4c8] sm:$0xff]  ;;  %v15090_v20 = vcombine.low %v18479_v10, %v18482_v34  ;;  %v6439_v31 = vld [vmem:[%s16929_s7 + $0x560] sm:$0xff] }
 0x4bd   : > { %12823 = vmatpush1.bf16.msra.mxu1 %v15068_v44  ;;  %12526 = vmatprep.mubr.bf16.mxu0 %v18461_v19  ;;  %v15082_v44 = vcombine.low %v6411_v16, %v6415_v27  ;;  %v15093_v22 = vcombine.high %v18486_v46, %v18489_v60  ;;  %v6428_v40 = vld [vmem:[%s16929_s7 + $0x508] sm:$0xff]  ;;  %v15092_v2 = vcombine.low %v18486_v46, %v18489_v60 }
 0x4be   : > { %12854 = vmatprep.mubr.bf16.mxu1 %v18461_v19  ;;  %v4436_v38 = vpop.f32.mrb[152].mxu0  ;;  %12496 = vmatprep.subr.bf16.mxu0 %v15075_v57  ;;  %v4629_v42 = vpop.f32.mrb[152].mxu1  ;;  %v6431_v57 = vld [vmem:[%s16929_s7 + $0x520] sm:$0xff]  ;;  %v15107_v46 = vcombine.high %v6435_v37, %v6439_v31 }
 0x4bf   : > { %v5314_v56 = vmax.f32 %v4436_v38, 0.0  ;;  %12824 = vmatprep.subr.bf16.mxu1 %v15077_v15  ;;  %v4438_v39 = vpop.f32.mrb[153].mxu0  ;;  %v5316_v53 = vmax.f32 %v4629_v42, 0.0  ;;  %v4631_v28 = vpop.f32.mrb[153].mxu1  ;;  %v15099_v15 = vcombine.high %v6427_v33, %v6431_v57 }
 0x4c0   : > { %v5315_v49 = vmax.f32 %v4438_v39, 0.0  ;;  %12497 = vmatpush1.bf16.msra.mxu0 %v15074_v1  ;;  %v4440_v0 = vpop.f32.mrb[154].mxu0  ;;  %v5317_v43 = vmax.f32 %v4631_v28, 0.0  ;;  %v4633_v14 = vpop.f32.mrb[154].mxu1  ;;  %v18506_v1 = vld [vmem:[%s16929_s7 + $0x548] sm:$0xff]  ;;  %v15100_v39 = vcombine.low %v6428_v40, %v6432_v63 }
 0x4c1   : > { %v5933_v62 = vadd.f32 %v5932_v29, %v5314_v56  ;;  %12825 = vmatpush1.bf16.msra.mxu1 %v15076_v32  ;;  %v5330_v48 = vmax.f32 %v4440_v0, 0.0  ;;  %v4442_v5 = vpop.f32.mrb[155].mxu0  ;;  %12498 = vmatprep.subr.bf16.mxu0 %v15083_v41  ;;  %v6007_v25 = vadd.f32 %v6006_v8, %v5316_v53  ;;  %v5332_v7 = vmax.f32 %v4633_v14, 0.0  ;;  %v4635_v17 = vpop.f32.mrb[155].mxu1  ;;  %v6443_v14 = vld [vmem:[%s16929_s7 + $0x580] sm:$0xff] }
 0x4c2   : > { %v5970_v55 = vadd.f32 %v5969_v4, %v5315_v49  ;;  %v5331_v51 = vmax.f32 %v4442_v5, 0.0  ;;  %12826 = vmatprep.subr.bf16.mxu1 %v15085_v30  ;;  %v6044_v3 = vadd.f32 %v6043_v50, %v5317_v43  ;;  %v5333_v24 = vmax.f32 %v4635_v17, 0.0  ;;  %v6440_v50 = vld [vmem:[%s16929_s7 + $0x568] sm:$0xff]  ;;  %v6447_v5 = vld [vmem:[%s16929_s7 + $0x5a0] sm:$0xff] }
 0x4c3   : > { %v5934_v6 = vadd.f32 %v5933_v62, %v5330_v48  ;;  %v6008_v16 = vadd.f32 %v6007_v25, %v5332_v7  ;;  %v15101_v4 = vcombine.high %v6428_v40, %v6432_v63  ;;  %v15098_v30 = vcombine.low %v6427_v33, %v6431_v57  ;;  %v6444_v7 = vld [vmem:[%s16929_s7 + $0x588] sm:$0xff]  ;;  %v6451_v40 = vld [vmem:[%s16929_s7 + $0x5c0] sm:$0xff] }
 0x4c4   : > { %v5971_v27 = vadd.f32 %v5970_v55, %v5331_v51  ;;  %12499 = vmatpush1.bf16.msra.mxu0 %v15082_v44  ;;  %v6045_v29 = vadd.f32 %v6044_v3, %v5333_v24  ;;  %v15109_v0 = vcombine.high %v18506_v1, %v6440_v50  ;;  %v6448_v51 = vld [vmem:[%s16929_s7 + $0x5a8] sm:$0xff]  ;;  %v15106_v57 = vcombine.low %v6435_v37, %v6439_v31  ;;  %v6455_v63 = vld [vmem:[%s16929_s7 + $0x5e0] sm:$0xff] }
 0x4c5   : > { %12827 = vmatpush1.bf16.msra.mxu1 %v15084_v52  ;;  %12500 = vmatprep.subr.bf16.mxu0 %v15091_v11  ;;  %v15115_v24 = vcombine.high %v6443_v14, %v6447_v5 }
 0x4c6   : > { %v4446_v8 = vpop.f32.mrb[156].mxu0  ;;  %12828 = vmatprep.subr.bf16.mxu1 %v15093_v22  ;;  %v4639_v41 = vpop.f32.mrb[156].mxu1 }
 0x4c7   : > { %v5346_v32 = vmax.f32 %v4446_v8, 0.0  ;;  %v4448_v38 = vpop.f32.mrb[157].mxu0  ;;  %v5348_v10 = vmax.f32 %v4639_v41, 0.0  ;;  %v4641_v56 = vpop.f32.mrb[157].mxu1 }
 0x4c8   : > { %v5347_v34 = vmax.f32 %v4448_v38, 0.0  ;;  %12501 = vmatpush1.bf16.msra.mxu0 %v15090_v20  ;;  %v4450_v42 = vpop.f32.mrb[158].mxu0  ;;  %v5349_v44 = vmax.f32 %v4641_v56, 0.0  ;;  %v4643_v49 = vpop.f32.mrb[158].mxu1  ;;  %v18518_v20 = vld [vmem:[%s16929_s7 + $0x5c8] sm:$0xff]  ;;  %v15116_v38 = vcombine.low %v6444_v7, %v6448_v51 }
 0x4c9   : > { %v5935_v60 = vadd.f32 %v5934_v6, %v5346_v32  ;;  %12829 = vmatpush1.bf16.msra.mxu1 %v15092_v2  ;;  %v5362_v53 = vmax.f32 %v4450_v42, 0.0  ;;  %v4452_v28 = vpop.f32.mrb[159].mxu0  ;;  %12502 = vmatprep.subr.bf16.mxu0 %v15099_v15  ;;  %v6009_v52 = vadd.f32 %v6008_v16, %v5348_v10  ;;  %v5364_v62 = vmax.f32 %v4643_v49, 0.0  ;;  %v4645_v48 = vpop.f32.mrb[159].mxu1  ;;  %v6459_v49 = vld [vmem:[%s16929_s7 + $0x600] sm:$0xff] }
 0x4ca   : > { %v5972_v11 = vadd.f32 %v5971_v27, %v5347_v34  ;;  %v5363_v43 = vmax.f32 %v4452_v28, 0.0  ;;  %12830 = vmatprep.subr.bf16.mxu1 %v15101_v4  ;;  %v6046_v22 = vadd.f32 %v6045_v29, %v5349_v44  ;;  %v5365_v55 = vmax.f32 %v4645_v48, 0.0  ;;  %v6456_v29 = vld [vmem:[%s16929_s7 + $0x5e8] sm:$0xff]  ;;  %v6463_v28 = vld [vmem:[%s16929_s7 + $0x620] sm:$0xff] }
 0x4cb   : > { %v5936_v25 = vadd.f32 %v5935_v60, %v5362_v53  ;;  %v6010_v17 = vadd.f32 %v6009_v52, %v5364_v62  ;;  %v15108_v6 = vcombine.low %v18506_v1, %v6440_v50  ;;  %v15117_v27 = vcombine.high %v6444_v7, %v6448_v51  ;;  %v6460_v62 = vld [vmem:[%s16929_s7 + $0x608] sm:$0xff]  ;;  %v18528_v7 = vld [vmem:[%s16929_s7 + $0x640] sm:$0xff] }
 0x4cc   : > { %v5973_v33 = vadd.f32 %v5972_v11, %v5363_v43  ;;  %12503 = vmatpush1.bf16.msra.mxu0 %v15098_v30  ;;  %v6047_v3 = vadd.f32 %v6046_v22, %v5365_v55  ;;  %v15114_v4 = vcombine.low %v6443_v14, %v6447_v5  ;;  %v15123_v1 = vcombine.high %v6451_v40, %v6455_v63  ;;  %v6464_v43 = vld [vmem:[%s16929_s7 + $0x628] sm:$0xff]  ;;  %v6471_v51 = vld [vmem:[%s16929_s7 + $0x660] sm:$0xff] }
 0x4cd   : > { %12831 = vmatpush1.bf16.msra.mxu1 %v15100_v39  ;;  %12504 = vmatprep.subr.bf16.mxu0 %v15107_v46  ;;  %v15125_v42 = vcombine.high %v18518_v20, %v6456_v29  ;;  %v15122_v5 = vcombine.low %v6451_v40, %v6455_v63  ;;  %v15131_v55 = vcombine.high %v6459_v49, %v6463_v28 }
 0x4ce   : > { %v4456_v16 = vpop.f32.mrb[160].mxu0  ;;  %12832 = vmatprep.subr.bf16.mxu1 %v15109_v0  ;;  %v4649_v15 = vpop.f32.mrb[160].mxu1  ;;  %v15130_v40 = vcombine.low %v6459_v49, %v6463_v28  ;;  %v15138_v28 = vcombine.low %v18528_v7, %v6471_v51 }
 0x4cf   : > { %v5378_v2 = vmax.f32 %v4456_v16, 0.0  ;;  %v4458_v8 = vpop.f32.mrb[161].mxu0  ;;  %v5380_v32 = vmax.f32 %v4649_v15, 0.0  ;;  %v4651_v31 = vpop.f32.mrb[161].mxu1  ;;  %v15139_v15 = vcombine.high %v18528_v7, %v6471_v51 }
 0x4d0   : > { %v5379_v37 = vmax.f32 %v4458_v8, 0.0  ;;  %12505 = vmatpush1.bf16.msra.mxu0 %v15106_v57  ;;  %v4460_v41 = vpop.f32.mrb[162].mxu0  ;;  %v5381_v30 = vmax.f32 %v4651_v31, 0.0  ;;  %v4653_v34 = vpop.f32.mrb[162].mxu1  ;;  %v18532_v57 = vld [vmem:[%s16929_s7 + $0x648] sm:$0xff] }
 0x4d1   : > { %v5937_v50 = vadd.f32 %v5936_v25, %v5378_v2  ;;  %12833 = vmatpush1.bf16.msra.mxu1 %v15108_v6  ;;  %v5394_v10 = vmax.f32 %v4460_v41, 0.0  ;;  %v4462_v56 = vpop.f32.mrb[163].mxu0  ;;  %12506 = vmatprep.subr.bf16.mxu0 %v15115_v24  ;;  %v6011_v39 = vadd.f32 %v6010_v17, %v5380_v32  ;;  %v5396_v60 = vmax.f32 %v4653_v34, 0.0  ;;  %v4655_v53 = vpop.f32.mrb[163].mxu1  ;;  %v6475_v34 = vld [vmem:[%s16929_s7 + $0x680] sm:$0xff] }
 0x4d2   : > { %v5974_v46 = vadd.f32 %v5973_v33, %v5379_v37  ;;  %v5395_v44 = vmax.f32 %v4462_v56, 0.0  ;;  %12834 = vmatprep.subr.bf16.mxu1 %v15117_v27  ;;  %v6048_v0 = vadd.f32 %v6047_v3, %v5381_v30  ;;  %v5397_v11 = vmax.f32 %v4655_v53, 0.0  ;;  %v18535_v3 = vld [vmem:[%s16929_s7 + $0x668] sm:$0xff]  ;;  %v6479_v56 = vld [vmem:[%s16929_s7 + $0x6a0] sm:$0xff] }
 0x4d3   : > { %v5938_v52 = vadd.f32 %v5937_v50, %v5394_v10  ;;  %v6012_v48 = vadd.f32 %v6011_v39, %v5396_v60  ;;  %v15124_v25 = vcombine.low %v18518_v20, %v6456_v29  ;;  %v15133_v33 = vcombine.high %v6460_v62, %v6464_v43  ;;  %v6476_v60 = vld [vmem:[%s16929_s7 + $0x688] sm:$0xff] }
 0x4d4   : > { %v5975_v14 = vadd.f32 %v5974_v46, %v5395_v44  ;;  %12507 = vmatpush1.bf16.msra.mxu0 %v15114_v4  ;;  %v6049_v22 = vadd.f32 %v6048_v0, %v5397_v11  ;;  %v15132_v29 = vcombine.low %v6460_v62, %v6464_v43  ;;  %v15141_v41 = vcombine.high %v18532_v57, %v18535_v3  ;;  %v6480_v44 = vld [vmem:[%s16929_s7 + $0x6a8] sm:$0xff]  ;;  %v18548_v62 = vld [vmem:[%s16929_s7 + $0x6c0] sm:$0xff] }
 0x4d5   : > { %12835 = vmatpush1.bf16.msra.mxu1 %v15116_v38  ;;  %12508 = vmatprep.subr.bf16.mxu0 %v15123_v1  ;;  %v15147_v11 = vcombine.high %v6475_v34, %v6479_v56  ;;  %v18551_v43 = vld [vmem:[%s16929_s7 + $0x6e0] sm:$0xff] }
 0x4d6   : > { %v4466_v17 = vpop.f32.mrb[164].mxu0  ;;  %12836 = vmatprep.subr.bf16.mxu1 %v15125_v42  ;;  %v4659_v24 = vpop.f32.mrb[164].mxu1 }
 0x4d7   : > { %v5410_v6 = vmax.f32 %v4466_v17, 0.0  ;;  %v4468_v16 = vpop.f32.mrb[165].mxu0  ;;  %v5412_v63 = vmax.f32 %v4659_v24, 0.0  ;;  %v4661_v2 = vpop.f32.mrb[165].mxu1  ;;  %v15146_v17 = vcombine.low %v6475_v34, %v6479_v56  ;;  %v15148_v24 = vcombine.low %v6476_v60, %v6480_v44  ;;  %v6496_v34 = vld [vmem:[%s16929_s7 + $0x728] sm:$0xff] }
 0x4d8   : > { %v5411_v27 = vmax.f32 %v4468_v16, 0.0  ;;  %12509 = vmatpush1.bf16.msra.mxu0 %v15122_v5  ;;  %v4470_v20 = vpop.f32.mrb[166].mxu0  ;;  %v5413_v4 = vmax.f32 %v4661_v2, 0.0  ;;  %v4663_v37 = vpop.f32.mrb[166].mxu1  ;;  %v18554_v5 = vld [vmem:[%s16929_s7 + $0x6c8] sm:$0xff]  ;;  %v15155_v16 = vcombine.high %v18548_v62, %v18551_v43 }
 0x4d9   : > { %v5939_v8 = vadd.f32 %v5938_v52, %v5410_v6  ;;  %12837 = vmatpush1.bf16.msra.mxu1 %v15124_v25  ;;  %v5426_v32 = vmax.f32 %v4470_v20, 0.0  ;;  %v4472_v31 = vpop.f32.mrb[167].mxu0  ;;  %12510 = vmatprep.subr.bf16.mxu0 %v15131_v55  ;;  %v6013_v38 = vadd.f32 %v6012_v48, %v5412_v63  ;;  %v5428_v50 = vmax.f32 %v4663_v37, 0.0  ;;  %v4665_v10 = vpop.f32.mrb[167].mxu1 }
 0x4da   : > { %v5976_v1 = vadd.f32 %v5975_v14, %v5411_v27  ;;  %v5427_v30 = vmax.f32 %v4472_v31, 0.0  ;;  %12838 = vmatprep.subr.bf16.mxu1 %v15133_v33  ;;  %v6050_v42 = vadd.f32 %v6049_v22, %v5413_v4  ;;  %v5429_v46 = vmax.f32 %v4665_v10, 0.0  ;;  %v18557_v22 = vld [vmem:[%s16929_s7 + $0x6e8] sm:$0xff]  ;;  %v6491_v31 = vld [vmem:[%s16929_s7 + $0x700] sm:$0xff] }
 0x4db   : > { %v5940_v39 = vadd.f32 %v5939_v8, %v5426_v32  ;;  %v6014_v53 = vadd.f32 %v6013_v38, %v5428_v50  ;;  %v15140_v52 = vcombine.low %v18532_v57, %v18535_v3  ;;  %v15149_v14 = vcombine.high %v6476_v60, %v6480_v44  ;;  %v6492_v10 = vld [vmem:[%s16929_s7 + $0x708] sm:$0xff] }
 0x4dc   : > { %v5977_v49 = vadd.f32 %v5976_v1, %v5427_v30  ;;  %12511 = vmatpush1.bf16.msra.mxu0 %v15130_v40  ;;  %v6051_v0 = vadd.f32 %v6050_v42, %v5429_v46  ;;  %v3128_v25 = vrot.slane %v17736_v9, 4  ;;  %v3202_v38 = vrot.slane %v17740_v45, 4 }
 0x4dd   : > { %12839 = vmatpush1.bf16.msra.mxu1 %v15132_v29  ;;  %12512 = vmatprep.subr.bf16.mxu0 %v15139_v15  ;;  %v15157_v29 = vcombine.high %v18554_v5, %v18557_v22  ;;  %v15156_v60 = vcombine.low %v18554_v5, %v18557_v22 }
 0x4de   : > { %v4476_v48 = vpop.f32.mrb[168].mxu0  ;;  %12840 = vmatprep.subr.bf16.mxu1 %v15141_v41  ;;  %v4669_v7 = vpop.f32.mrb[168].mxu1  ;;  %v6495_v41 = vld [vmem:[%s16929_s7 + $0x720] sm:$0xff] }
 0x4df   : > { %v5442_v55 = vmax.f32 %v4476_v48, 0.0  ;;  %v4478_v51 = vpop.f32.mrb[169].mxu0  ;;  %v5444_v33 = vmax.f32 %v4669_v7, 0.0  ;;  %v4671_v3 = vpop.f32.mrb[169].mxu1  ;;  %v15163_v44 = vcombine.high %v6491_v31, %v6495_v41  ;;  %v18584_v48 = vld [vmem:[%s16929_s7 + $0x768] sm:$0xff] }
 0x4e0   : > { %v5443_v57 = vmax.f32 %v4478_v51, 0.0  ;;  %12513 = vmatpush1.bf16.msra.mxu0 %v15138_v28  ;;  %v4480_v6 = vpop.f32.mrb[170].mxu0  ;;  %v5445_v63 = vmax.f32 %v4671_v3, 0.0  ;;  %v4673_v2 = vpop.f32.mrb[170].mxu1  ;;  %v3165_v28 = vrot.slane %v17742_v23, 4 }
 0x4e1   : > { %v5941_v40 = vadd.f32 %v5940_v39, %v5442_v55  ;;  %12841 = vmatpush1.bf16.msra.mxu1 %v15140_v52  ;;  %v5458_v27 = vmax.f32 %v4480_v6, 0.0  ;;  %v4482_v20 = vpop.f32.mrb[171].mxu0  ;;  %12514 = vmatprep.subr.bf16.mxu0 %v15147_v11  ;;  %v6015_v15 = vadd.f32 %v6014_v53, %v5444_v33  ;;  %v5460_v4 = vmax.f32 %v4673_v2, 0.0  ;;  %v4675_v37 = vpop.f32.mrb[171].mxu1  ;;  %v18574_v53 = vld [vmem:[%s16929_s7 + $0x740] sm:$0xff]  ;;  %v18581_v11 = vld [vmem:[%s16929_s7 + $0x748] sm:$0xff] }
 0x4e2   : > { %v5978_v8 = vadd.f32 %v5977_v49, %v5443_v57  ;;  %v5459_v32 = vmax.f32 %v4482_v20, 0.0  ;;  %12842 = vmatprep.subr.bf16.mxu1 %v15149_v14  ;;  %v6052_v1 = vadd.f32 %v6051_v0, %v5445_v63  ;;  %v5461_v30 = vmax.f32 %v4675_v37, 0.0  ;;  %v18577_v49 = vld [vmem:[%s16929_s7 + $0x760] sm:$0xff] }
 0x4e3   : > { %v5942_v50 = vadd.f32 %v5941_v40, %v5458_v27  ;;  %v6016_v56 = vadd.f32 %v6015_v15, %v5460_v4  ;;  %v15154_v39 = vcombine.low %v18548_v62, %v18551_v43  ;;  %v15165_v52 = vcombine.high %v6492_v10, %v6496_v34  ;;  %v6511_v15 = vld [vmem:[%s16929_s7 + $0x7a0] sm:$0xff] }
 0x4e4   : > { %v5979_v42 = vadd.f32 %v5978_v8, %v5459_v32  ;;  %12515 = vmatpush1.bf16.msra.mxu0 %v15146_v17  ;;  %v6053_v46 = vadd.f32 %v6052_v1, %v5461_v30  ;;  %v18587_v62 = vadd.f32 %v3128_v25, %v17736_v9  ;;  %v18590_v43 = vadd.f32 %v3202_v38, %v17740_v45 }
 0x4e5   : > { %12843 = vmatpush1.bf16.msra.mxu1 %v15148_v24  ;;  %12516 = vmatprep.subr.bf16.mxu0 %v15155_v16  ;;  %v15162_v55 = vcombine.low %v6491_v31, %v6495_v41  ;;  %v15164_v57 = vcombine.low %v6492_v10, %v6496_v34  ;;  %v15171_v3 = vcombine.high %v18574_v53, %v18577_v49  ;;  %v6508_v31 = vld [vmem:[%s16929_s7 + $0x788] sm:$0xff]  ;;  %v18608_v34 = vld [vmem:[%s16929_s7 + $0x7c0] sm:$0xff] }
 0x4e6   : > { %v4486_v0 = vpop.f32.mrb[172].mxu0  ;;  %12844 = vmatprep.subr.bf16.mxu1 %v15157_v29  ;;  %v15173_v16 = vcombine.high %v18581_v11, %v18584_v48  ;;  %v6507_v29 = vld [vmem:[%s16929_s7 + $0x780] sm:$0xff]  ;;  %v18599_v8 = vadd.f32 %v3165_v28, %v17742_v23  ;;  %v6512_v41 = vld [vmem:[%s16929_s7 + $0x7a8] sm:$0xff]  ;;  %v15172_v23 = vcombine.low %v18581_v11, %v18584_v48 }
 0x4e7   : > { %v5474_v14 = vmax.f32 %v4486_v0, 0.0  ;;  %v4679_v5 = vpop.f32.mrb[172].mxu1  ;;  %v4488_v22 = vpop.f32.mrb[173].mxu0  ;;  %v15179_v10 = vcombine.high %v6507_v29, %v6511_v15  ;;  %v15178_v11 = vcombine.low %v6507_v29, %v6511_v15  ;;  %v18636_v15 = vld [vmem:[%s16929_s7 + $0x808] sm:$0xff] }
 0x4e8   : > { %v5476_v7 = vmax.f32 %v4679_v5, 0.0  ;;  %v5475_v51 = vmax.f32 %v4488_v22, 0.0  ;;  %v4681_v17 = vpop.f32.mrb[173].mxu1  ;;  %12517 = vmatpush1.bf16.msra.mxu0 %v15154_v39  ;;  %v4490_v33 = vpop.f32.mrb[174].mxu0 }
 0x4e9   : > { %v5943_v9 = vadd.f32 %v5942_v50, %v5474_v14  ;;  %v5477_v25 = vmax.f32 %v4681_v17, 0.0  ;;  %12845 = vmatpush1.bf16.msra.mxu1 %v15156_v60  ;;  %v5490_v45 = vmax.f32 %v4490_v33, 0.0  ;;  %v4683_v6 = vpop.f32.mrb[174].mxu1  ;;  %v4492_v24 = vpop.f32.mrb[175].mxu0  ;;  %12518 = vmatprep.subr.bf16.mxu0 %v15163_v44  ;;  %v15170_v50 = vcombine.low %v18574_v53, %v18577_v49  ;;  %v18615_v60 = vld [vmem:[%s16929_s7 + $0x7c8] sm:$0xff] }
 0x4ea   : > { %v6017_v40 = vadd.f32 %v6016_v56, %v5476_v7  ;;  %v5980_v63 = vadd.f32 %v5979_v42, %v5475_v51  ;;  %v5492_v27 = vmax.f32 %v4683_v6, 0.0  ;;  %v5491_v2 = vmax.f32 %v4492_v24, 0.0  ;;  %v4685_v20 = vpop.f32.mrb[175].mxu1  ;;  %12846 = vmatprep.subr.bf16.mxu1 %v15165_v52  ;;  %v18611_v56 = vld [vmem:[%s16929_s7 + $0x7e0] sm:$0xff]  ;;  %v18618_v44 = vld [vmem:[%s16929_s7 + $0x7e8] sm:$0xff] }
 0x4eb   : > { %v6054_v4 = vadd.f32 %v6053_v46, %v5477_v25  ;;  %v5944_v32 = vadd.f32 %v5943_v9, %v5490_v45  ;;  %v5493_v37 = vmax.f32 %v4685_v20, 0.0  ;;  %v3130_v42 = vrot.slane %v18587_v62, 2 }
 0x4ec   : > { %v6018_v38 = vadd.f32 %v6017_v40, %v5492_v27  ;;  %v5981_v1 = vadd.f32 %v5980_v63, %v5491_v2  ;;  %12519 = vmatpush1.bf16.msra.mxu0 %v15162_v55  ;;  %v15181_v46 = vcombine.high %v6508_v31, %v6512_v41  ;;  %v3204_v53 = vrot.slane %v18590_v43, 2  ;;  %v18627_v40 = vld [vmem:[%s16929_s7 + $0x800] sm:$0xff] }
 0x4ed   : > { %v6055_v30 = vadd.f32 %v6054_v4, %v5493_v37  ;;  %12847 = vmatpush1.bf16.msra.mxu1 %v15164_v57  ;;  %12520 = vmatprep.subr.bf16.mxu0 %v15171_v3  ;;  %v3167_v49 = vrot.slane %v18599_v8, 2  ;;  %v15180_v55 = vcombine.low %v6508_v31, %v6512_v41  ;;  %v15187_v7 = vcombine.high %v18608_v34, %v18611_v56  ;;  %v18630_v63 = vld [vmem:[%s16929_s7 + $0x820] sm:$0xff]  ;;  %v6528_v4 = vld [vmem:[%s16929_s7 + $0x828] sm:$0xff] }
 0x4ee   : > { %v4496_v39 = vpop.f32.mrb[176].mxu0  ;;  %12848 = vmatprep.subr.bf16.mxu1 %v15173_v16  ;;  %v15189_v9 = vcombine.high %v18615_v60, %v18618_v44  ;;  %v18633_v27 = vadd.f32 %v3130_v42, %v18587_v62  ;;  %v15186_v31 = vcombine.low %v18608_v34, %v18611_v56  ;;  %v15188_v62 = vcombine.low %v18615_v60, %v18618_v44  ;;  %v18659_v56 = vld [vmem:[%s16929_s7 + $0x848] sm:$0xff] }
 0x4ef   : > { %v5506_v28 = vmax.f32 %v4496_v39, 0.0  ;;  %v4689_v0 = vpop.f32.mrb[176].mxu1  ;;  %v4498_v52 = vpop.f32.mrb[177].mxu0  ;;  %v15197_v34 = vcombine.high %v18636_v15, %v6528_v4  ;;  %v18662_v42 = vld [vmem:[%s16929_s7 + $0x868] sm:$0xff] }
 0x4f0   : > { %v5508_v48 = vmax.f32 %v4689_v0, 0.0  ;;  %v5507_v14 = vmax.f32 %v4498_v52, 0.0  ;;  %v4691_v5 = vpop.f32.mrb[177].mxu1  ;;  %12521 = vmatpush1.bf16.msra.mxu0 %v15170_v50  ;;  %v4500_v22 = vpop.f32.mrb[178].mxu0  ;;  %v18649_v50 = vld [vmem:[%s16929_s7 + $0x860] sm:$0xff]  ;;  %v3132_v39 = vrot.slane %v18633_v27, 1  ;;  %v15196_v52 = vcombine.low %v18636_v15, %v6528_v4 }
 0x4f1   : > { %v5945_v51 = vadd.f32 %v5944_v32, %v5506_v28  ;;  %v5509_v17 = vmax.f32 %v4691_v5, 0.0  ;;  %12849 = vmatpush1.bf16.msra.mxu1 %v15172_v23  ;;  %v5522_v33 = vmax.f32 %v4500_v22, 0.0  ;;  %v4693_v57 = vpop.f32.mrb[178].mxu1  ;;  %v4502_v3 = vpop.f32.mrb[179].mxu0  ;;  %12522 = vmatprep.subr.bf16.mxu0 %v15179_v10  ;;  %v18655_v23 = vadd.f32 %v3167_v49, %v18599_v8  ;;  %v18698_v4 = vld [vmem:[%s16929_s7 + $0x8c0] sm:$0xff] }
 0x4f2   : > { %v6019_v25 = vadd.f32 %v6018_v38, %v5508_v48  ;;  %v5982_v45 = vadd.f32 %v5981_v1, %v5507_v14  ;;  %v5524_v6 = vmax.f32 %v4693_v57, 0.0  ;;  %v5523_v24 = vmax.f32 %v4502_v3, 0.0  ;;  %v4695_v16 = vpop.f32.mrb[179].mxu1  ;;  %12850 = vmatprep.subr.bf16.mxu1 %v15181_v46  ;;  %v18646_v1 = vld [vmem:[%s16929_s7 + $0x840] sm:$0xff] }
 0x4f3   : > { %v6056_v2 = vadd.f32 %v6055_v30, %v5509_v17  ;;  %v5946_v20 = vadd.f32 %v5945_v51, %v5522_v33  ;;  %v5525_v29 = vmax.f32 %v4695_v16, 0.0  ;;  %v15195_v38 = vcombine.high %v18627_v40, %v18630_v63  ;;  %v18677_v3 = vld [vmem:[%s16929_s7 + $0x880] sm:$0xff]  ;;  %v6540_v16 = vld [vmem:[%s16929_s7 + $0x888] sm:$0xff] }
 0x4f4   : > { %v6020_v32 = vadd.f32 %v6019_v25, %v5524_v6  ;;  %v5983_v37 = vadd.f32 %v5982_v45, %v5523_v24  ;;  %12523 = vmatpush1.bf16.msra.mxu0 %v15178_v11  ;;  %v18652_v30 = vadd.f32 %v3204_v53, %v18590_v43  ;;  %v18667_v46 = vpack.c.bf16 %v18051_v35, %v18051_v35 }
 0x4f5   : > { %v6057_v41 = vadd.f32 %v6056_v2, %v5525_v29  ;;  %12851 = vmatpush1.bf16.msra.mxu1 %v15180_v55  ;;  %12524 = vmatprep.subr.bf16.mxu0 %v15187_v7  ;;  %v15194_v8 = vcombine.low %v18627_v40, %v18630_v63  ;;  %v15203_v11 = vcombine.high %v18646_v1, %v18649_v50  ;;  %v6544_v40 = vld [vmem:[%s16929_s7 + $0x8a8] sm:$0xff] }
 0x4f6   : > { %v4506_v10 = vpop.f32.mrb[180].mxu0  ;;  %12852 = vmatprep.subr.bf16.mxu1 %v15189_v9  ;;  %v15205_v55 = vcombine.high %v18659_v56, %v18662_v42  ;;  %v18680_v9 = vld [vmem:[%s16929_s7 + $0x8a0] sm:$0xff]  ;;  %v18685_v24 = vpack.c.bf16 %v18423_v12, %v18423_v12  ;;  %v15204_v12 = vcombine.low %v18659_v56, %v18662_v42 }
 0x4f7   : > { %v5538_v60 = vmax.f32 %v4506_v10, 0.0  ;;  %v4699_v43 = vpop.f32.mrb[180].mxu1  ;;  %v4508_v44 = vpop.f32.mrb[181].mxu0  ;;  %v15211_v15 = vcombine.high %v18677_v3, %v18680_v9  ;;  %v15210_v42 = vcombine.low %v18677_v3, %v18680_v9  ;;  %v18727_v3 = vld [vmem:[%s16929_s7 + $0x908] sm:$0xff] }
 0x4f8   : > { %v5540_v53 = vmax.f32 %v4699_v43, 0.0  ;;  %v5539_v49 = vmax.f32 %v4508_v44, 0.0  ;;  %v4701_v28 = vpop.f32.mrb[181].mxu1  ;;  %12525 = vmatpush1.bf16.msra.mxu0 %v15186_v31  ;;  %v4510_v0 = vpop.f32.mrb[182].mxu0  ;;  %v18730_v9 = vld [vmem:[%s16929_s7 + $0x928] sm:$0xff] }
 0x4f9   : > { %v5947_v35 = vadd.f32 %v5946_v20, %v5538_v60  ;;  %v5541_v48 = vmax.f32 %v4701_v28, 0.0  ;;  %12853 = vmatpush1.bf16.msra.mxu1 %v15188_v62  ;;  %v5554_v14 = vmax.f32 %v4510_v0, 0.0  ;;  %v4703_v5 = vpop.f32.mrb[182].mxu1  ;;  %v4512_v22 = vpop.f32.mrb[183].mxu0  ;;  %12535 = vmatprep.subr.bf16.mxu0 %v15195_v38  ;;  %v15202_v20 = vcombine.low %v18646_v1, %v18649_v50  ;;  %v18706_v62 = vld [vmem:[%s16929_s7 + $0x8c8] sm:$0xff] }
 0x4fa   : > { %v6021_v7 = vadd.f32 %v6020_v32, %v5540_v53  ;;  %v5984_v51 = vadd.f32 %v5983_v37, %v5539_v49  ;;  %v5556_v17 = vmax.f32 %v4703_v5, 0.0  ;;  %v5555_v33 = vmax.f32 %v4512_v22, 0.0  ;;  %v4705_v57 = vpop.f32.mrb[183].mxu1  ;;  %12863 = vmatprep.subr.bf16.mxu1 %v15197_v34  ;;  %v18701_v32 = vld [vmem:[%s16929_s7 + $0x8e0] sm:$0xff]  ;;  %v18709_v38 = vld [vmem:[%s16929_s7 + $0x8e8] sm:$0xff] }
 0x4fb   : > { %v6058_v25 = vadd.f32 %v6057_v41, %v5541_v48  ;;  %v5948_v45 = vadd.f32 %v5947_v35, %v5554_v14  ;;  %v5557_v6 = vmax.f32 %v4705_v57, 0.0  ;;  %12527 = vmatmul.mubr.bf16.vlgmr.msra.gmra.mrb[0].mxu0 %v18667_v46  ;;  %v3206_v37 = vrot.slane %v18652_v30, 1 }
 0x4fc   : > { %v6022_v63 = vadd.f32 %v6021_v7, %v5556_v17  ;;  %v5985_v2 = vadd.f32 %v5984_v51, %v5555_v33  ;;  %12855 = vmatmul.mubr.bf16.vlgmr.msra.gmra.mrb[0].mxu1 %v18667_v46  ;;  %12536 = vmatpush1.bf16.msra.mxu0 %v15194_v8  ;;  %v15213_v41 = vcombine.high %v6540_v16, %v6544_v40  ;;  %v3169_v50 = vrot.slane %v18655_v23, 1  ;;  %v18723_v7 = vld [vmem:[%s16929_s7 + $0x920] sm:$0xff] }
 0x4fd   : > { %v6059_v29 = vadd.f32 %v6058_v25, %v5557_v6  ;;  %12567 = vmatprep.mubr.bf16.mxu0 %v18685_v24  ;;  %12864 = vmatpush1.bf16.msra.mxu1 %v15196_v52  ;;  %v3133_v1 = vadd.f32 %v3132_v39, %v18633_v27  ;;  %v15212_v53 = vcombine.low %v6540_v16, %v6544_v40 }
 0x4fe   : > { %12895 = vmatprep.mubr.bf16.mxu1 %v18685_v24  ;;  %v4516_v31 = vpop.f32.mrb[184].mxu0  ;;  %12537 = vmatprep.subr.bf16.mxu0 %v15203_v11  ;;  %v15219_v49 = vcombine.high %v18698_v4, %v18701_v32  ;;  %v15221_v11 = vcombine.high %v18706_v62, %v18709_v38  ;;  %v3207_v51 = vadd.f32 %v3206_v37, %v18652_v30 }
 0x4ff   : > { %v5570_v10 = vmax.f32 %v4516_v31, 0.0  ;;  %v4709_v34 = vpop.f32.mrb[184].mxu1  ;;  %12865 = vmatprep.subr.bf16.mxu1 %v15205_v55  ;;  %v4518_v56 = vpop.f32.mrb[185].mxu0  ;;  %v18720_v55 = vld [vmem:[%s16929_s7 + $0x900] sm:$0xff]  ;;  %v15218_v6 = vcombine.low %v18698_v4, %v18701_v32  ;;  %v15220_v30 = vcombine.low %v18706_v62, %v18709_v38  ;;  %v18749_v4 = vld [vmem:[%s16929_s7 + $0x948] sm:$0xff]  ;;  %v18754_v37 = vmul.f32 0.00390625, %v3133_v1 }
 0x500   : > { %v5572_v60 = vmax.f32 %v4709_v34, 0.0  ;;  %v5571_v43 = vmax.f32 %v4518_v56, 0.0  ;;  %v4711_v44 = vpop.f32.mrb[185].mxu1  ;;  %12538 = vmatpush1.bf16.msra.mxu0 %v15202_v20  ;;  %v4520_v8 = vpop.f32.mrb[186].mxu0  ;;  %v15227_v40 = vcombine.high %v18720_v55, %v18723_v7  ;;  %v3170_v20 = vadd.f32 %v3169_v50, %v18655_v23  ;;  %v18752_v32 = vld [vmem:[%s16929_s7 + $0x968] sm:$0xff] }
 0x501   : > { %v5949_v27 = vadd.f32 %v5948_v45, %v5570_v10  ;;  %v5573_v39 = vmax.f32 %v4711_v44, 0.0  ;;  %12866 = vmatpush1.bf16.msra.mxu1 %v15204_v12  ;;  %v5586_v28 = vmax.f32 %v4520_v8, 0.0  ;;  %v4713_v0 = vpop.f32.mrb[186].mxu1  ;;  %v4522_v52 = vpop.f32.mrb[187].mxu0  ;;  %12539 = vmatprep.subr.bf16.mxu0 %v15211_v15  ;;  %v15229_v15 = vcombine.high %v18727_v3, %v18730_v9 }
 0x502   : > { %v6023_v35 = vadd.f32 %v6022_v63, %v5572_v60  ;;  %v5986_v48 = vadd.f32 %v5985_v2, %v5571_v43  ;;  %v5588_v14 = vmax.f32 %v4713_v0, 0.0  ;;  %v5587_v5 = vmax.f32 %v4522_v52, 0.0  ;;  %v4715_v22 = vpop.f32.mrb[187].mxu1  ;;  %12867 = vmatprep.subr.bf16.mxu1 %v15213_v41  ;;  %v18739_v63 = vld [vmem:[%s16929_s7 + $0x940] sm:$0xff] }
 0x503   : > { %v6060_v17 = vadd.f32 %v6059_v29, %v5573_v39  ;;  %v5950_v33 = vadd.f32 %v5949_v27, %v5586_v28  ;;  %v5589_v57 = vmax.f32 %v4715_v22, 0.0  ;;  %v18742_v2 = vld [vmem:[%s16929_s7 + $0x960] sm:$0xff]  ;;  %v3239_v29 = vrot.slane %v17747_v21, 4 }
 0x504   : > { %v6024_v25 = vadd.f32 %v6023_v35, %v5588_v14  ;;  %v5987_v45 = vadd.f32 %v5986_v48, %v5587_v5  ;;  %12540 = vmatpush1.bf16.msra.mxu0 %v15210_v42  ;;  %v18756_v31 = vmul.f32 0.00390625, %v3207_v51  ;;  %v15226_v23 = vcombine.low %v18720_v55, %v18723_v7  ;;  %v18770_v35 = vld [vmem:[%s16929_s7 + $0x9a0] sm:$0xff]  ;;  %v18775_v55 = vld [vmem:[%s16929_s7 + $0x988] sm:$0xff] }
 0x505   : > { %v6061_v16 = vadd.f32 %v6060_v17, %v5589_v57  ;;  %12868 = vmatpush1.bf16.msra.mxu1 %v15212_v53  ;;  %12541 = vmatprep.subr.bf16.mxu0 %v15219_v49  ;;  %v15228_v42 = vcombine.low %v18727_v3, %v18730_v9  ;;  %v15235_v1 = vcombine.high %v18739_v63, %v18742_v2  ;;  %v18772_v48 = vmul.f32 0.00390625, %v3170_v20  ;;  %v18778_v7 = vld [vmem:[%s16929_s7 + $0x9a8] sm:$0xff]  ;;  %v18781_v51 = vld [vmem:[%s16929_s7 + $0x9c0] sm:$0xff] }
 0x506   : > { %v4526_v12 = vpop.f32.mrb[188].mxu0  ;;  %12869 = vmatprep.subr.bf16.mxu1 %v15221_v11  ;;  %v15237_v49 = vcombine.high %v18749_v4, %v18752_v32  ;;  %v18767_v11 = vld [vmem:[%s16929_s7 + $0x980] sm:$0xff]  ;;  %v15234_v57 = vcombine.low %v18739_v63, %v18742_v2  ;;  %v15236_v3 = vcombine.low %v18749_v4, %v18752_v32 }
 0x507   : > { %v5602_v41 = vmax.f32 %v4526_v12, 0.0  ;;  %v4719_v62 = vpop.f32.mrb[188].mxu1  ;;  %v4528_v38 = vpop.f32.mrb[189].mxu0  ;;  %v18788_v9 = vld [vmem:[%s16929_s7 + $0x9e0] sm:$0xff]  ;;  %v15244_v12 = vcombine.low %v18775_v55, %v18778_v7 }
 0x508   : > { %v5604_v50 = vmax.f32 %v4719_v62, 0.0  ;;  %v5603_v10 = vmax.f32 %v4528_v38, 0.0  ;;  %v4721_v34 = vpop.f32.mrb[189].mxu1  ;;  %12542 = vmatpush1.bf16.msra.mxu0 %v15218_v6  ;;  %v4530_v56 = vpop.f32.mrb[190].mxu0  ;;  %v15250_v62 = vcombine.low %v18781_v51, %v18788_v9  ;;  %v15251_v38 = vcombine.high %v18781_v51, %v18788_v9 }
 0x509   : > { %v5951_v60 = vadd.f32 %v5950_v33, %v5602_v41  ;;  %v5605_v43 = vmax.f32 %v4721_v34, 0.0  ;;  %12870 = vmatpush1.bf16.msra.mxu1 %v15220_v30  ;;  %v5618_v44 = vmax.f32 %v4530_v56, 0.0  ;;  %v4723_v8 = vpop.f32.mrb[190].mxu1  ;;  %v4532_v53 = vpop.f32.mrb[191].mxu0  ;;  %12543 = vmatprep.subr.bf16.mxu0 %v15227_v40  ;;  %v15242_v30 = vcombine.low %v18767_v11, %v18770_v35 }
 0x50a   : > { %v6025_v27 = vadd.f32 %v6024_v25, %v5604_v50  ;;  %v5988_v39 = vadd.f32 %v5987_v45, %v5603_v10  ;;  %v5620_v28 = vmax.f32 %v4723_v8, 0.0  ;;  %v5619_v0 = vmax.f32 %v4532_v53, 0.0  ;;  %v4725_v52 = vpop.f32.mrb[191].mxu1  ;;  %12871 = vmatprep.subr.bf16.mxu1 %v15229_v15  ;;  %v18791_v25 = vld [vmem:[%s16929_s7 + $0x9c8] sm:$0xff] }
 0x50b   : > { %v6062_v14 = vadd.f32 %v6061_v16, %v5605_v43  ;;  %v5952_v5 = vadd.f32 %v5951_v60, %v5618_v44  ;;  %v5621_v22 = vmax.f32 %v4725_v52, 0.0  ;;  %v18794_v45 = vld [vmem:[%s16929_s7 + $0x9e8] sm:$0xff]  ;;  %v15243_v40 = vcombine.high %v18767_v11, %v18770_v35  ;;  %v18813_v60 = vld [vmem:[%s16929_s7 + $0xa00] sm:$0xff] }
 0x50c   : > { %v6026_v17 = vadd.f32 %v6025_v27, %v5620_v28  ;;  %v5989_v33 = vadd.f32 %v5988_v39, %v5619_v0  ;;  %12544 = vmatpush1.bf16.msra.mxu0 %v15226_v23  ;;  %v15245_v15 = vcombine.high %v18775_v55, %v18778_v7  ;;  %v15253_v23 = vcombine.high %v18791_v25, %v18794_v45  ;;  %v18816_v35 = vld [vmem:[%s16929_s7 + $0xa20] sm:$0xff]  ;;  %v18821_v7 = vld [vmem:[%s16929_s7 + $0xa08] sm:$0xff] }
 0x50d   : > { %v5953_v6 = vrot.slane %v5952_v5, 4  ;;  %v18796_v16 = vadd.f32 %v6062_v14, %v5621_v22  ;;  %12872 = vmatpush1.bf16.msra.mxu1 %v15228_v42  ;;  %12545 = vmatprep.subr.bf16.mxu0 %v15235_v1  ;;  %v15252_v55 = vcombine.low %v18791_v25, %v18794_v45  ;;  %v15258_v25 = vcombine.low %v18813_v60, %v18816_v35 }
 0x50e   : > { %v6027_v63 = vrot.slane %v6026_v17, 4  ;;  %v5990_v2 = vrot.slane %v5989_v33, 4  ;;  %v4762_v20 = vpop.f32.mrb[192].mxu0  ;;  %12873 = vmatprep.subr.bf16.mxu1 %v15237_v49  ;;  %v15259_v45 = vcombine.high %v18813_v60, %v18816_v35 }
 0x50f   : > { %v5954_v4 = vadd.f32 %v5953_v6, %v5952_v5  ;;  %v4955_v32 = vpop.f32.mrb[192].mxu1  ;;  %v4764_v41 = vpop.f32.mrb[193].mxu0  ;;  %v5126_v34 = vmax.f32 %v4762_v20, 0.0 }
 0x510   : > { %v6028_v50 = vadd.f32 %v6027_v63, %v6026_v17  ;;  %v5991_v10 = vadd.f32 %v5990_v2, %v5989_v33  ;;  %v5128_v56 = vmax.f32 %v4955_v32, 0.0  ;;  %v4957_v42 = vpop.f32.mrb[193].mxu1  ;;  %12546 = vmatpush1.bf16.msra.mxu0 %v15234_v57  ;;  %v4766_v1 = vpop.f32.mrb[194].mxu0  ;;  %v5127_v44 = vmax.f32 %v4764_v41, 0.0  ;;  %v18824_v17 = vld [vmem:[%s16929_s7 + $0xa28] sm:$0xff]  ;;  %v18830_v63 = vld [vmem:[%s16929_s7 + $0xa60] sm:$0xff] }
 0x511   : > { %v5955_v43 = vrot.slane %v5954_v4, 2  ;;  %v5129_v8 = vmax.f32 %v4957_v42, 0.0  ;;  %12874 = vmatpush1.bf16.msra.mxu1 %v15236_v3  ;;  %v5142_v53 = vmax.f32 %v4766_v1, 0.0  ;;  %v4959_v49 = vpop.f32.mrb[194].mxu1  ;;  %v4768_v27 = vpop.f32.mrb[195].mxu0  ;;  %12547 = vmatprep.subr.bf16.mxu0 %v15243_v40  ;;  %v18827_v40 = vld [vmem:[%s16929_s7 + $0xa40] sm:$0xff]  ;;  %v15261_v41 = vcombine.high %v18821_v7, %v18824_v17 }
 0x512   : > { %v6029_v39 = vrot.slane %v6028_v50, 2  ;;  %v5992_v28 = vrot.slane %v5991_v10, 2  ;;  %v5144_v0 = vmax.f32 %v4959_v49, 0.0  ;;  %v5143_v52 = vmax.f32 %v4768_v27, 0.0  ;;  %v4961_v11 = vpop.f32.mrb[195].mxu1  ;;  %12875 = vmatprep.subr.bf16.mxu1 %v15245_v15 }
 0x513   : > { %v5956_v14 = vadd.f32 %v5955_v43, %v5954_v4  ;;  %v6070_v5 = vadd.f32 %v5142_v53, %v5126_v34  ;;  %v5145_v22 = vmax.f32 %v4961_v11, 0.0  ;;  %v15266_v42 = vcombine.low %v18827_v40, %v18830_v63 }
 0x514   : > { %v6030_v33 = vadd.f32 %v6029_v39, %v6028_v50  ;;  %v5993_v57 = vadd.f32 %v5992_v28, %v5991_v10  ;;  %v6144_v3 = vadd.f32 %v5144_v0, %v5128_v56  ;;  %v6107_v6 = vadd.f32 %v5143_v52, %v5127_v44  ;;  %12548 = vmatpush1.bf16.msra.mxu0 %v15242_v30  ;;  %v18841_v50 = vld [vmem:[%s16929_s7 + $0xa48] sm:$0xff] }
 0x515   : > { %v5957_v2 = vrot.slane %v5956_v14, 1  ;;  %v6181_v20 = vadd.f32 %v5145_v22, %v5129_v8  ;;  %12876 = vmatpush1.bf16.msra.mxu1 %v15244_v12  ;;  %12549 = vmatprep.subr.bf16.mxu0 %v15251_v38  ;;  %v15260_v30 = vcombine.low %v18821_v7, %v18824_v17  ;;  %v18844_v12 = vld [vmem:[%s16929_s7 + $0xa68] sm:$0xff]  ;;  %v18859_v22 = vld [vmem:[%s16929_s7 + $0xaa0] sm:$0xff] }
 0x516   : > { %v6031_v15 = vrot.slane %v6030_v33, 1  ;;  %v5994_v4 = vrot.slane %v5993_v57, 1  ;;  %v4772_v32 = vpop.f32.mrb[196].mxu0  ;;  %12877 = vmatprep.subr.bf16.mxu1 %v15253_v23  ;;  %v15267_v23 = vcombine.high %v18827_v40, %v18830_v63  ;;  %v15269_v52 = vcombine.high %v18841_v50, %v18844_v12 }
 0x517   : > { %v5958_v38 = vadd.f32 %v5957_v2, %v5956_v14  ;;  %v5158_v10 = vmax.f32 %v4772_v32, 0.0  ;;  %v4965_v34 = vpop.f32.mrb[196].mxu1  ;;  %v4774_v56 = vpop.f32.mrb[197].mxu0  ;;  %v15268_v17 = vcombine.low %v18841_v50, %v18844_v12  ;;  %v18896_v50 = vld [vmem:[%s16929_s7 + $0xac8] sm:$0xff] }
 0x518   : > { %v6032_v1 = vadd.f32 %v6031_v15, %v6030_v33  ;;  %v5995_v60 = vadd.f32 %v5994_v4, %v5993_v57  ;;  %v5160_v43 = vmax.f32 %v4965_v34, 0.0  ;;  %v5159_v44 = vmax.f32 %v4774_v56, 0.0  ;;  %v4967_v8 = vpop.f32.mrb[197].mxu1  ;;  %12550 = vmatpush1.bf16.msra.mxu0 %v15250_v62  ;;  %v4776_v53 = vpop.f32.mrb[198].mxu0  ;;  %v18856_v62 = vld [vmem:[%s16929_s7 + $0xa80] sm:$0xff]  ;;  %v18868_v33 = vld [vmem:[%s16929_s7 + $0xa88] sm:$0xff] }
 0x519   : > { %v6226_v49 = vmul.f32 0.00390625, %v5958_v38  ;;  %v6071_v27 = vadd.f32 %v6070_v5, %v5158_v10  ;;  %v5161_v39 = vmax.f32 %v4967_v8, 0.0  ;;  %12878 = vmatpush1.bf16.msra.mxu1 %v15252_v55  ;;  %v4969_v28 = vpop.f32.mrb[198].mxu1  ;;  %v4778_v0 = vpop.f32.mrb[199].mxu0  ;;  %12551 = vmatprep.subr.bf16.mxu0 %v15259_v45  ;;  %v5174_v7 = vmax.f32 %v4776_v53, 0.0  ;;  %v18871_v57 = vld [vmem:[%s16929_s7 + $0xaa8] sm:$0xff] }
 0x51a   : > { %v6228_v11 = vmul.f32 0.00390625, %v6032_v1  ;;  %v6227_v35 = vmul.f32 0.00390625, %v5995_v60  ;;  %v6145_v14 = vadd.f32 %v6144_v3, %v5160_v43  ;;  %v6108_v51 = vadd.f32 %v6107_v6, %v5159_v44  ;;  %v4971_v9 = vpop.f32.mrb[199].mxu1  ;;  %12879 = vmatprep.subr.bf16.mxu1 %v15261_v41  ;;  %v18881_v45 = vld [vmem:[%s16929_s7 + $0xac0] sm:$0xff]  ;;  %v18899_v12 = vld [vmem:[%s16929_s7 + $0xae8] sm:$0xff] }
 0x51b   : > { %v18863_v5 = vsel %vm6234_vm1, %v18754_v37, %v6226_v49  ;;  %v6182_v55 = vadd.f32 %v6181_v20, %v5161_v39  ;;  %v6064_v6 = vrot.slane %v18796_v16, 4  ;;  %v5176_v40 = vmax.f32 %v4969_v28, 0.0  ;;  %v18884_v15 = vld [vmem:[%s16929_s7 + $0xae0] sm:$0xff] }
 0x51c   : > { %v18875_v3 = vsel %vm6234_vm1, %v18756_v31, %v6228_v11  ;;  %v5175_v37 = vmax.f32 %v4778_v0, 0.0  ;;  %12552 = vmatpush1.bf16.msra.mxu0 %v15258_v25  ;;  %v6072_v63 = vadd.f32 %v6071_v27, %v5174_v7  ;;  %v5177_v2 = vmax.f32 %v4971_v9, 0.0  ;;  %v6624_v7 = vld [vmem:[%s16929_s7 + $0xb28] sm:$0xff] }
 0x51d   : > { %12880 = vmatpush1.bf16.msra.mxu1 %v15260_v30  ;;  %12553 = vmatprep.subr.bf16.mxu0 %v15267_v23  ;;  %v15275_v20 = vcombine.high %v18856_v62, %v18859_v22  ;;  %v18888_v31 = vsel %vm6234_vm1, %v18772_v48, %v6227_v35  ;;  %v3240_v25 = vadd.f32 %v3239_v29, %v17747_v21  ;;  %v18911_v35 = vld [vmem:[%s16929_s7 + $0xb00] sm:$0xff] }
 0x51e   : > { %v6146_v4 = vadd.f32 %v6145_v14, %v5176_v40  ;;  %v6109_v32 = vadd.f32 %v6108_v51, %v5175_v37  ;;  %v4782_v41 = vpop.f32.mrb[200].mxu0  ;;  %12881 = vmatprep.subr.bf16.mxu1 %v15269_v52  ;;  %v15277_v30 = vcombine.high %v18868_v33, %v18871_v57  ;;  %v6183_v38 = vadd.f32 %v6182_v55, %v5177_v2  ;;  %v6623_v14 = vld [vmem:[%s16929_s7 + $0xb20] sm:$0xff]  ;;  %v6620_v55 = vld [vmem:[%s16929_s7 + $0xb08] sm:$0xff] }
 0x51f   : > { %v5190_v10 = vmax.f32 %v4782_v41, 0.0  ;;  %v4975_v34 = vpop.f32.mrb[200].mxu1  ;;  %v4784_v48 = vpop.f32.mrb[201].mxu0  ;;  %v15274_v56 = vcombine.low %v18856_v62, %v18859_v22  ;;  %v15276_v21 = vcombine.low %v18868_v33, %v18871_v57  ;;  %v6065_v29 = vadd.f32 %v6064_v6, %v18796_v16  ;;  %v18922_v2 = vld [vmem:[%s16929_s7 + $0xb40] sm:$0xff]  ;;  %v18928_v41 = vld [vmem:[%s16929_s7 + $0xb48] sm:$0xff] }
 0x520   : > { %v5192_v23 = vmax.f32 %v4975_v34, 0.0  ;;  %v5191_v1 = vmax.f32 %v4784_v48, 0.0  ;;  %v4977_v60 = vpop.f32.mrb[201].mxu1  ;;  %12554 = vmatpush1.bf16.msra.mxu0 %v15266_v42  ;;  %v4786_v43 = vpop.f32.mrb[202].mxu0  ;;  %v15283_v44 = vcombine.high %v18881_v45, %v18884_v15  ;;  %v15285_v16 = vcombine.high %v18896_v50, %v18899_v12 }
 0x521   : > { %v6073_v8 = vadd.f32 %v6072_v63, %v5190_v10  ;;  %v5193_v53 = vmax.f32 %v4977_v60, 0.0  ;;  %12882 = vmatpush1.bf16.msra.mxu1 %v15268_v17  ;;  %v5206_v49 = vmax.f32 %v4786_v43, 0.0  ;;  %v4979_v27 = vpop.f32.mrb[202].mxu1  ;;  %v4788_v39 = vpop.f32.mrb[203].mxu0  ;;  %12555 = vmatprep.subr.bf16.mxu0 %v15275_v20  ;;  %v3241_v51 = vrot.slane %v3240_v25, 2  ;;  %v18925_v20 = vld [vmem:[%s16929_s7 + $0xb60] sm:$0xff] }
 0x522   : > { %v6147_v28 = vadd.f32 %v6146_v4, %v5192_v23  ;;  %v6110_v42 = vadd.f32 %v6109_v32, %v5191_v1  ;;  %v5208_v0 = vmax.f32 %v4979_v27, 0.0  ;;  %v5207_v52 = vmax.f32 %v4788_v39, 0.0  ;;  %v4981_v11 = vpop.f32.mrb[203].mxu1  ;;  %12883 = vmatprep.subr.bf16.mxu1 %v15277_v30  ;;  %v18931_v30 = vld [vmem:[%s16929_s7 + $0xb68] sm:$0xff] }
 0x523   : > { %v6184_v9 = vadd.f32 %v6183_v38, %v5193_v53  ;;  %v6074_v62 = vadd.f32 %v6073_v8, %v5206_v49  ;;  %v5209_v22 = vmax.f32 %v4981_v11, 0.0  ;;  %v6066_v17 = vrot.slane %v6065_v29, 2 }
 0x524   : > { %v6148_v33 = vadd.f32 %v6147_v28, %v5208_v0  ;;  %v6111_v57 = vadd.f32 %v6110_v42, %v5207_v52  ;;  %12556 = vmatpush1.bf16.msra.mxu0 %v15274_v56  ;;  %v15282_v6 = vcombine.low %v18881_v45, %v18884_v15  ;;  %v15284_v37 = vcombine.low %v18896_v50, %v18899_v12  ;;  %v6635_v28 = vld [vmem:[%s16929_s7 + $0xb80] sm:$0xff] }
 0x525   : > { %v6185_v40 = vadd.f32 %v6184_v9, %v5209_v22  ;;  %12884 = vmatpush1.bf16.msra.mxu1 %v15276_v21  ;;  %12557 = vmatprep.subr.bf16.mxu0 %v15283_v44  ;;  %v15291_v63 = vcombine.high %v18911_v35, %v6623_v14  ;;  %v15293_v32 = vcombine.high %v6620_v55, %v6624_v7  ;;  %v6639_v42 = vld [vmem:[%s16929_s7 + $0xba0] sm:$0xff] }
 0x526   : > { %v4792_v4 = vpop.f32.mrb[204].mxu0  ;;  %12885 = vmatprep.subr.bf16.mxu1 %v15285_v16  ;;  %v3242_v45 = vadd.f32 %v3241_v51, %v3240_v25  ;;  %v15290_v34 = vcombine.low %v18911_v35, %v6623_v14  ;;  %v15292_v50 = vcombine.low %v6620_v55, %v6624_v7  ;;  %v6067_v12 = vadd.f32 %v6066_v17, %v6065_v29  ;;  %v6636_v14 = vld [vmem:[%s16929_s7 + $0xb88] sm:$0xff] }
 0x527   : > { %v5222_v15 = vmax.f32 %v4792_v4, 0.0  ;;  %v4985_v38 = vpop.f32.mrb[204].mxu1  ;;  %v4794_v10 = vpop.f32.mrb[205].mxu0  ;;  %v15299_v1 = vcombine.high %v18922_v2, %v18925_v20  ;;  %v15301_v29 = vcombine.high %v18928_v41, %v18931_v30  ;;  %v6640_v51 = vld [vmem:[%s16929_s7 + $0xba8] sm:$0xff]  ;;  %v15298_v55 = vcombine.low %v18922_v2, %v18925_v20 }
 0x528   : > { %v5224_v48 = vmax.f32 %v4985_v38, 0.0  ;;  %v5223_v56 = vmax.f32 %v4794_v10, 0.0  ;;  %v4987_v21 = vpop.f32.mrb[205].mxu1  ;;  %12558 = vmatpush1.bf16.msra.mxu0 %v15282_v6  ;;  %v4796_v23 = vpop.f32.mrb[206].mxu0  ;;  %v3243_v0 = vrot.slane %v3242_v45, 1  ;;  %v6068_v9 = vrot.slane %v6067_v12, 1 }
 0x529   : > { %v6075_v60 = vadd.f32 %v6074_v62, %v5222_v15  ;;  %v5225_v43 = vmax.f32 %v4987_v21, 0.0  ;;  %12886 = vmatpush1.bf16.msra.mxu1 %v15284_v37  ;;  %v5238_v25 = vmax.f32 %v4796_v23, 0.0  ;;  %v4989_v44 = vpop.f32.mrb[206].mxu1  ;;  %v4798_v8 = vpop.f32.mrb[207].mxu0  ;;  %12559 = vmatprep.subr.bf16.mxu0 %v15291_v63  ;;  %v15300_v17 = vcombine.low %v18928_v41, %v18931_v30  ;;  %v18950_v6 = vld [vmem:[%s16929_s7 + $0xbe0] sm:$0xff]  ;;  %v18953_v63 = vld [vmem:[%s16929_s7 + $0xbc8] sm:$0xff] }
 0x52a   : > { %v6149_v53 = vadd.f32 %v6148_v33, %v5224_v48  ;;  %v6112_v49 = vadd.f32 %v6111_v57, %v5223_v56  ;;  %v5240_v27 = vmax.f32 %v4989_v44, 0.0  ;;  %v5239_v39 = vmax.f32 %v4798_v8, 0.0  ;;  %v4991_v16 = vpop.f32.mrb[207].mxu1  ;;  %12887 = vmatprep.subr.bf16.mxu1 %v15293_v32  ;;  %v18947_v57 = vld [vmem:[%s16929_s7 + $0xbc0] sm:$0xff]  ;;  %v18956_v4 = vld [vmem:[%s16929_s7 + $0xbe8] sm:$0xff] }
 0x52b   : > { %v6186_v52 = vadd.f32 %v6185_v40, %v5225_v43  ;;  %v6076_v11 = vadd.f32 %v6075_v60, %v5238_v25  ;;  %v5241_v35 = vmax.f32 %v4991_v16, 0.0  ;;  %v15307_v33 = vcombine.high %v6635_v28, %v6639_v42 }
 0x52c   : > { %v6150_v62 = vadd.f32 %v6149_v53, %v5240_v27  ;;  %v6113_v22 = vadd.f32 %v6112_v49, %v5239_v39  ;;  %12560 = vmatpush1.bf16.msra.mxu0 %v15290_v34  ;;  %v15309_v37 = vcombine.high %v6636_v14, %v6640_v51  ;;  %v3244_v32 = vadd.f32 %v3243_v0, %v3242_v45  ;;  %v18963_v53 = vld [vmem:[%s16929_s7 + $0xc00] sm:$0xff] }
 0x52d   : > { %v6187_v7 = vadd.f32 %v6186_v52, %v5241_v35  ;;  %12888 = vmatpush1.bf16.msra.mxu1 %v15292_v50  ;;  %12561 = vmatprep.subr.bf16.mxu0 %v15299_v1  ;;  %v15306_v38 = vcombine.low %v6635_v28, %v6639_v42  ;;  %v15308_v10 = vcombine.low %v6636_v14, %v6640_v51  ;;  %v18966_v49 = vld [vmem:[%s16929_s7 + $0xc20] sm:$0xff]  ;;  %v18969_v28 = vld [vmem:[%s16929_s7 + $0xc08] sm:$0xff] }
 0x52e   : > { %v4802_v40 = vpop.f32.mrb[208].mxu0  ;;  %12889 = vmatprep.subr.bf16.mxu1 %v15301_v29  ;;  %v6069_v34 = vadd.f32 %v6068_v9, %v6067_v12  ;;  %v15315_v56 = vcombine.high %v18947_v57, %v18950_v6  ;;  %v15317_v12 = vcombine.high %v18953_v63, %v18956_v4  ;;  %v6656_v42 = vld [vmem:[%s16929_s7 + $0xc28] sm:$0xff]  ;;  %v15314_v35 = vcombine.low %v18947_v57, %v18950_v6 }
 0x52f   : > { %v5254_v2 = vmax.f32 %v4802_v40, 0.0  ;;  %v4995_v20 = vpop.f32.mrb[208].mxu1  ;;  %v4804_v15 = vpop.f32.mrb[209].mxu0  ;;  %v15316_v51 = vcombine.low %v18953_v63, %v18956_v4  ;;  %v15323_v9 = vcombine.high %v18963_v53, %v18966_v49  ;;  %v18993_v63 = vpack.c.bf16 %v18440_v36, %v18440_v36 }
 0x530   : > { %v5256_v41 = vmax.f32 %v4995_v20, 0.0  ;;  %v5255_v30 = vmax.f32 %v4804_v15, 0.0  ;;  %v4997_v50 = vpop.f32.mrb[209].mxu1  ;;  %12562 = vmatpush1.bf16.msra.mxu0 %v15298_v55  ;;  %v4806_v48 = vpop.f32.mrb[210].mxu0  ;;  %v6229_v0 = vmul.f32 0.00390625, %v6069_v34  ;;  %v15325_v55 = vcombine.high %v18969_v28, %v6656_v42 }
 0x531   : > { %v6077_v21 = vadd.f32 %v6076_v11, %v5254_v2  ;;  %v5257_v23 = vmax.f32 %v4997_v50, 0.0  ;;  %12890 = vmatpush1.bf16.msra.mxu1 %v15300_v17  ;;  %v5270_v45 = vmax.f32 %v4806_v48, 0.0  ;;  %v4999_v1 = vpop.f32.mrb[210].mxu1  ;;  %v4808_v60 = vpop.f32.mrb[211].mxu0  ;;  %12563 = vmatprep.subr.bf16.mxu0 %v15307_v33  ;;  %v18983_v17 = vld [vmem:[%s16929_s7 + $0xc60] sm:$0xff]  ;;  %v18987_v33 = vpack.c.bf16 %v18410_v58, %v18410_v58  ;;  %v6664_v58 = vld [vmem:[%s16929_s7 + $0xc68] sm:$0xff] }
 0x532   : > { %v6151_v43 = vadd.f32 %v6150_v62, %v5256_v41  ;;  %v6114_v25 = vadd.f32 %v6113_v22, %v5255_v30  ;;  %v5272_v44 = vmax.f32 %v4999_v1, 0.0  ;;  %v5271_v8 = vmax.f32 %v4808_v60, 0.0  ;;  %v5001_v29 = vpop.f32.mrb[211].mxu1  ;;  %12891 = vmatprep.subr.bf16.mxu1 %v15309_v37  ;;  %v6667_v60 = vld [vmem:[%s16929_s7 + $0xc80] sm:$0xff] }
 0x533   : > { %v6188_v27 = vadd.f32 %v6187_v7, %v5257_v23  ;;  %v6078_v39 = vadd.f32 %v6077_v21, %v5270_v45  ;;  %v5273_v16 = vmax.f32 %v5001_v29, 0.0  ;;  %v3405_v62 = vmul.f32 0.00390625, %v3244_v32  ;;  %v18980_v7 = vld [vmem:[%s16929_s7 + $0xc40] sm:$0xff]  ;;  %v6668_v29 = vld [vmem:[%s16929_s7 + $0xc88] sm:$0xff] }
 0x534   : > { %v6152_v52 = vadd.f32 %v6151_v43, %v5272_v44  ;;  %v6115_v11 = vadd.f32 %v6114_v25, %v5271_v8  ;;  %12564 = vmatpush1.bf16.msra.mxu0 %v15306_v38  ;;  %v15322_v37 = vcombine.low %v18963_v53, %v18966_v49  ;;  %v15324_v15 = vcombine.low %v18969_v28, %v6656_v42  ;;  %v6660_v38 = vld [vmem:[%s16929_s7 + $0xc48] sm:$0xff] }
 0x535   : > { %v6189_v14 = vadd.f32 %v6188_v27, %v5273_v16  ;;  %12892 = vmatpush1.bf16.msra.mxu1 %v15308_v10  ;;  %12565 = vmatprep.subr.bf16.mxu0 %v15315_v56  ;;  %v18999_v10 = vsel %vm6234_vm1, %v3405_v62, %v6229_v0  ;;  %v15331_v48 = vcombine.high %v18980_v7, %v18983_v17  ;;  %v6672_v53 = vld [vmem:[%s16929_s7 + $0xca8] sm:$0xff]  ;;  %v19013_v0 = vld [vmem:[%s16929_s7 + $0xcc0] sm:$0xff] }
 0x536   : > { %v4812_v22 = vpop.f32.mrb[212].mxu0  ;;  %12893 = vmatprep.subr.bf16.mxu1 %v15317_v12  ;;  %v6671_v12 = vld [vmem:[%s16929_s7 + $0xca0] sm:$0xff]  ;;  %v15333_v8 = vcombine.high %v6660_v38, %v6664_v58  ;;  %v15332_v28 = vcombine.low %v6660_v38, %v6664_v58 }
 0x537   : > { %v5286_v57 = vmax.f32 %v4812_v22, 0.0  ;;  %v5005_v6 = vpop.f32.mrb[212].mxu1  ;;  %v4814_v40 = vpop.f32.mrb[213].mxu0  ;;  %v15339_v42 = vcombine.high %v6667_v60, %v6671_v12 }
 0x538   : > { %v5288_v4 = vmax.f32 %v5005_v6, 0.0  ;;  %v5287_v32 = vmax.f32 %v4814_v40, 0.0  ;;  %v5007_v2 = vpop.f32.mrb[213].mxu1  ;;  %12566 = vmatpush1.bf16.msra.mxu0 %v15314_v35  ;;  %v4816_v20 = vpop.f32.mrb[214].mxu0  ;;  %v15341_v35 = vcombine.high %v6668_v29, %v6672_v53  ;;  %v15340_v40 = vcombine.low %v6668_v29, %v6672_v53  ;;  %v6691_v29 = vld [vmem:[%s16929_s7 + $0xd40] sm:$0xff] }
 0x539   : > { %v6079_v34 = vadd.f32 %v6078_v39, %v5286_v57  ;;  %v5289_v41 = vmax.f32 %v5007_v2, 0.0  ;;  %12894 = vmatpush1.bf16.msra.mxu1 %v15316_v51  ;;  %v5302_v30 = vmax.f32 %v4816_v20, 0.0  ;;  %v5009_v36 = vpop.f32.mrb[214].mxu1  ;;  %v4818_v50 = vpop.f32.mrb[215].mxu0  ;;  %12576 = vmatprep.subr.bf16.mxu0 %v15323_v9  ;;  %v15330_v39 = vcombine.low %v18980_v7, %v18983_v17  ;;  %v19023_v51 = vld [vmem:[%s16929_s7 + $0xce8] sm:$0xff]  ;;  %v6695_v53 = vld [vmem:[%s16929_s7 + $0xd60] sm:$0xff] }
 0x53a   : > { %v6153_v56 = vadd.f32 %v6152_v52, %v5288_v4  ;;  %v6116_v21 = vadd.f32 %v6115_v11, %v5287_v32  ;;  %v5304_v23 = vmax.f32 %v5009_v36, 0.0  ;;  %v5303_v45 = vmax.f32 %v4818_v50, 0.0  ;;  %v5011_v1 = vpop.f32.mrb[215].mxu1  ;;  %12904 = vmatprep.subr.bf16.mxu1 %v15325_v55  ;;  %v19016_v52 = vld [vmem:[%s16929_s7 + $0xce0] sm:$0xff] }
 0x53b   : > { %v6190_v43 = vadd.f32 %v6189_v14, %v5289_v41  ;;  %v6080_v25 = vadd.f32 %v6079_v34, %v5302_v30  ;;  %v5305_v44 = vmax.f32 %v5011_v1, 0.0  ;;  %12568 = vmatmul.mubr.bf16.vlgmr.msra.gmra.mrb[0].mxu0 %v18987_v33  ;;  %v19020_v14 = vld [vmem:[%s16929_s7 + $0xcc8] sm:$0xff]  ;;  %v15338_v55 = vcombine.low %v6667_v60, %v6671_v12  ;;  %v6683_v50 = vld [vmem:[%s16929_s7 + $0xd00] sm:$0xff] }
 0x53c   : > { %v6154_v49 = vadd.f32 %v6153_v56, %v5304_v23  ;;  %v6117_v27 = vadd.f32 %v6116_v21, %v5303_v45  ;;  %12896 = vmatmul.mubr.bf16.vlgmr.msra.gmra.mrb[0].mxu1 %v18987_v33  ;;  %12577 = vmatpush1.bf16.msra.mxu0 %v15322_v37  ;;  %v15347_v37 = vcombine.high %v19013_v0, %v19016_v52  ;;  %v6684_v45 = vld [vmem:[%s16929_s7 + $0xd08] sm:$0xff] }
 0x53d   : > { %v6191_v16 = vadd.f32 %v6190_v43, %v5305_v44  ;;  %12608 = vmatprep.mubr.bf16.mxu0 %v18993_v63  ;;  %12905 = vmatpush1.bf16.msra.mxu1 %v15324_v15  ;;  %v15349_v38 = vcombine.high %v19020_v14, %v19023_v51  ;;  %v6688_v1 = vld [vmem:[%s16929_s7 + $0xd28] sm:$0xff]  ;;  %v15346_v43 = vcombine.low %v19013_v0, %v19016_v52 }
 0x53e   : > { %12936 = vmatprep.mubr.bf16.mxu1 %v18993_v63  ;;  %v4822_v11 = vpop.f32.mrb[216].mxu0  ;;  %12578 = vmatprep.subr.bf16.mxu0 %v15331_v48  ;;  %v6687_v48 = vld [vmem:[%s16929_s7 + $0xd20] sm:$0xff]  ;;  %v15348_v44 = vcombine.low %v19020_v14, %v19023_v51  ;;  %v15363_v14 = vcombine.high %v6691_v29, %v6695_v53 }
 0x53f   : > { %v5318_v9 = vmax.f32 %v4822_v11, 0.0  ;;  %v5015_v62 = vpop.f32.mrb[216].mxu1  ;;  %12906 = vmatprep.subr.bf16.mxu1 %v15333_v8  ;;  %v4824_v22 = vpop.f32.mrb[217].mxu0  ;;  %v15355_v8 = vcombine.high %v6683_v50, %v6687_v48 }
 0x540   : > { %v5320_v7 = vmax.f32 %v5015_v62, 0.0  ;;  %v5319_v17 = vmax.f32 %v4824_v22, 0.0  ;;  %v5017_v57 = vpop.f32.mrb[217].mxu1  ;;  %12579 = vmatpush1.bf16.msra.mxu0 %v15330_v39  ;;  %v4826_v6 = vpop.f32.mrb[218].mxu0  ;;  %v19040_v39 = vld [vmem:[%s16929_s7 + $0xd48] sm:$0xff]  ;;  %v15356_v22 = vcombine.low %v6684_v45, %v6688_v1 }
 0x541   : > { %v6081_v4 = vadd.f32 %v6080_v25, %v5318_v9  ;;  %v5321_v32 = vmax.f32 %v5017_v57, 0.0  ;;  %12907 = vmatpush1.bf16.msra.mxu1 %v15332_v28  ;;  %v5334_v2 = vmax.f32 %v4826_v6, 0.0  ;;  %v5019_v20 = vpop.f32.mrb[218].mxu1  ;;  %v4828_v15 = vpop.f32.mrb[219].mxu0  ;;  %12580 = vmatprep.subr.bf16.mxu0 %v15339_v42 }
 0x542   : > { %v6155_v58 = vadd.f32 %v6154_v49, %v5320_v7  ;;  %v6118_v34 = vadd.f32 %v6117_v27, %v5319_v17  ;;  %v5336_v41 = vmax.f32 %v5019_v20, 0.0  ;;  %v5335_v30 = vmax.f32 %v4828_v15, 0.0  ;;  %v5021_v36 = vpop.f32.mrb[219].mxu1  ;;  %12908 = vmatprep.subr.bf16.mxu1 %v15341_v35  ;;  %v6699_v20 = vld [vmem:[%s16929_s7 + $0xd80] sm:$0xff] }
 0x543   : > { %v6192_v56 = vadd.f32 %v6191_v16, %v5321_v32  ;;  %v6082_v21 = vadd.f32 %v6081_v4, %v5334_v2  ;;  %v5337_v23 = vmax.f32 %v5021_v36, 0.0  ;;  %v15357_v27 = vcombine.high %v6684_v45, %v6688_v1  ;;  %v6696_v16 = vld [vmem:[%s16929_s7 + $0xd68] sm:$0xff]  ;;  %v6703_v15 = vld [vmem:[%s16929_s7 + $0xda0] sm:$0xff] }
 0x544   : > { %v6156_v60 = vadd.f32 %v6155_v58, %v5336_v41  ;;  %v6119_v12 = vadd.f32 %v6118_v34, %v5335_v30  ;;  %12581 = vmatpush1.bf16.msra.mxu0 %v15338_v55  ;;  %v15354_v35 = vcombine.low %v6683_v50, %v6687_v48  ;;  %v15365_v6 = vcombine.high %v19040_v39, %v6696_v16  ;;  %v6700_v41 = vld [vmem:[%s16929_s7 + $0xd88] sm:$0xff]  ;;  %v6707_v45 = vld [vmem:[%s16929_s7 + $0xdc0] sm:$0xff] }
 0x545   : > { %v6193_v25 = vadd.f32 %v6192_v56, %v5337_v23  ;;  %12909 = vmatpush1.bf16.msra.mxu1 %v15340_v40  ;;  %12582 = vmatprep.subr.bf16.mxu0 %v15347_v37  ;;  %v6704_v30 = vld [vmem:[%s16929_s7 + $0xda8] sm:$0xff]  ;;  %v15362_v48 = vcombine.low %v6691_v29, %v6695_v53  ;;  %v15371_v23 = vcombine.high %v6699_v20, %v6703_v15  ;;  %v6711_v1 = vld [vmem:[%s16929_s7 + $0xde0] sm:$0xff] }
 0x546   : > { %v4832_v49 = vpop.f32.mrb[220].mxu0  ;;  %12910 = vmatprep.subr.bf16.mxu1 %v15349_v38 }
 0x547   : > { %v5350_v28 = vmax.f32 %v4832_v49, 0.0  ;;  %v5025_v42 = vpop.f32.mrb[220].mxu1  ;;  %v4834_v11 = vpop.f32.mrb[221].mxu0 }
 0x548   : > { %v5352_v0 = vmax.f32 %v5025_v42, 0.0  ;;  %v5351_v52 = vmax.f32 %v4834_v11, 0.0  ;;  %v5027_v9 = vpop.f32.mrb[221].mxu1  ;;  %12583 = vmatpush1.bf16.msra.mxu0 %v15346_v43  ;;  %v4836_v62 = vpop.f32.mrb[222].mxu0  ;;  %v19052_v43 = vld [vmem:[%s16929_s7 + $0xdc8] sm:$0xff]  ;;  %v15372_v11 = vcombine.low %v6700_v41, %v6704_v30 }
 0x549   : > { %v6083_v51 = vadd.f32 %v6082_v21, %v5350_v28  ;;  %v5353_v55 = vmax.f32 %v5027_v9, 0.0  ;;  %12911 = vmatpush1.bf16.msra.mxu1 %v15348_v44  ;;  %v5366_v7 = vmax.f32 %v4836_v62, 0.0  ;;  %v5029_v17 = vpop.f32.mrb[222].mxu1  ;;  %v4838_v57 = vpop.f32.mrb[223].mxu0  ;;  %12584 = vmatprep.subr.bf16.mxu0 %v15355_v8  ;;  %v15364_v21 = vcombine.low %v19040_v39, %v6696_v16 }
 0x54a   : > { %v6157_v40 = vadd.f32 %v6156_v60, %v5352_v0  ;;  %v6120_v37 = vadd.f32 %v6119_v12, %v5351_v52  ;;  %v5368_v4 = vmax.f32 %v5029_v17, 0.0  ;;  %v5367_v32 = vmax.f32 %v4838_v57, 0.0  ;;  %v5031_v2 = vpop.f32.mrb[223].mxu1  ;;  %12912 = vmatprep.subr.bf16.mxu1 %v15357_v27  ;;  %v6715_v17 = vld [vmem:[%s16929_s7 + $0xe00] sm:$0xff] }
 0x54b   : > { %v6194_v38 = vadd.f32 %v6193_v25, %v5353_v55  ;;  %v6084_v58 = vadd.f32 %v6083_v51, %v5366_v7  ;;  %v5369_v34 = vmax.f32 %v5031_v2, 0.0  ;;  %v15373_v12 = vcombine.high %v6700_v41, %v6704_v30  ;;  %v6712_v25 = vld [vmem:[%s16929_s7 + $0xde8] sm:$0xff]  ;;  %v6719_v57 = vld [vmem:[%s16929_s7 + $0xe20] sm:$0xff] }
 0x54c   : > { %v6158_v36 = vadd.f32 %v6157_v40, %v5368_v4  ;;  %v6121_v50 = vadd.f32 %v6120_v37, %v5367_v32  ;;  %12585 = vmatpush1.bf16.msra.mxu0 %v15354_v35  ;;  %v15370_v27 = vcombine.low %v6699_v20, %v6703_v15  ;;  %v15379_v39 = vcombine.high %v6707_v45, %v6711_v1  ;;  %v6716_v4 = vld [vmem:[%s16929_s7 + $0xe08] sm:$0xff]  ;;  %v6723_v41 = vld [vmem:[%s16929_s7 + $0xe40] sm:$0xff] }
 0x54d   : > { %v6195_v56 = vadd.f32 %v6194_v38, %v5369_v34  ;;  %12913 = vmatpush1.bf16.msra.mxu1 %v15356_v22  ;;  %12586 = vmatprep.subr.bf16.mxu0 %v15363_v14  ;;  %v15381_v62 = vcombine.high %v19052_v43, %v6712_v25  ;;  %v6720_v32 = vld [vmem:[%s16929_s7 + $0xe28] sm:$0xff]  ;;  %v15378_v15 = vcombine.low %v6707_v45, %v6711_v1  ;;  %v6727_v30 = vld [vmem:[%s16929_s7 + $0xe60] sm:$0xff] }
 0x54e   : > { %v4842_v60 = vpop.f32.mrb[224].mxu0  ;;  %12914 = vmatprep.subr.bf16.mxu1 %v15365_v6  ;;  %v15387_v34 = vcombine.high %v6715_v17, %v6719_v57 }
 0x54f   : > { %v5382_v44 = vmax.f32 %v4842_v60, 0.0  ;;  %v5035_v8 = vpop.f32.mrb[224].mxu1  ;;  %v4844_v49 = vpop.f32.mrb[225].mxu0 }
 0x550   : > { %v5384_v28 = vmax.f32 %v5035_v8, 0.0  ;;  %v5383_v29 = vmax.f32 %v4844_v49, 0.0  ;;  %v5037_v53 = vpop.f32.mrb[225].mxu1  ;;  %12587 = vmatpush1.bf16.msra.mxu0 %v15362_v48  ;;  %v4846_v42 = vpop.f32.mrb[226].mxu0  ;;  %v19064_v48 = vld [vmem:[%s16929_s7 + $0xe48] sm:$0xff]  ;;  %v15388_v49 = vcombine.low %v6716_v4, %v6720_v32 }
 0x551   : > { %v6085_v16 = vadd.f32 %v6084_v58, %v5382_v44  ;;  %v5385_v35 = vmax.f32 %v5037_v53, 0.0  ;;  %12915 = vmatpush1.bf16.msra.mxu1 %v15364_v21  ;;  %v5398_v0 = vmax.f32 %v4846_v42, 0.0  ;;  %v5039_v52 = vpop.f32.mrb[226].mxu1  ;;  %v4848_v9 = vpop.f32.mrb[227].mxu0  ;;  %12588 = vmatprep.subr.bf16.mxu0 %v15371_v23  ;;  %v15380_v58 = vcombine.low %v19052_v43, %v6712_v25 }
 0x552   : > { %v6159_v22 = vadd.f32 %v6158_v36, %v5384_v28  ;;  %v6122_v14 = vadd.f32 %v6121_v50, %v5383_v29  ;;  %v5400_v51 = vmax.f32 %v5039_v52, 0.0  ;;  %v5399_v55 = vmax.f32 %v4848_v9, 0.0  ;;  %v5041_v7 = vpop.f32.mrb[227].mxu1  ;;  %12916 = vmatprep.subr.bf16.mxu1 %v15373_v12  ;;  %v6731_v52 = vld [vmem:[%s16929_s7 + $0xe80] sm:$0xff] }
 0x553   : > { %v6196_v6 = vadd.f32 %v6195_v56, %v5385_v35  ;;  %v6086_v40 = vadd.f32 %v6085_v16, %v5398_v0  ;;  %v5401_v37 = vmax.f32 %v5041_v7, 0.0  ;;  %v15389_v50 = vcombine.high %v6716_v4, %v6720_v32  ;;  %v6728_v56 = vld [vmem:[%s16929_s7 + $0xe68] sm:$0xff]  ;;  %v6735_v9 = vld [vmem:[%s16929_s7 + $0xea0] sm:$0xff] }
 0x554   : > { %v6160_v2 = vadd.f32 %v6159_v22, %v5400_v51  ;;  %v6123_v20 = vadd.f32 %v6122_v14, %v5399_v55  ;;  %12589 = vmatpush1.bf16.msra.mxu0 %v15370_v27  ;;  %v15386_v12 = vcombine.low %v6715_v17, %v6719_v57  ;;  %v15395_v43 = vcombine.high %v6723_v41, %v6727_v30  ;;  %v6732_v51 = vld [vmem:[%s16929_s7 + $0xe88] sm:$0xff]  ;;  %v6739_v4 = vld [vmem:[%s16929_s7 + $0xec0] sm:$0xff] }
 0x555   : > { %v6197_v38 = vadd.f32 %v6196_v6, %v5401_v37  ;;  %12917 = vmatpush1.bf16.msra.mxu1 %v15372_v11  ;;  %12590 = vmatprep.subr.bf16.mxu0 %v15379_v39  ;;  %v15397_v42 = vcombine.high %v19064_v48, %v6728_v56  ;;  %v6736_v55 = vld [vmem:[%s16929_s7 + $0xea8] sm:$0xff]  ;;  %v15394_v57 = vcombine.low %v6723_v41, %v6727_v30  ;;  %v6743_v32 = vld [vmem:[%s16929_s7 + $0xee0] sm:$0xff] }
 0x556   : > { %v4852_v36 = vpop.f32.mrb[228].mxu0  ;;  %12918 = vmatprep.subr.bf16.mxu1 %v15381_v62  ;;  %v15403_v37 = vcombine.high %v6731_v52, %v6735_v9 }
 0x557   : > { %v5414_v21 = vmax.f32 %v4852_v36, 0.0  ;;  %v5045_v23 = vpop.f32.mrb[228].mxu1  ;;  %v4854_v60 = vpop.f32.mrb[229].mxu0 }
 0x558   : > { %v5416_v44 = vmax.f32 %v5045_v23, 0.0  ;;  %v5415_v45 = vmax.f32 %v4854_v60, 0.0  ;;  %v5047_v1 = vpop.f32.mrb[229].mxu1  ;;  %12591 = vmatpush1.bf16.msra.mxu0 %v15378_v15  ;;  %v4856_v8 = vpop.f32.mrb[230].mxu0  ;;  %v19076_v15 = vld [vmem:[%s16929_s7 + $0xec8] sm:$0xff]  ;;  %v15404_v60 = vcombine.low %v6732_v51, %v6736_v55 }
 0x559   : > { %v6087_v25 = vadd.f32 %v6086_v40, %v5414_v21  ;;  %v5417_v27 = vmax.f32 %v5047_v1, 0.0  ;;  %12919 = vmatpush1.bf16.msra.mxu1 %v15380_v58  ;;  %v5430_v28 = vmax.f32 %v4856_v8, 0.0  ;;  %v5049_v29 = vpop.f32.mrb[230].mxu1  ;;  %v4858_v53 = vpop.f32.mrb[231].mxu0  ;;  %12592 = vmatprep.subr.bf16.mxu0 %v15387_v34  ;;  %v15396_v40 = vcombine.low %v19064_v48, %v6728_v56 }
 0x55a   : > { %v6161_v11 = vadd.f32 %v6160_v2, %v5416_v44  ;;  %v6124_v39 = vadd.f32 %v6123_v20, %v5415_v45  ;;  %v5432_v16 = vmax.f32 %v5049_v29, 0.0  ;;  %v5431_v35 = vmax.f32 %v4858_v53, 0.0  ;;  %v5051_v0 = vpop.f32.mrb[231].mxu1  ;;  %12920 = vmatprep.subr.bf16.mxu1 %v15389_v50  ;;  %v6747_v29 = vld [vmem:[%s16929_s7 + $0xf00] sm:$0xff] }
 0x55b   : > { %v6198_v62 = vadd.f32 %v6197_v38, %v5417_v27  ;;  %v6088_v22 = vadd.f32 %v6087_v25, %v5430_v28  ;;  %v5433_v14 = vmax.f32 %v5051_v0, 0.0  ;;  %v15405_v20 = vcombine.high %v6732_v51, %v6736_v55  ;;  %v6744_v38 = vld [vmem:[%s16929_s7 + $0xee8] sm:$0xff]  ;;  %v6751_v53 = vld [vmem:[%s16929_s7 + $0xf20] sm:$0xff] }
 0x55c   : > { %v6162_v7 = vadd.f32 %v6161_v11, %v5432_v16  ;;  %v6125_v17 = vadd.f32 %v6124_v39, %v5431_v35  ;;  %12593 = vmatpush1.bf16.msra.mxu0 %v15386_v12  ;;  %v15402_v50 = vcombine.low %v6731_v52, %v6735_v9  ;;  %v15411_v48 = vcombine.high %v6739_v4, %v6743_v32  ;;  %v6748_v16 = vld [vmem:[%s16929_s7 + $0xf08] sm:$0xff]  ;;  %v6755_v51 = vld [vmem:[%s16929_s7 + $0xf40] sm:$0xff] }
 0x55d   : > { %v6199_v6 = vadd.f32 %v6198_v62, %v5433_v14  ;;  %12921 = vmatpush1.bf16.msra.mxu1 %v15388_v49  ;;  %12594 = vmatprep.subr.bf16.mxu0 %v15395_v43  ;;  %v15413_v8 = vcombine.high %v19076_v15, %v6744_v38  ;;  %v6752_v35 = vld [vmem:[%s16929_s7 + $0xf28] sm:$0xff]  ;;  %v15410_v9 = vcombine.low %v6739_v4, %v6743_v32  ;;  %v6759_v55 = vld [vmem:[%s16929_s7 + $0xf60] sm:$0xff] }
 0x55e   : > { %v4862_v2 = vpop.f32.mrb[232].mxu0  ;;  %12922 = vmatprep.subr.bf16.mxu1 %v15397_v42  ;;  %v15419_v14 = vcombine.high %v6747_v29, %v6751_v53 }
 0x55f   : > { %v5446_v58 = vmax.f32 %v4862_v2, 0.0  ;;  %v5055_v34 = vpop.f32.mrb[232].mxu1  ;;  %v4864_v36 = vpop.f32.mrb[233].mxu0 }
 0x560   : > { %v5448_v21 = vmax.f32 %v5055_v34, 0.0  ;;  %v5447_v41 = vmax.f32 %v4864_v36, 0.0  ;;  %v5057_v30 = vpop.f32.mrb[233].mxu1  ;;  %12595 = vmatpush1.bf16.msra.mxu0 %v15394_v57  ;;  %v4866_v23 = vpop.f32.mrb[234].mxu0  ;;  %v19088_v57 = vld [vmem:[%s16929_s7 + $0xf48] sm:$0xff]  ;;  %v15420_v36 = vcombine.low %v6748_v16, %v6752_v35 }
 0x561   : > { %v6089_v56 = vadd.f32 %v6088_v22, %v5446_v58  ;;  %v5449_v12 = vmax.f32 %v5057_v30, 0.0  ;;  %12923 = vmatpush1.bf16.msra.mxu1 %v15396_v40  ;;  %v5462_v44 = vmax.f32 %v4866_v23, 0.0  ;;  %v5059_v45 = vpop.f32.mrb[234].mxu1  ;;  %v4868_v1 = vpop.f32.mrb[235].mxu0  ;;  %12596 = vmatprep.subr.bf16.mxu0 %v15403_v37  ;;  %v15412_v22 = vcombine.low %v19076_v15, %v6744_v38 }
 0x562   : > { %v6163_v49 = vadd.f32 %v6162_v7, %v5448_v21  ;;  %v6126_v43 = vadd.f32 %v6125_v17, %v5447_v41  ;;  %v5464_v25 = vmax.f32 %v5059_v45, 0.0  ;;  %v5463_v27 = vmax.f32 %v4868_v1, 0.0  ;;  %v5061_v28 = vpop.f32.mrb[235].mxu1  ;;  %12924 = vmatprep.subr.bf16.mxu1 %v15405_v20  ;;  %v6763_v45 = vld [vmem:[%s16929_s7 + $0xf80] sm:$0xff] }
 0x563   : > { %v6200_v42 = vadd.f32 %v6199_v6, %v5449_v12  ;;  %v6090_v11 = vadd.f32 %v6089_v56, %v5462_v44  ;;  %v5465_v39 = vmax.f32 %v5061_v28, 0.0  ;;  %v15421_v17 = vcombine.high %v6748_v16, %v6752_v35  ;;  %v6760_v6 = vld [vmem:[%s16929_s7 + $0xf68] sm:$0xff]  ;;  %v6767_v1 = vld [vmem:[%s16929_s7 + $0xfa0] sm:$0xff] }
 0x564   : > { %v6164_v0 = vadd.f32 %v6163_v49, %v5464_v25  ;;  %v6127_v52 = vadd.f32 %v6126_v43, %v5463_v27  ;;  %12597 = vmatpush1.bf16.msra.mxu0 %v15402_v50  ;;  %v15418_v20 = vcombine.low %v6747_v29, %v6751_v53  ;;  %v15427_v15 = vcombine.high %v6755_v51, %v6759_v55  ;;  %v6764_v25 = vld [vmem:[%s16929_s7 + $0xf88] sm:$0xff]  ;;  %v19098_v16 = vld [vmem:[%s16929_s7 + $0xfc0] sm:$0xff] }
 0x565   : > { %v6201_v62 = vadd.f32 %v6200_v42, %v5465_v39  ;;  %12925 = vmatpush1.bf16.msra.mxu1 %v15404_v60  ;;  %12598 = vmatprep.subr.bf16.mxu0 %v15411_v48  ;;  %v15429_v23 = vcombine.high %v19088_v57, %v6760_v6  ;;  %v6768_v27 = vld [vmem:[%s16929_s7 + $0xfa8] sm:$0xff]  ;;  %v15426_v53 = vcombine.low %v6755_v51, %v6759_v55  ;;  %v19101_v35 = vld [vmem:[%s16929_s7 + $0xfe0] sm:$0xff] }
 0x566   : > { %v4872_v7 = vpop.f32.mrb[236].mxu0  ;;  %12926 = vmatprep.subr.bf16.mxu1 %v15413_v8  ;;  %v15435_v39 = vcombine.high %v6763_v45, %v6767_v1  ;;  %v15434_v55 = vcombine.low %v6763_v45, %v6767_v1  ;;  %v15442_v1 = vcombine.low %v19098_v16, %v19101_v35 }
 0x567   : > { %v5478_v40 = vmax.f32 %v4872_v7, 0.0  ;;  %v5065_v37 = vpop.f32.mrb[236].mxu1  ;;  %v4874_v2 = vpop.f32.mrb[237].mxu0 }
 0x568   : > { %v5480_v58 = vmax.f32 %v5065_v37, 0.0  ;;  %v5479_v4 = vmax.f32 %v4874_v2, 0.0  ;;  %v5067_v32 = vpop.f32.mrb[237].mxu1  ;;  %12599 = vmatpush1.bf16.msra.mxu0 %v15410_v9  ;;  %v4876_v34 = vpop.f32.mrb[238].mxu0  ;;  %v19104_v9 = vld [vmem:[%s16929_s7 + $0xfc8] sm:$0xff]  ;;  %v15443_v37 = vcombine.high %v19098_v16, %v19101_v35  ;;  %v3313_v16 = vrot.slane %v17879_v26, 4 }
 0x569   : > { %v6091_v38 = vadd.f32 %v6090_v11, %v5478_v40  ;;  %v5481_v50 = vmax.f32 %v5067_v32, 0.0  ;;  %12927 = vmatpush1.bf16.msra.mxu1 %v15412_v22  ;;  %v5494_v21 = vmax.f32 %v4876_v34, 0.0  ;;  %v5069_v41 = vpop.f32.mrb[238].mxu1  ;;  %v4878_v30 = vpop.f32.mrb[239].mxu0  ;;  %12600 = vmatprep.subr.bf16.mxu0 %v15419_v14  ;;  %v15428_v11 = vcombine.low %v19088_v57, %v6760_v6 }
 0x56a   : > { %v6165_v60 = vadd.f32 %v6164_v0, %v5480_v58  ;;  %v6128_v48 = vadd.f32 %v6127_v52, %v5479_v4  ;;  %v5496_v56 = vmax.f32 %v5069_v41, 0.0  ;;  %v5495_v12 = vmax.f32 %v4878_v30, 0.0  ;;  %v5071_v44 = vpop.f32.mrb[239].mxu1  ;;  %12928 = vmatprep.subr.bf16.mxu1 %v15421_v17  ;;  %v19114_v41 = vld [vmem:[%s16929_s7 + $0x1000] sm:$0xff] }
 0x56b   : > { %v6202_v8 = vadd.f32 %v6201_v62, %v5481_v50  ;;  %v6092_v49 = vadd.f32 %v6091_v38, %v5494_v21  ;;  %v5497_v43 = vmax.f32 %v5071_v44, 0.0  ;;  %v15437_v52 = vcombine.high %v6764_v25, %v6768_v27  ;;  %v19107_v62 = vld [vmem:[%s16929_s7 + $0xfe8] sm:$0xff]  ;;  %v19117_v30 = vld [vmem:[%s16929_s7 + $0x1020] sm:$0xff] }
 0x56c   : > { %v6166_v28 = vadd.f32 %v6165_v60, %v5496_v56  ;;  %v6129_v29 = vadd.f32 %v6128_v48, %v5495_v12  ;;  %12601 = vmatpush1.bf16.msra.mxu0 %v15418_v20  ;;  %v15436_v6 = vcombine.low %v6764_v25, %v6768_v27  ;;  %v15445_v34 = vcombine.high %v19104_v9, %v19107_v62  ;;  %v19120_v56 = vld [vmem:[%s16929_s7 + $0x1008] sm:$0xff]  ;;  %v19130_v25 = vld [vmem:[%s16929_s7 + $0x1040] sm:$0xff] }
 0x56d   : > { %v6203_v42 = vadd.f32 %v6202_v8, %v5497_v43  ;;  %12929 = vmatpush1.bf16.msra.mxu1 %v15420_v36  ;;  %12602 = vmatprep.subr.bf16.mxu0 %v15427_v15  ;;  %v6784_v12 = vld [vmem:[%s16929_s7 + $0x1028] sm:$0xff]  ;;  %v15451_v43 = vcombine.high %v19114_v41, %v19117_v30  ;;  %v19133_v27 = vld [vmem:[%s16929_s7 + $0x1060] sm:$0xff]  ;;  %v19147_v35 = vpack.c.bf16 %v18417_v18, %v18417_v18 }
 0x56e   : > { %v4882_v0 = vpop.f32.mrb[240].mxu0  ;;  %12930 = vmatprep.subr.bf16.mxu1 %v15429_v23 }
 0x56f   : > { %v5510_v22 = vmax.f32 %v4882_v0, 0.0  ;;  %v5075_v14 = vpop.f32.mrb[240].mxu1  ;;  %v4884_v51 = vpop.f32.mrb[241].mxu0 }
 0x570   : > { %v5512_v7 = vmax.f32 %v5075_v14, 0.0  ;;  %v5511_v17 = vmax.f32 %v4884_v51, 0.0  ;;  %v5077_v40 = vpop.f32.mrb[241].mxu1  ;;  %12603 = vmatpush1.bf16.msra.mxu0 %v15426_v53  ;;  %v4886_v57 = vpop.f32.mrb[242].mxu0 }
 0x571   : > { %v6093_v2 = vadd.f32 %v6092_v49, %v5510_v22  ;;  %v5513_v20 = vmax.f32 %v5077_v40, 0.0  ;;  %12931 = vmatpush1.bf16.msra.mxu1 %v15428_v11  ;;  %v5526_v58 = vmax.f32 %v4886_v57, 0.0  ;;  %v5079_v4 = vpop.f32.mrb[242].mxu1  ;;  %v4888_v32 = vpop.f32.mrb[243].mxu0  ;;  %12604 = vmatprep.subr.bf16.mxu0 %v15435_v39  ;;  %v15444_v49 = vcombine.low %v19104_v9, %v19107_v62  ;;  %v19139_v11 = vld [vmem:[%s16929_s7 + $0x1048] sm:$0xff] }
 0x572   : > { %v6167_v36 = vadd.f32 %v6166_v28, %v5512_v7  ;;  %v6130_v15 = vadd.f32 %v6129_v29, %v5511_v17  ;;  %v5528_v38 = vmax.f32 %v5079_v4, 0.0  ;;  %v5527_v50 = vmax.f32 %v4888_v32, 0.0  ;;  %v5081_v21 = vpop.f32.mrb[243].mxu1  ;;  %12932 = vmatprep.subr.bf16.mxu1 %v15437_v52  ;;  %v19142_v39 = vld [vmem:[%s16929_s7 + $0x1068] sm:$0xff] }
 0x573   : > { %v6204_v23 = vadd.f32 %v6203_v42, %v5513_v20  ;;  %v6094_v60 = vadd.f32 %v6093_v2, %v5526_v58  ;;  %v5529_v48 = vmax.f32 %v5081_v21, 0.0  ;;  %v3276_v28 = vrot.slane %v17873_v13, 4 }
 0x574   : > { %v6168_v44 = vadd.f32 %v6167_v36, %v5528_v38  ;;  %v6131_v45 = vadd.f32 %v6130_v15, %v5527_v50  ;;  %12605 = vmatpush1.bf16.msra.mxu0 %v15434_v55  ;;  %v3350_v29 = vrot.slane %v17877_v61, 4  ;;  %v15453_v42 = vcombine.high %v19120_v56, %v6784_v12  ;;  %v19157_v36 = vld [vmem:[%s16929_s7 + $0x1080] sm:$0xff] }
 0x575   : > { %v6205_v8 = vadd.f32 %v6204_v23, %v5529_v48  ;;  %12933 = vmatpush1.bf16.msra.mxu1 %v15436_v6  ;;  %12606 = vmatprep.subr.bf16.mxu0 %v15443_v37  ;;  %v15450_v62 = vcombine.low %v19114_v41, %v19117_v30  ;;  %v15452_v7 = vcombine.low %v19120_v56, %v6784_v12  ;;  %v19160_v15 = vld [vmem:[%s16929_s7 + $0x10a0] sm:$0xff]  ;;  %v19168_v30 = vld [vmem:[%s16929_s7 + $0x1088] sm:$0xff] }
 0x576   : > { %v4892_v53 = vpop.f32.mrb[244].mxu0  ;;  %12934 = vmatprep.subr.bf16.mxu1 %v15445_v34  ;;  %v15459_v17 = vcombine.high %v19130_v25, %v19133_v27  ;;  %v15461_v2 = vcombine.high %v19139_v11, %v19142_v39  ;;  %v19165_v41 = vpack.c.bf16 %v18888_v31, %v18888_v31  ;;  %v6800_v23 = vld [vmem:[%s16929_s7 + $0x10a8] sm:$0xff]  ;;  %v15458_v56 = vcombine.low %v19130_v25, %v19133_v27 }
 0x577   : > { %v5542_v0 = vmax.f32 %v4892_v53, 0.0  ;;  %v5085_v52 = vpop.f32.mrb[244].mxu1  ;;  %v4894_v9 = vpop.f32.mrb[245].mxu0  ;;  %v15460_v31 = vcombine.low %v19139_v11, %v19142_v39  ;;  %v15469_v25 = vcombine.high %v19168_v30, %v6800_v23  ;;  %v19190_v27 = vld [vmem:[%s16929_s7 + $0x10c8] sm:$0xff]  ;;  %v19199_v11 = vadd.f32 %v3313_v16, %v17879_v26 }
 0x578   : > { %v5544_v22 = vmax.f32 %v5085_v52, 0.0  ;;  %v5543_v14 = vmax.f32 %v4894_v9, 0.0  ;;  %v5087_v51 = vpop.f32.mrb[245].mxu1  ;;  %12607 = vmatpush1.bf16.msra.mxu0 %v15442_v1  ;;  %v4896_v55 = vpop.f32.mrb[246].mxu0  ;;  %v19183_v1 = vld [vmem:[%s16929_s7 + $0x10e0] sm:$0xff]  ;;  %v19193_v53 = vld [vmem:[%s16929_s7 + $0x10e8] sm:$0xff] }
 0x579   : > { %v6095_v18 = vadd.f32 %v6094_v60, %v5542_v0  ;;  %v5545_v40 = vmax.f32 %v5087_v51, 0.0  ;;  %12935 = vmatpush1.bf16.msra.mxu1 %v15444_v49  ;;  %v5558_v57 = vmax.f32 %v4896_v55, 0.0  ;;  %v5089_v6 = vpop.f32.mrb[246].mxu1  ;;  %v4898_v37 = vpop.f32.mrb[247].mxu0  ;;  %12617 = vmatprep.subr.bf16.mxu0 %v15451_v43  ;;  %v3387_v49 = vrot.slane %v17884_v47, 4 }
 0x57a   : > { %v6169_v20 = vadd.f32 %v6168_v44, %v5544_v22  ;;  %v6132_v58 = vadd.f32 %v6131_v45, %v5543_v14  ;;  %v5560_v4 = vmax.f32 %v5089_v6, 0.0  ;;  %v5559_v32 = vmax.f32 %v4898_v37, 0.0  ;;  %v5091_v34 = vpop.f32.mrb[247].mxu1  ;;  %12945 = vmatprep.subr.bf16.mxu1 %v15453_v42  ;;  %v19180_v45 = vld [vmem:[%s16929_s7 + $0x10c0] sm:$0xff] }
 0x57b   : > { %v6206_v38 = vadd.f32 %v6205_v8, %v5545_v40  ;;  %v6096_v50 = vadd.f32 %v6095_v18, %v5558_v57  ;;  %v5561_v21 = vmax.f32 %v5091_v34, 0.0  ;;  %12609 = vmatmul.mubr.bf16.vlgmr.msra.gmra.mrb[0].mxu0 %v19147_v35  ;;  %v15467_v44 = vcombine.high %v19157_v36, %v19160_v15  ;;  %v19209_v37 = vld [vmem:[%s16929_s7 + $0x1100] sm:$0xff]  ;;  %v6812_v34 = vld [vmem:[%s16929_s7 + $0x1108] sm:$0xff] }
 0x57c   : > { %v6170_v60 = vadd.f32 %v6169_v20, %v5560_v4  ;;  %v6133_v48 = vadd.f32 %v6132_v58, %v5559_v32  ;;  %12937 = vmatmul.mubr.bf16.vlgmr.msra.gmra.mrb[0].mxu1 %v19147_v35  ;;  %12618 = vmatpush1.bf16.msra.mxu0 %v15450_v62  ;;  %v3277_v8 = vadd.f32 %v3276_v28, %v17873_v13 }
 0x57d   : > { %v6207_v12 = vadd.f32 %v6206_v38, %v5561_v21  ;;  %12649 = vmatprep.mubr.bf16.mxu0 %v19165_v41  ;;  %12946 = vmatpush1.bf16.msra.mxu1 %v15452_v7  ;;  %v19196_v42 = vadd.f32 %v3350_v29, %v17877_v61  ;;  %v15466_v0 = vcombine.low %v19157_v36, %v19160_v15  ;;  %v6816_v36 = vld [vmem:[%s16929_s7 + $0x1128] sm:$0xff] }
 0x57e   : > { %12977 = vmatprep.mubr.bf16.mxu1 %v19165_v41  ;;  %v4902_v43 = vpop.f32.mrb[248].mxu0  ;;  %12619 = vmatprep.subr.bf16.mxu0 %v15459_v17  ;;  %v15468_v14 = vcombine.low %v19168_v30, %v6800_v23  ;;  %v15475_v61 = vcombine.high %v19180_v45, %v19183_v1  ;;  %v15477_v7 = vcombine.high %v19190_v27, %v19193_v53  ;;  %v3278_v20 = vrot.slane %v3277_v8, 2 }
 0x57f   : > { %v5574_v39 = vmax.f32 %v4902_v43, 0.0  ;;  %v5095_v13 = vpop.f32.mrb[248].mxu1  ;;  %12947 = vmatprep.subr.bf16.mxu1 %v15461_v2  ;;  %v4904_v28 = vpop.f32.mrb[249].mxu0  ;;  %v19212_v2 = vld [vmem:[%s16929_s7 + $0x1120] sm:$0xff]  ;;  %v15476_v30 = vcombine.low %v19190_v27, %v19193_v53 }
 0x580   : > { %v5576_v52 = vmax.f32 %v5095_v13, 0.0  ;;  %v5575_v9 = vmax.f32 %v4904_v28, 0.0  ;;  %v5097_v62 = vpop.f32.mrb[249].mxu1  ;;  %12620 = vmatpush1.bf16.msra.mxu0 %v15458_v56  ;;  %v4906_v22 = vpop.f32.mrb[250].mxu0  ;;  %v15483_v23 = vcombine.high %v19209_v37, %v19212_v2  ;;  %v3352_v56 = vrot.slane %v19196_v42, 2 }
 0x581   : > { %v6097_v26 = vadd.f32 %v6096_v50, %v5574_v39  ;;  %v5577_v29 = vmax.f32 %v5097_v62, 0.0  ;;  %12948 = vmatpush1.bf16.msra.mxu1 %v15460_v31  ;;  %v5590_v16 = vmax.f32 %v4906_v22, 0.0  ;;  %v5099_v51 = vpop.f32.mrb[250].mxu1  ;;  %v4908_v55 = vpop.f32.mrb[251].mxu0  ;;  %12621 = vmatprep.subr.bf16.mxu0 %v15467_v44  ;;  %v15474_v50 = vcombine.low %v19180_v45, %v19183_v1  ;;  %v19231_v45 = vld [vmem:[%s16929_s7 + $0x1148] sm:$0xff] }
 0x582   : > { %v6171_v17 = vadd.f32 %v6170_v60, %v5576_v52  ;;  %v6134_v18 = vadd.f32 %v6133_v48, %v5575_v9  ;;  %v5592_v40 = vmax.f32 %v5099_v51, 0.0  ;;  %v5591_v57 = vmax.f32 %v4908_v55, 0.0  ;;  %v5101_v6 = vpop.f32.mrb[251].mxu1  ;;  %12949 = vmatprep.subr.bf16.mxu1 %v15469_v25  ;;  %v19223_v60 = vld [vmem:[%s16929_s7 + $0x1140] sm:$0xff]  ;;  %v19234_v1 = vld [vmem:[%s16929_s7 + $0x1168] sm:$0xff] }
 0x583   : > { %v6208_v58 = vadd.f32 %v6207_v12, %v5577_v29  ;;  %v6098_v4 = vadd.f32 %v6097_v26, %v5590_v16  ;;  %v5593_v32 = vmax.f32 %v5101_v6, 0.0  ;;  %v19226_v48 = vld [vmem:[%s16929_s7 + $0x1160] sm:$0xff]  ;;  %v3388_v12 = vadd.f32 %v3387_v49, %v17884_v47 }
 0x584   : > { %v6172_v15 = vadd.f32 %v6171_v17, %v5592_v40  ;;  %v6135_v38 = vadd.f32 %v6134_v18, %v5591_v57  ;;  %12622 = vmatpush1.bf16.msra.mxu0 %v15466_v0  ;;  %v15485_v44 = vcombine.high %v6812_v34, %v6816_v36  ;;  %v19236_v43 = vadd.f32 %v3278_v20, %v3277_v8  ;;  %v6827_v17 = vld [vmem:[%s16929_s7 + $0x1180] sm:$0xff]  ;;  %v6832_v20 = vld [vmem:[%s16929_s7 + $0x11a8] sm:$0xff] }
 0x585   : > { %v6209_v21 = vadd.f32 %v6208_v58, %v5593_v32  ;;  %12950 = vmatpush1.bf16.msra.mxu1 %v15468_v14  ;;  %12623 = vmatprep.subr.bf16.mxu0 %v15475_v61  ;;  %v3315_v25 = vrot.slane %v19199_v11, 2  ;;  %v15482_v13 = vcombine.low %v19209_v37, %v19212_v2  ;;  %v15484_v52 = vcombine.low %v6812_v34, %v6816_v36  ;;  %v6831_v18 = vld [vmem:[%s16929_s7 + $0x11a0] sm:$0xff]  ;;  %v6828_v2 = vld [vmem:[%s16929_s7 + $0x1188] sm:$0xff] }
 0x586   : > { %v4912_v31 = vpop.f32.mrb[252].mxu0  ;;  %12951 = vmatprep.subr.bf16.mxu1 %v15477_v7  ;;  %v15491_v9 = vcombine.high %v19223_v60, %v19226_v48  ;;  %v15493_v26 = vcombine.high %v19231_v45, %v19234_v1  ;;  %v3389_v40 = vrot.slane %v3388_v12, 2  ;;  %v3353_v58 = vadd.f32 %v3352_v56, %v19196_v42  ;;  %v6835_v56 = vld [vmem:[%s16929_s7 + $0x11c0] sm:$0xff] }
 0x587   : > { %v5606_v27 = vmax.f32 %v4912_v31, 0.0  ;;  %v5105_v53 = vpop.f32.mrb[252].mxu1  ;;  %v4914_v39 = vpop.f32.mrb[253].mxu0  ;;  %v15490_v34 = vcombine.low %v19223_v60, %v19226_v48  ;;  %v3316_v42 = vadd.f32 %v3315_v25, %v19199_v11  ;;  %v6839_v31 = vld [vmem:[%s16929_s7 + $0x11e0] sm:$0xff]  ;;  %v3280_v60 = vrot.slane %v19236_v43, 1 }
 0x588   : > { %v5608_v28 = vmax.f32 %v5105_v53, 0.0  ;;  %v5607_v0 = vmax.f32 %v4914_v39, 0.0  ;;  %v5107_v47 = vpop.f32.mrb[253].mxu1  ;;  %12624 = vmatpush1.bf16.msra.mxu0 %v15474_v50  ;;  %v4916_v49 = vpop.f32.mrb[254].mxu0  ;;  %v15499_v50 = vcombine.high %v6827_v17, %v6831_v18  ;;  %v3390_v48 = vadd.f32 %v3389_v40, %v3388_v12  ;;  %v6836_v53 = vld [vmem:[%s16929_s7 + $0x11c8] sm:$0xff] }
 0x589   : > { %v6099_v8 = vadd.f32 %v6098_v4, %v5606_v27  ;;  %v5609_v62 = vmax.f32 %v5107_v47, 0.0  ;;  %12952 = vmatpush1.bf16.msra.mxu1 %v15476_v30  ;;  %v5622_v22 = vmax.f32 %v4916_v49, 0.0  ;;  %v5109_v14 = vpop.f32.mrb[254].mxu1  ;;  %v4918_v61 = vpop.f32.mrb[255].mxu0  ;;  %12625 = vmatprep.subr.bf16.mxu0 %v15483_v23  ;;  %v15501_v23 = vcombine.high %v6828_v2, %v6832_v20  ;;  %v6840_v39 = vld [vmem:[%s16929_s7 + $0x11e8] sm:$0xff] }
 0x58a   : > { %v6173_v29 = vadd.f32 %v6172_v15, %v5608_v28  ;;  %v6136_v16 = vadd.f32 %v6135_v38, %v5607_v0  ;;  %v5624_v51 = vmax.f32 %v5109_v14, 0.0  ;;  %v5623_v55 = vmax.f32 %v4918_v61, 0.0  ;;  %v5111_v7 = vpop.f32.mrb[255].mxu1  ;;  %12953 = vmatprep.subr.bf16.mxu1 %v15485_v44 }
 0x58b   : > { %v6210_v57 = vadd.f32 %v6209_v21, %v5609_v62  ;;  %v6100_v6 = vadd.f32 %v6099_v8, %v5622_v22  ;;  %v5625_v37 = vmax.f32 %v5111_v7, 0.0  ;;  %v15492_v38 = vcombine.low %v19231_v45, %v19234_v1  ;;  %v6843_v8 = vld [vmem:[%s16929_s7 + $0x1200] sm:$0xff] }
 0x58c   : > { %v6174_v4 = vadd.f32 %v6173_v29, %v5624_v51  ;;  %v6137_v32 = vadd.f32 %v6136_v16, %v5623_v55  ;;  %12626 = vmatpush1.bf16.msra.mxu0 %v15482_v13  ;;  %v3354_v13 = vrot.slane %v3353_v58, 1  ;;  %v15498_v11 = vcombine.low %v6827_v17, %v6831_v18  ;;  %v6847_v62 = vld [vmem:[%s16929_s7 + $0x1220] sm:$0xff]  ;;  %v6844_v29 = vld [vmem:[%s16929_s7 + $0x1208] sm:$0xff] }
 0x58d   : > { %v6101_v36 = vrot.slane %v6100_v6, 4  ;;  %v6211_v15 = vadd.f32 %v6210_v57, %v5625_v37  ;;  %12954 = vmatpush1.bf16.msra.mxu1 %v15484_v52  ;;  %12627 = vmatprep.subr.bf16.mxu0 %v15491_v9  ;;  %v15500_v0 = vcombine.low %v6828_v2, %v6832_v20  ;;  %v15507_v47 = vcombine.high %v6835_v56, %v6839_v31  ;;  %v6848_v16 = vld [vmem:[%s16929_s7 + $0x1228] sm:$0xff] }
 0x58e   : > { %v6175_v21 = vrot.slane %v6174_v4, 4  ;;  %v6138_v30 = vrot.slane %v6137_v32, 4  ;;  %12955 = vmatprep.subr.bf16.mxu1 %v15493_v26  ;;  %v3317_v12 = vrot.slane %v3316_v42, 1  ;;  %v15509_v9 = vcombine.high %v6836_v53, %v6840_v39 }
 0x58f   : > { %v6102_v44 = vadd.f32 %v6101_v36, %v6100_v6  ;;  %v6212_v27 = vrot.slane %v6211_v15, 4  ;;  %v3281_v22 = vadd.f32 %v3280_v60, %v19236_v43  ;;  %v3391_v14 = vrot.slane %v3390_v48, 1 }
 0x590   : > { %v6176_v28 = vadd.f32 %v6175_v21, %v6174_v4  ;;  %v6139_v45 = vadd.f32 %v6138_v30, %v6137_v32  ;;  %12628 = vmatpush1.bf16.msra.mxu0 %v15490_v34  ;;  %v3355_v51 = vadd.f32 %v3354_v13, %v3353_v58  ;;  %v15506_v17 = vcombine.low %v6835_v56, %v6839_v31  ;;  %v6851_v58 = vld [vmem:[%s16929_s7 + $0x1240] sm:$0xff] }
 0x591   : > { %v6103_v1 = vrot.slane %v6102_v44, 2  ;;  %v6213_v25 = vadd.f32 %v6212_v27, %v6211_v15  ;;  %12956 = vmatpush1.bf16.msra.mxu1 %v15492_v38  ;;  %12629 = vmatprep.subr.bf16.mxu0 %v15499_v50  ;;  %v15508_v57 = vcombine.low %v6836_v53, %v6840_v39  ;;  %v15515_v43 = vcombine.high %v6843_v8, %v6847_v62  ;;  %v6855_v4 = vld [vmem:[%s16929_s7 + $0x1260] sm:$0xff]  ;;  %v6852_v38 = vld [vmem:[%s16929_s7 + $0x1248] sm:$0xff] }
 0x592   : > { %v6177_v49 = vrot.slane %v6176_v28, 2  ;;  %v6140_v52 = vrot.slane %v6139_v45, 2  ;;  %12957 = vmatprep.subr.bf16.mxu1 %v15501_v23  ;;  %v3318_v6 = vadd.f32 %v3317_v12, %v3316_v42  ;;  %v15517_v20 = vcombine.high %v6844_v29, %v6848_v16  ;;  %v6856_v50 = vld [vmem:[%s16929_s7 + $0x1268] sm:$0xff]  ;;  %v6859_v13 = vld [vmem:[%s16929_s7 + $0x1280] sm:$0xff] }
 0x593   : > { %v6104_v61 = vadd.f32 %v6103_v1, %v6102_v44  ;;  %v6214_v26 = vrot.slane %v6213_v25, 2  ;;  %v3406_v32 = vmul.f32 0.00390625, %v3281_v22  ;;  %v3392_v34 = vadd.f32 %v3391_v14, %v3390_v48  ;;  %v6867_v22 = vld [vmem:[%s16929_s7 + $0x12c0] sm:$0xff] }
 0x594   : > { %v6178_v55 = vadd.f32 %v6177_v49, %v6176_v28  ;;  %v6141_v7 = vadd.f32 %v6140_v52, %v6139_v45  ;;  %12630 = vmatpush1.bf16.msra.mxu0 %v15498_v11  ;;  %v3408_v21 = vmul.f32 0.00390625, %v3355_v51  ;;  %v15514_v56 = vcombine.low %v6843_v8, %v6847_v62  ;;  %v6863_v28 = vld [vmem:[%s16929_s7 + $0x12a0] sm:$0xff] }
 0x595   : > { %v6105_v18 = vrot.slane %v6104_v61, 1  ;;  %v6215_v40 = vadd.f32 %v6214_v26, %v6213_v25  ;;  %12958 = vmatpush1.bf16.msra.mxu1 %v15500_v0  ;;  %12631 = vmatprep.subr.bf16.mxu0 %v15507_v47  ;;  %v15516_v60 = vcombine.low %v6844_v29, %v6848_v16  ;;  %v15523_v44 = vcombine.high %v6851_v58, %v6855_v4  ;;  %v6860_v25 = vld [vmem:[%s16929_s7 + $0x1288] sm:$0xff]  ;;  %v6871_v14 = vld [vmem:[%s16929_s7 + $0x12e0] sm:$0xff] }
 0x596   : > { %v6179_v37 = vrot.slane %v6178_v55, 1  ;;  %v6142_v2 = vrot.slane %v6141_v7, 1  ;;  %12959 = vmatprep.subr.bf16.mxu1 %v15509_v9  ;;  %v3407_v48 = vmul.f32 0.00390625, %v3318_v6  ;;  %v15525_v39 = vcombine.high %v6852_v38, %v6856_v50  ;;  %v6864_v0 = vld [vmem:[%s16929_s7 + $0x12a8] sm:$0xff] }
 0x597   : > { %v6106_v36 = vadd.f32 %v6105_v18, %v6104_v61  ;;  %v6216_v15 = vrot.slane %v6215_v40, 1  ;;  %v3409_v45 = vmul.f32 0.00390625, %v3392_v34  ;;  %v15522_v12 = vcombine.low %v6851_v58, %v6855_v4  ;;  %v6868_v61 = vld [vmem:[%s16929_s7 + $0x12c8] sm:$0xff] }
 0x598   : > { %v6180_v30 = vadd.f32 %v6179_v37, %v6178_v55  ;;  %v6143_v23 = vadd.f32 %v6142_v2, %v6141_v7  ;;  %12632 = vmatpush1.bf16.msra.mxu0 %v15506_v17  ;;  %v15524_v52 = vcombine.low %v6852_v38, %v6856_v50  ;;  %v15531_v9 = vcombine.high %v6859_v13, %v6863_v28  ;;  %v6872_v26 = vld [vmem:[%s16929_s7 + $0x12e8] sm:$0xff]  ;;  %v6875_v7 = vld [vmem:[%s16929_s7 + $0x1300] sm:$0xff] }
 0x599   : > { %v6230_v42 = vmul.f32 0.00390625, %v6106_v36  ;;  %v6217_v31 = vadd.f32 %v6216_v15, %v6215_v40  ;;  %12960 = vmatpush1.bf16.msra.mxu1 %v15508_v57  ;;  %12633 = vmatprep.subr.bf16.mxu0 %v15515_v43  ;;  %v15533_v62 = vcombine.high %v6860_v25, %v6864_v0  ;;  %v15530_v29 = vcombine.low %v6859_v13, %v6863_v28  ;;  %v6879_v17 = vld [vmem:[%s16929_s7 + $0x1320] sm:$0xff]  ;;  %v6876_v18 = vld [vmem:[%s16929_s7 + $0x1308] sm:$0xff] }
 0x59a   : > { %v6232_v27 = vmul.f32 0.00390625, %v6180_v30  ;;  %v6231_v53 = vmul.f32 0.00390625, %v6143_v23  ;;  %12961 = vmatprep.subr.bf16.mxu1 %v15517_v20  ;;  %v15532_v16 = vcombine.low %v6860_v25, %v6864_v0  ;;  %v15539_v51 = vcombine.high %v6867_v22, %v6871_v14  ;;  %v6880_v40 = vld [vmem:[%s16929_s7 + $0x1328] sm:$0xff]  ;;  %v6883_v2 = vld [vmem:[%s16929_s7 + $0x1340] sm:$0xff] }
 0x59b   : > { %v19272_v11 = vsel %vm6234_vm1, %v3406_v32, %v6230_v42  ;;  %v6233_v1 = vmul.f32 0.00390625, %v6217_v31  ;;  %v15541_v55 = vcombine.high %v6868_v61, %v6872_v26  ;;  %v15538_v57 = vcombine.low %v6867_v22, %v6871_v14  ;;  %v6887_v20 = vld [vmem:[%s16929_s7 + $0x1360] sm:$0xff]  ;;  %v6884_v58 = vld [vmem:[%s16929_s7 + $0x1348] sm:$0xff] }
 0x59c   : > { %v19277_v47 = vsel %vm6234_vm1, %v3408_v21, %v6232_v27  ;;  %12634 = vmatpush1.bf16.msra.mxu0 %v15514_v56  ;;  %v19280_v49 = vsel %vm6234_vm1, %v3407_v48, %v6231_v53  ;;  %v15540_v43 = vcombine.low %v6868_v61, %v6872_v26  ;;  %v15547_v6 = vcombine.high %v6875_v7, %v6879_v17  ;;  %v6888_v4 = vld [vmem:[%s16929_s7 + $0x1368] sm:$0xff]  ;;  %v6891_v38 = vld [vmem:[%s16929_s7 + $0x1380] sm:$0xff] }
 0x59d   : > { %12962 = vmatpush1.bf16.msra.mxu1 %v15516_v60  ;;  %12635 = vmatprep.subr.bf16.mxu0 %v15523_v44  ;;  %v19283_v8 = vsel %vm6234_vm1, %v3409_v45, %v6233_v1  ;;  %v15549_v37 = vcombine.high %v6876_v18, %v6880_v40  ;;  %v15546_v32 = vcombine.low %v6875_v7, %v6879_v17  ;;  %v6895_v50 = vld [vmem:[%s16929_s7 + $0x13a0] sm:$0xff]  ;;  %v6892_v21 = vld [vmem:[%s16929_s7 + $0x1388] sm:$0xff] }
 0x59e   : > { %12963 = vmatprep.subr.bf16.mxu1 %v15525_v39  ;;  %v15548_v34 = vcombine.low %v6876_v18, %v6880_v40  ;;  %v15555_v36 = vcombine.high %v6883_v2, %v6887_v20  ;;  %v15557_v15 = vcombine.high %v6884_v58, %v6888_v4  ;;  %v6896_v30 = vld [vmem:[%s16929_s7 + $0x13a8] sm:$0xff]  ;;  %v15554_v23 = vcombine.low %v6883_v2, %v6887_v20  ;;  %v6899_v60 = vld [vmem:[%s16929_s7 + $0x13c0] sm:$0xff] }
 0x59f   : > { %v15556_v56 = vcombine.low %v6884_v58, %v6888_v4  ;;  %v15563_v42 = vcombine.high %v6891_v38, %v6895_v50  ;;  %v15565_v31 = vcombine.high %v6892_v21, %v6896_v30  ;;  %v6903_v44 = vld [vmem:[%s16929_s7 + $0x13e0] sm:$0xff]  ;;  %v6900_v48 = vld [vmem:[%s16929_s7 + $0x13c8] sm:$0xff]  ;;  %v15562_v53 = vcombine.low %v6891_v38, %v6895_v50 }
 0x5a0   : > { %12636 = vmatpush1.bf16.msra.mxu0 %v15522_v12  ;;  %v6904_v27 = vld [vmem:[%s16929_s7 + $0x13e8] sm:$0xff]  ;;  %v15564_v39 = vcombine.low %v6892_v21, %v6896_v30  ;;  %v15571_v13 = vcombine.high %v6899_v60, %v6903_v44  ;;  %v6907_v45 = vld [vmem:[%s16929_s7 + $0x1400] sm:$0xff]  ;;  %v15570_v12 = vcombine.low %v6899_v60, %v6903_v44  ;;  %v19322_v18 = vpack.c.bf16 %v18999_v10, %v18999_v10 }
 0x5a1   : > { %12964 = vmatpush1.bf16.msra.mxu1 %v15524_v52  ;;  %12637 = vmatprep.subr.bf16.mxu0 %v15531_v9  ;;  %v15573_v28 = vcombine.high %v6900_v48, %v6904_v27  ;;  %v6911_v1 = vld [vmem:[%s16929_s7 + $0x1420] sm:$0xff]  ;;  %v6908_v25 = vld [vmem:[%s16929_s7 + $0x1408] sm:$0xff]  ;;  %v15572_v52 = vcombine.low %v6900_v48, %v6904_v27 }
 0x5a2   : > { %12965 = vmatprep.subr.bf16.mxu1 %v15533_v62  ;;  %v6912_v0 = vld [vmem:[%s16929_s7 + $0x1428] sm:$0xff]  ;;  %v15579_v9 = vcombine.high %v6907_v45, %v6911_v1  ;;  %v6915_v22 = vld [vmem:[%s16929_s7 + $0x1440] sm:$0xff]  ;;  %v15578_v61 = vcombine.low %v6907_v45, %v6911_v1 }
 0x5a3   : > { %v15581_v62 = vcombine.high %v6908_v25, %v6912_v0  ;;  %v6919_v14 = vld [vmem:[%s16929_s7 + $0x1460] sm:$0xff]  ;;  %v6916_v26 = vld [vmem:[%s16929_s7 + $0x1448] sm:$0xff] }
 0x5a4   : > { %12638 = vmatpush1.bf16.msra.mxu0 %v15530_v29  ;;  %v6920_v29 = vld [vmem:[%s16929_s7 + $0x1468] sm:$0xff]  ;;  %v6923_v7 = vld [vmem:[%s16929_s7 + $0x1480] sm:$0xff] }
 0x5a5   : > { %12966 = vmatpush1.bf16.msra.mxu1 %v15532_v16  ;;  %12639 = vmatprep.subr.bf16.mxu0 %v15539_v51  ;;  %v19315_v16 = vpack.c.bf16 %v18863_v5, %v18863_v5  ;;  %v15580_v51 = vcombine.low %v6908_v25, %v6912_v0  ;;  %v6927_v17 = vld [vmem:[%s16929_s7 + $0x14a0] sm:$0xff]  ;;  %v15589_v40 = vcombine.high %v6916_v26, %v6920_v29  ;;  %v6928_v5 = vld [vmem:[%s16929_s7 + $0x14a8] sm:$0xff] }
 0x5a6   : > { %12967 = vmatprep.subr.bf16.mxu1 %v15541_v55  ;;  %v15587_v55 = vcombine.high %v6915_v22, %v6919_v14  ;;  %v6931_v2 = vld [vmem:[%s16929_s7 + $0x14c0] sm:$0xff]  ;;  %v6932_v58 = vld [vmem:[%s16929_s7 + $0x14c8] sm:$0xff] }
 0x5a7   : > { %v6935_v20 = vld [vmem:[%s16929_s7 + $0x14e0] sm:$0xff]  ;;  %v6936_v4 = vld [vmem:[%s16929_s7 + $0x14e8] sm:$0xff] }
 0x5a8   : > { %12640 = vmatpush1.bf16.msra.mxu0 %v15538_v57  ;;  %v6924_v57 = vld [vmem:[%s16929_s7 + $0x1488] sm:$0xff]  ;;  %v6939_v38 = vld [vmem:[%s16929_s7 + $0x1500] sm:$0xff] }
 0x5a9   : > { %12968 = vmatpush1.bf16.msra.mxu1 %v15540_v43  ;;  %12641 = vmatprep.subr.bf16.mxu0 %v15547_v6  ;;  %v15586_v43 = vcombine.low %v6915_v22, %v6919_v14  ;;  %v15588_v6 = vcombine.low %v6916_v26, %v6920_v29  ;;  %v15597_v10 = vcombine.high %v6924_v57, %v6928_v5  ;;  %v6943_v50 = vld [vmem:[%s16929_s7 + $0x1520] sm:$0xff]  ;;  %v6940_v21 = vld [vmem:[%s16929_s7 + $0x1508] sm:$0xff] }
 0x5aa   : > { %12969 = vmatprep.subr.bf16.mxu1 %v15549_v37  ;;  %v15595_v37 = vcombine.high %v6923_v7, %v6927_v17  ;;  %v6944_v30 = vld [vmem:[%s16929_s7 + $0x1528] sm:$0xff]  ;;  %v6947_v60 = vld [vmem:[%s16929_s7 + $0x1540] sm:$0xff] }
 0x5ab   : > { %v6951_v44 = vld [vmem:[%s16929_s7 + $0x1560] sm:$0xff]  ;;  %v6948_v48 = vld [vmem:[%s16929_s7 + $0x1548] sm:$0xff] }
 0x5ac   : > { %12642 = vmatpush1.bf16.msra.mxu0 %v15546_v32  ;;  %v15594_v32 = vcombine.low %v6923_v7, %v6927_v17  ;;  %v6952_v27 = vld [vmem:[%s16929_s7 + $0x1568] sm:$0xff]  ;;  %v6955_v45 = vld [vmem:[%s16929_s7 + $0x1580] sm:$0xff] }
 0x5ad   : > { %12970 = vmatpush1.bf16.msra.mxu1 %v15548_v34  ;;  %12643 = vmatprep.subr.bf16.mxu0 %v15555_v36  ;;  %v15596_v34 = vcombine.low %v6924_v57, %v6928_v5  ;;  %v15603_v36 = vcombine.high %v6931_v2, %v6935_v20  ;;  %v6959_v1 = vld [vmem:[%s16929_s7 + $0x15a0] sm:$0xff]  ;;  %v6956_v25 = vld [vmem:[%s16929_s7 + $0x1588] sm:$0xff] }
 0x5ae   : > { %12971 = vmatprep.subr.bf16.mxu1 %v15557_v15  ;;  %v15605_v15 = vcombine.high %v6932_v58, %v6936_v4  ;;  %v6960_v0 = vld [vmem:[%s16929_s7 + $0x15a8] sm:$0xff]  ;;  %v6963_v22 = vld [vmem:[%s16929_s7 + $0x15c0] sm:$0xff]  ;;  %v15626_v29 = vcombine.low %v6955_v45, %v6959_v1 }
 0x5af   : > { %v6967_v14 = vld [vmem:[%s16929_s7 + $0x15e0] sm:$0xff]  ;;  %v6968_v26 = vld [vmem:[%s16929_s7 + $0x15e8] sm:$0xff] }
 0x5b0   : > { %12644 = vmatpush1.bf16.msra.mxu0 %v15554_v23  ;;  %v15602_v23 = vcombine.low %v6931_v2, %v6935_v20  ;;  %v6971_v17 = vld [vmem:[%s16929_s7 + $0x1600] sm:$0xff]  ;;  %v6972_v57 = vld [vmem:[%s16929_s7 + $0x1608] sm:$0xff] }
 0x5b1   : > { %12972 = vmatpush1.bf16.msra.mxu1 %v15556_v56  ;;  %12645 = vmatprep.subr.bf16.mxu0 %v15563_v42  ;;  %v15604_v56 = vcombine.low %v6932_v58, %v6936_v4  ;;  %v15611_v42 = vcombine.high %v6939_v38, %v6943_v50  ;;  %v6976_v5 = vld [vmem:[%s16929_s7 + $0x1628] sm:$0xff]  ;;  %v6979_v2 = vld [vmem:[%s16929_s7 + $0x1640] sm:$0xff] }
 0x5b2   : > { %12973 = vmatprep.subr.bf16.mxu1 %v15565_v31  ;;  %v15613_v31 = vcombine.high %v6940_v21, %v6944_v30  ;;  %v6983_v20 = vld [vmem:[%s16929_s7 + $0x1660] sm:$0xff]  ;;  %v6980_v58 = vld [vmem:[%s16929_s7 + $0x1648] sm:$0xff] }
 0x5b3   : > { %v6984_v4 = vld [vmem:[%s16929_s7 + $0x1668] sm:$0xff] }
 0x5b4   : > { %12646 = vmatpush1.bf16.msra.mxu0 %v15562_v53  ;;  %v15610_v53 = vcombine.low %v6939_v38, %v6943_v50  ;;  %v6987_v38 = vld [vmem:[%s16929_s7 + $0x1680] sm:$0xff] }
 0x5b5   : > { %12974 = vmatpush1.bf16.msra.mxu1 %v15564_v39  ;;  %12647 = vmatprep.subr.bf16.mxu0 %v15571_v13  ;;  %v15612_v39 = vcombine.low %v6940_v21, %v6944_v30  ;;  %v15619_v13 = vcombine.high %v6947_v60, %v6951_v44  ;;  %v6991_v50 = vld [vmem:[%s16929_s7 + $0x16a0] sm:$0xff]  ;;  %v6988_v21 = vld [vmem:[%s16929_s7 + $0x1688] sm:$0xff] }
 0x5b6   : > { %12975 = vmatprep.subr.bf16.mxu1 %v15573_v28  ;;  %v15621_v28 = vcombine.high %v6948_v48, %v6952_v27  ;;  %v6992_v30 = vld [vmem:[%s16929_s7 + $0x16a8] sm:$0xff] }
 0x5b8   : > { %12648 = vmatpush1.bf16.msra.mxu0 %v15570_v12  ;;  %v15618_v12 = vcombine.low %v6947_v60, %v6951_v44  ;;  %v6995_v60 = vld [vmem:[%s16929_s7 + $0x16c0] sm:$0xff] }
 0x5b9   : > { %12976 = vmatpush1.bf16.msra.mxu1 %v15572_v52  ;;  %12658 = vmatprep.subr.bf16.mxu0 %v15579_v9  ;;  %v15620_v52 = vcombine.low %v6948_v48, %v6952_v27  ;;  %v15627_v9 = vcombine.high %v6955_v45, %v6959_v1  ;;  %v6999_v44 = vld [vmem:[%s16929_s7 + $0x16e0] sm:$0xff]  ;;  %v6996_v48 = vld [vmem:[%s16929_s7 + $0x16c8] sm:$0xff] }
 0x5ba   : > { %12986 = vmatprep.subr.bf16.mxu1 %v15581_v62  ;;  %v15629_v62 = vcombine.high %v6956_v25, %v6960_v0  ;;  %v7000_v27 = vld [vmem:[%s16929_s7 + $0x16e8] sm:$0xff]  ;;  %v7003_v45 = vld [vmem:[%s16929_s7 + $0x1700] sm:$0xff] }
 0x5bb   : > { %12650 = vmatmul.mubr.bf16.vlgmr.msra.gmra.mrb[0].mxu0 %v19315_v16  ;;  %v7007_v1 = vld [vmem:[%s16929_s7 + $0x1720] sm:$0xff] }
 0x5bc   : > { %12978 = vmatmul.mubr.bf16.vlgmr.msra.gmra.mrb[0].mxu1 %v19315_v16  ;;  %12659 = vmatpush1.bf16.msra.mxu0 %v15578_v61  ;;  %v6964_v61 = vld [vmem:[%s16929_s7 + $0x15c8] sm:$0xff] }
 0x5bd   : > { %12690 = vmatprep.mubr.bf16.mxu0 %v19322_v18  ;;  %12987 = vmatpush1.bf16.msra.mxu1 %v15580_v51  ;;  %v15628_v51 = vcombine.low %v6956_v25, %v6960_v0  ;;  %v15637_v7 = vcombine.high %v6964_v61, %v6968_v26  ;;  %v7004_v25 = vld [vmem:[%s16929_s7 + $0x1708] sm:$0xff] }
 0x5be   : > { %13018 = vmatprep.mubr.bf16.mxu1 %v19322_v18  ;;  %12660 = vmatprep.subr.bf16.mxu0 %v15587_v55  ;;  %v15635_v55 = vcombine.high %v6963_v22, %v6967_v14  ;;  %v7008_v0 = vld [vmem:[%s16929_s7 + $0x1728] sm:$0xff] }
 0x5bf   : > { %12988 = vmatprep.subr.bf16.mxu1 %v15589_v40  ;;  %v6975_v40 = vld [vmem:[%s16929_s7 + $0x1620] sm:$0xff] }
 0x5c0   : > { %12661 = vmatpush1.bf16.msra.mxu0 %v15586_v43  ;;  %v15634_v43 = vcombine.low %v6963_v22, %v6967_v14  ;;  %v7011_v22 = vld [vmem:[%s16929_s7 + $0x1740] sm:$0xff] }
 0x5c1   : > { %12989 = vmatpush1.bf16.msra.mxu1 %v15588_v6  ;;  %12662 = vmatprep.subr.bf16.mxu0 %v15595_v37  ;;  %v15636_v6 = vcombine.low %v6964_v61, %v6968_v26  ;;  %v15643_v37 = vcombine.high %v6971_v17, %v6975_v40  ;;  %v7015_v14 = vld [vmem:[%s16929_s7 + $0x1760] sm:$0xff]  ;;  %v7012_v61 = vld [vmem:[%s16929_s7 + $0x1748] sm:$0xff] }
 0x5c2   : > { %12990 = vmatprep.subr.bf16.mxu1 %v15597_v10  ;;  %v15645_v10 = vcombine.high %v6972_v57, %v6976_v5  ;;  %v7016_v26 = vld [vmem:[%s16929_s7 + $0x1768] sm:$0xff] }
 0x5c4   : > { %12663 = vmatpush1.bf16.msra.mxu0 %v15594_v32  ;;  %v15642_v32 = vcombine.low %v6971_v17, %v6975_v40  ;;  %v7019_v17 = vld [vmem:[%s16929_s7 + $0x1780] sm:$0xff] }
 0x5c5   : > { %12991 = vmatpush1.bf16.msra.mxu1 %v15596_v34  ;;  %12664 = vmatprep.subr.bf16.mxu0 %v15603_v36  ;;  %v15644_v34 = vcombine.low %v6972_v57, %v6976_v5  ;;  %v15651_v36 = vcombine.high %v6979_v2, %v6983_v20  ;;  %v7023_v40 = vld [vmem:[%s16929_s7 + $0x17a0] sm:$0xff]  ;;  %v7020_v57 = vld [vmem:[%s16929_s7 + $0x1788] sm:$0xff] }
 0x5c6   : > { %12992 = vmatprep.subr.bf16.mxu1 %v15605_v15  ;;  %v15653_v15 = vcombine.high %v6980_v58, %v6984_v4  ;;  %v7024_v5 = vld [vmem:[%s16929_s7 + $0x17a8] sm:$0xff] }
 0x5c8   : > { %12665 = vmatpush1.bf16.msra.mxu0 %v15602_v23  ;;  %v15650_v23 = vcombine.low %v6979_v2, %v6983_v20  ;;  %v7027_v2 = vld [vmem:[%s16929_s7 + $0x17c0] sm:$0xff] }
 0x5c9   : > { %12993 = vmatpush1.bf16.msra.mxu1 %v15604_v56  ;;  %12666 = vmatprep.subr.bf16.mxu0 %v15611_v42  ;;  %v15652_v56 = vcombine.low %v6980_v58, %v6984_v4  ;;  %v15659_v42 = vcombine.high %v6987_v38, %v6991_v50  ;;  %v7031_v20 = vld [vmem:[%s16929_s7 + $0x17e0] sm:$0xff]  ;;  %v7028_v58 = vld [vmem:[%s16929_s7 + $0x17c8] sm:$0xff] }
 0x5ca   : > { %12994 = vmatprep.subr.bf16.mxu1 %v15613_v31  ;;  %v15661_v31 = vcombine.high %v6988_v21, %v6992_v30  ;;  %v7032_v4 = vld [vmem:[%s16929_s7 + $0x17e8] sm:$0xff] }
 0x5cc   : > { %12667 = vmatpush1.bf16.msra.mxu0 %v15610_v53  ;;  %v15658_v53 = vcombine.low %v6987_v38, %v6991_v50  ;;  %v7035_v38 = vld [vmem:[%s16929_s7 + $0x1800] sm:$0xff] }
 0x5cd   : > { %12995 = vmatpush1.bf16.msra.mxu1 %v15612_v39  ;;  %12668 = vmatprep.subr.bf16.mxu0 %v15619_v13  ;;  %v15660_v39 = vcombine.low %v6988_v21, %v6992_v30  ;;  %v15667_v13 = vcombine.high %v6995_v60, %v6999_v44  ;;  %v7039_v50 = vld [vmem:[%s16929_s7 + $0x1820] sm:$0xff]  ;;  %v7036_v21 = vld [vmem:[%s16929_s7 + $0x1808] sm:$0xff] }
 0x5ce   : > { %12996 = vmatprep.subr.bf16.mxu1 %v15621_v28  ;;  %v15669_v28 = vcombine.high %v6996_v48, %v7000_v27  ;;  %v7040_v30 = vld [vmem:[%s16929_s7 + $0x1828] sm:$0xff] }
 0x5d0   : > { %12669 = vmatpush1.bf16.msra.mxu0 %v15618_v12  ;;  %v15666_v12 = vcombine.low %v6995_v60, %v6999_v44  ;;  %v7043_v60 = vld [vmem:[%s16929_s7 + $0x1840] sm:$0xff] }
 0x5d1   : > { %12997 = vmatpush1.bf16.msra.mxu1 %v15620_v52  ;;  %12670 = vmatprep.subr.bf16.mxu0 %v15627_v9  ;;  %v15668_v52 = vcombine.low %v6996_v48, %v7000_v27  ;;  %v15675_v9 = vcombine.high %v7003_v45, %v7007_v1  ;;  %v7047_v44 = vld [vmem:[%s16929_s7 + $0x1860] sm:$0xff]  ;;  %v15706_v48 = vcombine.low %v7035_v38, %v7039_v50  ;;  %v7044_v27 = vld [vmem:[%s16929_s7 + $0x1848] sm:$0xff] }
 0x5d2   : > { %12998 = vmatprep.subr.bf16.mxu1 %v15629_v62  ;;  %v15677_v62 = vcombine.high %v7004_v25, %v7008_v0 }
 0x5d4   : > { %12671 = vmatpush1.bf16.msra.mxu0 %v15626_v29  ;;  %v15674_v29 = vcombine.low %v7003_v45, %v7007_v1  ;;  %v7051_v45 = vld [vmem:[%s16929_s7 + $0x1880] sm:$0xff] }
 0x5d5   : > { %12999 = vmatpush1.bf16.msra.mxu1 %v15628_v51  ;;  %12672 = vmatprep.subr.bf16.mxu0 %v15635_v55  ;;  %v15676_v51 = vcombine.low %v7004_v25, %v7008_v0  ;;  %v15683_v55 = vcombine.high %v7011_v22, %v7015_v14  ;;  %v7055_v1 = vld [vmem:[%s16929_s7 + $0x18a0] sm:$0xff]  ;;  %v19398_v25 = vpack.c.bf16 %v19280_v49, %v19280_v49 }
 0x5d6   : > { %13000 = vmatprep.subr.bf16.mxu1 %v15637_v7  ;;  %v15685_v7 = vcombine.high %v7012_v61, %v7016_v26 }
 0x5d8   : > { %12673 = vmatpush1.bf16.msra.mxu0 %v15634_v43  ;;  %v15682_v43 = vcombine.low %v7011_v22, %v7015_v14  ;;  %v7059_v22 = vld [vmem:[%s16929_s7 + $0x18c0] sm:$0xff] }
 0x5d9   : > { %13001 = vmatpush1.bf16.msra.mxu1 %v15636_v6  ;;  %12674 = vmatprep.subr.bf16.mxu0 %v15643_v37  ;;  %v15684_v6 = vcombine.low %v7012_v61, %v7016_v26  ;;  %v15691_v37 = vcombine.high %v7019_v17, %v7023_v40  ;;  %v7063_v14 = vld [vmem:[%s16929_s7 + $0x18e0] sm:$0xff]  ;;  %v7060_v61 = vld [vmem:[%s16929_s7 + $0x18c8] sm:$0xff] }
 0x5da   : > { %13002 = vmatprep.subr.bf16.mxu1 %v15645_v10  ;;  %v15693_v10 = vcombine.high %v7020_v57, %v7024_v5  ;;  %v7064_v26 = vld [vmem:[%s16929_s7 + $0x18e8] sm:$0xff] }
 0x5dc   : > { %12675 = vmatpush1.bf16.msra.mxu0 %v15642_v32  ;;  %v15690_v32 = vcombine.low %v7019_v17, %v7023_v40  ;;  %v7067_v17 = vld [vmem:[%s16929_s7 + $0x1900] sm:$0xff] }
 0x5dd   : > { %13003 = vmatpush1.bf16.msra.mxu1 %v15644_v34  ;;  %12676 = vmatprep.subr.bf16.mxu0 %v15651_v36  ;;  %v15692_v34 = vcombine.low %v7020_v57, %v7024_v5  ;;  %v15699_v36 = vcombine.high %v7027_v2, %v7031_v20  ;;  %v7071_v40 = vld [vmem:[%s16929_s7 + $0x1920] sm:$0xff]  ;;  %v7068_v57 = vld [vmem:[%s16929_s7 + $0x1908] sm:$0xff] }
 0x5de   : > { %13004 = vmatprep.subr.bf16.mxu1 %v15653_v15  ;;  %v15701_v15 = vcombine.high %v7028_v58, %v7032_v4  ;;  %v7072_v5 = vld [vmem:[%s16929_s7 + $0x1928] sm:$0xff] }
 0x5e0   : > { %12677 = vmatpush1.bf16.msra.mxu0 %v15650_v23  ;;  %v15698_v23 = vcombine.low %v7027_v2, %v7031_v20  ;;  %v7075_v2 = vld [vmem:[%s16929_s7 + $0x1940] sm:$0xff] }
 0x5e1   : > { %13005 = vmatpush1.bf16.msra.mxu1 %v15652_v56  ;;  %12678 = vmatprep.subr.bf16.mxu0 %v15659_v42  ;;  %v15700_v56 = vcombine.low %v7028_v58, %v7032_v4  ;;  %v15707_v42 = vcombine.high %v7035_v38, %v7039_v50  ;;  %v7079_v20 = vld [vmem:[%s16929_s7 + $0x1960] sm:$0xff]  ;;  %v7076_v58 = vld [vmem:[%s16929_s7 + $0x1948] sm:$0xff] }
 0x5e2   : > { %13006 = vmatprep.subr.bf16.mxu1 %v15661_v31  ;;  %v15709_v31 = vcombine.high %v7036_v21, %v7040_v30  ;;  %v7080_v4 = vld [vmem:[%s16929_s7 + $0x1968] sm:$0xff]  ;;  %v7083_v38 = vld [vmem:[%s16929_s7 + $0x1980] sm:$0xff] }
 0x5e3   : > { %v7087_v50 = vld [vmem:[%s16929_s7 + $0x19a0] sm:$0xff] }
 0x5e4   : > { %12679 = vmatpush1.bf16.msra.mxu0 %v15658_v53  ;;  %v7048_v53 = vld [vmem:[%s16929_s7 + $0x1868] sm:$0xff] }
 0x5e5   : > { %13007 = vmatpush1.bf16.msra.mxu1 %v15660_v39  ;;  %12680 = vmatprep.subr.bf16.mxu0 %v15667_v13  ;;  %v19391_v39 = vpack.c.bf16 %v18875_v3, %v18875_v3  ;;  %v15708_v13 = vcombine.low %v7036_v21, %v7040_v30  ;;  %v15717_v0 = vcombine.high %v7044_v27, %v7048_v53  ;;  %v7056_v3 = vld [vmem:[%s16929_s7 + $0x18a8] sm:$0xff] }
 0x5e6   : > { %13008 = vmatprep.subr.bf16.mxu1 %v15669_v28  ;;  %v15715_v28 = vcombine.high %v7043_v60, %v7047_v44  ;;  %v7084_v21 = vld [vmem:[%s16929_s7 + $0x1988] sm:$0xff] }
 0x5e7   : > { %v7088_v30 = vld [vmem:[%s16929_s7 + $0x19a8] sm:$0xff] }
 0x5e8   : > { %12681 = vmatpush1.bf16.msra.mxu0 %v15666_v12  ;;  %v7052_v12 = vld [vmem:[%s16929_s7 + $0x1888] sm:$0xff] }
 0x5e9   : > { %13009 = vmatpush1.bf16.msra.mxu1 %v15668_v52  ;;  %12682 = vmatprep.subr.bf16.mxu0 %v15675_v9  ;;  %v15714_v52 = vcombine.low %v7043_v60, %v7047_v44  ;;  %v15716_v9 = vcombine.low %v7044_v27, %v7048_v53  ;;  %v15725_v49 = vcombine.high %v7052_v12, %v7056_v3  ;;  %v7091_v60 = vld [vmem:[%s16929_s7 + $0x19c0] sm:$0xff]  ;;  %v7096_v27 = vld [vmem:[%s16929_s7 + $0x19e8] sm:$0xff] }
 0x5ea   : > { %13010 = vmatprep.subr.bf16.mxu1 %v15677_v62  ;;  %v15723_v62 = vcombine.high %v7051_v45, %v7055_v1  ;;  %v7095_v44 = vld [vmem:[%s16929_s7 + $0x19e0] sm:$0xff]  ;;  %v15754_v53 = vcombine.low %v7083_v38, %v7087_v50 }
 0x5ec   : > { %12683 = vmatpush1.bf16.msra.mxu0 %v15674_v29  ;;  %v15722_v29 = vcombine.low %v7051_v45, %v7055_v1  ;;  %v7099_v1 = vld [vmem:[%s16929_s7 + $0x1a00] sm:$0xff] }
 0x5ed   : > { %13011 = vmatpush1.bf16.msra.mxu1 %v15676_v51  ;;  %12684 = vmatprep.subr.bf16.mxu0 %v15683_v55  ;;  %v15724_v51 = vcombine.low %v7052_v12, %v7056_v3  ;;  %v15731_v55 = vcombine.high %v7059_v22, %v7063_v14  ;;  %v7100_v12 = vld [vmem:[%s16929_s7 + $0x1a08] sm:$0xff] }
 0x5ee   : > { %13012 = vmatprep.subr.bf16.mxu1 %v15685_v7  ;;  %v15733_v7 = vcombine.high %v7060_v61, %v7064_v26  ;;  %v7104_v3 = vld [vmem:[%s16929_s7 + $0x1a28] sm:$0xff] }
 0x5f0   : > { %12685 = vmatpush1.bf16.msra.mxu0 %v15682_v43  ;;  %v15730_v43 = vcombine.low %v7059_v22, %v7063_v14  ;;  %v7107_v22 = vld [vmem:[%s16929_s7 + $0x1a40] sm:$0xff] }
 0x5f1   : > { %13013 = vmatpush1.bf16.msra.mxu1 %v15684_v6  ;;  %12686 = vmatprep.subr.bf16.mxu0 %v15691_v37  ;;  %v15732_v6 = vcombine.low %v7060_v61, %v7064_v26  ;;  %v15739_v37 = vcombine.high %v7067_v17, %v7071_v40  ;;  %v7111_v14 = vld [vmem:[%s16929_s7 + $0x1a60] sm:$0xff]  ;;  %v7108_v61 = vld [vmem:[%s16929_s7 + $0x1a48] sm:$0xff] }
 0x5f2   : > { %13014 = vmatprep.subr.bf16.mxu1 %v15693_v10  ;;  %v15741_v10 = vcombine.high %v7068_v57, %v7072_v5  ;;  %v7112_v26 = vld [vmem:[%s16929_s7 + $0x1a68] sm:$0xff] }
 0x5f4   : > { %12687 = vmatpush1.bf16.msra.mxu0 %v15690_v32  ;;  %v15738_v32 = vcombine.low %v7067_v17, %v7071_v40  ;;  %v7115_v17 = vld [vmem:[%s16929_s7 + $0x1a80] sm:$0xff] }
 0x5f5   : > { %13015 = vmatpush1.bf16.msra.mxu1 %v15692_v34  ;;  %12688 = vmatprep.subr.bf16.mxu0 %v15699_v36  ;;  %v15740_v34 = vcombine.low %v7068_v57, %v7072_v5  ;;  %v15747_v36 = vcombine.high %v7075_v2, %v7079_v20  ;;  %v7119_v40 = vld [vmem:[%s16929_s7 + $0x1aa0] sm:$0xff]  ;;  %v7116_v57 = vld [vmem:[%s16929_s7 + $0x1a88] sm:$0xff] }
 0x5f6   : > { %13016 = vmatprep.subr.bf16.mxu1 %v15701_v15  ;;  %v15749_v15 = vcombine.high %v7076_v58, %v7080_v4  ;;  %v7120_v5 = vld [vmem:[%s16929_s7 + $0x1aa8] sm:$0xff] }
 0x5f8   : > { %12689 = vmatpush1.bf16.msra.mxu0 %v15698_v23  ;;  %v15746_v23 = vcombine.low %v7075_v2, %v7079_v20  ;;  %v7123_v2 = vld [vmem:[%s16929_s7 + $0x1ac0] sm:$0xff] }
 0x5f9   : > { %13017 = vmatpush1.bf16.msra.mxu1 %v15700_v56  ;;  %12699 = vmatprep.subr.bf16.mxu0 %v15707_v42  ;;  %v15748_v56 = vcombine.low %v7076_v58, %v7080_v4  ;;  %v15755_v42 = vcombine.high %v7083_v38, %v7087_v50  ;;  %v7127_v20 = vld [vmem:[%s16929_s7 + $0x1ae0] sm:$0xff]  ;;  %v7124_v58 = vld [vmem:[%s16929_s7 + $0x1ac8] sm:$0xff] }
 0x5fa   : > { %13027 = vmatprep.subr.bf16.mxu1 %v15709_v31  ;;  %v15757_v31 = vcombine.high %v7084_v21, %v7088_v30  ;;  %v7128_v4 = vld [vmem:[%s16929_s7 + $0x1ae8] sm:$0xff]  ;;  %v7131_v38 = vld [vmem:[%s16929_s7 + $0x1b00] sm:$0xff] }
 0x5fb   : > { %12691 = vmatmul.mubr.bf16.vlgmr.msra.gmra.mrb[0].mxu0 %v19391_v39  ;;  %v7135_v50 = vld [vmem:[%s16929_s7 + $0x1b20] sm:$0xff] }
 0x5fc   : > { %13019 = vmatmul.mubr.bf16.vlgmr.msra.gmra.mrb[0].mxu1 %v19391_v39  ;;  %12700 = vmatpush1.bf16.msra.mxu0 %v15706_v48  ;;  %v7092_v48 = vld [vmem:[%s16929_s7 + $0x19c8] sm:$0xff] }
 0x5fd   : > { %12731 = vmatprep.mubr.bf16.mxu0 %v19398_v25  ;;  %13028 = vmatpush1.bf16.msra.mxu1 %v15708_v13  ;;  %v15756_v13 = vcombine.low %v7084_v21, %v7088_v30  ;;  %v15765_v45 = vcombine.high %v7092_v48, %v7096_v27  ;;  %v7132_v21 = vld [vmem:[%s16929_s7 + $0x1b08] sm:$0xff] }
 0x5fe   : > { %13059 = vmatprep.mubr.bf16.mxu1 %v19398_v25  ;;  %12701 = vmatprep.subr.bf16.mxu0 %v15715_v28  ;;  %v15763_v28 = vcombine.high %v7091_v60, %v7095_v44  ;;  %v7136_v30 = vld [vmem:[%s16929_s7 + $0x1b28] sm:$0xff] }
 0x5ff   : > { %13029 = vmatprep.subr.bf16.mxu1 %v15717_v0  ;;  %v7103_v0 = vld [vmem:[%s16929_s7 + $0x1a20] sm:$0xff] }
 0x600   : > { %12702 = vmatpush1.bf16.msra.mxu0 %v15714_v52  ;;  %v15762_v52 = vcombine.low %v7091_v60, %v7095_v44  ;;  %v7139_v60 = vld [vmem:[%s16929_s7 + $0x1b40] sm:$0xff] }
 0x601   : > { %13030 = vmatpush1.bf16.msra.mxu1 %v15716_v9  ;;  %12703 = vmatprep.subr.bf16.mxu0 %v15723_v62  ;;  %v15764_v9 = vcombine.low %v7092_v48, %v7096_v27  ;;  %v15771_v62 = vcombine.high %v7099_v1, %v7103_v0  ;;  %v7143_v44 = vld [vmem:[%s16929_s7 + $0x1b60] sm:$0xff]  ;;  %v7140_v48 = vld [vmem:[%s16929_s7 + $0x1b48] sm:$0xff] }
 0x602   : > { %13031 = vmatprep.subr.bf16.mxu1 %v15725_v49  ;;  %v15773_v49 = vcombine.high %v7100_v12, %v7104_v3  ;;  %v7144_v27 = vld [vmem:[%s16929_s7 + $0x1b68] sm:$0xff] }
 0x604   : > { %12704 = vmatpush1.bf16.msra.mxu0 %v15722_v29  ;;  %v15770_v29 = vcombine.low %v7099_v1, %v7103_v0  ;;  %v7147_v1 = vld [vmem:[%s16929_s7 + $0x1b80] sm:$0xff] }
 0x605   : > { %13032 = vmatpush1.bf16.msra.mxu1 %v15724_v51  ;;  %12705 = vmatprep.subr.bf16.mxu0 %v15731_v55  ;;  %v15772_v51 = vcombine.low %v7100_v12, %v7104_v3  ;;  %v15779_v55 = vcombine.high %v7107_v22, %v7111_v14  ;;  %v7151_v0 = vld [vmem:[%s16929_s7 + $0x1ba0] sm:$0xff]  ;;  %v7148_v12 = vld [vmem:[%s16929_s7 + $0x1b88] sm:$0xff] }
 0x606   : > { %13033 = vmatprep.subr.bf16.mxu1 %v15733_v7  ;;  %v15781_v7 = vcombine.high %v7108_v61, %v7112_v26  ;;  %v7152_v3 = vld [vmem:[%s16929_s7 + $0x1ba8] sm:$0xff] }
 0x608   : > { %12706 = vmatpush1.bf16.msra.mxu0 %v15730_v43  ;;  %v15778_v43 = vcombine.low %v7107_v22, %v7111_v14  ;;  %v7155_v22 = vld [vmem:[%s16929_s7 + $0x1bc0] sm:$0xff] }
 0x609   : > { %13034 = vmatpush1.bf16.msra.mxu1 %v15732_v6  ;;  %12707 = vmatprep.subr.bf16.mxu0 %v15739_v37  ;;  %v15780_v6 = vcombine.low %v7108_v61, %v7112_v26  ;;  %v15787_v37 = vcombine.high %v7115_v17, %v7119_v40  ;;  %v7159_v14 = vld [vmem:[%s16929_s7 + $0x1be0] sm:$0xff]  ;;  %v7156_v61 = vld [vmem:[%s16929_s7 + $0x1bc8] sm:$0xff] }
 0x60a   : > { %13035 = vmatprep.subr.bf16.mxu1 %v15741_v10  ;;  %v15789_v10 = vcombine.high %v7116_v57, %v7120_v5  ;;  %v7160_v26 = vld [vmem:[%s16929_s7 + $0x1be8] sm:$0xff] }
 0x60c   : > { %12708 = vmatpush1.bf16.msra.mxu0 %v15738_v32  ;;  %v15786_v32 = vcombine.low %v7115_v17, %v7119_v40  ;;  %v7163_v17 = vld [vmem:[%s16929_s7 + $0x1c00] sm:$0xff] }
 0x60d   : > { %13036 = vmatpush1.bf16.msra.mxu1 %v15740_v34  ;;  %12709 = vmatprep.subr.bf16.mxu0 %v15747_v36  ;;  %v15788_v34 = vcombine.low %v7116_v57, %v7120_v5  ;;  %v15795_v36 = vcombine.high %v7123_v2, %v7127_v20  ;;  %v7167_v40 = vld [vmem:[%s16929_s7 + $0x1c20] sm:$0xff]  ;;  %v7164_v57 = vld [vmem:[%s16929_s7 + $0x1c08] sm:$0xff] }
 0x60e   : > { %13037 = vmatprep.subr.bf16.mxu1 %v15749_v15  ;;  %v15797_v15 = vcombine.high %v7124_v58, %v7128_v4  ;;  %v7168_v5 = vld [vmem:[%s16929_s7 + $0x1c28] sm:$0xff] }
 0x610   : > { %12710 = vmatpush1.bf16.msra.mxu0 %v15746_v23  ;;  %v15794_v23 = vcombine.low %v7123_v2, %v7127_v20  ;;  %v7171_v2 = vld [vmem:[%s16929_s7 + $0x1c40] sm:$0xff] }
 0x611   : > { %13038 = vmatpush1.bf16.msra.mxu1 %v15748_v56  ;;  %12711 = vmatprep.subr.bf16.mxu0 %v15755_v42  ;;  %v15796_v56 = vcombine.low %v7124_v58, %v7128_v4  ;;  %v15803_v42 = vcombine.high %v7131_v38, %v7135_v50  ;;  %v7175_v20 = vld [vmem:[%s16929_s7 + $0x1c60] sm:$0xff]  ;;  %v15834_v58 = vcombine.low %v7163_v17, %v7167_v40  ;;  %v7172_v4 = vld [vmem:[%s16929_s7 + $0x1c48] sm:$0xff] }
 0x612   : > { %13039 = vmatprep.subr.bf16.mxu1 %v15757_v31  ;;  %v15805_v31 = vcombine.high %v7132_v21, %v7136_v30 }
 0x614   : > { %12712 = vmatpush1.bf16.msra.mxu0 %v15754_v53  ;;  %v15802_v53 = vcombine.low %v7131_v38, %v7135_v50  ;;  %v7179_v38 = vld [vmem:[%s16929_s7 + $0x1c80] sm:$0xff] }
 0x615   : > { %13040 = vmatpush1.bf16.msra.mxu1 %v15756_v13  ;;  %12713 = vmatprep.subr.bf16.mxu0 %v15763_v28  ;;  %v15804_v13 = vcombine.low %v7132_v21, %v7136_v30  ;;  %v15811_v28 = vcombine.high %v7139_v60, %v7143_v44  ;;  %v7183_v50 = vld [vmem:[%s16929_s7 + $0x1ca0] sm:$0xff]  ;;  %v19474_v21 = vpack.c.bf16 %v19283_v8, %v19283_v8 }
 0x616   : > { %13041 = vmatprep.subr.bf16.mxu1 %v15765_v45  ;;  %v15813_v45 = vcombine.high %v7140_v48, %v7144_v27 }
 0x618   : > { %12714 = vmatpush1.bf16.msra.mxu0 %v15762_v52  ;;  %v15810_v52 = vcombine.low %v7139_v60, %v7143_v44  ;;  %v7187_v60 = vld [vmem:[%s16929_s7 + $0x1cc0] sm:$0xff] }
 0x619   : > { %13042 = vmatpush1.bf16.msra.mxu1 %v15764_v9  ;;  %12715 = vmatprep.subr.bf16.mxu0 %v15771_v62  ;;  %v15812_v9 = vcombine.low %v7140_v48, %v7144_v27  ;;  %v15819_v62 = vcombine.high %v7147_v1, %v7151_v0  ;;  %v7191_v44 = vld [vmem:[%s16929_s7 + $0x1ce0] sm:$0xff]  ;;  %v7188_v48 = vld [vmem:[%s16929_s7 + $0x1cc8] sm:$0xff] }
 0x61a   : > { %13043 = vmatprep.subr.bf16.mxu1 %v15773_v49  ;;  %v15821_v49 = vcombine.high %v7148_v12, %v7152_v3  ;;  %v7192_v27 = vld [vmem:[%s16929_s7 + $0x1ce8] sm:$0xff] }
 0x61c   : > { %12716 = vmatpush1.bf16.msra.mxu0 %v15770_v29  ;;  %v15818_v29 = vcombine.low %v7147_v1, %v7151_v0  ;;  %v7195_v1 = vld [vmem:[%s16929_s7 + $0x1d00] sm:$0xff] }
 0x61d   : > { %13044 = vmatpush1.bf16.msra.mxu1 %v15772_v51  ;;  %12717 = vmatprep.subr.bf16.mxu0 %v15779_v55  ;;  %v15820_v51 = vcombine.low %v7148_v12, %v7152_v3  ;;  %v15827_v55 = vcombine.high %v7155_v22, %v7159_v14  ;;  %v7199_v0 = vld [vmem:[%s16929_s7 + $0x1d20] sm:$0xff]  ;;  %v7196_v12 = vld [vmem:[%s16929_s7 + $0x1d08] sm:$0xff] }
 0x61e   : > { %13045 = vmatprep.subr.bf16.mxu1 %v15781_v7  ;;  %v15829_v7 = vcombine.high %v7156_v61, %v7160_v26  ;;  %v7200_v3 = vld [vmem:[%s16929_s7 + $0x1d28] sm:$0xff] }
 0x620   : > { %12718 = vmatpush1.bf16.msra.mxu0 %v15778_v43  ;;  %v15826_v43 = vcombine.low %v7155_v22, %v7159_v14  ;;  %v7203_v22 = vld [vmem:[%s16929_s7 + $0x1d40] sm:$0xff] }
 0x621   : > { %13046 = vmatpush1.bf16.msra.mxu1 %v15780_v6  ;;  %12719 = vmatprep.subr.bf16.mxu0 %v15787_v37  ;;  %v15828_v6 = vcombine.low %v7156_v61, %v7160_v26  ;;  %v15835_v37 = vcombine.high %v7163_v17, %v7167_v40  ;;  %v7207_v14 = vld [vmem:[%s16929_s7 + $0x1d60] sm:$0xff]  ;;  %v7204_v61 = vld [vmem:[%s16929_s7 + $0x1d48] sm:$0xff] }
 0x622   : > { %13047 = vmatprep.subr.bf16.mxu1 %v15789_v10  ;;  %v15837_v10 = vcombine.high %v7164_v57, %v7168_v5  ;;  %v7208_v26 = vld [vmem:[%s16929_s7 + $0x1d68] sm:$0xff]  ;;  %v7211_v17 = vld [vmem:[%s16929_s7 + $0x1d80] sm:$0xff] }
 0x623   : > { %v7215_v40 = vld [vmem:[%s16929_s7 + $0x1da0] sm:$0xff] }
 0x624   : > { %12720 = vmatpush1.bf16.msra.mxu0 %v15786_v32  ;;  %v7176_v32 = vld [vmem:[%s16929_s7 + $0x1c68] sm:$0xff] }
 0x625   : > { %13048 = vmatpush1.bf16.msra.mxu1 %v15788_v34  ;;  %12721 = vmatprep.subr.bf16.mxu0 %v15795_v36  ;;  %v19467_v34 = vpack.c.bf16 %v19272_v11, %v19272_v11  ;;  %v15836_v36 = vcombine.low %v7164_v57, %v7168_v5  ;;  %v15845_v30 = vcombine.high %v7172_v4, %v7176_v32  ;;  %v7184_v11 = vld [vmem:[%s16929_s7 + $0x1ca8] sm:$0xff] }
 0x626   : > { %13049 = vmatprep.subr.bf16.mxu1 %v15797_v15  ;;  %v15843_v15 = vcombine.high %v7171_v2, %v7175_v20  ;;  %v7212_v57 = vld [vmem:[%s16929_s7 + $0x1d88] sm:$0xff] }
 0x627   : > { %v7216_v5 = vld [vmem:[%s16929_s7 + $0x1da8] sm:$0xff] }
 0x628   : > { %12722 = vmatpush1.bf16.msra.mxu0 %v15794_v23  ;;  %v7180_v23 = vld [vmem:[%s16929_s7 + $0x1c88] sm:$0xff] }
 0x629   : > { %13050 = vmatpush1.bf16.msra.mxu1 %v15796_v56  ;;  %12723 = vmatprep.subr.bf16.mxu0 %v15803_v42  ;;  %v15842_v56 = vcombine.low %v7171_v2, %v7175_v20  ;;  %v15844_v42 = vcombine.low %v7172_v4, %v7176_v32  ;;  %v15853_v8 = vcombine.high %v7180_v23, %v7184_v11  ;;  %v7219_v2 = vld [vmem:[%s16929_s7 + $0x1dc0] sm:$0xff]  ;;  %v7224_v4 = vld [vmem:[%s16929_s7 + $0x1de8] sm:$0xff] }
 0x62a   : > { %13051 = vmatprep.subr.bf16.mxu1 %v15805_v31  ;;  %v15851_v31 = vcombine.high %v7179_v38, %v7183_v50  ;;  %v7223_v20 = vld [vmem:[%s16929_s7 + $0x1de0] sm:$0xff]  ;;  %v15882_v32 = vcombine.low %v7211_v17, %v7215_v40 }
 0x62c   : > { %12724 = vmatpush1.bf16.msra.mxu0 %v15802_v53  ;;  %v15850_v53 = vcombine.low %v7179_v38, %v7183_v50  ;;  %v7227_v50 = vld [vmem:[%s16929_s7 + $0x1e00] sm:$0xff] }
 0x62d   : > { %13052 = vmatpush1.bf16.msra.mxu1 %v15804_v13  ;;  %12725 = vmatprep.subr.bf16.mxu0 %v15811_v28  ;;  %v15852_v13 = vcombine.low %v7180_v23, %v7184_v11  ;;  %v15859_v28 = vcombine.high %v7187_v60, %v7191_v44  ;;  %v7228_v23 = vld [vmem:[%s16929_s7 + $0x1e08] sm:$0xff] }
 0x62e   : > { %13053 = vmatprep.subr.bf16.mxu1 %v15813_v45  ;;  %v15861_v45 = vcombine.high %v7188_v48, %v7192_v27  ;;  %v7232_v11 = vld [vmem:[%s16929_s7 + $0x1e28] sm:$0xff] }
 0x630   : > { %12726 = vmatpush1.bf16.msra.mxu0 %v15810_v52  ;;  %v15858_v52 = vcombine.low %v7187_v60, %v7191_v44  ;;  %v7235_v60 = vld [vmem:[%s16929_s7 + $0x1e40] sm:$0xff] }
 0x631   : > { %13054 = vmatpush1.bf16.msra.mxu1 %v15812_v9  ;;  %12727 = vmatprep.subr.bf16.mxu0 %v15819_v62  ;;  %v15860_v9 = vcombine.low %v7188_v48, %v7192_v27  ;;  %v15867_v62 = vcombine.high %v7195_v1, %v7199_v0  ;;  %v7239_v44 = vld [vmem:[%s16929_s7 + $0x1e60] sm:$0xff]  ;;  %v7236_v48 = vld [vmem:[%s16929_s7 + $0x1e48] sm:$0xff] }
 0x632   : > { %13055 = vmatprep.subr.bf16.mxu1 %v15821_v49  ;;  %v15869_v49 = vcombine.high %v7196_v12, %v7200_v3  ;;  %v7240_v27 = vld [vmem:[%s16929_s7 + $0x1e68] sm:$0xff] }
 0x634   : > { %12728 = vmatpush1.bf16.msra.mxu0 %v15818_v29  ;;  %v15866_v29 = vcombine.low %v7195_v1, %v7199_v0  ;;  %v7243_v1 = vld [vmem:[%s16929_s7 + $0x1e80] sm:$0xff] }
 0x635   : > { %13056 = vmatpush1.bf16.msra.mxu1 %v15820_v51  ;;  %12729 = vmatprep.subr.bf16.mxu0 %v15827_v55  ;;  %v15868_v51 = vcombine.low %v7196_v12, %v7200_v3  ;;  %v15875_v55 = vcombine.high %v7203_v22, %v7207_v14  ;;  %v7247_v0 = vld [vmem:[%s16929_s7 + $0x1ea0] sm:$0xff]  ;;  %v7244_v12 = vld [vmem:[%s16929_s7 + $0x1e88] sm:$0xff] }
 0x636   : > { %13057 = vmatprep.subr.bf16.mxu1 %v15829_v7  ;;  %v15877_v7 = vcombine.high %v7204_v61, %v7208_v26  ;;  %v7248_v3 = vld [vmem:[%s16929_s7 + $0x1ea8] sm:$0xff] }
 0x638   : > { %12730 = vmatpush1.bf16.msra.mxu0 %v15826_v43  ;;  %v15874_v43 = vcombine.low %v7203_v22, %v7207_v14  ;;  %v7251_v22 = vld [vmem:[%s16929_s7 + $0x1ec0] sm:$0xff] }
 0x639   : > { %13058 = vmatpush1.bf16.msra.mxu1 %v15828_v6  ;;  %12740 = vmatprep.subr.bf16.mxu0 %v15835_v37  ;;  %v15876_v6 = vcombine.low %v7204_v61, %v7208_v26  ;;  %v15883_v37 = vcombine.high %v7211_v17, %v7215_v40  ;;  %v7255_v14 = vld [vmem:[%s16929_s7 + $0x1ee0] sm:$0xff]  ;;  %v7252_v61 = vld [vmem:[%s16929_s7 + $0x1ec8] sm:$0xff] }
 0x63a   : > { %13068 = vmatprep.subr.bf16.mxu1 %v15837_v10  ;;  %v15885_v10 = vcombine.high %v7212_v57, %v7216_v5  ;;  %v7256_v26 = vld [vmem:[%s16929_s7 + $0x1ee8] sm:$0xff]  ;;  %v7259_v17 = vld [vmem:[%s16929_s7 + $0x1f00] sm:$0xff] }
 0x63b   : > { %12732 = vmatmul.mubr.bf16.vlgmr.msra.gmra.mrb[0].mxu0 %v19467_v34  ;;  %v7263_v40 = vld [vmem:[%s16929_s7 + $0x1f20] sm:$0xff] }
 0x63c   : > { %13060 = vmatmul.mubr.bf16.vlgmr.msra.gmra.mrb[0].mxu1 %v19467_v34  ;;  %12741 = vmatpush1.bf16.msra.mxu0 %v15834_v58  ;;  %v7220_v58 = vld [vmem:[%s16929_s7 + $0x1dc8] sm:$0xff] }
 0x63d   : > { %12772 = vmatprep.mubr.bf16.mxu0 %v19474_v21  ;;  %13069 = vmatpush1.bf16.msra.mxu1 %v15836_v36  ;;  %v15884_v36 = vcombine.low %v7212_v57, %v7216_v5  ;;  %v15893_v38 = vcombine.high %v7220_v58, %v7224_v4  ;;  %v7260_v57 = vld [vmem:[%s16929_s7 + $0x1f08] sm:$0xff] }
 0x63e   : > { %13100 = vmatprep.mubr.bf16.mxu1 %v19474_v21  ;;  %12742 = vmatprep.subr.bf16.mxu0 %v15843_v15  ;;  %v15891_v15 = vcombine.high %v7219_v2, %v7223_v20  ;;  %v7264_v5 = vld [vmem:[%s16929_s7 + $0x1f28] sm:$0xff] }
 0x63f   : > { %13070 = vmatprep.subr.bf16.mxu1 %v15845_v30  ;;  %v7231_v30 = vld [vmem:[%s16929_s7 + $0x1e20] sm:$0xff] }
 0x640   : > { %12743 = vmatpush1.bf16.msra.mxu0 %v15842_v56  ;;  %v15890_v56 = vcombine.low %v7219_v2, %v7223_v20  ;;  %v7267_v2 = vld [vmem:[%s16929_s7 + $0x1f40] sm:$0xff] }
 0x641   : > { %13071 = vmatpush1.bf16.msra.mxu1 %v15844_v42  ;;  %12744 = vmatprep.subr.bf16.mxu0 %v15851_v31  ;;  %v15892_v42 = vcombine.low %v7220_v58, %v7224_v4  ;;  %v15899_v31 = vcombine.high %v7227_v50, %v7231_v30  ;;  %v7271_v20 = vld [vmem:[%s16929_s7 + $0x1f60] sm:$0xff]  ;;  %v7268_v58 = vld [vmem:[%s16929_s7 + $0x1f48] sm:$0xff] }
 0x642   : > { %13072 = vmatprep.subr.bf16.mxu1 %v15853_v8  ;;  %v15901_v8 = vcombine.high %v7228_v23, %v7232_v11  ;;  %v7272_v4 = vld [vmem:[%s16929_s7 + $0x1f68] sm:$0xff] }
 0x644   : > { %12745 = vmatpush1.bf16.msra.mxu0 %v15850_v53  ;;  %v15898_v53 = vcombine.low %v7227_v50, %v7231_v30  ;;  %v7275_v50 = vld [vmem:[%s16929_s7 + $0x1f80] sm:$0xff] }
 0x645   : > { %13073 = vmatpush1.bf16.msra.mxu1 %v15852_v13  ;;  %12746 = vmatprep.subr.bf16.mxu0 %v15859_v28  ;;  %v15900_v13 = vcombine.low %v7228_v23, %v7232_v11  ;;  %v15907_v28 = vcombine.high %v7235_v60, %v7239_v44  ;;  %v7279_v30 = vld [vmem:[%s16929_s7 + $0x1fa0] sm:$0xff]  ;;  %v7276_v23 = vld [vmem:[%s16929_s7 + $0x1f88] sm:$0xff] }
 0x646   : > { %13074 = vmatprep.subr.bf16.mxu1 %v15861_v45  ;;  %v15909_v45 = vcombine.high %v7236_v48, %v7240_v27  ;;  %v7280_v11 = vld [vmem:[%s16929_s7 + $0x1fa8] sm:$0xff] }
 0x648   : > { %12747 = vmatpush1.bf16.msra.mxu0 %v15858_v52  ;;  %v15906_v52 = vcombine.low %v7235_v60, %v7239_v44  ;;  %v7283_v60 = vld [vmem:[%s16929_s7 + $0x1fc0] sm:$0xff] }
 0x649   : > { %13075 = vmatpush1.bf16.msra.mxu1 %v15860_v9  ;;  %12748 = vmatprep.subr.bf16.mxu0 %v15867_v62  ;;  %v15908_v9 = vcombine.low %v7236_v48, %v7240_v27  ;;  %v15915_v62 = vcombine.high %v7243_v1, %v7247_v0  ;;  %v7287_v44 = vld [vmem:[%s16929_s7 + $0x1fe0] sm:$0xff]  ;;  %v7284_v48 = vld [vmem:[%s16929_s7 + $0x1fc8] sm:$0xff] }
 0x64a   : > { %13076 = vmatprep.subr.bf16.mxu1 %v15869_v49  ;;  %v15917_v49 = vcombine.high %v7244_v12, %v7248_v3  ;;  %v7288_v27 = vld [vmem:[%s16929_s7 + $0x1fe8] sm:$0xff] }
 0x64c   : > { %12749 = vmatpush1.bf16.msra.mxu0 %v15866_v29  ;;  %v15914_v29 = vcombine.low %v7243_v1, %v7247_v0  ;;  %v6269_v1 = vld [vmem:[%s16929_s7 + $0x10] sm:$0xff] }
 0x64d   : > { %13077 = vmatpush1.bf16.msra.mxu1 %v15868_v51  ;;  %12750 = vmatprep.subr.bf16.mxu0 %v15875_v55  ;;  %v15916_v51 = vcombine.low %v7244_v12, %v7248_v3  ;;  %v15923_v55 = vcombine.high %v7251_v22, %v7255_v14  ;;  %v6273_v0 = vld [vmem:[%s16929_s7 + $0x30] sm:$0xff]  ;;  %v6270_v12 = vld [vmem:[%s16929_s7 + $0x18] sm:$0xff] }
 0x64e   : > { %13078 = vmatprep.subr.bf16.mxu1 %v15877_v7  ;;  %v15925_v7 = vcombine.high %v7252_v61, %v7256_v26  ;;  %v6274_v3 = vld [vmem:[%s16929_s7 + $0x38] sm:$0xff] }
 0x650   : > { %12751 = vmatpush1.bf16.msra.mxu0 %v15874_v43  ;;  %v15922_v43 = vcombine.low %v7251_v22, %v7255_v14  ;;  %v6277_v22 = vld [vmem:[%s16929_s7 + $0x50] sm:$0xff] }
 0x651   : > { %13079 = vmatpush1.bf16.msra.mxu1 %v15876_v6  ;;  %12752 = vmatprep.subr.bf16.mxu0 %v15883_v37  ;;  %v15924_v6 = vcombine.low %v7252_v61, %v7256_v26  ;;  %v15931_v37 = vcombine.high %v7259_v17, %v7263_v40  ;;  %v6281_v14 = vld [vmem:[%s16929_s7 + $0x70] sm:$0xff]  ;;  %v14942_v61 = vcombine.low %v6269_v1, %v6273_v0  ;;  %v6278_v26 = vld [vmem:[%s16929_s7 + $0x58] sm:$0xff] }
 0x652   : > { %13080 = vmatprep.subr.bf16.mxu1 %v15885_v10  ;;  %v15933_v10 = vcombine.high %v7260_v57, %v7264_v5 }
 0x654   : > { %12753 = vmatpush1.bf16.msra.mxu0 %v15882_v32  ;;  %v15930_v32 = vcombine.low %v7259_v17, %v7263_v40  ;;  %v6285_v17 = vld [vmem:[%s16929_s7 + $0x90] sm:$0xff] }
 0x655   : > { %13081 = vmatpush1.bf16.msra.mxu1 %v15884_v36  ;;  %12754 = vmatprep.subr.bf16.mxu0 %v15891_v15  ;;  %v15932_v36 = vcombine.low %v7260_v57, %v7264_v5  ;;  %v15939_v15 = vcombine.high %v7267_v2, %v7271_v20  ;;  %v6289_v40 = vld [vmem:[%s16929_s7 + $0xb0] sm:$0xff]  ;;  %v6286_v5 = vld [vmem:[%s16929_s7 + $0x98] sm:$0xff] }
 0x656   : > { %13082 = vmatprep.subr.bf16.mxu1 %v15893_v38  ;;  %v15941_v38 = vcombine.high %v7268_v58, %v7272_v4 }
 0x658   : > { %12755 = vmatpush1.bf16.msra.mxu0 %v15890_v56  ;;  %v15938_v56 = vcombine.low %v7267_v2, %v7271_v20  ;;  %v6293_v2 = vld [vmem:[%s16929_s7 + $0xd0] sm:$0xff] }
 0x659   : > { %13083 = vmatpush1.bf16.msra.mxu1 %v15892_v42  ;;  %12756 = vmatprep.subr.bf16.mxu0 %v15899_v31  ;;  %v15940_v42 = vcombine.low %v7268_v58, %v7272_v4  ;;  %v15947_v31 = vcombine.high %v7275_v50, %v7279_v30  ;;  %v6297_v20 = vld [vmem:[%s16929_s7 + $0xf0] sm:$0xff]  ;;  %v6294_v58 = vld [vmem:[%s16929_s7 + $0xd8] sm:$0xff] }
 0x65a   : > { %13084 = vmatprep.subr.bf16.mxu1 %v15901_v8  ;;  %v15949_v8 = vcombine.high %v7276_v23, %v7280_v11  ;;  %v6298_v4 = vld [vmem:[%s16929_s7 + $0xf8] sm:$0xff] }
 0x65c   : > { %12757 = vmatpush1.bf16.msra.mxu0 %v15898_v53  ;;  %v15946_v53 = vcombine.low %v7275_v50, %v7279_v30  ;;  %v6305_v50 = vld [vmem:[%s16929_s7 + $0x130] sm:$0xff]  ;;  %v6302_v30 = vld [vmem:[%s16929_s7 + $0x118] sm:$0xff] }
 0x65d   : > { %13085 = vmatpush1.bf16.msra.mxu1 %v15900_v13  ;;  %12758 = vmatprep.subr.bf16.mxu0 %v15907_v28  ;;  %v15948_v13 = vcombine.low %v7276_v23, %v7280_v11  ;;  %v15955_v28 = vcombine.high %v7283_v60, %v7287_v44  ;;  %v6306_v23 = vld [vmem:[%s16929_s7 + $0x138] sm:$0xff]  ;;  %v14966_v11 = vcombine.low %v6293_v2, %v6297_v20 }
 0x65e   : > { %13086 = vmatprep.subr.bf16.mxu1 %v15909_v45  ;;  %v15957_v45 = vcombine.high %v7284_v48, %v7288_v27 }
 0x660   : > { %12759 = vmatpush1.bf16.msra.mxu0 %v15906_v52  ;;  %v15954_v52 = vcombine.low %v7283_v60, %v7287_v44  ;;  %v6313_v60 = vld [vmem:[%s16929_s7 + $0x170] sm:$0xff]  ;;  %v6310_v44 = vld [vmem:[%s16929_s7 + $0x158] sm:$0xff] }
 0x661   : > { %13087 = vmatpush1.bf16.msra.mxu1 %v15908_v9  ;;  %12760 = vmatprep.subr.bf16.mxu0 %v15915_v62  ;;  %v15956_v9 = vcombine.low %v7284_v48, %v7288_v27  ;;  %v14943_v62 = vcombine.high %v6269_v1, %v6273_v0  ;;  %v6314_v48 = vld [vmem:[%s16929_s7 + $0x178] sm:$0xff]  ;;  %v6321_v1 = vld [vmem:[%s16929_s7 + $0x1b0] sm:$0xff] }
 0x662   : > { %13088 = vmatprep.subr.bf16.mxu1 %v15917_v49  ;;  %v14945_v49 = vcombine.high %v6270_v12, %v6274_v3  ;;  %v6318_v0 = vld [vmem:[%s16929_s7 + $0x198] sm:$0xff] }
 0x664   : > { %12761 = vmatpush1.bf16.msra.mxu0 %v15914_v29  ;;  %v6282_v29 = vld [vmem:[%s16929_s7 + $0x78] sm:$0xff] }
 0x665   : > { %13089 = vmatpush1.bf16.msra.mxu1 %v15916_v51  ;;  %12762 = vmatprep.subr.bf16.mxu0 %v15923_v55  ;;  %v19543_v51 = vpack.c.bf16 %v19277_v47, %v19277_v47  ;;  %v14944_v55 = vcombine.low %v6270_v12, %v6274_v3  ;;  %v14953_v57 = vcombine.high %v6278_v26, %v6282_v29  ;;  %v6322_v12 = vld [vmem:[%s16929_s7 + $0x1b8] sm:$0xff] }
 0x666   : > { %13090 = vmatprep.subr.bf16.mxu1 %v15925_v7  ;;  %v14951_v7 = vcombine.high %v6277_v22, %v6281_v14  ;;  %v14950_v47 = vcombine.low %v6277_v22, %v6281_v14  ;;  %v6329_v22 = vld [vmem:[%s16929_s7 + $0x1f0] sm:$0xff]  ;;  %v6326_v14 = vld [vmem:[%s16929_s7 + $0x1d8] sm:$0xff] }
 0x668   : > { %12763 = vmatpush1.bf16.msra.mxu0 %v15922_v43  ;;  %v6290_v43 = vld [vmem:[%s16929_s7 + $0xb8] sm:$0xff] }
 0x669   : > { %13091 = vmatpush1.bf16.msra.mxu1 %v15924_v6  ;;  %12764 = vmatprep.subr.bf16.mxu0 %v15931_v37  ;;  %v14952_v6 = vcombine.low %v6278_v26, %v6282_v29  ;;  %v14959_v37 = vcombine.high %v6285_v17, %v6289_v40  ;;  %v14992_v29 = vcombine.low %v6318_v0, %v6322_v12 }
 0x66a   : > { %13092 = vmatprep.subr.bf16.mxu1 %v15933_v10  ;;  %v14961_v10 = vcombine.high %v6286_v5, %v6290_v43 }
 0x66c   : > { %12765 = vmatpush1.bf16.msra.mxu0 %v15930_v32  ;;  %v14958_v32 = vcombine.low %v6285_v17, %v6289_v40  ;;  %v6333_v17 = vld [vmem:[%s16929_s7 + $0x210] sm:$0xff] }
 0x66d   : > { %13093 = vmatpush1.bf16.msra.mxu1 %v15932_v36  ;;  %12766 = vmatprep.subr.bf16.mxu0 %v15939_v15  ;;  %v14960_v36 = vcombine.low %v6286_v5, %v6290_v43  ;;  %v14967_v15 = vcombine.high %v6293_v2, %v6297_v20  ;;  %v6337_v40 = vld [vmem:[%s16929_s7 + $0x230] sm:$0xff]  ;;  %v6338_v5 = vld [vmem:[%s16929_s7 + $0x238] sm:$0xff] }
 0x66e   : > { %13094 = vmatprep.subr.bf16.mxu1 %v15941_v38  ;;  %v6301_v38 = vld [vmem:[%s16929_s7 + $0x110] sm:$0xff]  ;;  %v6342_v20 = vld [vmem:[%s16929_s7 + $0x258] sm:$0xff] }
 0x66f   : > { %v14974_v27 = vcombine.low %v6301_v38, %v6305_v50  ;;  %v6345_v2 = vld [vmem:[%s16929_s7 + $0x270] sm:$0xff] }
 0x670   : > { %12767 = vmatpush1.bf16.msra.mxu0 %v15938_v56  ;;  %v14968_v56 = vcombine.low %v6294_v58, %v6298_v4 }
 0x671   : > { %13095 = vmatpush1.bf16.msra.mxu1 %v15940_v42  ;;  %12768 = vmatprep.subr.bf16.mxu0 %v15947_v31  ;;  %v14975_v42 = vcombine.high %v6301_v38, %v6305_v50  ;;  %v14977_v31 = vcombine.high %v6302_v30, %v6306_v23  ;;  %v6353_v38 = vld [vmem:[%s16929_s7 + $0x2b0] sm:$0xff]  ;;  %v6350_v50 = vld [vmem:[%s16929_s7 + $0x298] sm:$0xff] }
 0x672   : > { %13096 = vmatprep.subr.bf16.mxu1 %v15949_v8  ;;  %v6309_v8 = vld [vmem:[%s16929_s7 + $0x150] sm:$0xff] }
 0x673   : > { %v14982_v3 = vcombine.low %v6309_v8, %v6313_v60 }
 0x674   : > { %12769 = vmatpush1.bf16.msra.mxu0 %v15946_v53  ;;  %v14976_v53 = vcombine.low %v6302_v30, %v6306_v23  ;;  %v6354_v30 = vld [vmem:[%s16929_s7 + $0x2b8] sm:$0xff] }
 0x675   : > { %13097 = vmatpush1.bf16.msra.mxu1 %v15948_v13  ;;  %12770 = vmatprep.subr.bf16.mxu0 %v15955_v28  ;;  %v14983_v13 = vcombine.high %v6309_v8, %v6313_v60  ;;  %v14985_v28 = vcombine.high %v6310_v44, %v6314_v48  ;;  %v6361_v8 = vld [vmem:[%s16929_s7 + $0x2f0] sm:$0xff]  ;;  %v6358_v60 = vld [vmem:[%s16929_s7 + $0x2d8] sm:$0xff] }
 0x676   : > { %13098 = vmatprep.subr.bf16.mxu1 %v15957_v45  ;;  %v6317_v45 = vld [vmem:[%s16929_s7 + $0x190] sm:$0xff] }
 0x677   : > { %v14990_v26 = vcombine.low %v6317_v45, %v6321_v1 }
 0x678   : > { %12771 = vmatpush1.bf16.msra.mxu0 %v15954_v52  ;;  %v14984_v52 = vcombine.low %v6310_v44, %v6314_v48  ;;  %v6362_v44 = vld [vmem:[%s16929_s7 + $0x2f8] sm:$0xff] }
 0x679   : > { %13099 = vmatpush1.bf16.msra.mxu1 %v15956_v9  ;;  %13109 = vmatprep.subr.bf16.mxu0 %v14943_v62  ;;  %v14991_v9 = vcombine.high %v6317_v45, %v6321_v1  ;;  %v14993_v62 = vcombine.high %v6318_v0, %v6322_v12  ;;  %v6369_v45 = vld [vmem:[%s16929_s7 + $0x330] sm:$0xff]  ;;  %v6366_v1 = vld [vmem:[%s16929_s7 + $0x318] sm:$0xff] }
 0x67a   : > { %13437 = vmatprep.subr.bf16.mxu1 %v14945_v49  ;;  %v6325_v49 = vld [vmem:[%s16929_s7 + $0x1d0] sm:$0xff]  ;;  %v6370_v0 = vld [vmem:[%s16929_s7 + $0x338] sm:$0xff] }
 0x67b   : > { %12773 = vmatmul.mubr.bf16.vlgmr.msra.gmra.mrb[0].mxu0 %v19543_v51  ;;  %v14998_v43 = vcombine.low %v6325_v49, %v6329_v22 }
 0x67c   : > { %13101 = vmatmul.mubr.bf16.vlgmr.msra.gmra.mrb[0].mxu1 %v19543_v51  ;;  %13110 = vmatpush1.bf16.msra.mxu0 %v14942_v61  ;;  %v6330_v61 = vld [vmem:[%s16929_s7 + $0x1f8] sm:$0xff] }
 0x67d   : > { %13141 = vmatprep.mubr.bf16.mxu0 %v18444_v59  ;;  %13438 = vmatpush1.bf16.msra.mxu1 %v14944_v55  ;;  %v14999_v55 = vcombine.high %v6325_v49, %v6329_v22  ;;  %v6377_v49 = vld [vmem:[%s16929_s7 + $0x370] sm:$0xff]  ;;  %v6374_v22 = vld [vmem:[%s16929_s7 + $0x358] sm:$0xff] }
 0x67e   : > { %13469 = vmatprep.mubr.bf16.mxu1 %v18444_v59  ;;  %13111 = vmatprep.subr.bf16.mxu0 %v14951_v7  ;;  %v14969_v59 = vcombine.high %v6294_v58, %v6298_v4  ;;  %v15001_v7 = vcombine.high %v6326_v14, %v6330_v61  ;;  %v6346_v58 = vld [vmem:[%s16929_s7 + $0x278] sm:$0xff]  ;;  %v15006_v4 = vcombine.low %v6333_v17, %v6337_v40 }
 0x67f   : > { %13439 = vmatprep.subr.bf16.mxu1 %v14953_v57  ;;  %v6334_v57 = vld [vmem:[%s16929_s7 + $0x218] sm:$0xff] }
 0x680   : > { %13112 = vmatpush1.bf16.msra.mxu0 %v14950_v47  ;;  %v15000_v47 = vcombine.low %v6326_v14, %v6330_v61  ;;  %v6378_v14 = vld [vmem:[%s16929_s7 + $0x378] sm:$0xff] }
 0x681   : > { %13440 = vmatpush1.bf16.msra.mxu1 %v14952_v6  ;;  %13113 = vmatprep.subr.bf16.mxu0 %v14959_v37  ;;  %v15007_v6 = vcombine.high %v6333_v17, %v6337_v40  ;;  %v15009_v37 = vcombine.high %v6334_v57, %v6338_v5  ;;  %v6385_v17 = vld [vmem:[%s16929_s7 + $0x3b0] sm:$0xff]  ;;  %v6382_v40 = vld [vmem:[%s16929_s7 + $0x398] sm:$0xff] }
 0x682   : > { %13441 = vmatprep.subr.bf16.mxu1 %v14961_v10  ;;  %v6341_v10 = vld [vmem:[%s16929_s7 + $0x250] sm:$0xff] }
 0x683   : > { %v15014_v23 = vcombine.low %v6341_v10, %v6345_v2 }
 0x684   : > { %13114 = vmatpush1.bf16.msra.mxu0 %v14958_v32  ;;  %v15008_v32 = vcombine.low %v6334_v57, %v6338_v5  ;;  %v6386_v57 = vld [vmem:[%s16929_s7 + $0x3b8] sm:$0xff] }
 0x685   : > { %13442 = vmatpush1.bf16.msra.mxu1 %v14960_v36  ;;  %13115 = vmatprep.subr.bf16.mxu0 %v14967_v15  ;;  %v15015_v36 = vcombine.high %v6341_v10, %v6345_v2  ;;  %v15017_v15 = vcombine.high %v6342_v20, %v6346_v58  ;;  %v6393_v10 = vld [vmem:[%s16929_s7 + $0x3f0] sm:$0xff]  ;;  %v6390_v2 = vld [vmem:[%s16929_s7 + $0x3d8] sm:$0xff] }
 0x686   : > { %13443 = vmatprep.subr.bf16.mxu1 %v14969_v59  ;;  %v6349_v59 = vld [vmem:[%s16929_s7 + $0x290] sm:$0xff] }
 0x687   : > { %v15022_v48 = vcombine.low %v6349_v59, %v6353_v38 }
 0x688   : > { %13116 = vmatpush1.bf16.msra.mxu0 %v14966_v11  ;;  %v15016_v11 = vcombine.low %v6342_v20, %v6346_v58  ;;  %v6394_v20 = vld [vmem:[%s16929_s7 + $0x3f8] sm:$0xff] }
 0x689   : > { %13444 = vmatpush1.bf16.msra.mxu1 %v14968_v56  ;;  %13117 = vmatprep.subr.bf16.mxu0 %v14975_v42  ;;  %v15023_v56 = vcombine.high %v6349_v59, %v6353_v38  ;;  %v15025_v42 = vcombine.high %v6350_v50, %v6354_v30  ;;  %v6401_v59 = vld [vmem:[%s16929_s7 + $0x430] sm:$0xff]  ;;  %v6398_v38 = vld [vmem:[%s16929_s7 + $0x418] sm:$0xff] }
 0x68a   : > { %13445 = vmatprep.subr.bf16.mxu1 %v14977_v31  ;;  %v6357_v31 = vld [vmem:[%s16929_s7 + $0x2d0] sm:$0xff] }
 0x68b   : > { %v15030_v12 = vcombine.low %v6357_v31, %v6361_v8 }
 0x68c   : > { %13118 = vmatpush1.bf16.msra.mxu0 %v14974_v27  ;;  %v15024_v27 = vcombine.low %v6350_v50, %v6354_v30  ;;  %v6402_v50 = vld [vmem:[%s16929_s7 + $0x438] sm:$0xff] }
 0x68d   : > { %13446 = vmatpush1.bf16.msra.mxu1 %v14976_v53  ;;  %13119 = vmatprep.subr.bf16.mxu0 %v14983_v13  ;;  %v15031_v53 = vcombine.high %v6357_v31, %v6361_v8  ;;  %v15033_v13 = vcombine.high %v6358_v60, %v6362_v44  ;;  %v6409_v31 = vld [vmem:[%s16929_s7 + $0x470] sm:$0xff] }
 0x68e   : > { %13447 = vmatprep.subr.bf16.mxu1 %v14985_v28  ;;  %v6365_v28 = vld [vmem:[%s16929_s7 + $0x310] sm:$0xff] }
 0x68f   : > { %v15038_v61 = vcombine.low %v6365_v28, %v6369_v45 }
 0x690   : > { %13120 = vmatpush1.bf16.msra.mxu0 %v14982_v3  ;;  %v15032_v3 = vcombine.low %v6358_v60, %v6362_v44  ;;  %v6406_v60 = vld [vmem:[%s16929_s7 + $0x458] sm:$0xff] }
 0x691   : > { %13448 = vmatpush1.bf16.msra.mxu1 %v14984_v52  ;;  %13121 = vmatprep.subr.bf16.mxu0 %v14991_v9  ;;  %v15039_v52 = vcombine.high %v6365_v28, %v6369_v45  ;;  %v15041_v9 = vcombine.high %v6366_v1, %v6370_v0  ;;  %v6410_v44 = vld [vmem:[%s16929_s7 + $0x478] sm:$0xff] }
 0x692   : > { %13449 = vmatprep.subr.bf16.mxu1 %v14993_v62  ;;  %v6373_v62 = vld [vmem:[%s16929_s7 + $0x350] sm:$0xff]  ;;  %v15081_v28 = vcombine.high %v6406_v60, %v6410_v44  ;;  %v6414_v45 = vld [vmem:[%s16929_s7 + $0x498] sm:$0xff] }
 0x693   : > { %v15046_v5 = vcombine.low %v6373_v62, %v6377_v49 }
 0x694   : > { %13122 = vmatpush1.bf16.msra.mxu0 %v14990_v26  ;;  %v15040_v26 = vcombine.low %v6366_v1, %v6370_v0  ;;  %v6418_v1 = vld [vmem:[%s16929_s7 + $0x4b8] sm:$0xff] }
 0x695   : > { %13450 = vmatpush1.bf16.msra.mxu1 %v14992_v29  ;;  %13123 = vmatprep.subr.bf16.mxu0 %v14999_v55  ;;  %v15047_v29 = vcombine.high %v6373_v62, %v6377_v49  ;;  %v15049_v55 = vcombine.high %v6374_v22, %v6378_v14  ;;  %v6425_v62 = vld [vmem:[%s16929_s7 + $0x4f0] sm:$0xff]  ;;  %v6422_v49 = vld [vmem:[%s16929_s7 + $0x4d8] sm:$0xff] }
 0x696   : > { %13451 = vmatprep.subr.bf16.mxu1 %v15001_v7  ;;  %v6381_v7 = vld [vmem:[%s16929_s7 + $0x390] sm:$0xff] }
 0x697   : > { %v15054_v58 = vcombine.low %v6381_v7, %v6385_v17 }
 0x698   : > { %13124 = vmatpush1.bf16.msra.mxu0 %v14998_v43  ;;  %v15048_v43 = vcombine.low %v6374_v22, %v6378_v14  ;;  %v15088_v14 = vcombine.low %v6414_v45, %v6418_v1 }
 0x699   : > { %13452 = vmatpush1.bf16.msra.mxu1 %v15000_v47  ;;  %13125 = vmatprep.subr.bf16.mxu0 %v15007_v6  ;;  %v15055_v47 = vcombine.high %v6381_v7, %v6385_v17  ;;  %v15057_v6 = vcombine.high %v6382_v40, %v6386_v57  ;;  %v6434_v7 = vld [vmem:[%s16929_s7 + $0x538] sm:$0xff] }
 0x69a   : > { %13453 = vmatprep.subr.bf16.mxu1 %v15009_v37  ;;  %v6389_v37 = vld [vmem:[%s16929_s7 + $0x3d0] sm:$0xff] }
 0x69b   : > { %v15062_v30 = vcombine.low %v6389_v37, %v6393_v10 }
 0x69c   : > { %13126 = vmatpush1.bf16.msra.mxu0 %v15006_v4  ;;  %v15056_v4 = vcombine.low %v6382_v40, %v6386_v57 }
 0x69d   : > { %13454 = vmatpush1.bf16.msra.mxu1 %v15008_v32  ;;  %13127 = vmatprep.subr.bf16.mxu0 %v15015_v36  ;;  %v15063_v32 = vcombine.high %v6389_v37, %v6393_v10  ;;  %v15065_v36 = vcombine.high %v6390_v2, %v6394_v20  ;;  %v6442_v37 = vld [vmem:[%s16929_s7 + $0x578] sm:$0xff] }
 0x69e   : > { %13455 = vmatprep.subr.bf16.mxu1 %v15017_v15  ;;  %v6397_v15 = vld [vmem:[%s16929_s7 + $0x410] sm:$0xff] }
 0x69f   : > { %v15070_v8 = vcombine.low %v6397_v15, %v6401_v59 }
 0x6a0   : > { %13128 = vmatpush1.bf16.msra.mxu0 %v15014_v23  ;;  %v15064_v23 = vcombine.low %v6390_v2, %v6394_v20 }
 0x6a1   : > { %13456 = vmatpush1.bf16.msra.mxu1 %v15016_v11  ;;  %13129 = vmatprep.subr.bf16.mxu0 %v15023_v56  ;;  %v15071_v11 = vcombine.high %v6397_v15, %v6401_v59  ;;  %v15073_v56 = vcombine.high %v6398_v38, %v6402_v50  ;;  %v6450_v15 = vld [vmem:[%s16929_s7 + $0x5b8] sm:$0xff] }
 0x6a2   : > { %13457 = vmatprep.subr.bf16.mxu1 %v15025_v42  ;;  %v6405_v42 = vld [vmem:[%s16929_s7 + $0x450] sm:$0xff] }
 0x6a3   : > { %v15078_v0 = vcombine.low %v6405_v42, %v6409_v31 }
 0x6a4   : > { %13130 = vmatpush1.bf16.msra.mxu0 %v15022_v48  ;;  %v15072_v48 = vcombine.low %v6398_v38, %v6402_v50 }
 0x6a5   : > { %13458 = vmatpush1.bf16.msra.mxu1 %v15024_v27  ;;  %13131 = vmatprep.subr.bf16.mxu0 %v15031_v53  ;;  %v15079_v27 = vcombine.high %v6405_v42, %v6409_v31  ;;  %v6413_v53 = vld [vmem:[%s16929_s7 + $0x490] sm:$0xff]  ;;  %v6458_v42 = vld [vmem:[%s16929_s7 + $0x5f8] sm:$0xff] }
 0x6a6   : > { %13459 = vmatprep.subr.bf16.mxu1 %v15033_v13  ;;  %v6417_v13 = vld [vmem:[%s16929_s7 + $0x4b0] sm:$0xff] }
 0x6a7   : > { %v15086_v22 = vcombine.low %v6413_v53, %v6417_v13 }
 0x6a8   : > { %13132 = vmatpush1.bf16.msra.mxu0 %v15030_v12  ;;  %v15080_v12 = vcombine.low %v6406_v60, %v6410_v44 }
 0x6a9   : > { %13460 = vmatpush1.bf16.msra.mxu1 %v15032_v3  ;;  %13133 = vmatprep.subr.bf16.mxu0 %v15039_v52  ;;  %v15087_v3 = vcombine.high %v6413_v53, %v6417_v13  ;;  %v15089_v52 = vcombine.high %v6414_v45, %v6418_v1  ;;  %v6462_v53 = vld [vmem:[%s16929_s7 + $0x618] sm:$0xff] }
 0x6aa   : > { %13461 = vmatprep.subr.bf16.mxu1 %v15041_v9  ;;  %v6421_v9 = vld [vmem:[%s16929_s7 + $0x4d0] sm:$0xff]  ;;  %v6466_v13 = vld [vmem:[%s16929_s7 + $0x638] sm:$0xff] }
 0x6ab   : > { %v15094_v17 = vcombine.low %v6421_v9, %v6425_v62 }
 0x6ac   : > { %13134 = vmatpush1.bf16.msra.mxu0 %v15038_v61  ;;  %v15095_v61 = vcombine.high %v6421_v9, %v6425_v62  ;;  %v6474_v9 = vld [vmem:[%s16929_s7 + $0x678] sm:$0xff] }
 0x6ad   : > { %13462 = vmatpush1.bf16.msra.mxu1 %v15040_v26  ;;  %13135 = vmatprep.subr.bf16.mxu0 %v15047_v29  ;;  %v6429_v26 = vld [vmem:[%s16929_s7 + $0x510] sm:$0xff] }
 0x6ae   : > { %13463 = vmatprep.subr.bf16.mxu1 %v15049_v55  ;;  %v6433_v29 = vld [vmem:[%s16929_s7 + $0x530] sm:$0xff]  ;;  %v6430_v55 = vld [vmem:[%s16929_s7 + $0x518] sm:$0xff] }
 0x6af   : > { %v15103_v57 = vcombine.high %v6429_v26, %v6433_v29  ;;  %v15102_v10 = vcombine.low %v6429_v26, %v6433_v29  ;;  %v15104_v2 = vcombine.low %v6430_v55, %v6434_v7  ;;  %v6482_v26 = vld [vmem:[%s16929_s7 + $0x6b8] sm:$0xff] }
 0x6b0   : > { %13136 = vmatpush1.bf16.msra.mxu0 %v15046_v5  ;;  %v15105_v5 = vcombine.high %v6430_v55, %v6434_v7 }
 0x6b1   : > { %13464 = vmatpush1.bf16.msra.mxu1 %v15048_v43  ;;  %13137 = vmatprep.subr.bf16.mxu0 %v15055_v47  ;;  %v6437_v43 = vld [vmem:[%s16929_s7 + $0x550] sm:$0xff] }
 0x6b2   : > { %13465 = vmatprep.subr.bf16.mxu1 %v15057_v6  ;;  %v6441_v47 = vld [vmem:[%s16929_s7 + $0x570] sm:$0xff]  ;;  %v6438_v6 = vld [vmem:[%s16929_s7 + $0x558] sm:$0xff] }
 0x6b3   : > { %v15111_v20 = vcombine.high %v6437_v43, %v6441_v47  ;;  %v15110_v59 = vcombine.low %v6437_v43, %v6441_v47  ;;  %v15112_v38 = vcombine.low %v6438_v6, %v6442_v37  ;;  %v6490_v43 = vld [vmem:[%s16929_s7 + $0x6f8] sm:$0xff] }
 0x6b4   : > { %13138 = vmatpush1.bf16.msra.mxu0 %v15054_v58  ;;  %v15113_v58 = vcombine.high %v6438_v6, %v6442_v37 }
 0x6b5   : > { %13466 = vmatpush1.bf16.msra.mxu1 %v15056_v4  ;;  %13139 = vmatprep.subr.bf16.mxu0 %v15063_v32  ;;  %v6445_v4 = vld [vmem:[%s16929_s7 + $0x590] sm:$0xff] }
 0x6b6   : > { %13467 = vmatprep.subr.bf16.mxu1 %v15065_v36  ;;  %v6449_v32 = vld [vmem:[%s16929_s7 + $0x5b0] sm:$0xff]  ;;  %v6446_v36 = vld [vmem:[%s16929_s7 + $0x598] sm:$0xff] }
 0x6b7   : > { %v15119_v50 = vcombine.high %v6445_v4, %v6449_v32  ;;  %v15118_v31 = vcombine.low %v6445_v4, %v6449_v32  ;;  %v6498_v4 = vld [vmem:[%s16929_s7 + $0x738] sm:$0xff] }
 0x6b8   : > { %13140 = vmatpush1.bf16.msra.mxu0 %v15062_v30  ;;  %v15121_v30 = vcombine.high %v6446_v36, %v6450_v15 }
 0x6b9   : > { %13468 = vmatpush1.bf16.msra.mxu1 %v15064_v23  ;;  %13150 = vmatprep.subr.bf16.mxu0 %v15071_v11  ;;  %v6453_v23 = vld [vmem:[%s16929_s7 + $0x5d0] sm:$0xff] }
 0x6ba   : > { %13478 = vmatprep.subr.bf16.mxu1 %v15073_v56  ;;  %v6457_v11 = vld [vmem:[%s16929_s7 + $0x5f0] sm:$0xff]  ;;  %v6454_v56 = vld [vmem:[%s16929_s7 + $0x5d8] sm:$0xff] }
 0x6bb   : > { %13142 = vmatmul.mubr.bf16.vlgmr.msra.gmra.mrb[4].mxu0 %v18457_v54  ;;  %v15127_v60 = vcombine.high %v6453_v23, %v6457_v11  ;;  %v15129_v44 = vcombine.high %v6454_v56, %v6458_v42  ;;  %v15128_v45 = vcombine.low %v6454_v56, %v6458_v42 }
 0x6bc   : > { %13470 = vmatmul.mubr.bf16.vlgmr.msra.gmra.mrb[4].mxu1 %v18457_v54  ;;  %13151 = vmatpush1.bf16.msra.mxu0 %v15070_v8  ;;  %v6426_v54 = vld [vmem:[%s16929_s7 + $0x4f8] sm:$0xff]  ;;  %v15120_v8 = vcombine.low %v6446_v36, %v6450_v15 }
 0x6bd   : > { %13182 = vmatprep.mubr.bf16.mxu0 %v18461_v19  ;;  %13479 = vmatpush1.bf16.msra.mxu1 %v15072_v48  ;;  %v15096_v40 = vcombine.low %v6422_v49, %v6426_v54  ;;  %v6461_v48 = vld [vmem:[%s16929_s7 + $0x610] sm:$0xff] }
 0x6be   : > { %13510 = vmatprep.mubr.bf16.mxu1 %v18461_v19  ;;  %13152 = vmatprep.subr.bf16.mxu0 %v15079_v27  ;;  %v15097_v19 = vcombine.high %v6422_v49, %v6426_v54  ;;  %v6465_v27 = vld [vmem:[%s16929_s7 + $0x630] sm:$0xff]  ;;  %v15136_v49 = vcombine.low %v6462_v53, %v6466_v13 }
 0x6bf   : > { %13480 = vmatprep.subr.bf16.mxu1 %v15081_v28  ;;  %v15126_v28 = vcombine.low %v6453_v23, %v6457_v11  ;;  %v15135_v1 = vcombine.high %v6461_v48, %v6465_v27  ;;  %v15134_v62 = vcombine.low %v6461_v48, %v6465_v27  ;;  %v6506_v23 = vld [vmem:[%s16929_s7 + $0x778] sm:$0xff] }
 0x6c0   : > { %13153 = vmatpush1.bf16.msra.mxu0 %v15078_v0  ;;  %v15137_v0 = vcombine.high %v6462_v53, %v6466_v13  ;;  %v6514_v48 = vld [vmem:[%s16929_s7 + $0x7b8] sm:$0xff] }
 0x6c1   : > { %13481 = vmatpush1.bf16.msra.mxu1 %v15080_v12  ;;  %13154 = vmatprep.subr.bf16.mxu0 %v15087_v3  ;;  %v6469_v12 = vld [vmem:[%s16929_s7 + $0x650] sm:$0xff] }
 0x6c2   : > { %13482 = vmatprep.subr.bf16.mxu1 %v15089_v52  ;;  %v6473_v3 = vld [vmem:[%s16929_s7 + $0x670] sm:$0xff]  ;;  %v6470_v52 = vld [vmem:[%s16929_s7 + $0x658] sm:$0xff] }
 0x6c3   : > { %v15143_v54 = vcombine.high %v6469_v12, %v6473_v3  ;;  %v15142_v29 = vcombine.low %v6469_v12, %v6473_v3  ;;  %v15144_v55 = vcombine.low %v6470_v52, %v6474_v9  ;;  %v6522_v12 = vld [vmem:[%s16929_s7 + $0x7f8] sm:$0xff] }
 0x6c4   : > { %13155 = vmatpush1.bf16.msra.mxu0 %v15086_v22  ;;  %v15145_v22 = vcombine.high %v6470_v52, %v6474_v9 }
 0x6c5   : > { %13483 = vmatpush1.bf16.msra.mxu1 %v15088_v14  ;;  %13156 = vmatprep.subr.bf16.mxu0 %v15095_v61  ;;  %v6477_v14 = vld [vmem:[%s16929_s7 + $0x690] sm:$0xff] }
 0x6c6   : > { %13484 = vmatprep.subr.bf16.mxu1 %v15097_v19  ;;  %v6481_v61 = vld [vmem:[%s16929_s7 + $0x6b0] sm:$0xff]  ;;  %v6478_v19 = vld [vmem:[%s16929_s7 + $0x698] sm:$0xff] }
 0x6c7   : > { %v15151_v7 = vcombine.high %v6477_v14, %v6481_v61  ;;  %v15150_v47 = vcombine.low %v6477_v14, %v6481_v61  ;;  %v15152_v6 = vcombine.low %v6478_v19, %v6482_v26  ;;  %v6530_v14 = vld [vmem:[%s16929_s7 + $0x838] sm:$0xff] }
 0x6c8   : > { %13157 = vmatpush1.bf16.msra.mxu0 %v15094_v17  ;;  %v15153_v17 = vcombine.high %v6478_v19, %v6482_v26 }
 0x6c9   : > { %13485 = vmatpush1.bf16.msra.mxu1 %v15096_v40  ;;  %13158 = vmatprep.subr.bf16.mxu0 %v15103_v57  ;;  %v6485_v40 = vld [vmem:[%s16929_s7 + $0x6d0] sm:$0xff] }
 0x6ca   : > { %13486 = vmatprep.subr.bf16.mxu1 %v15105_v5  ;;  %v6489_v57 = vld [vmem:[%s16929_s7 + $0x6f0] sm:$0xff]  ;;  %v6486_v5 = vld [vmem:[%s16929_s7 + $0x6d8] sm:$0xff] }
 0x6cb   : > { %v15159_v37 = vcombine.high %v6485_v40, %v6489_v57  ;;  %v15158_v32 = vcombine.low %v6485_v40, %v6489_v57  ;;  %v15160_v36 = vcombine.low %v6486_v5, %v6490_v43  ;;  %v6534_v40 = vld [vmem:[%s16929_s7 + $0x858] sm:$0xff] }
 0x6cc   : > { %13159 = vmatpush1.bf16.msra.mxu0 %v15102_v10  ;;  %v15161_v10 = vcombine.high %v6486_v5, %v6490_v43  ;;  %v6538_v57 = vld [vmem:[%s16929_s7 + $0x878] sm:$0xff] }
 0x6cd   : > { %13487 = vmatpush1.bf16.msra.mxu1 %v15104_v2  ;;  %13160 = vmatprep.subr.bf16.mxu0 %v15111_v20  ;;  %v6493_v2 = vld [vmem:[%s16929_s7 + $0x710] sm:$0xff] }
 0x6ce   : > { %13488 = vmatprep.subr.bf16.mxu1 %v15113_v58  ;;  %v6497_v20 = vld [vmem:[%s16929_s7 + $0x730] sm:$0xff]  ;;  %v6494_v58 = vld [vmem:[%s16929_s7 + $0x718] sm:$0xff] }
 0x6cf   : > { %v15167_v15 = vcombine.high %v6493_v2, %v6497_v20  ;;  %v15166_v11 = vcombine.low %v6493_v2, %v6497_v20  ;;  %v15168_v56 = vcombine.low %v6494_v58, %v6498_v4  ;;  %v6546_v2 = vld [vmem:[%s16929_s7 + $0x8b8] sm:$0xff] }
 0x6d0   : > { %13161 = vmatpush1.bf16.msra.mxu0 %v15110_v59  ;;  %v15169_v59 = vcombine.high %v6494_v58, %v6498_v4  ;;  %v15208_v58 = vcombine.low %v6534_v40, %v6538_v57 }
 0x6d1   : > { %13489 = vmatpush1.bf16.msra.mxu1 %v15112_v38  ;;  %13162 = vmatprep.subr.bf16.mxu0 %v15119_v50  ;;  %v6501_v38 = vld [vmem:[%s16929_s7 + $0x750] sm:$0xff] }
 0x6d2   : > { %13490 = vmatprep.subr.bf16.mxu1 %v15121_v30  ;;  %v6505_v50 = vld [vmem:[%s16929_s7 + $0x770] sm:$0xff]  ;;  %v6502_v30 = vld [vmem:[%s16929_s7 + $0x758] sm:$0xff] }
 0x6d3   : > { %v15175_v42 = vcombine.high %v6501_v38, %v6505_v50  ;;  %v15174_v27 = vcombine.low %v6501_v38, %v6505_v50  ;;  %v15176_v53 = vcombine.low %v6502_v30, %v6506_v23 }
 0x6d4   : > { %13163 = vmatpush1.bf16.msra.mxu0 %v15118_v31  ;;  %v15177_v31 = vcombine.high %v6502_v30, %v6506_v23  ;;  %v6557_v23 = vld [vmem:[%s16929_s7 + $0x910] sm:$0xff] }
 0x6d5   : > { %13491 = vmatpush1.bf16.msra.mxu1 %v15120_v8  ;;  %13164 = vmatprep.subr.bf16.mxu0 %v15127_v60  ;;  %v6509_v8 = vld [vmem:[%s16929_s7 + $0x790] sm:$0xff] }
 0x6d6   : > { %13492 = vmatprep.subr.bf16.mxu1 %v15129_v44  ;;  %v6513_v60 = vld [vmem:[%s16929_s7 + $0x7b0] sm:$0xff]  ;;  %v6510_v44 = vld [vmem:[%s16929_s7 + $0x798] sm:$0xff] }
 0x6d7   : > { %v15183_v13 = vcombine.high %v6509_v8, %v6513_v60  ;;  %v15182_v3 = vcombine.low %v6509_v8, %v6513_v60  ;;  %v15184_v52 = vcombine.low %v6510_v44, %v6514_v48 }
 0x6d8   : > { %13165 = vmatpush1.bf16.msra.mxu0 %v15126_v28  ;;  %v15185_v28 = vcombine.high %v6510_v44, %v6514_v48  ;;  %v6565_v48 = vld [vmem:[%s16929_s7 + $0x950] sm:$0xff] }
 0x6d9   : > { %13493 = vmatpush1.bf16.msra.mxu1 %v15128_v45  ;;  %13166 = vmatprep.subr.bf16.mxu0 %v15135_v1  ;;  %v6517_v45 = vld [vmem:[%s16929_s7 + $0x7d0] sm:$0xff] }
 0x6da   : > { %13494 = vmatprep.subr.bf16.mxu1 %v15137_v0  ;;  %v6521_v1 = vld [vmem:[%s16929_s7 + $0x7f0] sm:$0xff]  ;;  %v6518_v0 = vld [vmem:[%s16929_s7 + $0x7d8] sm:$0xff] }
 0x6db   : > { %v15191_v9 = vcombine.high %v6517_v45, %v6521_v1  ;;  %v15190_v61 = vcombine.low %v6517_v45, %v6521_v1  ;;  %v15192_v19 = vcombine.low %v6518_v0, %v6522_v12 }
 0x6dc   : > { %13167 = vmatpush1.bf16.msra.mxu0 %v15134_v62  ;;  %v15193_v62 = vcombine.high %v6518_v0, %v6522_v12  ;;  %v6573_v12 = vld [vmem:[%s16929_s7 + $0x990] sm:$0xff] }
 0x6dd   : > { %13495 = vmatpush1.bf16.msra.mxu1 %v15136_v49  ;;  %13168 = vmatprep.subr.bf16.mxu0 %v15143_v54  ;;  %v6525_v49 = vld [vmem:[%s16929_s7 + $0x810] sm:$0xff] }
 0x6de   : > { %13496 = vmatprep.subr.bf16.mxu1 %v15145_v22  ;;  %v6529_v54 = vld [vmem:[%s16929_s7 + $0x830] sm:$0xff]  ;;  %v6526_v22 = vld [vmem:[%s16929_s7 + $0x818] sm:$0xff] }
 0x6df   : > { %v15199_v26 = vcombine.high %v6525_v49, %v6529_v54  ;;  %v15200_v5 = vcombine.low %v6526_v22, %v6530_v14 }
 0x6e0   : > { %13169 = vmatpush1.bf16.msra.mxu0 %v15142_v29  ;;  %v15201_v29 = vcombine.high %v6526_v22, %v6530_v14  ;;  %v6581_v14 = vld [vmem:[%s16929_s7 + $0x9d0] sm:$0xff] }
 0x6e1   : > { %13497 = vmatpush1.bf16.msra.mxu1 %v15144_v55  ;;  %13170 = vmatprep.subr.bf16.mxu0 %v15151_v7  ;;  %v6533_v55 = vld [vmem:[%s16929_s7 + $0x850] sm:$0xff] }
 0x6e2   : > { %13498 = vmatprep.subr.bf16.mxu1 %v15153_v17  ;;  %v6537_v7 = vld [vmem:[%s16929_s7 + $0x870] sm:$0xff]  ;;  %v15198_v17 = vcombine.low %v6525_v49, %v6529_v54 }
 0x6e3   : > { %v15207_v43 = vcombine.high %v6533_v55, %v6537_v7  ;;  %v15206_v20 = vcombine.low %v6533_v55, %v6537_v7 }
 0x6e4   : > { %13171 = vmatpush1.bf16.msra.mxu0 %v15150_v47  ;;  %v6541_v47 = vld [vmem:[%s16929_s7 + $0x890] sm:$0xff] }
 0x6e5   : > { %13499 = vmatpush1.bf16.msra.mxu1 %v15152_v6  ;;  %13172 = vmatprep.subr.bf16.mxu0 %v15159_v37  ;;  %v6545_v6 = vld [vmem:[%s16929_s7 + $0x8b0] sm:$0xff]  ;;  %v15209_v37 = vcombine.high %v6534_v40, %v6538_v57 }
 0x6e6   : > { %13500 = vmatprep.subr.bf16.mxu1 %v15161_v10  ;;  %v6542_v10 = vld [vmem:[%s16929_s7 + $0x898] sm:$0xff]  ;;  %v15215_v4 = vcombine.high %v6541_v47, %v6545_v6  ;;  %v15214_v38 = vcombine.low %v6541_v47, %v6545_v6  ;;  %v6589_v40 = vld [vmem:[%s16929_s7 + $0xa10] sm:$0xff] }
 0x6e7   : > { %v15216_v50 = vcombine.low %v6542_v10, %v6546_v2  ;;  %v6593_v57 = vld [vmem:[%s16929_s7 + $0xa30] sm:$0xff] }
 0x6e8   : > { %13173 = vmatpush1.bf16.msra.mxu0 %v15158_v32  ;;  %v15217_v32 = vcombine.high %v6542_v10, %v6546_v2  ;;  %v6597_v2 = vld [vmem:[%s16929_s7 + $0xa50] sm:$0xff] }
 0x6e9   : > { %13501 = vmatpush1.bf16.msra.mxu1 %v15160_v36  ;;  %13174 = vmatprep.subr.bf16.mxu0 %v15167_v15  ;;  %v6549_v36 = vld [vmem:[%s16929_s7 + $0x8d0] sm:$0xff] }
 0x6ea   : > { %13502 = vmatprep.subr.bf16.mxu1 %v15169_v59  ;;  %v6553_v15 = vld [vmem:[%s16929_s7 + $0x8f0] sm:$0xff]  ;;  %v6550_v59 = vld [vmem:[%s16929_s7 + $0x8d8] sm:$0xff] }
 0x6eb   : > { %v15223_v30 = vcombine.high %v6549_v36, %v6553_v15 }
 0x6ec   : > { %13175 = vmatpush1.bf16.msra.mxu0 %v15166_v11  ;;  %v6561_v11 = vld [vmem:[%s16929_s7 + $0x930] sm:$0xff] }
 0x6ed   : > { %13503 = vmatpush1.bf16.msra.mxu1 %v15168_v56  ;;  %13176 = vmatprep.subr.bf16.mxu0 %v15175_v42  ;;  %v6558_v56 = vld [vmem:[%s16929_s7 + $0x918] sm:$0xff]  ;;  %v15231_v60 = vcombine.high %v6557_v23, %v6561_v11 }
 0x6ee   : > { %13504 = vmatprep.subr.bf16.mxu1 %v15177_v31  ;;  %v6562_v42 = vld [vmem:[%s16929_s7 + $0x938] sm:$0xff]  ;;  %v15222_v31 = vcombine.low %v6549_v36, %v6553_v15 }
 0x6ef   : > { %v15233_v44 = vcombine.high %v6558_v56, %v6562_v42  ;;  %v15232_v45 = vcombine.low %v6558_v56, %v6562_v42  ;;  %v6613_v42 = vld [vmem:[%s16929_s7 + $0xad0] sm:$0xff] }
 0x6f0   : > { %13177 = vmatpush1.bf16.msra.mxu0 %v15174_v27  ;;  %v6569_v27 = vld [vmem:[%s16929_s7 + $0x970] sm:$0xff] }
 0x6f1   : > { %13505 = vmatpush1.bf16.msra.mxu1 %v15176_v53  ;;  %13178 = vmatprep.subr.bf16.mxu0 %v15183_v13  ;;  %v6566_v53 = vld [vmem:[%s16929_s7 + $0x958] sm:$0xff]  ;;  %v15239_v1 = vcombine.high %v6565_v48, %v6569_v27 }
 0x6f2   : > { %13506 = vmatprep.subr.bf16.mxu1 %v15185_v28  ;;  %v6570_v13 = vld [vmem:[%s16929_s7 + $0x978] sm:$0xff]  ;;  %v15230_v28 = vcombine.low %v6557_v23, %v6561_v11 }
 0x6f3   : > { %v15241_v0 = vcombine.high %v6566_v53, %v6570_v13  ;;  %v15240_v49 = vcombine.low %v6566_v53, %v6570_v13  ;;  %v6621_v13 = vld [vmem:[%s16929_s7 + $0xb10] sm:$0xff] }
 0x6f4   : > { %13179 = vmatpush1.bf16.msra.mxu0 %v15182_v3  ;;  %v6577_v3 = vld [vmem:[%s16929_s7 + $0x9b0] sm:$0xff] }
 0x6f5   : > { %13507 = vmatpush1.bf16.msra.mxu1 %v15184_v52  ;;  %13180 = vmatprep.subr.bf16.mxu0 %v15191_v9  ;;  %v6574_v52 = vld [vmem:[%s16929_s7 + $0x998] sm:$0xff]  ;;  %v15247_v54 = vcombine.high %v6573_v12, %v6577_v3 }
 0x6f6   : > { %13508 = vmatprep.subr.bf16.mxu1 %v15193_v62  ;;  %v6578_v9 = vld [vmem:[%s16929_s7 + $0x9b8] sm:$0xff]  ;;  %v15238_v62 = vcombine.low %v6565_v48, %v6569_v27 }
 0x6f7   : > { %v15249_v22 = vcombine.high %v6574_v52, %v6578_v9  ;;  %v15248_v55 = vcombine.low %v6574_v52, %v6578_v9  ;;  %v6629_v9 = vld [vmem:[%s16929_s7 + $0xb50] sm:$0xff] }
 0x6f8   : > { %13181 = vmatpush1.bf16.msra.mxu0 %v15190_v61  ;;  %v6585_v61 = vld [vmem:[%s16929_s7 + $0x9f0] sm:$0xff] }
 0x6f9   : > { %13509 = vmatpush1.bf16.msra.mxu1 %v15192_v19  ;;  %13191 = vmatprep.subr.bf16.mxu0 %v15199_v26  ;;  %v6582_v19 = vld [vmem:[%s16929_s7 + $0x9d8] sm:$0xff]  ;;  %v15255_v7 = vcombine.high %v6581_v14, %v6585_v61  ;;  %v15254_v47 = vcombine.low %v6581_v14, %v6585_v61 }
 0x6fa   : > { %13519 = vmatprep.subr.bf16.mxu1 %v15201_v29  ;;  %v6586_v26 = vld [vmem:[%s16929_s7 + $0x9f8] sm:$0xff]  ;;  %v15246_v29 = vcombine.low %v6573_v12, %v6577_v3 }
 0x6fb   : > { %13183 = vmatmul.mubr.bf16.vlgmr.msra.gmra.mrb[4].mxu0 %v18667_v46  ;;  %v15256_v6 = vcombine.low %v6582_v19, %v6586_v26 }
 0x6fc   : > { %13511 = vmatmul.mubr.bf16.vlgmr.msra.gmra.mrb[4].mxu1 %v18667_v46  ;;  %13192 = vmatpush1.bf16.msra.mxu0 %v15198_v17  ;;  %v6554_v46 = vld [vmem:[%s16929_s7 + $0x8f8] sm:$0xff]  ;;  %v15257_v17 = vcombine.high %v6582_v19, %v6586_v26  ;;  %v6637_v26 = vld [vmem:[%s16929_s7 + $0xb90] sm:$0xff] }
 0x6fd   : > { %13223 = vmatprep.mubr.bf16.mxu0 %v18685_v24  ;;  %13520 = vmatpush1.bf16.msra.mxu1 %v15200_v5  ;;  %v15224_v8 = vcombine.low %v6550_v59, %v6554_v46  ;;  %v6590_v5 = vld [vmem:[%s16929_s7 + $0xa18] sm:$0xff] }
 0x6fe   : > { %13551 = vmatprep.mubr.bf16.mxu1 %v18685_v24  ;;  %13193 = vmatprep.subr.bf16.mxu0 %v15207_v43  ;;  %v15225_v24 = vcombine.high %v6550_v59, %v6554_v46  ;;  %v6594_v43 = vld [vmem:[%s16929_s7 + $0xa38] sm:$0xff]  ;;  %v6605_v46 = vld [vmem:[%s16929_s7 + $0xa90] sm:$0xff] }
 0x6ff   : > { %13521 = vmatprep.subr.bf16.mxu1 %v15209_v37  ;;  %v15263_v37 = vcombine.high %v6589_v40, %v6593_v57  ;;  %v15265_v10 = vcombine.high %v6590_v5, %v6594_v43  ;;  %v15264_v36 = vcombine.low %v6590_v5, %v6594_v43  ;;  %v6645_v43 = vld [vmem:[%s16929_s7 + $0xbd0] sm:$0xff] }
 0x700   : > { %13194 = vmatpush1.bf16.msra.mxu0 %v15206_v20  ;;  %v6601_v20 = vld [vmem:[%s16929_s7 + $0xa70] sm:$0xff] }
 0x701   : > { %13522 = vmatpush1.bf16.msra.mxu1 %v15208_v58  ;;  %13195 = vmatprep.subr.bf16.mxu0 %v15215_v4  ;;  %v6598_v58 = vld [vmem:[%s16929_s7 + $0xa58] sm:$0xff]  ;;  %v15271_v15 = vcombine.high %v6597_v2, %v6601_v20 }
 0x702   : > { %13523 = vmatprep.subr.bf16.mxu1 %v15217_v32  ;;  %v6602_v4 = vld [vmem:[%s16929_s7 + $0xa78] sm:$0xff]  ;;  %v15262_v32 = vcombine.low %v6589_v40, %v6593_v57 }
 0x703   : > { %v15273_v59 = vcombine.high %v6598_v58, %v6602_v4  ;;  %v15272_v23 = vcombine.low %v6598_v58, %v6602_v4  ;;  %v6653_v4 = vld [vmem:[%s16929_s7 + $0xc10] sm:$0xff] }
 0x704   : > { %13196 = vmatpush1.bf16.msra.mxu0 %v15214_v38  ;;  %v6609_v38 = vld [vmem:[%s16929_s7 + $0xab0] sm:$0xff] }
 0x705   : > { %13524 = vmatpush1.bf16.msra.mxu1 %v15216_v50  ;;  %13197 = vmatprep.subr.bf16.mxu0 %v15223_v30  ;;  %v6606_v50 = vld [vmem:[%s16929_s7 + $0xa98] sm:$0xff]  ;;  %v15279_v11 = vcombine.high %v6605_v46, %v6609_v38 }
 0x706   : > { %13525 = vmatprep.subr.bf16.mxu1 %v15225_v24  ;;  %v6610_v30 = vld [vmem:[%s16929_s7 + $0xab8] sm:$0xff]  ;;  %v15270_v24 = vcombine.low %v6597_v2, %v6601_v20 }
 0x707   : > { %v15281_v56 = vcombine.high %v6606_v50, %v6610_v30  ;;  %v15280_v48 = vcombine.low %v6606_v50, %v6610_v30  ;;  %v6661_v30 = vld [vmem:[%s16929_s7 + $0xc50] sm:$0xff] }
 0x708   : > { %13198 = vmatpush1.bf16.msra.mxu0 %v15222_v31  ;;  %v6617_v31 = vld [vmem:[%s16929_s7 + $0xaf0] sm:$0xff] }
 0x709   : > { %13526 = vmatpush1.bf16.msra.mxu1 %v15224_v8  ;;  %13199 = vmatprep.subr.bf16.mxu0 %v15231_v60  ;;  %v6614_v8 = vld [vmem:[%s16929_s7 + $0xad8] sm:$0xff]  ;;  %v15287_v27 = vcombine.high %v6613_v42, %v6617_v31 }
 0x70a   : > { %13527 = vmatprep.subr.bf16.mxu1 %v15233_v44  ;;  %v6618_v60 = vld [vmem:[%s16929_s7 + $0xaf8] sm:$0xff]  ;;  %v15278_v44 = vcombine.low %v6605_v46, %v6609_v38 }
 0x70b   : > { %v15289_v53 = vcombine.high %v6614_v8, %v6618_v60  ;;  %v15288_v12 = vcombine.low %v6614_v8, %v6618_v60  ;;  %v6669_v8 = vld [vmem:[%s16929_s7 + $0xc90] sm:$0xff] }
 0x70c   : > { %13200 = vmatpush1.bf16.msra.mxu0 %v15230_v28  ;;  %v6625_v28 = vld [vmem:[%s16929_s7 + $0xb30] sm:$0xff] }
 0x70d   : > { %13528 = vmatpush1.bf16.msra.mxu1 %v15232_v45  ;;  %13201 = vmatprep.subr.bf16.mxu0 %v15239_v1  ;;  %v6622_v45 = vld [vmem:[%s16929_s7 + $0xb18] sm:$0xff]  ;;  %v15295_v3 = vcombine.high %v6621_v13, %v6625_v28  ;;  %v6673_v60 = vld [vmem:[%s16929_s7 + $0xcb0] sm:$0xff] }
 0x70e   : > { %13529 = vmatprep.subr.bf16.mxu1 %v15241_v0  ;;  %v6626_v1 = vld [vmem:[%s16929_s7 + $0xb38] sm:$0xff]  ;;  %v15286_v0 = vcombine.low %v6613_v42, %v6617_v31 }
 0x70f   : > { %v15297_v52 = vcombine.high %v6622_v45, %v6626_v1  ;;  %v15296_v14 = vcombine.low %v6622_v45, %v6626_v1  ;;  %v6677_v1 = vld [vmem:[%s16929_s7 + $0xcd0] sm:$0xff] }
 0x710   : > { %13202 = vmatpush1.bf16.msra.mxu0 %v15238_v62  ;;  %v6633_v62 = vld [vmem:[%s16929_s7 + $0xb70] sm:$0xff] }
 0x711   : > { %13530 = vmatpush1.bf16.msra.mxu1 %v15240_v49  ;;  %13203 = vmatprep.subr.bf16.mxu0 %v15247_v54  ;;  %v6630_v49 = vld [vmem:[%s16929_s7 + $0xb58] sm:$0xff]  ;;  %v15303_v61 = vcombine.high %v6629_v9, %v6633_v62 }
 0x712   : > { %13531 = vmatprep.subr.bf16.mxu1 %v15249_v22  ;;  %v6634_v54 = vld [vmem:[%s16929_s7 + $0xb78] sm:$0xff]  ;;  %v15294_v22 = vcombine.low %v6621_v13, %v6625_v28  ;;  %v15343_v28 = vcombine.high %v6669_v8, %v6673_v60 }
 0x713   : > { %v15305_v19 = vcombine.high %v6630_v49, %v6634_v54  ;;  %v15304_v40 = vcombine.low %v6630_v49, %v6634_v54  ;;  %v6689_v49 = vld [vmem:[%s16929_s7 + $0xd30] sm:$0xff]  ;;  %v6686_v54 = vld [vmem:[%s16929_s7 + $0xd18] sm:$0xff] }
 0x714   : > { %13204 = vmatpush1.bf16.msra.mxu0 %v15246_v29  ;;  %v6641_v29 = vld [vmem:[%s16929_s7 + $0xbb0] sm:$0xff] }
 0x715   : > { %13532 = vmatpush1.bf16.msra.mxu1 %v15248_v55  ;;  %13205 = vmatprep.subr.bf16.mxu0 %v15255_v7  ;;  %v6638_v55 = vld [vmem:[%s16929_s7 + $0xb98] sm:$0xff]  ;;  %v15311_v57 = vcombine.high %v6637_v26, %v6641_v29 }
 0x716   : > { %13533 = vmatprep.subr.bf16.mxu1 %v15257_v17  ;;  %v6642_v7 = vld [vmem:[%s16929_s7 + $0xbb8] sm:$0xff]  ;;  %v15302_v17 = vcombine.low %v6629_v9, %v6633_v62  ;;  %v6685_v62 = vld [vmem:[%s16929_s7 + $0xd10] sm:$0xff] }
 0x717   : > { %v15313_v5 = vcombine.high %v6638_v55, %v6642_v7  ;;  %v15312_v2 = vcombine.low %v6638_v55, %v6642_v7  ;;  %v6697_v55 = vld [vmem:[%s16929_s7 + $0xd70] sm:$0xff]  ;;  %v6694_v7 = vld [vmem:[%s16929_s7 + $0xd58] sm:$0xff] }
 0x718   : > { %13206 = vmatpush1.bf16.msra.mxu0 %v15254_v47  ;;  %v6649_v47 = vld [vmem:[%s16929_s7 + $0xbf0] sm:$0xff] }
 0x719   : > { %13534 = vmatpush1.bf16.msra.mxu1 %v15256_v6  ;;  %13207 = vmatprep.subr.bf16.mxu0 %v15263_v37  ;;  %v6646_v6 = vld [vmem:[%s16929_s7 + $0xbd8] sm:$0xff]  ;;  %v15319_v20 = vcombine.high %v6645_v43, %v6649_v47 }
 0x71a   : > { %13535 = vmatprep.subr.bf16.mxu1 %v15265_v10  ;;  %v6650_v37 = vld [vmem:[%s16929_s7 + $0xbf8] sm:$0xff]  ;;  %v15310_v10 = vcombine.low %v6637_v26, %v6641_v29  ;;  %v6693_v29 = vld [vmem:[%s16929_s7 + $0xd50] sm:$0xff] }
 0x71b   : > { %v15321_v58 = vcombine.high %v6646_v6, %v6650_v37  ;;  %v15320_v46 = vcombine.low %v6646_v6, %v6650_v37  ;;  %v6705_v6 = vld [vmem:[%s16929_s7 + $0xdb0] sm:$0xff]  ;;  %v6702_v37 = vld [vmem:[%s16929_s7 + $0xd98] sm:$0xff] }
 0x71c   : > { %13208 = vmatpush1.bf16.msra.mxu0 %v15262_v32  ;;  %v6657_v32 = vld [vmem:[%s16929_s7 + $0xc30] sm:$0xff] }
 0x71d   : > { %13536 = vmatpush1.bf16.msra.mxu1 %v15264_v36  ;;  %13209 = vmatprep.subr.bf16.mxu0 %v15271_v15  ;;  %v6654_v36 = vld [vmem:[%s16929_s7 + $0xc18] sm:$0xff]  ;;  %v15327_v38 = vcombine.high %v6653_v4, %v6657_v32 }
 0x71e   : > { %13537 = vmatprep.subr.bf16.mxu1 %v15273_v59  ;;  %v6658_v15 = vld [vmem:[%s16929_s7 + $0xc38] sm:$0xff]  ;;  %v15318_v59 = vcombine.low %v6645_v43, %v6649_v47  ;;  %v6701_v47 = vld [vmem:[%s16929_s7 + $0xd90] sm:$0xff] }
 0x71f   : > { %v15329_v50 = vcombine.high %v6654_v36, %v6658_v15  ;;  %v15328_v42 = vcombine.low %v6654_v36, %v6658_v15  ;;  %v6709_v36 = vld [vmem:[%s16929_s7 + $0xdd0] sm:$0xff] }
 0x720   : > { %13210 = vmatpush1.bf16.msra.mxu0 %v15270_v24  ;;  %v6665_v24 = vld [vmem:[%s16929_s7 + $0xc70] sm:$0xff] }
 0x721   : > { %13538 = vmatpush1.bf16.msra.mxu1 %v15272_v23  ;;  %13211 = vmatprep.subr.bf16.mxu0 %v15279_v11  ;;  %v15326_v23 = vcombine.low %v6653_v4, %v6657_v32  ;;  %v6662_v11 = vld [vmem:[%s16929_s7 + $0xc58] sm:$0xff]  ;;  %v15335_v31 = vcombine.high %v6661_v30, %v6665_v24  ;;  %v6713_v15 = vld [vmem:[%s16929_s7 + $0xdf0] sm:$0xff] }
 0x722   : > { %13539 = vmatprep.subr.bf16.mxu1 %v15281_v56  ;;  %v6666_v56 = vld [vmem:[%s16929_s7 + $0xc78] sm:$0xff] }
 0x723   : > { %v15336_v13 = vcombine.low %v6662_v11, %v6666_v56 }
 0x724   : > { %13212 = vmatpush1.bf16.msra.mxu0 %v15278_v44  ;;  %v15337_v44 = vcombine.high %v6662_v11, %v6666_v56 }
 0x725   : > { %13540 = vmatpush1.bf16.msra.mxu1 %v15280_v48  ;;  %13213 = vmatprep.subr.bf16.mxu0 %v15287_v27  ;;  %v6670_v48 = vld [vmem:[%s16929_s7 + $0xc98] sm:$0xff] }
 0x726   : > { %13541 = vmatprep.subr.bf16.mxu1 %v15289_v53  ;;  %v6674_v27 = vld [vmem:[%s16929_s7 + $0xcb8] sm:$0xff]  ;;  %v15334_v53 = vcombine.low %v6661_v30, %v6665_v24 }
 0x727   : > { %v15345_v45 = vcombine.high %v6670_v48, %v6674_v27 }
 0x728   : > { %13214 = vmatpush1.bf16.msra.mxu0 %v15286_v0  ;;  %v6681_v0 = vld [vmem:[%s16929_s7 + $0xcf0] sm:$0xff] }
 0x729   : > { %13542 = vmatpush1.bf16.msra.mxu1 %v15288_v12  ;;  %13215 = vmatprep.subr.bf16.mxu0 %v15295_v3  ;;  %v6678_v12 = vld [vmem:[%s16929_s7 + $0xcd8] sm:$0xff]  ;;  %v15342_v3 = vcombine.low %v6669_v8, %v6673_v60  ;;  %v15351_v9 = vcombine.high %v6677_v1, %v6681_v0 }
 0x72a   : > { %13543 = vmatprep.subr.bf16.mxu1 %v15297_v52  ;;  %v15344_v52 = vcombine.low %v6670_v48, %v6674_v27  ;;  %v6721_v48 = vld [vmem:[%s16929_s7 + $0xe30] sm:$0xff]  ;;  %v6718_v27 = vld [vmem:[%s16929_s7 + $0xe18] sm:$0xff] }
 0x72c   : > { %13216 = vmatpush1.bf16.msra.mxu0 %v15294_v22  ;;  %v6690_v22 = vld [vmem:[%s16929_s7 + $0xd38] sm:$0xff] }
 0x72d   : > { %13544 = vmatpush1.bf16.msra.mxu1 %v15296_v14  ;;  %13217 = vmatprep.subr.bf16.mxu0 %v15303_v61  ;;  %v15350_v14 = vcombine.low %v6677_v1, %v6681_v0  ;;  %v15361_v26 = vcombine.high %v6686_v54, %v6690_v22  ;;  %v6725_v0 = vld [vmem:[%s16929_s7 + $0xe50] sm:$0xff] }
 0x72e   : > { %13545 = vmatprep.subr.bf16.mxu1 %v15305_v19  ;;  %v15359_v19 = vcombine.high %v6685_v62, %v6689_v49 }
 0x730   : > { %13218 = vmatpush1.bf16.msra.mxu0 %v15302_v17  ;;  %v6698_v17 = vld [vmem:[%s16929_s7 + $0xd78] sm:$0xff] }
 0x731   : > { %13546 = vmatpush1.bf16.msra.mxu1 %v15304_v40  ;;  %13219 = vmatprep.subr.bf16.mxu0 %v15311_v57  ;;  %v15358_v40 = vcombine.low %v6685_v62, %v6689_v49  ;;  %v15360_v57 = vcombine.low %v6686_v54, %v6690_v22  ;;  %v15369_v43 = vcombine.high %v6694_v7, %v6698_v17  ;;  %v6733_v49 = vld [vmem:[%s16929_s7 + $0xe90] sm:$0xff]  ;;  %v6734_v22 = vld [vmem:[%s16929_s7 + $0xe98] sm:$0xff] }
 0x732   : > { %13547 = vmatprep.subr.bf16.mxu1 %v15313_v5  ;;  %v15367_v5 = vcombine.high %v6693_v29, %v6697_v55  ;;  %v6737_v54 = vld [vmem:[%s16929_s7 + $0xeb0] sm:$0xff] }
 0x734   : > { %13220 = vmatpush1.bf16.msra.mxu0 %v15310_v10  ;;  %v6706_v10 = vld [vmem:[%s16929_s7 + $0xdb8] sm:$0xff] }
 0x735   : > { %13548 = vmatpush1.bf16.msra.mxu1 %v15312_v2  ;;  %13221 = vmatprep.subr.bf16.mxu0 %v15319_v20  ;;  %v15366_v2 = vcombine.low %v6693_v29, %v6697_v55  ;;  %v15368_v20 = vcombine.low %v6694_v7, %v6698_v17  ;;  %v15377_v32 = vcombine.high %v6702_v37, %v6706_v10  ;;  %v6741_v55 = vld [vmem:[%s16929_s7 + $0xed0] sm:$0xff]  ;;  %v6742_v17 = vld [vmem:[%s16929_s7 + $0xed8] sm:$0xff] }
 0x736   : > { %13549 = vmatprep.subr.bf16.mxu1 %v15321_v58  ;;  %v15375_v58 = vcombine.high %v6701_v47, %v6705_v6  ;;  %v6745_v7 = vld [vmem:[%s16929_s7 + $0xef0] sm:$0xff] }
 0x738   : > { %13222 = vmatpush1.bf16.msra.mxu0 %v15318_v59 }
 0x739   : > { %13550 = vmatpush1.bf16.msra.mxu1 %v15320_v46  ;;  %13232 = vmatprep.subr.bf16.mxu0 %v15327_v38  ;;  %v6710_v38 = vld [vmem:[%s16929_s7 + $0xdd8] sm:$0xff] }
 0x73a   : > { %13560 = vmatprep.subr.bf16.mxu1 %v15329_v50  ;;  %v6714_v50 = vld [vmem:[%s16929_s7 + $0xdf8] sm:$0xff] }
 0x73b   : > { %13224 = vmatmul.mubr.bf16.vlgmr.msra.gmra.mrb[4].mxu0 %v18987_v33  ;;  %v15385_v60 = vcombine.high %v6710_v38, %v6714_v50 }
 0x73c   : > { %13552 = vmatmul.mubr.bf16.vlgmr.msra.gmra.mrb[4].mxu1 %v18987_v33  ;;  %13233 = vmatpush1.bf16.msra.mxu0 %v15326_v23  ;;  %v6682_v33 = vld [vmem:[%s16929_s7 + $0xcf8] sm:$0xff]  ;;  %v15374_v23 = vcombine.low %v6701_v47, %v6705_v6  ;;  %v6749_v6 = vld [vmem:[%s16929_s7 + $0xf10] sm:$0xff] }
 0x73d   : > { %13264 = vmatprep.mubr.bf16.mxu0 %v18993_v63  ;;  %13561 = vmatpush1.bf16.msra.mxu1 %v15328_v42  ;;  %v15352_v61 = vcombine.low %v6678_v12, %v6682_v33  ;;  %v15376_v42 = vcombine.low %v6702_v37, %v6706_v10  ;;  %v6753_v37 = vld [vmem:[%s16929_s7 + $0xf30] sm:$0xff]  ;;  %v6750_v10 = vld [vmem:[%s16929_s7 + $0xf18] sm:$0xff] }
 0x73e   : > { %13592 = vmatprep.mubr.bf16.mxu1 %v18993_v63  ;;  %13234 = vmatprep.subr.bf16.mxu0 %v15335_v31  ;;  %v15353_v63 = vcombine.high %v6678_v12, %v6682_v33  ;;  %v15383_v31 = vcombine.high %v6709_v36, %v6713_v15  ;;  %v6729_v12 = vld [vmem:[%s16929_s7 + $0xe70] sm:$0xff]  ;;  %v6726_v33 = vld [vmem:[%s16929_s7 + $0xe58] sm:$0xff] }
 0x73f   : > { %13562 = vmatprep.subr.bf16.mxu1 %v15337_v44  ;;  %v6717_v44 = vld [vmem:[%s16929_s7 + $0xe10] sm:$0xff] }
 0x740   : > { %13235 = vmatpush1.bf16.msra.mxu0 %v15334_v53  ;;  %v6722_v53 = vld [vmem:[%s16929_s7 + $0xe38] sm:$0xff] }
 0x741   : > { %13563 = vmatpush1.bf16.msra.mxu1 %v15336_v13  ;;  %13236 = vmatprep.subr.bf16.mxu0 %v15343_v28  ;;  %v15382_v13 = vcombine.low %v6709_v36, %v6713_v15  ;;  %v15384_v28 = vcombine.low %v6710_v38, %v6714_v50  ;;  %v15393_v1 = vcombine.high %v6718_v27, %v6722_v53  ;;  %v6757_v15 = vld [vmem:[%s16929_s7 + $0xf50] sm:$0xff]  ;;  %v6758_v50 = vld [vmem:[%s16929_s7 + $0xf58] sm:$0xff] }
 0x742   : > { %13564 = vmatprep.subr.bf16.mxu1 %v15345_v45  ;;  %v15391_v45 = vcombine.high %v6717_v44, %v6721_v48  ;;  %v6761_v38 = vld [vmem:[%s16929_s7 + $0xf70] sm:$0xff] }
 0x744   : > { %13237 = vmatpush1.bf16.msra.mxu0 %v15342_v3  ;;  %v6730_v3 = vld [vmem:[%s16929_s7 + $0xe78] sm:$0xff] }
 0x745   : > { %13565 = vmatpush1.bf16.msra.mxu1 %v15344_v52  ;;  %13238 = vmatprep.subr.bf16.mxu0 %v15351_v9  ;;  %v15390_v52 = vcombine.low %v6717_v44, %v6721_v48  ;;  %v15392_v9 = vcombine.low %v6718_v27, %v6722_v53  ;;  %v15401_v62 = vcombine.high %v6726_v33, %v6730_v3  ;;  %v6770_v44 = vld [vmem:[%s16929_s7 + $0xfb8] sm:$0xff] }
 0x746   : > { %13566 = vmatprep.subr.bf16.mxu1 %v15353_v63  ;;  %v15399_v63 = vcombine.high %v6725_v0, %v6729_v12  ;;  %v15430_v48 = vcombine.low %v6757_v15, %v6761_v38 }
 0x748   : > { %13239 = vmatpush1.bf16.msra.mxu0 %v15350_v14  ;;  %v6738_v14 = vld [vmem:[%s16929_s7 + $0xeb8] sm:$0xff] }
 0x749   : > { %13567 = vmatpush1.bf16.msra.mxu1 %v15352_v61  ;;  %13240 = vmatprep.subr.bf16.mxu0 %v15359_v19  ;;  %v15398_v61 = vcombine.low %v6725_v0, %v6729_v12  ;;  %v15400_v19 = vcombine.low %v6726_v33, %v6730_v3  ;;  %v15409_v29 = vcombine.high %v6734_v22, %v6738_v14  ;;  %v6778_v0 = vld [vmem:[%s16929_s7 + $0xff8] sm:$0xff] }
 0x74a   : > { %13568 = vmatprep.subr.bf16.mxu1 %v15361_v26  ;;  %v15407_v26 = vcombine.high %v6733_v49, %v6737_v54 }
 0x74c   : > { %13241 = vmatpush1.bf16.msra.mxu0 %v15358_v40  ;;  %v6746_v40 = vld [vmem:[%s16929_s7 + $0xef8] sm:$0xff] }
 0x74d   : > { %13569 = vmatpush1.bf16.msra.mxu1 %v15360_v57  ;;  %13242 = vmatprep.subr.bf16.mxu0 %v15367_v5  ;;  %v15406_v57 = vcombine.low %v6733_v49, %v6737_v54  ;;  %v15408_v5 = vcombine.low %v6734_v22, %v6738_v14  ;;  %v15417_v47 = vcombine.high %v6742_v17, %v6746_v40  ;;  %v6786_v49 = vld [vmem:[%s16929_s7 + $0x1038] sm:$0xff] }
 0x74e   : > { %v19773_v4 = vpop.f32.mrb[0].mxu0  ;;  %13570 = vmatprep.subr.bf16.mxu1 %v15369_v43  ;;  %v15415_v43 = vcombine.high %v6741_v55, %v6745_v7 }
 0x74f   : > { %v19777_v59 = vpop.f32.mrb[0].mxu1  ;;  %v19779_v46 = vpop.f32.mrb[1].mxu0 }
 0x750   : > { %v19783_v30 = vpop.f32.mrb[1].mxu1  ;;  %v12778_v24 = vpop.f32.mrb[2].mxu0  ;;  %13243 = vmatpush1.bf16.msra.mxu0 %v15366_v2  ;;  %v6754_v2 = vld [vmem:[%s16929_s7 + $0xf38] sm:$0xff] }
 0x751   : > { %v13106_v11 = vpop.f32.mrb[2].mxu1  ;;  %13571 = vmatpush1.bf16.msra.mxu1 %v15368_v20  ;;  %v12779_v56 = vpop.f32.mrb[3].mxu0  ;;  %13244 = vmatprep.subr.bf16.mxu0 %v15375_v58  ;;  %v15414_v20 = vcombine.low %v6741_v55, %v6745_v7  ;;  %v15416_v58 = vcombine.low %v6742_v17, %v6746_v40  ;;  %v15425_v36 = vcombine.high %v6750_v10, %v6754_v2  ;;  %v6762_v24 = vld [vmem:[%s16929_s7 + $0xf78] sm:$0xff] }
 0x752   : > { %v13107_v8 = vpop.f32.mrb[3].mxu1  ;;  %13572 = vmatprep.subr.bf16.mxu1 %v15377_v32  ;;  %v15423_v32 = vcombine.high %v6749_v6, %v6753_v37  ;;  %v15424_v11 = vcombine.low %v6750_v10, %v6754_v2  ;;  %v15431_v56 = vcombine.high %v6757_v15, %v6761_v38  ;;  %v15432_v27 = vcombine.low %v6758_v50, %v6762_v24  ;;  %v6790_v55 = vld [vmem:[%s16929_s7 + $0x1058] sm:$0xff] }
 0x753   : > { %v6769_v8 = vld [vmem:[%s16929_s7 + $0xfb0] sm:$0xff]  ;;  %v6794_v7 = vld [vmem:[%s16929_s7 + $0x1078] sm:$0xff] }
 0x754   : > { %13245 = vmatpush1.bf16.msra.mxu0 %v15374_v23  ;;  %v15422_v23 = vcombine.low %v6749_v6, %v6753_v37  ;;  %v6802_v6 = vld [vmem:[%s16929_s7 + $0x10b8] sm:$0xff]  ;;  %v15464_v10 = vcombine.low %v6790_v55, %v6794_v7 }
 0x755   : > { %13573 = vmatpush1.bf16.msra.mxu1 %v15376_v42  ;;  %13246 = vmatprep.subr.bf16.mxu0 %v15383_v31  ;;  %v15433_v42 = vcombine.high %v6758_v50, %v6762_v24  ;;  %v6765_v31 = vld [vmem:[%s16929_s7 + $0xf90] sm:$0xff] }
 0x756   : > { %13574 = vmatprep.subr.bf16.mxu1 %v15385_v60  ;;  %v6766_v60 = vld [vmem:[%s16929_s7 + $0xf98] sm:$0xff]  ;;  %v15439_v53 = vcombine.high %v6765_v31, %v6769_v8  ;;  %v15438_v12 = vcombine.low %v6765_v31, %v6769_v8  ;;  %v6813_v24 = vld [vmem:[%s16929_s7 + $0x1110] sm:$0xff] }
 0x757   : > { %v15440_v33 = vcombine.low %v6766_v60, %v6770_v44 }
 0x758   : > { %13247 = vmatpush1.bf16.msra.mxu0 %v15382_v13  ;;  %v15441_v13 = vcombine.high %v6766_v60, %v6770_v44  ;;  %v6821_v44 = vld [vmem:[%s16929_s7 + $0x1150] sm:$0xff] }
 0x759   : > { %13575 = vmatpush1.bf16.msra.mxu1 %v15384_v28  ;;  %13248 = vmatprep.subr.bf16.mxu0 %v15391_v45  ;;  %v6773_v28 = vld [vmem:[%s16929_s7 + $0xfd0] sm:$0xff] }
 0x75a   : > { %13576 = vmatprep.subr.bf16.mxu1 %v15393_v1  ;;  %v6777_v45 = vld [vmem:[%s16929_s7 + $0xff0] sm:$0xff]  ;;  %v6774_v1 = vld [vmem:[%s16929_s7 + $0xfd8] sm:$0xff] }
 0x75b   : > { %v15447_v3 = vcombine.high %v6773_v28, %v6777_v45  ;;  %v15446_v54 = vcombine.low %v6773_v28, %v6777_v45  ;;  %v15448_v22 = vcombine.low %v6774_v1, %v6778_v0 }
 0x75c   : > { %13249 = vmatpush1.bf16.msra.mxu0 %v15390_v52  ;;  %v15449_v52 = vcombine.high %v6774_v1, %v6778_v0  ;;  %v6829_v0 = vld [vmem:[%s16929_s7 + $0x1190] sm:$0xff] }
 0x75d   : > { %13577 = vmatpush1.bf16.msra.mxu1 %v15392_v9  ;;  %13250 = vmatprep.subr.bf16.mxu0 %v15399_v63  ;;  %v6781_v9 = vld [vmem:[%s16929_s7 + $0x1010] sm:$0xff] }
 0x75e   : > { %13578 = vmatprep.subr.bf16.mxu1 %v15401_v62  ;;  %v6785_v63 = vld [vmem:[%s16929_s7 + $0x1030] sm:$0xff]  ;;  %v6782_v62 = vld [vmem:[%s16929_s7 + $0x1018] sm:$0xff] }
 0x75f   : > { %v15455_v14 = vcombine.high %v6781_v9, %v6785_v63  ;;  %v15456_v17 = vcombine.low %v6782_v62, %v6786_v49 }
 0x760   : > { %13251 = vmatpush1.bf16.msra.mxu0 %v15398_v61  ;;  %v15457_v61 = vcombine.high %v6782_v62, %v6786_v49  ;;  %v6837_v49 = vld [vmem:[%s16929_s7 + $0x11d0] sm:$0xff] }
 0x761   : > { %13579 = vmatpush1.bf16.msra.mxu1 %v15400_v19  ;;  %13252 = vmatprep.subr.bf16.mxu0 %v15407_v26  ;;  %v6789_v19 = vld [vmem:[%s16929_s7 + $0x1050] sm:$0xff] }
 0x762   : > { %13580 = vmatprep.subr.bf16.mxu1 %v15409_v29  ;;  %v6793_v26 = vld [vmem:[%s16929_s7 + $0x1070] sm:$0xff]  ;;  %v15454_v29 = vcombine.low %v6781_v9, %v6785_v63 }
 0x763   : > { %v15463_v40 = vcombine.high %v6789_v19, %v6793_v26  ;;  %v15462_v37 = vcombine.low %v6789_v19, %v6793_v26 }
 0x764   : > { %13253 = vmatpush1.bf16.msra.mxu0 %v15406_v57  ;;  %v6797_v57 = vld [vmem:[%s16929_s7 + $0x1090] sm:$0xff] }
 0x765   : > { %13581 = vmatpush1.bf16.msra.mxu1 %v15408_v5  ;;  %13254 = vmatprep.subr.bf16.mxu0 %v15415_v43  ;;  %v6801_v5 = vld [vmem:[%s16929_s7 + $0x10b0] sm:$0xff]  ;;  %v15465_v43 = vcombine.high %v6790_v55, %v6794_v7 }
 0x766   : > { %13582 = vmatprep.subr.bf16.mxu1 %v15417_v47  ;;  %v6798_v47 = vld [vmem:[%s16929_s7 + $0x1098] sm:$0xff]  ;;  %v15471_v2 = vcombine.high %v6797_v57, %v6801_v5  ;;  %v15470_v15 = vcombine.low %v6797_v57, %v6801_v5  ;;  %v6845_v55 = vld [vmem:[%s16929_s7 + $0x1210] sm:$0xff] }
 0x767   : > { %v15472_v38 = vcombine.low %v6798_v47, %v6802_v6  ;;  %v6849_v7 = vld [vmem:[%s16929_s7 + $0x1230] sm:$0xff] }
 0x768   : > { %13255 = vmatpush1.bf16.msra.mxu0 %v15414_v20  ;;  %v15473_v20 = vcombine.high %v6798_v47, %v6802_v6  ;;  %v6853_v6 = vld [vmem:[%s16929_s7 + $0x1250] sm:$0xff] }
 0x769   : > { %13583 = vmatpush1.bf16.msra.mxu1 %v15416_v58  ;;  %13256 = vmatprep.subr.bf16.mxu0 %v15423_v32  ;;  %v6805_v58 = vld [vmem:[%s16929_s7 + $0x10d0] sm:$0xff] }
 0x76a   : > { %13584 = vmatprep.subr.bf16.mxu1 %v15425_v36  ;;  %v6809_v32 = vld [vmem:[%s16929_s7 + $0x10f0] sm:$0xff]  ;;  %v6806_v36 = vld [vmem:[%s16929_s7 + $0x10d8] sm:$0xff] }
 0x76b   : > { %v15479_v50 = vcombine.high %v6805_v58, %v6809_v32 }
 0x76c   : > { %13257 = vmatpush1.bf16.msra.mxu0 %v15422_v23  ;;  %v6817_v23 = vld [vmem:[%s16929_s7 + $0x1130] sm:$0xff] }
 0x76d   : > { %13585 = vmatpush1.bf16.msra.mxu1 %v15424_v11  ;;  %13258 = vmatprep.subr.bf16.mxu0 %v15431_v56  ;;  %v6814_v11 = vld [vmem:[%s16929_s7 + $0x1118] sm:$0xff]  ;;  %v15487_v8 = vcombine.high %v6813_v24, %v6817_v23 }
 0x76e   : > { %13586 = vmatprep.subr.bf16.mxu1 %v15433_v42  ;;  %v6818_v56 = vld [vmem:[%s16929_s7 + $0x1138] sm:$0xff]  ;;  %v15478_v42 = vcombine.low %v6805_v58, %v6809_v32 }
 0x76f   : > { %v15489_v60 = vcombine.high %v6814_v11, %v6818_v56  ;;  %v15488_v28 = vcombine.low %v6814_v11, %v6818_v56  ;;  %v6869_v56 = vld [vmem:[%s16929_s7 + $0x12d0] sm:$0xff] }
 0x770   : > { %13259 = vmatpush1.bf16.msra.mxu0 %v15430_v48  ;;  %v6825_v48 = vld [vmem:[%s16929_s7 + $0x1170] sm:$0xff] }
 0x771   : > { %13587 = vmatpush1.bf16.msra.mxu1 %v15432_v27  ;;  %13260 = vmatprep.subr.bf16.mxu0 %v15439_v53  ;;  %v6822_v27 = vld [vmem:[%s16929_s7 + $0x1158] sm:$0xff]  ;;  %v15495_v45 = vcombine.high %v6821_v44, %v6825_v48 }
 0x772   : > { %13588 = vmatprep.subr.bf16.mxu1 %v15441_v13  ;;  %v6826_v53 = vld [vmem:[%s16929_s7 + $0x1178] sm:$0xff]  ;;  %v15486_v13 = vcombine.low %v6813_v24, %v6817_v23 }
 0x773   : > { %v15497_v1 = vcombine.high %v6822_v27, %v6826_v53  ;;  %v15496_v9 = vcombine.low %v6822_v27, %v6826_v53  ;;  %v6877_v53 = vld [vmem:[%s16929_s7 + $0x1310] sm:$0xff] }
 0x774   : > { %13261 = vmatpush1.bf16.msra.mxu0 %v15438_v12  ;;  %v6833_v12 = vld [vmem:[%s16929_s7 + $0x11b0] sm:$0xff] }
 0x775   : > { %13589 = vmatpush1.bf16.msra.mxu1 %v15440_v33  ;;  %13262 = vmatprep.subr.bf16.mxu0 %v15447_v3  ;;  %v6830_v33 = vld [vmem:[%s16929_s7 + $0x1198] sm:$0xff]  ;;  %v15503_v63 = vcombine.high %v6829_v0, %v6833_v12 }
 0x776   : > { %13590 = vmatprep.subr.bf16.mxu1 %v15449_v52  ;;  %v6834_v3 = vld [vmem:[%s16929_s7 + $0x11b8] sm:$0xff]  ;;  %v15494_v52 = vcombine.low %v6821_v44, %v6825_v48 }
 0x777   : > { %v15505_v62 = vcombine.high %v6830_v33, %v6834_v3  ;;  %v15504_v19 = vcombine.low %v6830_v33, %v6834_v3  ;;  %v6885_v3 = vld [vmem:[%s16929_s7 + $0x1350] sm:$0xff] }
 0x778   : > { %13263 = vmatpush1.bf16.msra.mxu0 %v15446_v54  ;;  %v6841_v54 = vld [vmem:[%s16929_s7 + $0x11f0] sm:$0xff] }
 0x779   : > { %13591 = vmatpush1.bf16.msra.mxu1 %v15448_v22  ;;  %13273 = vmatprep.subr.bf16.mxu0 %v15455_v14  ;;  %v6838_v22 = vld [vmem:[%s16929_s7 + $0x11d8] sm:$0xff]  ;;  %v15511_v26 = vcombine.high %v6837_v49, %v6841_v54  ;;  %v15510_v57 = vcombine.low %v6837_v49, %v6841_v54 }
 0x77a   : > { %13601 = vmatprep.subr.bf16.mxu1 %v15457_v61  ;;  %v6842_v14 = vld [vmem:[%s16929_s7 + $0x11f8] sm:$0xff]  ;;  %v15502_v61 = vcombine.low %v6829_v0, %v6833_v12 }
 0x77b   : > { %13265 = vmatmul.mubr.bf16.vlgmr.msra.gmra.mrb[4].mxu0 %v19147_v35  ;;  %v15512_v5 = vcombine.low %v6838_v22, %v6842_v14 }
 0x77c   : > { %13593 = vmatmul.mubr.bf16.vlgmr.msra.gmra.mrb[4].mxu1 %v19147_v35  ;;  %13274 = vmatpush1.bf16.msra.mxu0 %v15454_v29  ;;  %v6810_v35 = vld [vmem:[%s16929_s7 + $0x10f8] sm:$0xff]  ;;  %v15513_v29 = vcombine.high %v6838_v22, %v6842_v14  ;;  %v6893_v14 = vld [vmem:[%s16929_s7 + $0x1390] sm:$0xff] }
 0x77d   : > { %13305 = vmatprep.mubr.bf16.mxu0 %v19165_v41  ;;  %13602 = vmatpush1.bf16.msra.mxu1 %v15456_v17  ;;  %v15480_v31 = vcombine.low %v6806_v36, %v6810_v35  ;;  %v6846_v17 = vld [vmem:[%s16929_s7 + $0x1218] sm:$0xff] }
 0x77e   : > { %13633 = vmatprep.mubr.bf16.mxu1 %v19165_v41  ;;  %13275 = vmatprep.subr.bf16.mxu0 %v15463_v40  ;;  %v15481_v41 = vcombine.high %v6806_v36, %v6810_v35  ;;  %v6850_v40 = vld [vmem:[%s16929_s7 + $0x1238] sm:$0xff]  ;;  %v6861_v35 = vld [vmem:[%s16929_s7 + $0x1290] sm:$0xff] }
 0x77f   : > { %13603 = vmatprep.subr.bf16.mxu1 %v15465_v43  ;;  %v15519_v43 = vcombine.high %v6845_v55, %v6849_v7  ;;  %v15521_v47 = vcombine.high %v6846_v17, %v6850_v40  ;;  %v15520_v58 = vcombine.low %v6846_v17, %v6850_v40  ;;  %v6901_v40 = vld [vmem:[%s16929_s7 + $0x13d0] sm:$0xff] }
 0x780   : > { %13276 = vmatpush1.bf16.msra.mxu0 %v15462_v37  ;;  %v6857_v37 = vld [vmem:[%s16929_s7 + $0x1270] sm:$0xff] }
 0x781   : > { %13604 = vmatpush1.bf16.msra.mxu1 %v15464_v10  ;;  %13277 = vmatprep.subr.bf16.mxu0 %v15471_v2  ;;  %v6854_v10 = vld [vmem:[%s16929_s7 + $0x1258] sm:$0xff]  ;;  %v15527_v32 = vcombine.high %v6853_v6, %v6857_v37 }
 0x782   : > { %13605 = vmatprep.subr.bf16.mxu1 %v15473_v20  ;;  %v6858_v2 = vld [vmem:[%s16929_s7 + $0x1278] sm:$0xff]  ;;  %v15518_v20 = vcombine.low %v6845_v55, %v6849_v7 }
 0x783   : > { %v15529_v36 = vcombine.high %v6854_v10, %v6858_v2  ;;  %v15528_v24 = vcombine.low %v6854_v10, %v6858_v2  ;;  %v6909_v2 = vld [vmem:[%s16929_s7 + $0x1410] sm:$0xff] }
 0x784   : > { %13278 = vmatpush1.bf16.msra.mxu0 %v15470_v15  ;;  %v6865_v15 = vld [vmem:[%s16929_s7 + $0x12b0] sm:$0xff] }
 0x785   : > { %13606 = vmatpush1.bf16.msra.mxu1 %v15472_v38  ;;  %13279 = vmatprep.subr.bf16.mxu0 %v15479_v50  ;;  %v6862_v38 = vld [vmem:[%s16929_s7 + $0x1298] sm:$0xff]  ;;  %v15535_v23 = vcombine.high %v6861_v35, %v6865_v15 }
 0x786   : > { %13607 = vmatprep.subr.bf16.mxu1 %v15481_v41  ;;  %v6866_v50 = vld [vmem:[%s16929_s7 + $0x12b8] sm:$0xff]  ;;  %v15526_v41 = vcombine.low %v6853_v6, %v6857_v37 }
 0x787   : > { %v15537_v11 = vcombine.high %v6862_v38, %v6866_v50  ;;  %v15536_v44 = vcombine.low %v6862_v38, %v6866_v50  ;;  %v6917_v50 = vld [vmem:[%s16929_s7 + $0x1450] sm:$0xff] }
 0x788   : > { %13280 = vmatpush1.bf16.msra.mxu0 %v15478_v42  ;;  %v6873_v42 = vld [vmem:[%s16929_s7 + $0x12f0] sm:$0xff] }
 0x789   : > { %13608 = vmatpush1.bf16.msra.mxu1 %v15480_v31  ;;  %13281 = vmatprep.subr.bf16.mxu0 %v15487_v8  ;;  %v6870_v31 = vld [vmem:[%s16929_s7 + $0x12d8] sm:$0xff]  ;;  %v15543_v48 = vcombine.high %v6869_v56, %v6873_v42 }
 0x78a   : > { %13609 = vmatprep.subr.bf16.mxu1 %v15489_v60  ;;  %v6874_v8 = vld [vmem:[%s16929_s7 + $0x12f8] sm:$0xff]  ;;  %v15534_v60 = vcombine.low %v6861_v35, %v6865_v15 }
 0x78b   : > { %v15545_v27 = vcombine.high %v6870_v31, %v6874_v8  ;;  %v15544_v0 = vcombine.low %v6870_v31, %v6874_v8  ;;  %v6925_v31 = vld [vmem:[%s16929_s7 + $0x1490] sm:$0xff] }
 0x78c   : > { %13282 = vmatpush1.bf16.msra.mxu0 %v15486_v13  ;;  %v6881_v13 = vld [vmem:[%s16929_s7 + $0x1330] sm:$0xff] }
 0x78d   : > { %13610 = vmatpush1.bf16.msra.mxu1 %v15488_v28  ;;  %13283 = vmatprep.subr.bf16.mxu0 %v15495_v45  ;;  %v6878_v28 = vld [vmem:[%s16929_s7 + $0x1318] sm:$0xff]  ;;  %v15551_v12 = vcombine.high %v6877_v53, %v6881_v13  ;;  %v6929_v8 = vld [vmem:[%s16929_s7 + $0x14b0] sm:$0xff] }
 0x78e   : > { %13611 = vmatprep.subr.bf16.mxu1 %v15497_v1  ;;  %v6882_v45 = vld [vmem:[%s16929_s7 + $0x1338] sm:$0xff]  ;;  %v15542_v1 = vcombine.low %v6869_v56, %v6873_v42 }
 0x78f   : > { %v15553_v33 = vcombine.high %v6878_v28, %v6882_v45  ;;  %v15552_v49 = vcombine.low %v6878_v28, %v6882_v45  ;;  %v6933_v45 = vld [vmem:[%s16929_s7 + $0x14d0] sm:$0xff] }
 0x790   : > { %13284 = vmatpush1.bf16.msra.mxu0 %v15494_v52  ;;  %v6889_v52 = vld [vmem:[%s16929_s7 + $0x1370] sm:$0xff] }
 0x791   : > { %13612 = vmatpush1.bf16.msra.mxu1 %v15496_v9  ;;  %13285 = vmatprep.subr.bf16.mxu0 %v15503_v63  ;;  %v6886_v9 = vld [vmem:[%s16929_s7 + $0x1358] sm:$0xff]  ;;  %v15559_v54 = vcombine.high %v6885_v3, %v6889_v52 }
 0x792   : > { %13613 = vmatprep.subr.bf16.mxu1 %v15505_v62  ;;  %v6890_v63 = vld [vmem:[%s16929_s7 + $0x1378] sm:$0xff]  ;;  %v15550_v62 = vcombine.low %v6877_v53, %v6881_v13  ;;  %v15599_v13 = vcombine.high %v6925_v31, %v6929_v8 }
 0x793   : > { %v15561_v22 = vcombine.high %v6886_v9, %v6890_v63  ;;  %v15560_v55 = vcombine.low %v6886_v9, %v6890_v63  ;;  %v6945_v9 = vld [vmem:[%s16929_s7 + $0x1530] sm:$0xff]  ;;  %v6942_v63 = vld [vmem:[%s16929_s7 + $0x1518] sm:$0xff] }
 0x794   : > { %13286 = vmatpush1.bf16.msra.mxu0 %v15502_v61  ;;  %v6897_v61 = vld [vmem:[%s16929_s7 + $0x13b0] sm:$0xff] }
 0x795   : > { %13614 = vmatpush1.bf16.msra.mxu1 %v15504_v19  ;;  %13287 = vmatprep.subr.bf16.mxu0 %v15511_v26  ;;  %v6894_v19 = vld [vmem:[%s16929_s7 + $0x1398] sm:$0xff]  ;;  %v15567_v7 = vcombine.high %v6893_v14, %v6897_v61 }
 0x796   : > { %13615 = vmatprep.subr.bf16.mxu1 %v15513_v29  ;;  %v6898_v26 = vld [vmem:[%s16929_s7 + $0x13b8] sm:$0xff]  ;;  %v15558_v29 = vcombine.low %v6885_v3, %v6889_v52  ;;  %v6941_v52 = vld [vmem:[%s16929_s7 + $0x1510] sm:$0xff] }
 0x797   : > { %v15569_v17 = vcombine.high %v6894_v19, %v6898_v26  ;;  %v15568_v6 = vcombine.low %v6894_v19, %v6898_v26  ;;  %v6953_v19 = vld [vmem:[%s16929_s7 + $0x1570] sm:$0xff]  ;;  %v6950_v26 = vld [vmem:[%s16929_s7 + $0x1558] sm:$0xff] }
 0x798   : > { %13288 = vmatpush1.bf16.msra.mxu0 %v15510_v57  ;;  %v6905_v57 = vld [vmem:[%s16929_s7 + $0x13f0] sm:$0xff] }
 0x799   : > { %13616 = vmatpush1.bf16.msra.mxu1 %v15512_v5  ;;  %13289 = vmatprep.subr.bf16.mxu0 %v15519_v43  ;;  %v6902_v5 = vld [vmem:[%s16929_s7 + $0x13d8] sm:$0xff]  ;;  %v15575_v37 = vcombine.high %v6901_v40, %v6905_v57 }
 0x79a   : > { %13617 = vmatprep.subr.bf16.mxu1 %v15521_v47  ;;  %v6906_v43 = vld [vmem:[%s16929_s7 + $0x13f8] sm:$0xff]  ;;  %v15566_v47 = vcombine.low %v6893_v14, %v6897_v61  ;;  %v6949_v61 = vld [vmem:[%s16929_s7 + $0x1550] sm:$0xff] }
 0x79b   : > { %v15577_v10 = vcombine.high %v6902_v5, %v6906_v43  ;;  %v15576_v35 = vcombine.low %v6902_v5, %v6906_v43  ;;  %v6961_v5 = vld [vmem:[%s16929_s7 + $0x15b0] sm:$0xff]  ;;  %v6958_v43 = vld [vmem:[%s16929_s7 + $0x1598] sm:$0xff] }
 0x79c   : > { %13290 = vmatpush1.bf16.msra.mxu0 %v15518_v20  ;;  %v6913_v20 = vld [vmem:[%s16929_s7 + $0x1430] sm:$0xff] }
 0x79d   : > { %13618 = vmatpush1.bf16.msra.mxu1 %v15520_v58  ;;  %13291 = vmatprep.subr.bf16.mxu0 %v15527_v32  ;;  %v6910_v58 = vld [vmem:[%s16929_s7 + $0x1418] sm:$0xff]  ;;  %v15583_v15 = vcombine.high %v6909_v2, %v6913_v20 }
 0x79e   : > { %13619 = vmatprep.subr.bf16.mxu1 %v15529_v36  ;;  %v6914_v32 = vld [vmem:[%s16929_s7 + $0x1438] sm:$0xff]  ;;  %v15574_v36 = vcombine.low %v6901_v40, %v6905_v57  ;;  %v6957_v57 = vld [vmem:[%s16929_s7 + $0x1590] sm:$0xff] }
 0x79f   : > { %v15585_v38 = vcombine.high %v6910_v58, %v6914_v32  ;;  %v15584_v56 = vcombine.low %v6910_v58, %v6914_v32  ;;  %v6969_v58 = vld [vmem:[%s16929_s7 + $0x15f0] sm:$0xff]  ;;  %v6966_v32 = vld [vmem:[%s16929_s7 + $0x15d8] sm:$0xff] }
 0x7a0   : > { %13292 = vmatpush1.bf16.msra.mxu0 %v15526_v41  ;;  %v6921_v41 = vld [vmem:[%s16929_s7 + $0x1470] sm:$0xff] }
 0x7a1   : > { %13620 = vmatpush1.bf16.msra.mxu1 %v15528_v24  ;;  %13293 = vmatprep.subr.bf16.mxu0 %v15535_v23  ;;  %v15582_v24 = vcombine.low %v6909_v2, %v6913_v20  ;;  %v6918_v23 = vld [vmem:[%s16929_s7 + $0x1458] sm:$0xff]  ;;  %v15591_v42 = vcombine.high %v6917_v50, %v6921_v41  ;;  %v6965_v20 = vld [vmem:[%s16929_s7 + $0x15d0] sm:$0xff] }
 0x7a2   : > { %13621 = vmatprep.subr.bf16.mxu1 %v15537_v11  ;;  %v6922_v11 = vld [vmem:[%s16929_s7 + $0x1478] sm:$0xff] }
 0x7a3   : > { %v15592_v53 = vcombine.low %v6918_v23, %v6922_v11 }
 0x7a4   : > { %13294 = vmatpush1.bf16.msra.mxu0 %v15534_v60  ;;  %v15593_v60 = vcombine.high %v6918_v23, %v6922_v11  ;;  %v6974_v23 = vld [vmem:[%s16929_s7 + $0x1618] sm:$0xff] }
 0x7a5   : > { %13622 = vmatpush1.bf16.msra.mxu1 %v15536_v44  ;;  %13295 = vmatprep.subr.bf16.mxu0 %v15543_v48  ;;  %v6926_v44 = vld [vmem:[%s16929_s7 + $0x1498] sm:$0xff] }
 0x7a6   : > { %13623 = vmatprep.subr.bf16.mxu1 %v15545_v27  ;;  %v6930_v48 = vld [vmem:[%s16929_s7 + $0x14b8] sm:$0xff]  ;;  %v15590_v27 = vcombine.low %v6917_v50, %v6921_v41  ;;  %v6973_v41 = vld [vmem:[%s16929_s7 + $0x1610] sm:$0xff] }
 0x7a7   : > { %v15601_v28 = vcombine.high %v6926_v44, %v6930_v48  ;;  %v6978_v11 = vld [vmem:[%s16929_s7 + $0x1638] sm:$0xff] }
 0x7a8   : > { %13296 = vmatpush1.bf16.msra.mxu0 %v15542_v1  ;;  %v6937_v1 = vld [vmem:[%s16929_s7 + $0x14f0] sm:$0xff] }
 0x7a9   : > { %13624 = vmatpush1.bf16.msra.mxu1 %v15544_v0  ;;  %13297 = vmatprep.subr.bf16.mxu0 %v15551_v12  ;;  %v6934_v0 = vld [vmem:[%s16929_s7 + $0x14d8] sm:$0xff]  ;;  %v15598_v12 = vcombine.low %v6925_v31, %v6929_v8  ;;  %v15607_v3 = vcombine.high %v6933_v45, %v6937_v1  ;;  %v15649_v8 = vcombine.high %v6974_v23, %v6978_v11 }
 0x7aa   : > { %13625 = vmatprep.subr.bf16.mxu1 %v15553_v33  ;;  %v15600_v33 = vcombine.low %v6926_v44, %v6930_v48  ;;  %v6985_v44 = vld [vmem:[%s16929_s7 + $0x1670] sm:$0xff]  ;;  %v6982_v48 = vld [vmem:[%s16929_s7 + $0x1658] sm:$0xff] }
 0x7ac   : > { %13298 = vmatpush1.bf16.msra.mxu0 %v15550_v62  ;;  %v6946_v62 = vld [vmem:[%s16929_s7 + $0x1538] sm:$0xff] }
 0x7ad   : > { %13626 = vmatpush1.bf16.msra.mxu1 %v15552_v49  ;;  %13299 = vmatprep.subr.bf16.mxu0 %v15559_v54  ;;  %v15606_v49 = vcombine.low %v6933_v45, %v6937_v1  ;;  %v15617_v14 = vcombine.high %v6942_v63, %v6946_v62  ;;  %v6989_v1 = vld [vmem:[%s16929_s7 + $0x1690] sm:$0xff] }
 0x7ae   : > { %13627 = vmatprep.subr.bf16.mxu1 %v15561_v22  ;;  %v15615_v22 = vcombine.high %v6941_v52, %v6945_v9 }
 0x7b0   : > { %13300 = vmatpush1.bf16.msra.mxu0 %v15558_v29  ;;  %v6954_v29 = vld [vmem:[%s16929_s7 + $0x1578] sm:$0xff] }
 0x7b1   : > { %13628 = vmatpush1.bf16.msra.mxu1 %v15560_v55  ;;  %13301 = vmatprep.subr.bf16.mxu0 %v15567_v7  ;;  %v15614_v55 = vcombine.low %v6941_v52, %v6945_v9  ;;  %v15616_v7 = vcombine.low %v6942_v63, %v6946_v62  ;;  %v15625_v40 = vcombine.high %v6950_v26, %v6954_v29  ;;  %v6997_v9 = vld [vmem:[%s16929_s7 + $0x16d0] sm:$0xff]  ;;  %v6998_v62 = vld [vmem:[%s16929_s7 + $0x16d8] sm:$0xff] }
 0x7b2   : > { %13629 = vmatprep.subr.bf16.mxu1 %v15569_v17  ;;  %v15623_v17 = vcombine.high %v6949_v61, %v6953_v19  ;;  %v7001_v63 = vld [vmem:[%s16929_s7 + $0x16f0] sm:$0xff] }
 0x7b4   : > { %13302 = vmatpush1.bf16.msra.mxu0 %v15566_v47  ;;  %v6962_v47 = vld [vmem:[%s16929_s7 + $0x15b8] sm:$0xff] }
 0x7b5   : > { %13630 = vmatpush1.bf16.msra.mxu1 %v15568_v6  ;;  %13303 = vmatprep.subr.bf16.mxu0 %v15575_v37  ;;  %v15622_v6 = vcombine.low %v6949_v61, %v6953_v19  ;;  %v15624_v37 = vcombine.low %v6950_v26, %v6954_v29  ;;  %v15633_v2 = vcombine.high %v6958_v43, %v6962_v47  ;;  %v7005_v19 = vld [vmem:[%s16929_s7 + $0x1710] sm:$0xff]  ;;  %v7006_v29 = vld [vmem:[%s16929_s7 + $0x1718] sm:$0xff] }
 0x7b6   : > { %13631 = vmatprep.subr.bf16.mxu1 %v15577_v10  ;;  %v15631_v10 = vcombine.high %v6957_v57, %v6961_v5  ;;  %v7009_v26 = vld [vmem:[%s16929_s7 + $0x1730] sm:$0xff] }
 0x7b8   : > { %13304 = vmatpush1.bf16.msra.mxu0 %v15574_v36  ;;  %v6970_v36 = vld [vmem:[%s16929_s7 + $0x15f8] sm:$0xff] }
 0x7b9   : > { %13632 = vmatpush1.bf16.msra.mxu1 %v15576_v35  ;;  %13314 = vmatprep.subr.bf16.mxu0 %v15583_v15  ;;  %v15630_v35 = vcombine.low %v6957_v57, %v6961_v5  ;;  %v15632_v15 = vcombine.low %v6958_v43, %v6962_v47  ;;  %v15641_v50 = vcombine.high %v6966_v32, %v6970_v36  ;;  %v7013_v5 = vld [vmem:[%s16929_s7 + $0x1750] sm:$0xff]  ;;  %v7014_v47 = vld [vmem:[%s16929_s7 + $0x1758] sm:$0xff] }
 0x7ba   : > { %13642 = vmatprep.subr.bf16.mxu1 %v15585_v38  ;;  %v15639_v38 = vcombine.high %v6965_v20, %v6969_v58  ;;  %v7017_v43 = vld [vmem:[%s16929_s7 + $0x1770] sm:$0xff] }
 0x7bb   : > { %13306 = vmatmul.mubr.bf16.vlgmr.msra.gmra.mrb[4].mxu0 %v19315_v16 }
 0x7bc   : > { %13634 = vmatmul.mubr.bf16.vlgmr.msra.gmra.mrb[4].mxu1 %v19315_v16  ;;  %13315 = vmatpush1.bf16.msra.mxu0 %v15582_v24  ;;  %v6938_v16 = vld [vmem:[%s16929_s7 + $0x14f8] sm:$0xff]  ;;  %v6977_v24 = vld [vmem:[%s16929_s7 + $0x1630] sm:$0xff] }
 0x7bd   : > { %13346 = vmatprep.mubr.bf16.mxu0 %v19322_v18  ;;  %13643 = vmatpush1.bf16.msra.mxu1 %v15584_v56  ;;  %v15608_v54 = vcombine.low %v6934_v0, %v6938_v16  ;;  %v15638_v56 = vcombine.low %v6965_v20, %v6969_v58  ;;  %v15647_v31 = vcombine.high %v6973_v41, %v6977_v24  ;;  %v7021_v58 = vld [vmem:[%s16929_s7 + $0x1790] sm:$0xff] }
 0x7be   : > { %13674 = vmatprep.mubr.bf16.mxu1 %v19322_v18  ;;  %13316 = vmatprep.subr.bf16.mxu0 %v15591_v42  ;;  %v15609_v18 = vcombine.high %v6934_v0, %v6938_v16  ;;  %v15640_v42 = vcombine.low %v6966_v32, %v6970_v36  ;;  %v6993_v0 = vld [vmem:[%s16929_s7 + $0x16b0] sm:$0xff]  ;;  %v6990_v16 = vld [vmem:[%s16929_s7 + $0x1698] sm:$0xff] }
 0x7bf   : > { %13644 = vmatprep.subr.bf16.mxu1 %v15593_v60  ;;  %v6981_v60 = vld [vmem:[%s16929_s7 + $0x1650] sm:$0xff]  ;;  %v7022_v36 = vld [vmem:[%s16929_s7 + $0x1798] sm:$0xff] }
 0x7c0   : > { %13317 = vmatpush1.bf16.msra.mxu0 %v15590_v27  ;;  %v6986_v27 = vld [vmem:[%s16929_s7 + $0x1678] sm:$0xff]  ;;  %v7025_v32 = vld [vmem:[%s16929_s7 + $0x17b0] sm:$0xff] }
 0x7c1   : > { %13645 = vmatpush1.bf16.msra.mxu1 %v15592_v53  ;;  %13318 = vmatprep.subr.bf16.mxu0 %v15599_v13  ;;  %v15646_v53 = vcombine.low %v6973_v41, %v6977_v24  ;;  %v15648_v13 = vcombine.low %v6974_v23, %v6978_v11  ;;  %v15657_v45 = vcombine.high %v6982_v48, %v6986_v27  ;;  %v7029_v24 = vld [vmem:[%s16929_s7 + $0x17d0] sm:$0xff]  ;;  %v7030_v11 = vld [vmem:[%s16929_s7 + $0x17d8] sm:$0xff] }
 0x7c2   : > { %13646 = vmatprep.subr.bf16.mxu1 %v15601_v28  ;;  %v15655_v28 = vcombine.high %v6981_v60, %v6985_v44  ;;  %v7033_v23 = vld [vmem:[%s16929_s7 + $0x17f0] sm:$0xff] }
 0x7c4   : > { %13319 = vmatpush1.bf16.msra.mxu0 %v15598_v12  ;;  %v6994_v12 = vld [vmem:[%s16929_s7 + $0x16b8] sm:$0xff] }
 0x7c5   : > { %13647 = vmatpush1.bf16.msra.mxu1 %v15600_v33  ;;  %13320 = vmatprep.subr.bf16.mxu0 %v15607_v3  ;;  %v15654_v33 = vcombine.low %v6981_v60, %v6985_v44  ;;  %v15656_v3 = vcombine.low %v6982_v48, %v6986_v27  ;;  %v15665_v52 = vcombine.high %v6990_v16, %v6994_v12  ;;  %v7037_v44 = vld [vmem:[%s16929_s7 + $0x1810] sm:$0xff]  ;;  %v7038_v27 = vld [vmem:[%s16929_s7 + $0x1818] sm:$0xff] }
 0x7c6   : > { %13648 = vmatprep.subr.bf16.mxu1 %v15609_v18  ;;  %v15663_v18 = vcombine.high %v6989_v1, %v6993_v0  ;;  %v7041_v48 = vld [vmem:[%s16929_s7 + $0x1830] sm:$0xff] }
 0x7c8   : > { %13321 = vmatpush1.bf16.msra.mxu0 %v15606_v49  ;;  %v7002_v49 = vld [vmem:[%s16929_s7 + $0x16f8] sm:$0xff] }
 0x7c9   : > { %13649 = vmatpush1.bf16.msra.mxu1 %v15608_v54  ;;  %13322 = vmatprep.subr.bf16.mxu0 %v15615_v22  ;;  %v15662_v54 = vcombine.low %v6989_v1, %v6993_v0  ;;  %v15664_v22 = vcombine.low %v6990_v16, %v6994_v12  ;;  %v15673_v61 = vcombine.high %v6998_v62, %v7002_v49  ;;  %v7045_v0 = vld [vmem:[%s16929_s7 + $0x1850] sm:$0xff] }
 0x7ca   : > { %13650 = vmatprep.subr.bf16.mxu1 %v15617_v14  ;;  %v15671_v14 = vcombine.high %v6997_v9, %v7001_v63  ;;  %v7049_v16 = vld [vmem:[%s16929_s7 + $0x1870] sm:$0xff]  ;;  %v15710_v12 = vcombine.low %v7037_v44, %v7041_v48 }
 0x7cc   : > { %13323 = vmatpush1.bf16.msra.mxu0 %v15614_v55  ;;  %v7010_v55 = vld [vmem:[%s16929_s7 + $0x1738] sm:$0xff] }
 0x7cd   : > { %13651 = vmatpush1.bf16.msra.mxu1 %v15616_v7  ;;  %13324 = vmatprep.subr.bf16.mxu0 %v15623_v17  ;;  %v15670_v7 = vcombine.low %v6997_v9, %v7001_v63  ;;  %v15672_v17 = vcombine.low %v6998_v62, %v7002_v49  ;;  %v15681_v57 = vcombine.high %v7006_v29, %v7010_v55  ;;  %v7053_v9 = vld [vmem:[%s16929_s7 + $0x1890] sm:$0xff]  ;;  %v7054_v49 = vld [vmem:[%s16929_s7 + $0x1898] sm:$0xff] }
 0x7ce   : > { %13652 = vmatprep.subr.bf16.mxu1 %v15625_v40  ;;  %v15679_v40 = vcombine.high %v7005_v19, %v7009_v26  ;;  %v7057_v63 = vld [vmem:[%s16929_s7 + $0x18b0] sm:$0xff] }
 0x7d0   : > { %13325 = vmatpush1.bf16.msra.mxu0 %v15622_v6  ;;  %v7018_v6 = vld [vmem:[%s16929_s7 + $0x1778] sm:$0xff] }
 0x7d1   : > { %13653 = vmatpush1.bf16.msra.mxu1 %v15624_v37  ;;  %13326 = vmatprep.subr.bf16.mxu0 %v15631_v10  ;;  %v15678_v37 = vcombine.low %v7005_v19, %v7009_v26  ;;  %v15680_v10 = vcombine.low %v7006_v29, %v7010_v55  ;;  %v15689_v20 = vcombine.high %v7014_v47, %v7018_v6  ;;  %v7061_v26 = vld [vmem:[%s16929_s7 + $0x18d0] sm:$0xff]  ;;  %v7062_v55 = vld [vmem:[%s16929_s7 + $0x18d8] sm:$0xff] }
 0x7d2   : > { %13654 = vmatprep.subr.bf16.mxu1 %v15633_v2  ;;  %v15687_v2 = vcombine.high %v7013_v5, %v7017_v43  ;;  %v7065_v29 = vld [vmem:[%s16929_s7 + $0x18f0] sm:$0xff] }
 0x7d4   : > { %13327 = vmatpush1.bf16.msra.mxu0 %v15630_v35  ;;  %v7026_v35 = vld [vmem:[%s16929_s7 + $0x17b8] sm:$0xff] }
 0x7d5   : > { %13655 = vmatpush1.bf16.msra.mxu1 %v15632_v15  ;;  %13328 = vmatprep.subr.bf16.mxu0 %v15639_v38  ;;  %v15686_v15 = vcombine.low %v7013_v5, %v7017_v43  ;;  %v15688_v38 = vcombine.low %v7014_v47, %v7018_v6  ;;  %v15697_v41 = vcombine.high %v7022_v36, %v7026_v35  ;;  %v7073_v5 = vld [vmem:[%s16929_s7 + $0x1930] sm:$0xff]  ;;  %v7070_v43 = vld [vmem:[%s16929_s7 + $0x1918] sm:$0xff] }
 0x7d6   : > { %13656 = vmatprep.subr.bf16.mxu1 %v15641_v50  ;;  %v15695_v50 = vcombine.high %v7021_v58, %v7025_v32  ;;  %v7074_v47 = vld [vmem:[%s16929_s7 + $0x1938] sm:$0xff]  ;;  %v15734_v6 = vcombine.low %v7061_v26, %v7065_v29 }
 0x7d8   : > { %13329 = vmatpush1.bf16.msra.mxu0 %v15638_v56  ;;  %v7034_v56 = vld [vmem:[%s16929_s7 + $0x17f8] sm:$0xff] }
 0x7d9   : > { %13657 = vmatpush1.bf16.msra.mxu1 %v15640_v42  ;;  %13330 = vmatprep.subr.bf16.mxu0 %v15647_v31  ;;  %v15694_v42 = vcombine.low %v7021_v58, %v7025_v32  ;;  %v15696_v31 = vcombine.low %v7022_v36, %v7026_v35  ;;  %v15705_v60 = vcombine.high %v7030_v11, %v7034_v56  ;;  %v7081_v58 = vld [vmem:[%s16929_s7 + $0x1970] sm:$0xff]  ;;  %v7078_v32 = vld [vmem:[%s16929_s7 + $0x1958] sm:$0xff] }
 0x7da   : > { %13658 = vmatprep.subr.bf16.mxu1 %v15649_v8  ;;  %v15703_v8 = vcombine.high %v7029_v24, %v7033_v23  ;;  %v7082_v36 = vld [vmem:[%s16929_s7 + $0x1978] sm:$0xff] }
 0x7dc   : > { %13331 = vmatpush1.bf16.msra.mxu0 %v15646_v53  ;;  %v7042_v53 = vld [vmem:[%s16929_s7 + $0x1838] sm:$0xff] }
 0x7dd   : > { %13659 = vmatpush1.bf16.msra.mxu1 %v15648_v13  ;;  %13332 = vmatprep.subr.bf16.mxu0 %v15655_v28  ;;  %v15702_v13 = vcombine.low %v7029_v24, %v7033_v23  ;;  %v15704_v28 = vcombine.low %v7030_v11, %v7034_v56  ;;  %v15713_v1 = vcombine.high %v7038_v27, %v7042_v53  ;;  %v7089_v24 = vld [vmem:[%s16929_s7 + $0x19b0] sm:$0xff]  ;;  %v7086_v23 = vld [vmem:[%s16929_s7 + $0x1998] sm:$0xff] }
 0x7de   : > { %13660 = vmatprep.subr.bf16.mxu1 %v15657_v45  ;;  %v15711_v45 = vcombine.high %v7037_v44, %v7041_v48  ;;  %v7090_v11 = vld [vmem:[%s16929_s7 + $0x19b8] sm:$0xff]  ;;  %v7097_v44 = vld [vmem:[%s16929_s7 + $0x19f0] sm:$0xff] }
 0x7df   : > { %v7094_v48 = vld [vmem:[%s16929_s7 + $0x19d8] sm:$0xff] }
 0x7e0   : > { %13333 = vmatpush1.bf16.msra.mxu0 %v15654_v33  ;;  %v7046_v33 = vld [vmem:[%s16929_s7 + $0x1858] sm:$0xff] }
 0x7e1   : > { %13661 = vmatpush1.bf16.msra.mxu1 %v15656_v3  ;;  %13334 = vmatprep.subr.bf16.mxu0 %v15663_v18  ;;  %v7050_v3 = vld [vmem:[%s16929_s7 + $0x1878] sm:$0xff]  ;;  %v15712_v18 = vcombine.low %v7038_v27, %v7042_v53 }
 0x7e2   : > { %13662 = vmatprep.subr.bf16.mxu1 %v15665_v52  ;;  %v15719_v52 = vcombine.high %v7045_v0, %v7049_v16  ;;  %v15721_v62 = vcombine.high %v7046_v33, %v7050_v3  ;;  %v7098_v27 = vld [vmem:[%s16929_s7 + $0x19f8] sm:$0xff] }
 0x7e4   : > { %13335 = vmatpush1.bf16.msra.mxu0 %v15662_v54  ;;  %v7058_v54 = vld [vmem:[%s16929_s7 + $0x18b8] sm:$0xff] }
 0x7e5   : > { %13663 = vmatpush1.bf16.msra.mxu1 %v15664_v22  ;;  %13336 = vmatprep.subr.bf16.mxu0 %v15671_v14  ;;  %v15718_v22 = vcombine.low %v7045_v0, %v7049_v16  ;;  %v15720_v14 = vcombine.low %v7046_v33, %v7050_v3  ;;  %v15729_v19 = vcombine.high %v7054_v49, %v7058_v54  ;;  %v7105_v0 = vld [vmem:[%s16929_s7 + $0x1a30] sm:$0xff]  ;;  %v7102_v16 = vld [vmem:[%s16929_s7 + $0x1a18] sm:$0xff] }
 0x7e6   : > { %13664 = vmatprep.subr.bf16.mxu1 %v15673_v61  ;;  %v15727_v61 = vcombine.high %v7053_v9, %v7057_v63  ;;  %v15768_v3 = vcombine.low %v7094_v48, %v7098_v27 }
 0x7e8   : > { %13337 = vmatpush1.bf16.msra.mxu0 %v15670_v7  ;;  %v15726_v7 = vcombine.low %v7053_v9, %v7057_v63  ;;  %v7109_v9 = vld [vmem:[%s16929_s7 + $0x1a50] sm:$0xff] }
 0x7e9   : > { %13665 = vmatpush1.bf16.msra.mxu1 %v15672_v17  ;;  %13338 = vmatprep.subr.bf16.mxu0 %v15679_v40  ;;  %v15728_v17 = vcombine.low %v7054_v49, %v7058_v54  ;;  %v15735_v40 = vcombine.high %v7061_v26, %v7065_v29  ;;  %v7113_v63 = vld [vmem:[%s16929_s7 + $0x1a70] sm:$0xff]  ;;  %v7114_v49 = vld [vmem:[%s16929_s7 + $0x1a78] sm:$0xff] }
 0x7ea   : > { %13666 = vmatprep.subr.bf16.mxu1 %v15681_v57  ;;  %v7069_v57 = vld [vmem:[%s16929_s7 + $0x1910] sm:$0xff]  ;;  %v7118_v29 = vld [vmem:[%s16929_s7 + $0x1a98] sm:$0xff] }
 0x7eb   : > { %v15742_v35 = vcombine.low %v7069_v57, %v7073_v5  ;;  %v7121_v26 = vld [vmem:[%s16929_s7 + $0x1ab0] sm:$0xff] }
 0x7ec   : > { %13339 = vmatpush1.bf16.msra.mxu0 %v15678_v37 }
 0x7ed   : > { %13667 = vmatpush1.bf16.msra.mxu1 %v15680_v10  ;;  %13340 = vmatprep.subr.bf16.mxu0 %v15687_v2  ;;  %v15743_v10 = vcombine.high %v7069_v57, %v7073_v5  ;;  %v15745_v2 = vcombine.high %v7070_v43, %v7074_v47  ;;  %v7129_v57 = vld [vmem:[%s16929_s7 + $0x1af0] sm:$0xff]  ;;  %v7126_v5 = vld [vmem:[%s16929_s7 + $0x1ad8] sm:$0xff] }
 0x7ee   : > { %13668 = vmatprep.subr.bf16.mxu1 %v15689_v20  ;;  %v7077_v20 = vld [vmem:[%s16929_s7 + $0x1950] sm:$0xff] }
 0x7ef   : > { %v15750_v56 = vcombine.low %v7077_v20, %v7081_v58 }
 0x7f0   : > { %13341 = vmatpush1.bf16.msra.mxu0 %v15686_v15  ;;  %v15744_v15 = vcombine.low %v7070_v43, %v7074_v47  ;;  %v7130_v43 = vld [vmem:[%s16929_s7 + $0x1af8] sm:$0xff] }
 0x7f1   : > { %13669 = vmatpush1.bf16.msra.mxu1 %v15688_v38  ;;  %13342 = vmatprep.subr.bf16.mxu0 %v15695_v50  ;;  %v15751_v38 = vcombine.high %v7077_v20, %v7081_v58  ;;  %v15753_v50 = vcombine.high %v7078_v32, %v7082_v36  ;;  %v7137_v20 = vld [vmem:[%s16929_s7 + $0x1b30] sm:$0xff]  ;;  %v7134_v58 = vld [vmem:[%s16929_s7 + $0x1b18] sm:$0xff] }
 0x7f2   : > { %13670 = vmatprep.subr.bf16.mxu1 %v15697_v41  ;;  %v7085_v41 = vld [vmem:[%s16929_s7 + $0x1990] sm:$0xff] }
 0x7f3   : > { %v15758_v53 = vcombine.low %v7085_v41, %v7089_v24 }
 0x7f4   : > { %13343 = vmatpush1.bf16.msra.mxu0 %v15694_v42  ;;  %v15752_v42 = vcombine.low %v7078_v32, %v7082_v36  ;;  %v7138_v32 = vld [vmem:[%s16929_s7 + $0x1b38] sm:$0xff] }
 0x7f5   : > { %13671 = vmatpush1.bf16.msra.mxu1 %v15696_v31  ;;  %13344 = vmatprep.subr.bf16.mxu0 %v15703_v8  ;;  %v15759_v31 = vcombine.high %v7085_v41, %v7089_v24  ;;  %v15761_v8 = vcombine.high %v7086_v23, %v7090_v11  ;;  %v7145_v41 = vld [vmem:[%s16929_s7 + $0x1b70] sm:$0xff]  ;;  %v7142_v24 = vld [vmem:[%s16929_s7 + $0x1b58] sm:$0xff] }
 0x7f6   : > { %13672 = vmatprep.subr.bf16.mxu1 %v15705_v60  ;;  %v7093_v60 = vld [vmem:[%s16929_s7 + $0x19d0] sm:$0xff] }
 0x7f7   : > { %v15766_v33 = vcombine.low %v7093_v60, %v7097_v44 }
 0x7f8   : > { %13345 = vmatpush1.bf16.msra.mxu0 %v15702_v13  ;;  %v15760_v13 = vcombine.low %v7086_v23, %v7090_v11  ;;  %v7146_v23 = vld [vmem:[%s16929_s7 + $0x1b78] sm:$0xff] }
 0x7f9   : > { %13673 = vmatpush1.bf16.msra.mxu1 %v15704_v28  ;;  %13355 = vmatprep.subr.bf16.mxu0 %v15711_v45  ;;  %v15767_v28 = vcombine.high %v7093_v60, %v7097_v44  ;;  %v15769_v45 = vcombine.high %v7094_v48, %v7098_v27  ;;  %v7153_v60 = vld [vmem:[%s16929_s7 + $0x1bb0] sm:$0xff]  ;;  %v7150_v44 = vld [vmem:[%s16929_s7 + $0x1b98] sm:$0xff] }
 0x7fa   : > { %13683 = vmatprep.subr.bf16.mxu1 %v15713_v1  ;;  %v7101_v1 = vld [vmem:[%s16929_s7 + $0x1a10] sm:$0xff]  ;;  %v7154_v48 = vld [vmem:[%s16929_s7 + $0x1bb8] sm:$0xff] }
 0x7fb   : > { %13347 = vmatmul.mubr.bf16.vlgmr.msra.gmra.mrb[4].mxu0 %v19391_v39  ;;  %v15774_v54 = vcombine.low %v7101_v1, %v7105_v0 }
 0x7fc   : > { %13675 = vmatmul.mubr.bf16.vlgmr.msra.gmra.mrb[4].mxu1 %v19391_v39  ;;  %13356 = vmatpush1.bf16.msra.mxu0 %v15710_v12  ;;  %v7066_v39 = vld [vmem:[%s16929_s7 + $0x18f8] sm:$0xff] }
 0x7fd   : > { %13387 = vmatprep.mubr.bf16.mxu0 %v19398_v25  ;;  %13684 = vmatpush1.bf16.msra.mxu1 %v15712_v18  ;;  %v15736_v37 = vcombine.low %v7062_v55, %v7066_v39  ;;  %v7106_v12 = vld [vmem:[%s16929_s7 + $0x1a38] sm:$0xff]  ;;  %v15775_v18 = vcombine.high %v7101_v1, %v7105_v0  ;;  %v7161_v1 = vld [vmem:[%s16929_s7 + $0x1bf0] sm:$0xff] }
 0x7fe   : > { %13715 = vmatprep.mubr.bf16.mxu1 %v19398_v25  ;;  %13357 = vmatprep.subr.bf16.mxu0 %v15719_v52  ;;  %v15737_v25 = vcombine.high %v7062_v55, %v7066_v39  ;;  %v15777_v52 = vcombine.high %v7102_v16, %v7106_v12  ;;  %v7122_v55 = vld [vmem:[%s16929_s7 + $0x1ab8] sm:$0xff]  ;;  %v15782_v39 = vcombine.low %v7109_v9, %v7113_v63 }
 0x7ff   : > { %13685 = vmatprep.subr.bf16.mxu1 %v15721_v62  ;;  %v7110_v62 = vld [vmem:[%s16929_s7 + $0x1a58] sm:$0xff] }
 0x800   : > { %13358 = vmatpush1.bf16.msra.mxu0 %v15718_v22  ;;  %v15776_v22 = vcombine.low %v7102_v16, %v7106_v12  ;;  %v7158_v0 = vld [vmem:[%s16929_s7 + $0x1bd8] sm:$0xff] }
 0x801   : > { %13686 = vmatpush1.bf16.msra.mxu1 %v15720_v14  ;;  %13359 = vmatprep.subr.bf16.mxu0 %v15727_v61  ;;  %v15783_v14 = vcombine.high %v7109_v9, %v7113_v63  ;;  %v15785_v61 = vcombine.high %v7110_v62, %v7114_v49  ;;  %v7162_v16 = vld [vmem:[%s16929_s7 + $0x1bf8] sm:$0xff]  ;;  %v7169_v9 = vld [vmem:[%s16929_s7 + $0x1c30] sm:$0xff] }
 0x802   : > { %13687 = vmatprep.subr.bf16.mxu1 %v15729_v19  ;;  %v7117_v19 = vld [vmem:[%s16929_s7 + $0x1a90] sm:$0xff]  ;;  %v7166_v63 = vld [vmem:[%s16929_s7 + $0x1c18] sm:$0xff] }
 0x803   : > { %v15790_v47 = vcombine.low %v7117_v19, %v7121_v26 }
 0x804   : > { %13360 = vmatpush1.bf16.msra.mxu0 %v15726_v7  ;;  %v15784_v7 = vcombine.low %v7110_v62, %v7114_v49  ;;  %v7170_v62 = vld [vmem:[%s16929_s7 + $0x1c38] sm:$0xff] }
 0x805   : > { %13688 = vmatpush1.bf16.msra.mxu1 %v15728_v17  ;;  %13361 = vmatprep.subr.bf16.mxu0 %v15735_v40  ;;  %v15791_v17 = vcombine.high %v7117_v19, %v7121_v26  ;;  %v15793_v40 = vcombine.high %v7118_v29, %v7122_v55  ;;  %v7177_v19 = vld [vmem:[%s16929_s7 + $0x1c70] sm:$0xff] }
 0x806   : > { %13689 = vmatprep.subr.bf16.mxu1 %v15737_v25  ;;  %v7125_v25 = vld [vmem:[%s16929_s7 + $0x1ad0] sm:$0xff] }
 0x807   : > { %v15798_v36 = vcombine.low %v7125_v25, %v7129_v57 }
 0x808   : > { %13362 = vmatpush1.bf16.msra.mxu0 %v15734_v6  ;;  %v15792_v6 = vcombine.low %v7118_v29, %v7122_v55  ;;  %v7174_v29 = vld [vmem:[%s16929_s7 + $0x1c58] sm:$0xff] }
 0x809   : > { %13690 = vmatpush1.bf16.msra.mxu1 %v15736_v37  ;;  %13363 = vmatprep.subr.bf16.mxu0 %v15743_v10  ;;  %v15799_v37 = vcombine.high %v7125_v25, %v7129_v57  ;;  %v15801_v10 = vcombine.high %v7126_v5, %v7130_v43  ;;  %v7178_v55 = vld [vmem:[%s16929_s7 + $0x1c78] sm:$0xff] }
 0x80a   : > { %13691 = vmatprep.subr.bf16.mxu1 %v15745_v2  ;;  %v7133_v2 = vld [vmem:[%s16929_s7 + $0x1b10] sm:$0xff]  ;;  %v15849_v25 = vcombine.high %v7174_v29, %v7178_v55  ;;  %v7182_v57 = vld [vmem:[%s16929_s7 + $0x1c98] sm:$0xff] }
 0x80b   : > { %v15806_v11 = vcombine.low %v7133_v2, %v7137_v20 }
 0x80c   : > { %13364 = vmatpush1.bf16.msra.mxu0 %v15742_v35  ;;  %v15800_v35 = vcombine.low %v7126_v5, %v7130_v43  ;;  %v7186_v5 = vld [vmem:[%s16929_s7 + $0x1cb8] sm:$0xff] }
 0x80d   : > { %13692 = vmatpush1.bf16.msra.mxu1 %v15744_v15  ;;  %13365 = vmatprep.subr.bf16.mxu0 %v15751_v38  ;;  %v15807_v15 = vcombine.high %v7133_v2, %v7137_v20  ;;  %v15809_v38 = vcombine.high %v7134_v58, %v7138_v32  ;;  %v7193_v2 = vld [vmem:[%s16929_s7 + $0x1cf0] sm:$0xff]  ;;  %v7190_v20 = vld [vmem:[%s16929_s7 + $0x1cd8] sm:$0xff] }
 0x80e   : > { %13693 = vmatprep.subr.bf16.mxu1 %v15753_v50  ;;  %v7141_v50 = vld [vmem:[%s16929_s7 + $0x1b50] sm:$0xff] }
 0x80f   : > { %v15814_v27 = vcombine.low %v7141_v50, %v7145_v41 }
 0x810   : > { %13366 = vmatpush1.bf16.msra.mxu0 %v15750_v56  ;;  %v15808_v56 = vcombine.low %v7134_v58, %v7138_v32  ;;  %v15856_v32 = vcombine.low %v7182_v57, %v7186_v5 }
 0x811   : > { %13694 = vmatpush1.bf16.msra.mxu1 %v15752_v42  ;;  %13367 = vmatprep.subr.bf16.mxu0 %v15759_v31  ;;  %v15815_v42 = vcombine.high %v7141_v50, %v7145_v41  ;;  %v15817_v31 = vcombine.high %v7142_v24, %v7146_v23  ;;  %v7202_v50 = vld [vmem:[%s16929_s7 + $0x1d38] sm:$0xff] }
 0x812   : > { %13695 = vmatprep.subr.bf16.mxu1 %v15761_v8  ;;  %v7149_v8 = vld [vmem:[%s16929_s7 + $0x1b90] sm:$0xff] }
 0x813   : > { %v15822_v12 = vcombine.low %v7149_v8, %v7153_v60 }
 0x814   : > { %13368 = vmatpush1.bf16.msra.mxu0 %v15758_v53  ;;  %v15816_v53 = vcombine.low %v7142_v24, %v7146_v23 }
 0x815   : > { %13696 = vmatpush1.bf16.msra.mxu1 %v15760_v13  ;;  %13369 = vmatprep.subr.bf16.mxu0 %v15767_v28  ;;  %v15823_v13 = vcombine.high %v7149_v8, %v7153_v60  ;;  %v15825_v28 = vcombine.high %v7150_v44, %v7154_v48  ;;  %v7210_v8 = vld [vmem:[%s16929_s7 + $0x1d78] sm:$0xff] }
 0x816   : > { %13697 = vmatprep.subr.bf16.mxu1 %v15769_v45  ;;  %v7157_v45 = vld [vmem:[%s16929_s7 + $0x1bd0] sm:$0xff] }
 0x817   : > { %v15830_v49 = vcombine.low %v7157_v45, %v7161_v1 }
 0x818   : > { %13370 = vmatpush1.bf16.msra.mxu0 %v15766_v33  ;;  %v15824_v33 = vcombine.low %v7150_v44, %v7154_v48 }
 0x819   : > { %13698 = vmatpush1.bf16.msra.mxu1 %v15768_v3  ;;  %13371 = vmatprep.subr.bf16.mxu0 %v15775_v18  ;;  %v15831_v3 = vcombine.high %v7157_v45, %v7161_v1  ;;  %v15833_v18 = vcombine.high %v7158_v0, %v7162_v16  ;;  %v7218_v45 = vld [vmem:[%s16929_s7 + $0x1db8] sm:$0xff] }
 0x81a   : > { %13699 = vmatprep.subr.bf16.mxu1 %v15777_v52  ;;  %v7165_v52 = vld [vmem:[%s16929_s7 + $0x1c10] sm:$0xff] }
 0x81b   : > { %v15838_v26 = vcombine.low %v7165_v52, %v7169_v9 }
 0x81c   : > { %13372 = vmatpush1.bf16.msra.mxu0 %v15774_v54  ;;  %v15832_v54 = vcombine.low %v7158_v0, %v7162_v16 }
 0x81d   : > { %13700 = vmatpush1.bf16.msra.mxu1 %v15776_v22  ;;  %13373 = vmatprep.subr.bf16.mxu0 %v15783_v14  ;;  %v15839_v22 = vcombine.high %v7165_v52, %v7169_v9  ;;  %v15841_v14 = vcombine.high %v7166_v63, %v7170_v62  ;;  %v7226_v52 = vld [vmem:[%s16929_s7 + $0x1df8] sm:$0xff] }
 0x81e   : > { %13701 = vmatprep.subr.bf16.mxu1 %v15785_v61  ;;  %v7173_v61 = vld [vmem:[%s16929_s7 + $0x1c50] sm:$0xff] }
 0x81f   : > { %v15846_v43 = vcombine.low %v7173_v61, %v7177_v19 }
 0x820   : > { %13374 = vmatpush1.bf16.msra.mxu0 %v15782_v39  ;;  %v15840_v39 = vcombine.low %v7166_v63, %v7170_v62 }
 0x821   : > { %13702 = vmatpush1.bf16.msra.mxu1 %v15784_v7  ;;  %13375 = vmatprep.subr.bf16.mxu0 %v15791_v17  ;;  %v15847_v7 = vcombine.high %v7173_v61, %v7177_v19  ;;  %v7181_v17 = vld [vmem:[%s16929_s7 + $0x1c90] sm:$0xff]  ;;  %v7234_v61 = vld [vmem:[%s16929_s7 + $0x1e38] sm:$0xff] }
 0x822   : > { %13703 = vmatprep.subr.bf16.mxu1 %v15793_v40  ;;  %v7185_v40 = vld [vmem:[%s16929_s7 + $0x1cb0] sm:$0xff] }
 0x823   : > { %v15854_v58 = vcombine.low %v7181_v17, %v7185_v40 }
 0x824   : > { %13376 = vmatpush1.bf16.msra.mxu0 %v15790_v47  ;;  %v15848_v47 = vcombine.low %v7174_v29, %v7178_v55 }
 0x825   : > { %13704 = vmatpush1.bf16.msra.mxu1 %v15792_v6  ;;  %13377 = vmatprep.subr.bf16.mxu0 %v15799_v37  ;;  %v15855_v6 = vcombine.high %v7181_v17, %v7185_v40  ;;  %v15857_v37 = vcombine.high %v7182_v57, %v7186_v5  ;;  %v7238_v17 = vld [vmem:[%s16929_s7 + $0x1e58] sm:$0xff] }
 0x826   : > { %13705 = vmatprep.subr.bf16.mxu1 %v15801_v10  ;;  %v7189_v10 = vld [vmem:[%s16929_s7 + $0x1cd0] sm:$0xff]  ;;  %v7242_v40 = vld [vmem:[%s16929_s7 + $0x1e78] sm:$0xff] }
 0x827   : > { %v15862_v41 = vcombine.low %v7189_v10, %v7193_v2 }
 0x828   : > { %13378 = vmatpush1.bf16.msra.mxu0 %v15798_v36  ;;  %v15863_v36 = vcombine.high %v7189_v10, %v7193_v2  ;;  %v7250_v10 = vld [vmem:[%s16929_s7 + $0x1eb8] sm:$0xff] }
 0x829   : > { %13706 = vmatpush1.bf16.msra.mxu1 %v15800_v35  ;;  %13379 = vmatprep.subr.bf16.mxu0 %v15807_v15  ;;  %v7197_v35 = vld [vmem:[%s16929_s7 + $0x1d10] sm:$0xff] }
 0x82a   : > { %13707 = vmatprep.subr.bf16.mxu1 %v15809_v38  ;;  %v7201_v15 = vld [vmem:[%s16929_s7 + $0x1d30] sm:$0xff]  ;;  %v7198_v38 = vld [vmem:[%s16929_s7 + $0x1d18] sm:$0xff] }
 0x82b   : > { %v15871_v23 = vcombine.high %v7197_v35, %v7201_v15  ;;  %v15870_v60 = vcombine.low %v7197_v35, %v7201_v15  ;;  %v15872_v44 = vcombine.low %v7198_v38, %v7202_v50  ;;  %v7258_v35 = vld [vmem:[%s16929_s7 + $0x1ef8] sm:$0xff] }
 0x82c   : > { %13380 = vmatpush1.bf16.msra.mxu0 %v15806_v11  ;;  %v15873_v11 = vcombine.high %v7198_v38, %v7202_v50 }
 0x82d   : > { %13708 = vmatpush1.bf16.msra.mxu1 %v15808_v56  ;;  %13381 = vmatprep.subr.bf16.mxu0 %v15815_v42  ;;  %v7205_v56 = vld [vmem:[%s16929_s7 + $0x1d50] sm:$0xff] }
 0x82e   : > { %13709 = vmatprep.subr.bf16.mxu1 %v15817_v31  ;;  %v7209_v42 = vld [vmem:[%s16929_s7 + $0x1d70] sm:$0xff]  ;;  %v7206_v31 = vld [vmem:[%s16929_s7 + $0x1d58] sm:$0xff] }
 0x82f   : > { %v15879_v48 = vcombine.high %v7205_v56, %v7209_v42  ;;  %v15878_v1 = vcombine.low %v7205_v56, %v7209_v42  ;;  %v15880_v0 = vcombine.low %v7206_v31, %v7210_v8  ;;  %v7262_v56 = vld [vmem:[%s16929_s7 + $0x1f18] sm:$0xff] }
 0x830   : > { %13382 = vmatpush1.bf16.msra.mxu0 %v15814_v27  ;;  %v15881_v27 = vcombine.high %v7206_v31, %v7210_v8  ;;  %v7266_v42 = vld [vmem:[%s16929_s7 + $0x1f38] sm:$0xff] }
 0x831   : > { %13710 = vmatpush1.bf16.msra.mxu1 %v15816_v53  ;;  %13383 = vmatprep.subr.bf16.mxu0 %v15823_v13  ;;  %v7213_v53 = vld [vmem:[%s16929_s7 + $0x1d90] sm:$0xff] }
 0x832   : > { %13711 = vmatprep.subr.bf16.mxu1 %v15825_v28  ;;  %v7217_v13 = vld [vmem:[%s16929_s7 + $0x1db0] sm:$0xff]  ;;  %v7214_v28 = vld [vmem:[%s16929_s7 + $0x1d98] sm:$0xff] }
 0x833   : > { %v15887_v16 = vcombine.high %v7213_v53, %v7217_v13  ;;  %v15886_v9 = vcombine.low %v7213_v53, %v7217_v13  ;;  %v15888_v63 = vcombine.low %v7214_v28, %v7218_v45  ;;  %v7270_v13 = vld [vmem:[%s16929_s7 + $0x1f58] sm:$0xff] }
 0x834   : > { %13384 = vmatpush1.bf16.msra.mxu0 %v15822_v12  ;;  %v15889_v12 = vcombine.high %v7214_v28, %v7218_v45  ;;  %v7274_v28 = vld [vmem:[%s16929_s7 + $0x1f78] sm:$0xff] }
 0x835   : > { %13712 = vmatpush1.bf16.msra.mxu1 %v15824_v33  ;;  %13385 = vmatprep.subr.bf16.mxu0 %v15831_v3  ;;  %v7221_v33 = vld [vmem:[%s16929_s7 + $0x1dd0] sm:$0xff] }
 0x836   : > { %13713 = vmatprep.subr.bf16.mxu1 %v15833_v18  ;;  %v7225_v3 = vld [vmem:[%s16929_s7 + $0x1df0] sm:$0xff]  ;;  %v7222_v18 = vld [vmem:[%s16929_s7 + $0x1dd8] sm:$0xff] }
 0x837   : > { %v15895_v62 = vcombine.high %v7221_v33, %v7225_v3  ;;  %v15894_v19 = vcombine.low %v7221_v33, %v7225_v3  ;;  %v7281_v33 = vld [vmem:[%s16929_s7 + $0x1fb0] sm:$0xff] }
 0x838   : > { %13386 = vmatpush1.bf16.msra.mxu0 %v15830_v49  ;;  %v15897_v49 = vcombine.high %v7222_v18, %v7226_v52 }
 0x839   : > { %13714 = vmatpush1.bf16.msra.mxu1 %v15832_v54  ;;  %13396 = vmatprep.subr.bf16.mxu0 %v15839_v22  ;;  %v7229_v54 = vld [vmem:[%s16929_s7 + $0x1e10] sm:$0xff] }
 0x83a   : > { %13724 = vmatprep.subr.bf16.mxu1 %v15841_v14  ;;  %v7233_v22 = vld [vmem:[%s16929_s7 + $0x1e30] sm:$0xff]  ;;  %v7230_v14 = vld [vmem:[%s16929_s7 + $0x1e18] sm:$0xff] }
 0x83b   : > { %13388 = vmatmul.mubr.bf16.vlgmr.msra.gmra.mrb[4].mxu0 %v19467_v34  ;;  %v15903_v29 = vcombine.high %v7229_v54, %v7233_v22  ;;  %v15905_v55 = vcombine.high %v7230_v14, %v7234_v61  ;;  %v15904_v57 = vcombine.low %v7230_v14, %v7234_v61  ;;  %v7285_v14 = vld [vmem:[%s16929_s7 + $0x1fd0] sm:$0xff] }
 0x83c   : > { %13716 = vmatmul.mubr.bf16.vlgmr.msra.gmra.mrb[4].mxu1 %v19467_v34  ;;  %13397 = vmatpush1.bf16.msra.mxu0 %v15838_v26  ;;  %v7194_v34 = vld [vmem:[%s16929_s7 + $0x1cf8] sm:$0xff]  ;;  %v15896_v26 = vcombine.low %v7222_v18, %v7226_v52  ;;  %v7289_v61 = vld [vmem:[%s16929_s7 + $0x1ff0] sm:$0xff] }
 0x83d   : > { %13428 = vmatprep.mubr.bf16.mxu0 %v19474_v21  ;;  %13725 = vmatpush1.bf16.msra.mxu1 %v15840_v39  ;;  %v15864_v24 = vcombine.low %v7190_v20, %v7194_v34  ;;  %v7237_v39 = vld [vmem:[%s16929_s7 + $0x1e50] sm:$0xff]  ;;  %v7278_v18 = vld [vmem:[%s16929_s7 + $0x1f98] sm:$0xff] }
 0x83e   : > { %13756 = vmatprep.mubr.bf16.mxu1 %v19474_v21  ;;  %13398 = vmatprep.subr.bf16.mxu0 %v15847_v7  ;;  %v15865_v21 = vcombine.high %v7190_v20, %v7194_v34  ;;  %v7241_v7 = vld [vmem:[%s16929_s7 + $0x1e70] sm:$0xff]  ;;  %v15912_v20 = vcombine.low %v7238_v17, %v7242_v40  ;;  %v7282_v52 = vld [vmem:[%s16929_s7 + $0x1fb8] sm:$0xff] }
 0x83f   : > { %13726 = vmatprep.subr.bf16.mxu1 %v15849_v25  ;;  %v15902_v25 = vcombine.low %v7229_v54, %v7233_v22  ;;  %v15911_v5 = vcombine.high %v7237_v39, %v7241_v7  ;;  %v15910_v2 = vcombine.low %v7237_v39, %v7241_v7  ;;  %v15953_v22 = vcombine.high %v7278_v18, %v7282_v52 }
 0x840   : > { %13399 = vmatpush1.bf16.msra.mxu0 %v15846_v43  ;;  %v15913_v43 = vcombine.high %v7238_v17, %v7242_v40  ;;  %v15952_v7 = vcombine.low %v7278_v18, %v7282_v52  ;;  %v15959_v17 = vcombine.high %v7285_v14, %v7289_v61  ;;  %v16372_v18 = vld [vmem:[%s16939_s27 + $0xf8] sm:$0xff]  }
 0x841   : > { %13727 = vmatpush1.bf16.msra.mxu1 %v15848_v47  ;;  %13400 = vmatprep.subr.bf16.mxu0 %v15855_v6  ;;  %v7245_v47 = vld [vmem:[%s16929_s7 + $0x1e90] sm:$0xff]  ;;  %v16373_v52 = vld [vmem:[%s16939_s27 + $0x38] sm:$0xff]  }
 0x842   : > { %13728 = vmatprep.subr.bf16.mxu1 %v15857_v37  ;;  %v7249_v6 = vld [vmem:[%s16929_s7 + $0x1eb0] sm:$0xff]  ;;  %v7246_v37 = vld [vmem:[%s16929_s7 + $0x1e98] sm:$0xff] }
 0x843   : > { %v15919_v34 = vcombine.high %v7245_v47, %v7249_v6  ;;  %v15918_v15 = vcombine.low %v7245_v47, %v7249_v6  ;;  %v15920_v38 = vcombine.low %v7246_v37, %v7250_v10  ;;  %v16343_v47 = vld [vmem:[%s16939_s27 + $0x40] sm:$0xff]  }
 0x844   : > { %13401 = vmatpush1.bf16.msra.mxu0 %v15854_v58  ;;  %v15921_v58 = vcombine.high %v7246_v37, %v7250_v10  ;;  %v16344_v6 = vld [vmem:[%s16939_s27 + $0xc0] sm:$0xff]  }
 0x845   : > { %13729 = vmatpush1.bf16.msra.mxu1 %v15856_v32  ;;  %13402 = vmatprep.subr.bf16.mxu0 %v15863_v36  ;;  %v7253_v32 = vld [vmem:[%s16929_s7 + $0x1ed0] sm:$0xff] }
 0x846   : > { %13730 = vmatprep.subr.bf16.mxu1 %v15865_v21  ;;  %v7257_v36 = vld [vmem:[%s16929_s7 + $0x1ef0] sm:$0xff]  ;;  %v7254_v21 = vld [vmem:[%s16929_s7 + $0x1ed8] sm:$0xff] }
 0x847   : > { %v15927_v50 = vcombine.high %v7253_v32, %v7257_v36  ;;  %v15926_v31 = vcombine.low %v7253_v32, %v7257_v36  ;;  %v15928_v8 = vcombine.low %v7254_v21, %v7258_v35  ;;  %v16349_v32 = vld [vmem:[%s16939_s27 + $0x8] sm:$0xff]  }
 0x848   : > { %13403 = vmatpush1.bf16.msra.mxu0 %v15862_v41  ;;  %v15929_v41 = vcombine.high %v7254_v21, %v7258_v35  ;;  %v16350_v36 = vld [vmem:[%s16939_s27 + $0x88] sm:$0xff]   ;;  %v16351_v21 = vld [vmem:[%s16939_s27 + $0x50] sm:$0xff]  }
 0x849   : > { %13731 = vmatpush1.bf16.msra.mxu1 %v15864_v24  ;;  %13404 = vmatprep.subr.bf16.mxu0 %v15871_v23  ;;  %v7261_v24 = vld [vmem:[%s16929_s7 + $0x1f10] sm:$0xff]  ;;  %v16352_v35 = vld [vmem:[%s16939_s27 + $0xd0] sm:$0xff]  }
 0x84a   : > { %13732 = vmatprep.subr.bf16.mxu1 %v15873_v11  ;;  %v7265_v23 = vld [vmem:[%s16929_s7 + $0x1f30] sm:$0xff]  ;;  %v7293_v11 = vlaneseq }
 0x84b   : > { %v15934_v45 = vcombine.low %v7261_v24, %v7265_v23 }
 0x84c   : > { %13405 = vmatpush1.bf16.msra.mxu0 %v15870_v60  ;;  %v15935_v60 = vcombine.high %v7261_v24, %v7265_v23  ;;  %v20079_v53 = vshrl.u32 %v7293_v11, 7  ;;  %v16358_v24 = vld [vmem:[%s16939_s27 + $0x98] sm:$0xff]   ;;  %v16359_v23 = vld [vmem:[%s16939_s27 + $0x60] sm:$0xff]  }
 0x84d   : > { %13733 = vmatpush1.bf16.msra.mxu1 %v15872_v44  ;;  %13406 = vmatprep.subr.bf16.mxu0 %v15879_v48  ;;  %v15937_v44 = vcombine.high %v7262_v56, %v7266_v42  ;;  %v7269_v48 = vld [vmem:[%s16929_s7 + $0x1f50] sm:$0xff] }
 0x84e   : > { %13734 = vmatprep.subr.bf16.mxu1 %v15881_v27  ;;  %v7273_v27 = vld [vmem:[%s16929_s7 + $0x1f70] sm:$0xff]  ;;  %v7299_v3 = vsub.s32 1, %v20079_v53 }
 0x84f   : > { %v16360_v11 = vld [vmem:[%s16939_s27 + $0xe0] sm:$0xff]  }
 0x850   : > { %13407 = vmatpush1.bf16.msra.mxu0 %v15878_v1  ;;  %v15936_v1 = vcombine.low %v7262_v56, %v7266_v42  ;;  %v16361_v56 = vld [vmem:[%s16939_s27 + $0x20] sm:$0xff]   ;;  %v7295_v42 = vsub.s32 0, %v20079_v53 }
 0x851   : > { %13735 = vmatpush1.bf16.msra.mxu1 %v15880_v0  ;;  %13408 = vmatprep.subr.bf16.mxu0 %v15887_v16  ;;  %v15943_v0 = vcombine.high %v7269_v48, %v7273_v27  ;;  %v15945_v16 = vcombine.high %v7270_v13, %v7274_v28 }
 0x852   : > { %13736 = vmatprep.subr.bf16.mxu1 %v15889_v12  ;;  %v7277_v12 = vld [vmem:[%s16929_s7 + $0x1f90] sm:$0xff] }
 0x853   : > { %v15951_v54 = vcombine.high %v7277_v12, %v7281_v33  ;;  %v15950_v39 = vcombine.low %v7277_v12, %v7281_v33  ;;  %v16370_v12 = vld [vmem:[%s16939_s27 + $0xb0] sm:$0xff]   ;;  %v16371_v33 = vld [vmem:[%s16939_s27 + $0x78] sm:$0xff]  }
 0x854   : > { %13409 = vmatpush1.bf16.msra.mxu0 %v15886_v9  ;;  %v20089_v9 = vld [vmem:[%s16937_s16] sm:$0xff]  ;;  %s14617_s16 = sshll.u32 %s20277_s11, 1 }
 0x855   : > { %13737 = vmatpush1.bf16.msra.mxu1 %v15888_v63  ;;  %13410 = vmatprep.subr.bf16.mxu0 %v15895_v62  ;;  %v7307_v63 = vsub.s32 3, %v20079_v53  ;;  %v15942_v62 = vcombine.low %v7269_v48, %v7273_v27  ;;  %v16365_v48 = vld [vmem:[%s16939_s27 + $0x28] sm:$0xff]   ;;  %v7296_v27 = vrot.slane %v20089_v9, %v7295_v42  ;;  %s390_s12 = scalar_lea.vmem %s20205_s6, %s14617_s16 }
 0x856   : > { %13738 = vmatprep.subr.bf16.mxu1 %v15897_v49  ;;  %v15944_v49 = vcombine.low %v7270_v13, %v7274_v28  ;;  %v16366_v13 = vld [vmem:[%s16939_s27 + $0xa8] sm:$0xff]   ;;  %v16367_v28 = vld [vmem:[%s16939_s27 + $0x70] sm:$0xff]  }
 0x858   : > { %13411 = vmatpush1.bf16.msra.mxu0 %v15894_v19  ;;  %v7300_v19 = vrot.slane %v20089_v9, %v7299_v3 }
 0x859   : > { %13739 = vmatpush1.bf16.msra.mxu1 %v15896_v26  ;;  %13412 = vmatprep.subr.bf16.mxu0 %v15903_v29  ;;  %v7286_v26 = vld [vmem:[%s16929_s7 + $0x1fd8] sm:$0xff] }
 0x85a   : > { %13740 = vmatprep.subr.bf16.mxu1 %v15905_v55  ;;  %v7290_v29 = vld [vmem:[%s16929_s7 + $0x1ff8] sm:$0xff]  ;;  %v7308_v55 = vrot.slane %v20089_v9, %v7307_v63  ;;  %s345_s7 = scalar_lea.vmem [#allocation9], %s16926_s28 }
 0x85b   : > { %v15961_v40 = vcombine.high %v7286_v26, %v7290_v29 }
 0x85c   : > { %13413 = vmatpush1.bf16.msra.mxu0 %v15902_v25  ;;  %v16121_v25 = vadd.f32 %v19779_v46, %v7300_v19  ;;  %v16346_v46 = vld [vmem:[%s16939_s27 + $0x80] sm:$0xff]  }
 0x85d   : > { %13741 = vmatpush1.bf16.msra.mxu1 %v15904_v57  ;;  %13414 = vmatprep.subr.bf16.mxu0 %v15911_v5  ;;  %v16123_v57 = vadd.f32 %v19783_v30, %v7308_v55  ;;  %v15958_v5 = vcombine.low %v7285_v14, %v7289_v61  ;;  %v16347_v30 = vld [vmem:[%s16939_s27 + $0x48] sm:$0xff]   ;;  %v16378_v14 = vld [vmem:[%s16939_s27 + $0x180] sm:$0xff]  }
 0x85e   : > { %13742 = vmatprep.subr.bf16.mxu1 %v15913_v43  ;;  %v15960_v43 = vcombine.low %v7286_v26, %v7290_v29  ;;  %v13766_v37 = vmax.f32 %v16121_v25, 0.0  ;;  %v16379_v61 = vld [vmem:[%s16939_s27 + $0x148] sm:$0xff]   ;;  %v16387_v25 = vld [vmem:[%s16939_s27 + $0x158] sm:$0xff]  }
 0x85f   : > { %v13768_v10 = vmax.f32 %v16123_v57, 0.0  ;;  %v16380_v26 = vld [vmem:[%s16939_s27 + $0x1c8] sm:$0xff]   ;;  %v16388_v57 = vld [vmem:[%s16939_s27 + $0x1d8] sm:$0xff]  }
 0x860   : > { %13415 = vmatpush1.bf16.msra.mxu0 %v15910_v2  ;;  %v16345_v2 = vld [vmem:[%s16939_s27] sm:$0xff]   ;;  %v16381_v29 = vld [vmem:[%s16939_s27 + $0x108] sm:$0xff]  }
 0x861   : > { %13743 = vmatpush1.bf16.msra.mxu1 %v15912_v20  ;;  %13416 = vmatprep.subr.bf16.mxu0 %v15919_v34  ;;  %v13774_v20 = vpack.c.bf16 %v13766_v37, %v13766_v37  ;;  %v16348_v34 = vld [vmem:[%s16939_s27 + $0xc8] sm:$0xff]   ;;  %v16393_v37 = vld [vmem:[%s16939_s27 + $0x120] sm:$0xff]  }
 0x862   : > { %13744 = vmatprep.subr.bf16.mxu1 %v15921_v58  ;;  %v13776_v58 = vpack.c.bf16 %v13768_v10, %v13768_v10  ;;  %v16382_v55 = vld [vmem:[%s16939_s27 + $0x188] sm:$0xff]   ;;  %v16394_v10 = vld [vmem:[%s16939_s27 + $0x1a0] sm:$0xff]  }
 0x864   : > { %13417 = vmatpush1.bf16.msra.mxu0 %v15918_v15  ;;  %v16353_v15 = vld [vmem:[%s16939_s27 + $0x10] sm:$0xff]  }
 0x865   : > { %13745 = vmatpush1.bf16.msra.mxu1 %v15920_v38  ;;  %13418 = vmatprep.subr.bf16.mxu0 %v15927_v50  ;;  %v16355_v38 = vld [vmem:[%s16939_s27 + $0x58] sm:$0xff]  }
 0x866   : > { %13746 = vmatprep.subr.bf16.mxu1 %v15929_v41  ;;  %v16356_v50 = vld [vmem:[%s16939_s27 + $0xd8] sm:$0xff]  }
 0x867   : > { %v16357_v41 = vld [vmem:[%s16939_s27 + $0x18] sm:$0xff]  }
 0x868   : > { %13419 = vmatpush1.bf16.msra.mxu0 %v15926_v31  ;;  %v16362_v31 = vld [vmem:[%s16939_s27 + $0xa0] sm:$0xff]  }
 0x869   : > { %13747 = vmatpush1.bf16.msra.mxu1 %v15928_v8  ;;  %13420 = vmatprep.subr.bf16.mxu0 %v15935_v60  ;;  %v16363_v8 = vld [vmem:[%s16939_s27 + $0x68] sm:$0xff]   ;;  %v7303_v60 = vsub.s32 2, %v20079_v53 }
 0x86a   : > { %13748 = vmatprep.subr.bf16.mxu1 %v15937_v44  ;;  %v16364_v44 = vld [vmem:[%s16939_s27 + $0xe8] sm:$0xff]  }
 0x86c   : > { %13421 = vmatpush1.bf16.msra.mxu0 %v15934_v45  ;;  %v7304_v45 = vrot.slane %v20089_v9, %v7303_v60 }
 0x86d   : > { %13749 = vmatpush1.bf16.msra.mxu1 %v15936_v1  ;;  %13422 = vmatprep.subr.bf16.mxu0 %v15943_v0  ;;  %v16368_v1 = vld [vmem:[%s16939_s27 + $0xf0] sm:$0xff]  }
 0x86e   : > { %13750 = vmatprep.subr.bf16.mxu1 %v15945_v16  ;;  %v16369_v0 = vld [vmem:[%s16939_s27 + $0x30] sm:$0xff]   ;;  %v16120_v16 = vadd.f32 %v19773_v4, %v7296_v27  ;;  %v16122_v3 = vadd.f32 %v19777_v59, %v7304_v45  ;;  %v16375_v4 = vld [vmem:[%s16939_s27 + $0x140] sm:$0xff]  }
 0x870   : > { %13423 = vmatpush1.bf16.msra.mxu0 %v15942_v62  ;;  %v13765_v63 = vmax.f32 %v16120_v16, 0.0  ;;  %v16374_v62 = vld [vmem:[%s16939_s27 + $0xb8] sm:$0xff]  }
 0x871   : > { %13751 = vmatpush1.bf16.msra.mxu1 %v15944_v49  ;;  %13424 = vmatprep.subr.bf16.mxu0 %v15951_v54  ;;  %v13767_v49 = vmax.f32 %v16122_v3, 0.0  ;;  %v16376_v54 = vld [vmem:[%s16939_s27 + $0x1c0] sm:$0xff]  }
 0x872   : > { %13752 = vmatprep.subr.bf16.mxu1 %v15953_v22  ;;  %v16377_v22 = vld [vmem:[%s16939_s27 + $0x100] sm:$0xff]   ;;  %v13773_v59 = vpack.c.bf16 %v13765_v63, %v13765_v63 }
 0x873   : > { %v13775_v19 = vpack.c.bf16 %v13767_v49, %v13767_v49  ;;  %v15962_v49 = vld [vmem:[%s345_s7] ss:$0 sm:$0xff] }
 0x874   : > { %13425 = vmatpush1.bf16.msra.mxu0 %v15950_v39  ;;  %v16383_v39 = vld [vmem:[%s16939_s27 + $0x150] sm:$0xff]  }
 0x875   : > { %13753 = vmatpush1.bf16.msra.mxu1 %v15952_v7  ;;  %13426 = vmatprep.subr.bf16.mxu0 %v15959_v17  ;;  %v16384_v7 = vld [vmem:[%s16939_s27 + $0x1d0] sm:$0xff]  }
 0x876   : > { %13754 = vmatprep.subr.bf16.mxu1 %v15961_v40  ;;  %v16385_v17 = vld [vmem:[%s16939_s27 + $0x110] sm:$0xff]  }
 0x877   : > { %v16386_v40 = vld [vmem:[%s16939_s27 + $0x190] sm:$0xff]  }
 0x878   : > { %13427 = vmatpush1.bf16.msra.mxu0 %v15958_v5  ;;  %v16389_v5 = vld [vmem:[%s16939_s27 + $0x118] sm:$0xff]  }
 0x879   : > { %13755 = vmatpush1.bf16.msra.mxu1 %v15960_v43  ;;  %16032 = vmatprep.subr.bf16.mxu0 %v16343_v47  ;;  %v16390_v43 = vld [vmem:[%s16939_s27 + $0x198] sm:$0xff]   ;;  %v16391_v47 = vld [vmem:[%s16939_s27 + $0x160] sm:$0xff]  }
 0x87a   : > { %16054 = vmatprep.subr.bf16.mxu1 %v16344_v6  ;;  %v16392_v6 = vld [vmem:[%s16939_s27 + $0x1e0] sm:$0xff]  }
 0x87b   : > { %13429 = vmatmul.mubr.bf16.vlgmr.msra.gmra.mrb[4].mxu0 %v19543_v51 }
 0x87c   : > { %13757 = vmatmul.mubr.bf16.vlgmr.msra.gmra.mrb[4].mxu1 %v19543_v51  ;;  %16033 = vmatpush3.bf16.msra.mxu0 %v16345_v2  ;;  %v16354_v51 = vld [vmem:[%s16939_s27 + $0x90] sm:$0xff]   ;;  %v16395_v2 = vld [vmem:[%s16939_s27 + $0x168] sm:$0xff]  }
 0x87d   : > { %14332 = vmatprep.mubr.bf16.mxu0 %v13774_v20  ;;  %16055 = vmatpush3.bf16.msra.mxu1 %v16346_v46  ;;  %v16396_v46 = vld [vmem:[%s16939_s27 + $0x1e8] sm:$0xff]  }
 0x87e   : > { %14372 = vmatprep.mubr.bf16.mxu1 %v13776_v58  ;;  %16034 = vmatprep.subr.bf16.mxu0 %v16347_v30  ;;  %v16397_v30 = vld [vmem:[%s16939_s27 + $0x128] sm:$0xff]   ;;  %v16400_v58 = vld [vmem:[%s16939_s27 + $0x1f0] sm:$0xff]  }
 0x87f   : > { %16056 = vmatprep.subr.bf16.mxu1 %v16348_v34  ;;  %v16398_v20 = vld [vmem:[%s16939_s27 + $0x1a8] sm:$0xff]   ;;  %v16399_v34 = vld [vmem:[%s16939_s27 + $0x170] sm:$0xff]  }
 0x880   : > { %16035 = vmatpush3.bf16.msra.mxu0 %v16349_v32  ;;  %v16401_v32 = vld [vmem:[%s16939_s27 + $0x130] sm:$0xff]  }
 0x881   : > { %16057 = vmatpush3.bf16.msra.mxu1 %v16350_v36  ;;  %16036 = vmatprep.subr.bf16.mxu0 %v16351_v21  ;;  %v16402_v36 = vld [vmem:[%s16939_s27 + $0x1b0] sm:$0xff]   ;;  %v16403_v21 = vld [vmem:[%s16939_s27 + $0x178] sm:$0xff]  }
 0x882   : > { %16058 = vmatprep.subr.bf16.mxu1 %v16352_v35  ;;  %v16404_v35 = vld [vmem:[%s16939_s27 + $0x1f8] sm:$0xff]  }
 0x884   : > { %16037 = vmatpush3.bf16.msra.mxu0 %v16353_v15  ;;  %v16405_v15 = vld [vmem:[%s16939_s27 + $0x138] sm:$0xff]  }
 0x885   : > { %16059 = vmatpush3.bf16.msra.mxu1 %v16354_v51  ;;  %16038 = vmatprep.subr.bf16.mxu0 %v16355_v38  ;;  %v16406_v51 = vld [vmem:[%s16939_s27 + $0x1b8] sm:$0xff]   ;;  %v7311_v38 = vsub.s32 4, %v20079_v53 }
 0x886   : > { %16060 = vmatprep.subr.bf16.mxu1 %v16356_v50  ;;  %v7319_v50 = vsub.s32 6, %v20079_v53 }
 0x888   : > { %16039 = vmatpush3.bf16.msra.mxu0 %v16357_v41  ;;  %v7315_v41 = vsub.s32 5, %v20079_v53 }
 0x889   : > { %16061 = vmatpush3.bf16.msra.mxu1 %v16358_v24  ;;  %16040 = vmatprep.subr.bf16.mxu0 %v16359_v23  ;;  %v7323_v24 = vsub.s32 7, %v20079_v53  ;;  %v7312_v23 = vrot.slane %v20089_v9, %v7311_v38 }
 0x88a   : > { %16062 = vmatprep.subr.bf16.mxu1 %v16360_v11  ;;  %v7320_v11 = vrot.slane %v20089_v9, %v7319_v50 }
 0x88b   : > { %v7324_v42 = vrot.slane %v20089_v9, %v7323_v24 }
 0x88c   : > { %16041 = vmatpush3.bf16.msra.mxu0 %v16361_v56  ;;  %v7316_v56 = vrot.slane %v20089_v9, %v7315_v41 }
 0x88d   : > { %16063 = vmatpush3.bf16.msra.mxu1 %v16362_v31  ;;  %16042 = vmatprep.subr.bf16.mxu0 %v16363_v8 }
 0x88e   : > { %16064 = vmatprep.subr.bf16.mxu1 %v16364_v44 }
 0x890   : > { %16043 = vmatpush3.bf16.msra.mxu0 %v16365_v48 }
 0x891   : > { %16065 = vmatpush3.bf16.msra.mxu1 %v16366_v13  ;;  %16044 = vmatprep.subr.bf16.mxu0 %v16367_v28 }
 0x892   : > { %16066 = vmatprep.subr.bf16.mxu1 %v16368_v1 }
 0x894   : > { %16045 = vmatpush3.bf16.msra.mxu0 %v16369_v0 }
 0x895   : > { %16067 = vmatpush3.bf16.msra.mxu1 %v16370_v12  ;;  %16046 = vmatprep.subr.bf16.mxu0 %v16371_v33 }
 0x896   : > { %16068 = vmatprep.subr.bf16.mxu1 %v16372_v18 }
 0x898   : > { %16047 = vmatpush3.bf16.msra.mxu0 %v16373_v52 }
 0x899   : > { %16069 = vmatpush3.bf16.msra.mxu1 %v16374_v62  ;;  %16076 = vmatprep.subr.bf16.mxu0 %v16375_v4 }
 0x89a   : > { %16098 = vmatprep.subr.bf16.mxu1 %v16376_v54 }
 0x89b   : > { %14333 = vmatmul.mubr.bf16.vlgmr.msra.gmra.mrb[8].mxu0 %v13773_v59 }
 0x89c   : > { %14373 = vmatmul.mubr.bf16.vlgmr.msra.gmra.mrb[8].mxu1 %v13775_v19  ;;  %16077 = vmatpush3.bf16.msra.mxu0 %v16377_v22 }
 0x89d   : > { %16099 = vmatpush3.bf16.msra.mxu1 %v16378_v14  ;;  %16078 = vmatprep.subr.bf16.mxu0 %v16379_v61 }
 0x89e   : > { %16100 = vmatprep.subr.bf16.mxu1 %v16380_v26 }
 0x8a0   : > { %16079 = vmatpush3.bf16.msra.mxu0 %v16381_v29 }
 0x8a1   : > { %16101 = vmatpush3.bf16.msra.mxu1 %v16382_v55  ;;  %16080 = vmatprep.subr.bf16.mxu0 %v16383_v39 }
 0x8a2   : > { %16102 = vmatprep.subr.bf16.mxu1 %v16384_v7 }
 0x8a4   : > { %16081 = vmatpush3.bf16.msra.mxu0 %v16385_v17 }
 0x8a5   : > { %16103 = vmatpush3.bf16.msra.mxu1 %v16386_v40  ;;  %16082 = vmatprep.subr.bf16.mxu0 %v16387_v25 }
 0x8a6   : > { %16104 = vmatprep.subr.bf16.mxu1 %v16388_v57 }
 0x8a8   : > { %16083 = vmatpush3.bf16.msra.mxu0 %v16389_v5 }
 0x8a9   : > { %16105 = vmatpush3.bf16.msra.mxu1 %v16390_v43  ;;  %16084 = vmatprep.subr.bf16.mxu0 %v16391_v47 }
 0x8aa   : > { %16106 = vmatprep.subr.bf16.mxu1 %v16392_v6 }
 0x8ac   : > { %16085 = vmatpush3.bf16.msra.mxu0 %v16393_v37 }
 0x8ad   : > { %16107 = vmatpush3.bf16.msra.mxu1 %v16394_v10  ;;  %16086 = vmatprep.subr.bf16.mxu0 %v16395_v2 }
 0x8ae   : > { %16108 = vmatprep.subr.bf16.mxu1 %v16396_v46 }
 0x8b0   : > { %16087 = vmatpush3.bf16.msra.mxu0 %v16397_v30 }
 0x8b1   : > { %16109 = vmatpush3.bf16.msra.mxu1 %v16398_v20  ;;  %16088 = vmatprep.subr.bf16.mxu0 %v16399_v34 }
 0x8b2   : > { %16110 = vmatprep.subr.bf16.mxu1 %v16400_v58 }
 0x8b4   : > { %16089 = vmatpush3.bf16.msra.mxu0 %v16401_v32 }
 0x8b5   : > { %16111 = vmatpush3.bf16.msra.mxu1 %v16402_v36  ;;  %16090 = vmatprep.subr.bf16.mxu0 %v16403_v21 }
 0x8b6   : > { %16112 = vmatprep.subr.bf16.mxu1 %v16404_v35 }
 0x8b8   : > { %16091 = vmatpush3.bf16.msra.mxu0 %v16405_v15 }
 0x8b9   : > { %16113 = vmatpush3.bf16.msra.mxu1 %v16406_v51 }
 0x94e   : > { %v13430_v31 = vpop.f32.mrb[4].mxu0 }
 0x94f   : > { %v16124_v8 = vadd.f32 %v13430_v31, %v7312_v23  ;;  %v13758_v60 = vpop.f32.mrb[4].mxu1  ;;  %v13432_v44 = vpop.f32.mrb[5].mxu0 }
 0x950   : > { %v16126_v48 = vadd.f32 %v13758_v60, %v7320_v11  ;;  %v16125_v27 = vadd.f32 %v13432_v44, %v7316_v56  ;;  %v13760_v13 = vpop.f32.mrb[5].mxu1  ;;  %v13434_v28 = vpop.f32.mrb[6].mxu0 }
 0x951   : > { %v13769_v45 = vmax.f32 %v16124_v8, 0.0  ;;  %v16127_v1 = vadd.f32 %v13760_v13, %v7324_v42  ;;  %v13762_v0 = vpop.f32.mrb[6].mxu1  ;;  %v13435_v53 = vpop.f32.mrb[7].mxu0 }
 0x952   : > { %v13771_v16 = vmax.f32 %v16126_v48, 0.0  ;;  %v13770_v12 = vmax.f32 %v16125_v27, 0.0  ;;  %v13763_v33 = vpop.f32.mrb[7].mxu1 }
 0x953   : > { %v13772_v3 = vmax.f32 %v16127_v1, 0.0  ;;  %v13777_v52 = vpack.c.bf16 %v13769_v45, %v13769_v45 }
 0x954   : > { %v13778_v18 = vpack.c.bf16 %v13770_v12, %v13770_v12  ;;  %v13779_v63 = vpack.c.bf16 %v13771_v16, %v13771_v16 }
 0x955   : > { %v13780_v9 = vpack.c.bf16 %v13772_v3, %v13772_v3 }
 0x956   : > { %14412 = vmatprep.mubr.bf16.mxu0 %v13778_v18 }
 0x957   : > { %14452 = vmatprep.mubr.bf16.mxu1 %v13780_v9  ;;  %14413 = vmatmul.mubr.bf16.vlgmr.msra.gmra.mrb[12].mxu0 %v13777_v52 }
 0x958   : > { %14453 = vmatmul.mubr.bf16.vlgmr.msra.gmra.mrb[12].mxu1 %v13779_v63 }
 0x96e   : > { %v16048_v62 = vpop.f32.mrb[8].mxu0 }
 0x96f   : > { %v16070_v4 = vpop.f32.mrb[8].mxu1  ;;  %v16049_v54 = vpop.f32.mrb[9].mxu0 }
 0x970   : > { %v16050_v22 = vadd.f32 %v16049_v54, %v16048_v62  ;;  %v16071_v59 = vpop.f32.mrb[9].mxu1  ;;  %v16051_v14 = vpop.f32.mrb[10].mxu0 }
 0x971   : > { %v16072_v61 = vadd.f32 %v16071_v59, %v16070_v4  ;;  %v16073_v19 = vpop.f32.mrb[10].mxu1  ;;  %v16052_v26 = vpop.f32.mrb[11].mxu0 }
 0x972   : > { %v14335_v29 = vadd.f32 %v16050_v22, %v15962_v49  ;;  %v16074_v55 = vpop.f32.mrb[11].mxu1 }
 0x974   : > { %v14375_v39 = vadd.f32 %v16072_v61, %v14335_v29 }
 0xa2a   : > { %v16092_v7 = vpop.f32.mrb[12].mxu0 }
 0xa2b   : > { %v16114_v17 = vpop.f32.mrb[12].mxu1  ;;  %v16093_v40 = vpop.f32.mrb[13].mxu0 }
 0xa2c   : > { %v16094_v25 = vadd.f32 %v16093_v40, %v16092_v7  ;;  %v16115_v57 = vpop.f32.mrb[13].mxu1  ;;  %v16095_v5 = vpop.f32.mrb[14].mxu0 }
 0xa2d   : > { %v16116_v43 = vadd.f32 %v16115_v57, %v16114_v17  ;;  %v16117_v47 = vpop.f32.mrb[14].mxu1  ;;  %v16096_v6 = vpop.f32.mrb[15].mxu0 }
 0xa2e   : > { %v14415_v37 = vadd.f32 %v16094_v25, %v14375_v39  ;;  %v16118_v10 = vpop.f32.mrb[15].mxu1 }
 0xa30   : > { %v14455_v2 = vadd.f32 %v16116_v43, %v14415_v37 }
 0xa32   : > { %14460 = vst [vmem:[%s390_s12] sm:$0x3] %v14455_v2 }
 0xa33 PF: > { %s20271_s26 = sld [smem:[#allocation13_spill]]  ;;  %p20_p4 = scmp.ge.s32.totalorder %s16714_s25, 4  }
 0xa34   : > { %s20272_s21 = smov %s16637_s22  ;;  %s20273_s22 = smov %s16641_s23 }
 0xa35   : > { %s20275_s24 = smov %s16714_s25  ;;  %22 = sbr.rel (!%p20_p4) target bundleno = 9 (0x9), region = 124 }
 0xa39   : > { %s20274_s23 = smov %s20271_s26 }
 0xa3c   :  { %14480 = vsyncpa [#allocation3], 1 }
 0xa3d   :  { %14482 = vsyncpa [#allocation3 + $0x1], 1 }
 0xa3e   :  { %14483 = vsyncpa [#allocation5], 1 }
 0xa3f   :  { %14485 = vsyncpa [#allocation5 + $0x1], 1 }
 0xa40   :  { %14486 = vsyncpa [#allocation8], 1 }
 0xa41   :  { %14488 = vsyncpa [#allocation8 + $0x1], 1 }

</bundles_post_ra>
